<compile_context>
chip_gen: v7x
topology: tpu7x:2x2x1
jax: 0.10.0
libtpu: 0.0.40
codegen_flags: <defaults>
</compile_context>

<pallas_src>
import numpy as np
import jax
import jax.numpy as jnp
from jax.experimental import pallas as pl
from jax.experimental.pallas import tpu as pltpu

BN_EPS = 1e-5
KSIZE = 5
STRIDE = 2


def conv_out(d, k=KSIZE, s=STRIDE):
    return (d - (k - 1) - 1) // s + 1


def _round_up(x, m):
    return (x + m - 1) // m * m


# ------------------------------ host-side glue ------------------------------

def im2col_nchw(x, k, stride):
    """x: [N, C, H, W] -> patches [N*OH*OW, C*k*k].

    Columns ordered (c, di, dj) = torch Conv2d weight flatten order.
    Rows ordered (n, oh, ow) densely = n*(OH*OW) + oh*OW + ow.
    """
    N, C, H, W = x.shape
    OH = (H - k) // stride + 1
    OW = (W - k) // stride + 1
    cols = []
    for di in range(k):
        for dj in range(k):
            cols.append(x[:, :, di:di + stride * (OH - 1) + 1:stride,
                              dj:dj + stride * (OW - 1) + 1:stride])
    p = jnp.stack(cols, axis=2)              # [N, C, k*k, OH, OW]
    p = jnp.transpose(p, (0, 3, 4, 1, 2))    # [N, OH, OW, C, k*k]
    return p.reshape(N * OH * OW, C * k * k)


def _row_mask(rows, img_pitch, row_pitch, n, oh, ow):
    """[rows, 1] f32 mask: 1.0 where a padded-layout row is a real (n, oh, ow)."""
    r = np.arange(rows)
    rem = r % img_pitch
    valid = (r // img_pitch < n) & (rem // row_pitch < oh) & (rem % row_pitch < ow)
    return jnp.asarray(valid[:, None], jnp.float32)


# ------------------------------ parameters ----------------------------------

def init_params(key, width, height, outputs):
    k = KSIZE
    ks = jax.random.split(key, 5)

    OH1, OW1 = conv_out(height), conv_out(width)
    OH3, OW3 = conv_out(conv_out(OH1)), conv_out(conv_out(OW1))
    S3 = OH3 * OW3
    connections = S3 * 32              # == CNN.__get_connections__(width, height, 5, 2, 32)

    K1 = 3 * k * k
    K1P = _round_up(K1, 128)

    def normal(kk, shape):
        return 0.05 * jax.random.normal(kk, shape, jnp.float32)

    # torch-layout parameters ...
    w1_t = normal(ks[0], (16, 3, k, k))           # Conv2d(3, 16, 5, stride=2).weight
    w2_t = normal(ks[1], (32, 16, k, k))          # Conv2d(16, 32, 5, stride=2).weight
    w3_t = normal(ks[2], (32, 32, k, k))          # Conv2d(32, 32, 5, stride=2).weight
    wh_t = normal(ks[3], (outputs, connections))  # Linear(connections, outputs).weight
    bh_t = normal(ks[4], (outputs,))              # Linear bias

    # ... rearranged once (free) into kernel-friendly layouts, bf16 for the MXU.
    # w1: [K1P, 16], rows = (c_in, di, dj) matching the im2col column order.
    w1 = jnp.zeros((K1P, 16), jnp.float32).at[:K1, :].set(
        w1_t.reshape(16, K1).T).astype(jnp.bfloat16)
    # w2/w3: tap-major [25, C_in, C_out]
    w2 = w2_t.transpose(2, 3, 1, 0).reshape(k * k, 16, 32).astype(jnp.bfloat16)
    w3 = w3_t.transpose(2, 3, 1, 0).reshape(k * k, 32, 32).astype(jnp.bfloat16)
    # head: torch flatten index is c*S3 + (h3*OW3 + w3)  ->  [S3, 32, outputs]
    wh = wh_t.reshape(outputs, 32, S3).transpose(2, 1, 0).astype(jnp.bfloat16)

    return {
        "w1": w1, "w2": w2, "w3": w3,
        "wh": wh, "bh": bh_t.reshape(1, outputs),
        "g16": jnp.ones((1, 16), jnp.float32),
        "be16": jnp.zeros((1, 16), jnp.float32),
        "g32": jnp.ones((1, 32), jnp.float32),   # bn32 is shared by conv2 & conv3
        "be32": jnp.zeros((1, 32), jnp.float32),
        # NOTE: conv biases are intentionally omitted: training-mode BatchNorm
        # subtracts the batch mean, so they cancel exactly in forward().
    }


# ------------------------------ fused forward --------------------------------

def cnn_forward(x, params):
    N, C_in, H, W = x.shape
    OH1, OW1 = conv_out(H), conv_out(W)
    OH2, OW2 = conv_out(OH1), conv_out(OW1)
    OH3, OW3 = conv_out(OH2), conv_out(OW2)
    assert OH3 >= 1 and OW3 >= 1, "input too small for three stride-2 convs"

    # Shared row-pitch layout: activation row = n*P_l + oh*R + ow with R = OW1,
    # P1 = OH1*OW1 (dense layer-1 activation), P_{l+1} = P_l // 2.  Then a conv
    # tap (di, dj) of the next layer reads rows  2*dst_row + di*R + dj  -> one
    # stride-2 window per tap.  Rows that don't correspond to a real (n,oh,ow)
    # are computed but masked out of the BatchNorm statistics and never feed a
    # valid output row.
    R = OW1
    P1 = OH1 * OW1
    assert P1 % 4 == 0, "layout trick needs OH1*OW1 divisible by 4"
    P2, P3 = P1 // 2, P1 // 4

    M1 = N * P1                                   # layer-1 rows (all valid)
    Z2 = (N - 1) * P2 + (OH2 - 1) * R + OW2       # layer-2 rows incl. layout gaps
    Z3 = (N - 1) * P3 + (OH3 - 1) * R + OW3       # layer-3 rows incl. layout gaps
    M2v = N * OH2 * OW2                           # valid rows for BN stats
    M3v = N * OH3 * OW3

    K1 = C_in * KSIZE * KSIZE
    K1P = params["w1"].shape[0]
    outputs = params["wh"].shape[2]
    assert params["wh"].shape[0] == OH3 * OW3

    # Host: layer-1 im2col only (depends only on the input image); K padded to
    # a lane multiple, cast to bf16 for the MXU.
    p1 = im2col_nchw(x, KSIZE, STRIDE)
    p1 = jnp.pad(p1, ((0, 0), (0, K1P - K1))).astype(jnp.bfloat16)

    mask2 = _row_mask(Z2, P2, R, N, OH2, OW2)
    mask3 = _row_mask(Z3, P3, R, N, OH3, OW3)

    def kernel(p1_ref, w1_ref, w2_ref, w3_ref, wh_ref, bh_ref,
               g16_ref, be16_ref, g32_ref, be32_ref, m2_ref, m3_ref,
               out_ref, act1_ref, act2_ref, act3_ref):

        def bn_relu(z, gamma, beta, mask, count):
            # Training-mode BatchNorm (biased variance, like PyTorch), folded
            # into one scale/shift pass, then ReLU.  All math in f32.
            if mask is None:
                mean = jnp.mean(z, axis=0, keepdims=True)
                var = jnp.mean(jnp.square(z - mean), axis=0, keepdims=True)
            else:
                inv = 1.0 / count
                mean = jnp.sum(z * mask, axis=0, keepdims=True) * inv
                var = jnp.sum(jnp.square(z - mean) * mask, axis=0,
                              keepdims=True) * inv
            scale = gamma * jax.lax.rsqrt(var + BN_EPS)   # rsqrt -> EUP slot
            shift = beta - mean * scale
            return jnp.maximum(z * scale + shift, 0.0)

        def conv_taps(src_ref, w_ref, z_rows, c_out):
            # Direct stride-2 5x5 conv as a sum over the 25 taps: each tap is
            # one strided row-window load from VMEM + one bf16 MXU matmul,
            # accumulated in f32.
            acc = jnp.zeros((z_rows, c_out), jnp.float32)
            for di in range(KSIZE):
                for dj in range(KSIZE):
                    t = di * KSIZE + dj
                    win = src_ref[pl.ds(di * R + dj, z_rows, stride=STRIDE), :]
                    acc = acc + jnp.dot(win.astype(jnp.bfloat16), w_ref[t],
                                        preferred_element_type=jnp.float32)
            return acc

        # ---- layer 1: im2col matmul + bn16 + relu (rows are dense) ----------
        z1 = jnp.dot(p1_ref[...], w1_ref[...],
                     preferred_element_type=jnp.float32)            # [M1, 16]
        act1_ref[...] = bn_relu(z1, g16_ref[...], be16_ref[...], None, float(M1))

        # ---- layer 2: conv16x32 + bn32 + relu --------------------------------
        z2 = conv_taps(act1_ref, w2_ref, Z2, 32)                     # [Z2, 32]
        act2_ref[...] = bn_relu(z2, g32_ref[...], be32_ref[...],
                                m2_ref[...], float(M2v))

        # ---- layer 3: conv32x32 + bn32 (same module reused) + relu -----------
        z3 = conv_taps(act2_ref, w3_ref, Z3, 32)                     # [Z3, 32]
        act3_ref[...] = bn_relu(z3, g32_ref[...], be32_ref[...],
                                m3_ref[...], float(M3v))

        # ---- head: Linear over torch's NCHW .view(N, -1) ---------------------
        # The flatten permutation is pre-folded into wh (tap-major) at init.
        for n in range(N):
            acc = jnp.zeros((1, outputs), jnp.float32)
            for h3 in range(OH3):
                for w3 in range(OW3):
                    s = h3 * OW3 + w3
                    row = act3_ref[pl.ds(n * P3 + h3 * R + w3, 1), :]  # [1, 32]
                    acc = acc + jnp.dot(row.astype(jnp.bfloat16), wh_ref[s],
                                        preferred_element_type=jnp.float32)
            out_ref[pl.ds(n, 1), :] = acc + bh_ref[...]

    return pl.pallas_call(
        kernel,
        out_shape=jax.ShapeDtypeStruct((N, outputs), jnp.float32),
        # no grid: single invocation, whole (tiny) operands resident in VMEM,
        # no pipeline / double-buffering overhead.
        scratch_shapes=[
            pltpu.VMEM((M1, 16), jnp.float32),   # layer-1 activation
            pltpu.VMEM((Z2, 32), jnp.float32),   # layer-2 activation (row-pitch layout)
            pltpu.VMEM((Z3, 32), jnp.float32),   # layer-3 activation (row-pitch layout)
        ],
    )(p1, params["w1"], params["w2"], params["w3"], params["wh"], params["bh"],
      params["g16"], params["be16"], params["g32"], params["be32"],
      mask2, mask3)


# TODO(synk): the optional torchvision preprocessor (Compose/ToPILImage/Resize)
# is host-side image glue with no Pallas equivalent; it is not part of forward().

if __name__ == "__main__":
    key = jax.random.PRNGKey(0)
    k_x, k_p = jax.random.split(key)

    batch, width, height, outputs = 2, 40, 40, 6
    x = jax.random.uniform(k_x, (batch, 3, height, width), jnp.float32)

    params = init_params(k_p, width, height, outputs)

    out = jax.jit(cnn_forward)(x, params)
    out = jax.block_until_ready(out)

    assert out.shape == (batch, outputs), out.shape
    assert out.dtype == jnp.float32
    assert bool(jnp.all(jnp.isfinite(out)))
    print("KERNEL_OK")
</pallas_src>

<mosaic_0001>
module attributes {stable_mosaic.version = 11 : i64} {
  func.func @kernel(%arg0: memref<648x128xbf16, #tpu.memory_space<vmem>>, %arg1: memref<128x16xbf16, #tpu.memory_space<vmem>>, %arg2: memref<25x16x32xbf16, #tpu.memory_space<vmem>>, %arg3: memref<25x32x32xbf16, #tpu.memory_space<vmem>>, %arg4: memref<4x32x6xbf16, #tpu.memory_space<vmem>>, %arg5: memref<1x6xf32, #tpu.memory_space<vmem>>, %arg6: memref<1x16xf32, #tpu.memory_space<vmem>>, %arg7: memref<1x16xf32, #tpu.memory_space<vmem>>, %arg8: memref<1x32xf32, #tpu.memory_space<vmem>>, %arg9: memref<1x32xf32, #tpu.memory_space<vmem>>, %arg10: memref<277x1xf32, #tpu.memory_space<vmem>>, %arg11: memref<101x1xf32, #tpu.memory_space<vmem>>, %arg12: memref<2x6xf32, #tpu.memory_space<vmem>>, %arg13: memref<648x16xf32, #tpu.memory_space<vmem>>, %arg14: memref<277x32xf32, #tpu.memory_space<vmem>>, %arg15: memref<101x32xf32, #tpu.memory_space<vmem>>) attributes {dimension_semantics = [], scalar_prefetch = 0 : i64, scratch_operands = 3 : i64, tpu.core_type = #tpu.core_type<tc>} {
    %c0 = arith.constant 0 : index
    %c0_0 = arith.constant 0 : index
    %0 = vector.load %arg0[%c0, %c0_0] : memref<648x128xbf16, #tpu.memory_space<vmem>>, vector<648x128xbf16>
    %c0_1 = arith.constant 0 : index
    %c0_2 = arith.constant 0 : index
    %1 = vector.load %arg1[%c0_1, %c0_2] : memref<128x16xbf16, #tpu.memory_space<vmem>>, vector<128x16xbf16>
    %cst = arith.constant dense<0.000000e+00> : vector<648x16xf32>
    %2 = tpu.matmul %0, %1, %cst {dimension_numbers = #tpu.dot_dimension_numbers<[1], [0], [0], [1], [0, 0, 1, 1], [], []>} : vector<648x128xbf16>, vector<128x16xbf16>, vector<648x16xf32> -> vector<648x16xf32>
    %c0_3 = arith.constant 0 : index
    %c0_4 = arith.constant 0 : index
    %3 = vector.load %arg6[%c0_3, %c0_4] : memref<1x16xf32, #tpu.memory_space<vmem>>, vector<1x16xf32>
    %c0_5 = arith.constant 0 : index
    %c0_6 = arith.constant 0 : index
    %4 = vector.load %arg7[%c0_5, %c0_6] : memref<1x16xf32, #tpu.memory_space<vmem>>, vector<1x16xf32>
    %cst_7 = arith.constant dense<0.000000e+00> : vector<16xf32>
    %5 = vector.multi_reduction <add>, %2, %cst_7 [0] : vector<648x16xf32> to vector<16xf32>
    %6 = vector.shape_cast %5 : vector<16xf32> to vector<1x16xf32>
    %cst_8 = arith.constant 6.480000e+02 : f32
    %7 = vector.broadcast %cst_8 : f32 to vector<1x16xf32>
    %8 = arith.divf %6, %7 : vector<1x16xf32>
    %9 = vector.broadcast %8 : vector<1x16xf32> to vector<648x16xf32>
    %10 = arith.subf %2, %9 : vector<648x16xf32>
    %11 = arith.mulf %10, %10 : vector<648x16xf32>
    %cst_9 = arith.constant dense<0.000000e+00> : vector<16xf32>
    %12 = vector.multi_reduction <add>, %11, %cst_9 [0] : vector<648x16xf32> to vector<16xf32>
    %13 = vector.shape_cast %12 : vector<16xf32> to vector<1x16xf32>
    %cst_10 = arith.constant 6.480000e+02 : f32
    %14 = vector.broadcast %cst_10 : f32 to vector<1x16xf32>
    %15 = arith.divf %13, %14 : vector<1x16xf32>
    %cst_11 = arith.constant 9.99999974E-6 : f32
    %16 = vector.broadcast %cst_11 : f32 to vector<1x16xf32>
    %17 = arith.addf %15, %16 : vector<1x16xf32>
    %18 = math.rsqrt %17 : vector<1x16xf32>
    %19 = arith.mulf %3, %18 : vector<1x16xf32>
    %20 = arith.mulf %8, %19 : vector<1x16xf32>
    %21 = arith.subf %4, %20 : vector<1x16xf32>
    %22 = vector.broadcast %19 : vector<1x16xf32> to vector<648x16xf32>
    %23 = arith.mulf %2, %22 : vector<648x16xf32>
    %24 = vector.broadcast %21 : vector<1x16xf32> to vector<648x16xf32>
    %25 = arith.addf %23, %24 : vector<648x16xf32>
    %cst_12 = arith.constant 0.000000e+00 : f32
    %26 = vector.broadcast %cst_12 : f32 to vector<648x16xf32>
    %27 = arith.maximumf %25, %26 : vector<648x16xf32>
    %c0_13 = arith.constant 0 : index
    %c0_14 = arith.constant 0 : index
    %28 = vector.load %arg13[%c0_13, %c0_14] : memref<648x16xf32, #tpu.memory_space<vmem>>, vector<648x16xf32>
    tpu.vector_store %arg13[%c0_13, %c0_14], %27 {strides = array<i32>} : memref<648x16xf32, #tpu.memory_space<vmem>>, vector<648x16xf32>,
    %cst_15 = arith.constant 0.000000e+00 : f32
    %29 = vector.broadcast %cst_15 : f32 to vector<277x32xf32>
    %c0_16 = arith.constant 0 : index
    %c0_17 = arith.constant 0 : index
    %30 = tpu.strided_load %arg13[%c0_16, %c0_17] {strides = array<i32: 2, 1>} : memref<648x16xf32, #tpu.memory_space<vmem>>, vector<277x16xf32>
    %31 = arith.truncf %30 : vector<277x16xf32> to vector<277x16xbf16>
    %c0_18 = arith.constant 0 : index
    %c0_19 = arith.constant 0 : index
    %c0_20 = arith.constant 0 : index
    %32 = vector.load %arg2[%c0_18, %c0_19, %c0_20] : memref<25x16x32xbf16, #tpu.memory_space<vmem>>, vector<1x16x32xbf16>
    %33 = vector.shape_cast %32 : vector<1x16x32xbf16> to vector<16x32xbf16>
    %cst_21 = arith.constant dense<0.000000e+00> : vector<277x32xf32>
    %34 = tpu.matmul %31, %33, %cst_21 {dimension_numbers = #tpu.dot_dimension_numbers<[1], [0], [0], [1], [0, 0, 1, 1], [], []>} : vector<277x16xbf16>, vector<16x32xbf16>, vector<277x32xf32> -> vector<277x32xf32>
    %35 = arith.addf %29, %34 : vector<277x32xf32>
    %c1 = arith.constant 1 : index
    %c0_22 = arith.constant 0 : index
    %36 = tpu.strided_load %arg13[%c1, %c0_22] {strides = array<i32: 2, 1>} : memref<648x16xf32, #tpu.memory_space<vmem>>, vector<277x16xf32>
    %37 = arith.truncf %36 : vector<277x16xf32> to vector<277x16xbf16>
    %c1_23 = arith.constant 1 : index
    %c0_24 = arith.constant 0 : index
    %c0_25 = arith.constant 0 : index
    %38 = vector.load %arg2[%c1_23, %c0_24, %c0_25] : memref<25x16x32xbf16, #tpu.memory_space<vmem>>, vector<1x16x32xbf16>
    %39 = vector.shape_cast %38 : vector<1x16x32xbf16> to vector<16x32xbf16>
    %cst_26 = arith.constant dense<0.000000e+00> : vector<277x32xf32>
    %40 = tpu.matmul %37, %39, %cst_26 {dimension_numbers = #tpu.dot_dimension_numbers<[1], [0], [0], [1], [0, 0, 1, 1], [], []>} : vector<277x16xbf16>, vector<16x32xbf16>, vector<277x32xf32> -> vector<277x32xf32>
    %41 = arith.addf %35, %40 : vector<277x32xf32>
    %c2 = arith.constant 2 : index
    %c0_27 = arith.constant 0 : index
    %42 = tpu.strided_load %arg13[%c2, %c0_27] {strides = array<i32: 2, 1>} : memref<648x16xf32, #tpu.memory_space<vmem>>, vector<277x16xf32>
    %43 = arith.truncf %42 : vector<277x16xf32> to vector<277x16xbf16>
    %c2_28 = arith.constant 2 : index
    %c0_29 = arith.constant 0 : index
    %c0_30 = arith.constant 0 : index
    %44 = vector.load %arg2[%c2_28, %c0_29, %c0_30] : memref<25x16x32xbf16, #tpu.memory_space<vmem>>, vector<1x16x32xbf16>
    %45 = vector.shape_cast %44 : vector<1x16x32xbf16> to vector<16x32xbf16>
    %cst_31 = arith.constant dense<0.000000e+00> : vector<277x32xf32>
    %46 = tpu.matmul %43, %45, %cst_31 {dimension_numbers = #tpu.dot_dimension_numbers<[1], [0], [0], [1], [0, 0, 1, 1], [], []>} : vector<277x16xbf16>, vector<16x32xbf16>, vector<277x32xf32> -> vector<277x32xf32>
    %47 = arith.addf %41, %46 : vector<277x32xf32>
    %c3 = arith.constant 3 : index
    %c0_32 = arith.constant 0 : index
    %48 = tpu.strided_load %arg13[%c3, %c0_32] {strides = array<i32: 2, 1>} : memref<648x16xf32, #tpu.memory_space<vmem>>, vector<277x16xf32>
    %49 = arith.truncf %48 : vector<277x16xf32> to vector<277x16xbf16>
    %c3_33 = arith.constant 3 : index
    %c0_34 = arith.constant 0 : index
    %c0_35 = arith.constant 0 : index
    %50 = vector.load %arg2[%c3_33, %c0_34, %c0_35] : memref<25x16x32xbf16, #tpu.memory_space<vmem>>, vector<1x16x32xbf16>
    %51 = vector.shape_cast %50 : vector<1x16x32xbf16> to vector<16x32xbf16>
    %cst_36 = arith.constant dense<0.000000e+00> : vector<277x32xf32>
    %52 = tpu.matmul %49, %51, %cst_36 {dimension_numbers = #tpu.dot_dimension_numbers<[1], [0], [0], [1], [0, 0, 1, 1], [], []>} : vector<277x16xbf16>, vector<16x32xbf16>, vector<277x32xf32> -> vector<277x32xf32>
    %53 = arith.addf %47, %52 : vector<277x32xf32>
    %c4 = arith.constant 4 : index
    %c0_37 = arith.constant 0 : index
    %54 = tpu.strided_load %arg13[%c4, %c0_37] {strides = array<i32: 2, 1>} : memref<648x16xf32, #tpu.memory_space<vmem>>, vector<277x16xf32>
    %55 = arith.truncf %54 : vector<277x16xf32> to vector<277x16xbf16>
    %c4_38 = arith.constant 4 : index
    %c0_39 = arith.constant 0 : index
    %c0_40 = arith.constant 0 : index
    %56 = vector.load %arg2[%c4_38, %c0_39, %c0_40] : memref<25x16x32xbf16, #tpu.memory_space<vmem>>, vector<1x16x32xbf16>
    %57 = vector.shape_cast %56 : vector<1x16x32xbf16> to vector<16x32xbf16>
    %cst_41 = arith.constant dense<0.000000e+00> : vector<277x32xf32>
    %58 = tpu.matmul %55, %57, %cst_41 {dimension_numbers = #tpu.dot_dimension_numbers<[1], [0], [0], [1], [0, 0, 1, 1], [], []>} : vector<277x16xbf16>, vector<16x32xbf16>, vector<277x32xf32> -> vector<277x32xf32>
    %59 = arith.addf %53, %58 : vector<277x32xf32>
    %c18 = arith.constant 18 : index
    %c0_42 = arith.constant 0 : index
    %60 = tpu.strided_load %arg13[%c18, %c0_42] {strides = array<i32: 2, 1>} : memref<648x16xf32, #tpu.memory_space<vmem>>, vector<277x16xf32>
    %61 = arith.truncf %60 : vector<277x16xf32> to vector<277x16xbf16>
    %c5 = arith.constant 5 : index
    %c0_43 = arith.constant 0 : index
    %c0_44 = arith.constant 0 : index
    %62 = vector.load %arg2[%c5, %c0_43, %c0_44] : memref<25x16x32xbf16, #tpu.memory_space<vmem>>, vector<1x16x32xbf16>
    %63 = vector.shape_cast %62 : vector<1x16x32xbf16> to vector<16x32xbf16>
    %cst_45 = arith.constant dense<0.000000e+00> : vector<277x32xf32>
    %64 = tpu.matmul %61, %63, %cst_45 {dimension_numbers = #tpu.dot_dimension_numbers<[1], [0], [0], [1], [0, 0, 1, 1], [], []>} : vector<277x16xbf16>, vector<16x32xbf16>, vector<277x32xf32> -> vector<277x32xf32>
    %65 = arith.addf %59, %64 : vector<277x32xf32>
    %c19 = arith.constant 19 : index
    %c0_46 = arith.constant 0 : index
    %66 = tpu.strided_load %arg13[%c19, %c0_46] {strides = array<i32: 2, 1>} : memref<648x16xf32, #tpu.memory_space<vmem>>, vector<277x16xf32>
    %67 = arith.truncf %66 : vector<277x16xf32> to vector<277x16xbf16>
    %c6 = arith.constant 6 : index
    %c0_47 = arith.constant 0 : index
    %c0_48 = arith.constant 0 : index
    %68 = vector.load %arg2[%c6, %c0_47, %c0_48] : memref<25x16x32xbf16, #tpu.memory_space<vmem>>, vector<1x16x32xbf16>
    %69 = vector.shape_cast %68 : vector<1x16x32xbf16> to vector<16x32xbf16>
    %cst_49 = arith.constant dense<0.000000e+00> : vector<277x32xf32>
    %70 = tpu.matmul %67, %69, %cst_49 {dimension_numbers = #tpu.dot_dimension_numbers<[1], [0], [0], [1], [0, 0, 1, 1], [], []>} : vector<277x16xbf16>, vector<16x32xbf16>, vector<277x32xf32> -> vector<277x32xf32>
    %71 = arith.addf %65, %70 : vector<277x32xf32>
    %c20 = arith.constant 20 : index
    %c0_50 = arith.constant 0 : index
    %72 = tpu.strided_load %arg13[%c20, %c0_50] {strides = array<i32: 2, 1>} : memref<648x16xf32, #tpu.memory_space<vmem>>, vector<277x16xf32>
    %73 = arith.truncf %72 : vector<277x16xf32> to vector<277x16xbf16>
    %c7 = arith.constant 7 : index
    %c0_51 = arith.constant 0 : index
    %c0_52 = arith.constant 0 : index
    %74 = vector.load %arg2[%c7, %c0_51, %c0_52] : memref<25x16x32xbf16, #tpu.memory_space<vmem>>, vector<1x16x32xbf16>
    %75 = vector.shape_cast %74 : vector<1x16x32xbf16> to vector<16x32xbf16>
    %cst_53 = arith.constant dense<0.000000e+00> : vector<277x32xf32>
    %76 = tpu.matmul %73, %75, %cst_53 {dimension_numbers = #tpu.dot_dimension_numbers<[1], [0], [0], [1], [0, 0, 1, 1], [], []>} : vector<277x16xbf16>, vector<16x32xbf16>, vector<277x32xf32> -> vector<277x32xf32>
    %77 = arith.addf %71, %76 : vector<277x32xf32>
    %c21 = arith.constant 21 : index
    %c0_54 = arith.constant 0 : index
    %78 = tpu.strided_load %arg13[%c21, %c0_54] {strides = array<i32: 2, 1>} : memref<648x16xf32, #tpu.memory_space<vmem>>, vector<277x16xf32>
    %79 = arith.truncf %78 : vector<277x16xf32> to vector<277x16xbf16>
    %c8 = arith.constant 8 : index
    %c0_55 = arith.constant 0 : index
    %c0_56 = arith.constant 0 : index
    %80 = vector.load %arg2[%c8, %c0_55, %c0_56] : memref<25x16x32xbf16, #tpu.memory_space<vmem>>, vector<1x16x32xbf16>
    %81 = vector.shape_cast %80 : vector<1x16x32xbf16> to vector<16x32xbf16>
    %cst_57 = arith.constant dense<0.000000e+00> : vector<277x32xf32>
    %82 = tpu.matmul %79, %81, %cst_57 {dimension_numbers = #tpu.dot_dimension_numbers<[1], [0], [0], [1], [0, 0, 1, 1], [], []>} : vector<277x16xbf16>, vector<16x32xbf16>, vector<277x32xf32> -> vector<277x32xf32>
    %83 = arith.addf %77, %82 : vector<277x32xf32>
    %c22 = arith.constant 22 : index
    %c0_58 = arith.constant 0 : index
    %84 = tpu.strided_load %arg13[%c22, %c0_58] {strides = array<i32: 2, 1>} : memref<648x16xf32, #tpu.memory_space<vmem>>, vector<277x16xf32>
    %85 = arith.truncf %84 : vector<277x16xf32> to vector<277x16xbf16>
    %c9 = arith.constant 9 : index
    %c0_59 = arith.constant 0 : index
    %c0_60 = arith.constant 0 : index
    %86 = vector.load %arg2[%c9, %c0_59, %c0_60] : memref<25x16x32xbf16, #tpu.memory_space<vmem>>, vector<1x16x32xbf16>
    %87 = vector.shape_cast %86 : vector<1x16x32xbf16> to vector<16x32xbf16>
    %cst_61 = arith.constant dense<0.000000e+00> : vector<277x32xf32>
    %88 = tpu.matmul %85, %87, %cst_61 {dimension_numbers = #tpu.dot_dimension_numbers<[1], [0], [0], [1], [0, 0, 1, 1], [], []>} : vector<277x16xbf16>, vector<16x32xbf16>, vector<277x32xf32> -> vector<277x32xf32>
    %89 = arith.addf %83, %88 : vector<277x32xf32>
    %c36 = arith.constant 36 : index
    %c0_62 = arith.constant 0 : index
    %90 = tpu.strided_load %arg13[%c36, %c0_62] {strides = array<i32: 2, 1>} : memref<648x16xf32, #tpu.memory_space<vmem>>, vector<277x16xf32>
    %91 = arith.truncf %90 : vector<277x16xf32> to vector<277x16xbf16>
    %c10 = arith.constant 10 : index
    %c0_63 = arith.constant 0 : index
    %c0_64 = arith.constant 0 : index
    %92 = vector.load %arg2[%c10, %c0_63, %c0_64] : memref<25x16x32xbf16, #tpu.memory_space<vmem>>, vector<1x16x32xbf16>
    %93 = vector.shape_cast %92 : vector<1x16x32xbf16> to vector<16x32xbf16>
    %cst_65 = arith.constant dense<0.000000e+00> : vector<277x32xf32>
    %94 = tpu.matmul %91, %93, %cst_65 {dimension_numbers = #tpu.dot_dimension_numbers<[1], [0], [0], [1], [0, 0, 1, 1], [], []>} : vector<277x16xbf16>, vector<16x32xbf16>, vector<277x32xf32> -> vector<277x32xf32>
    %95 = arith.addf %89, %94 : vector<277x32xf32>
    %c37 = arith.constant 37 : index
    %c0_66 = arith.constant 0 : index
    %96 = tpu.strided_load %arg13[%c37, %c0_66] {strides = array<i32: 2, 1>} : memref<648x16xf32, #tpu.memory_space<vmem>>, vector<277x16xf32>
    %97 = arith.truncf %96 : vector<277x16xf32> to vector<277x16xbf16>
    %c11 = arith.constant 11 : index
    %c0_67 = arith.constant 0 : index
    %c0_68 = arith.constant 0 : index
    %98 = vector.load %arg2[%c11, %c0_67, %c0_68] : memref<25x16x32xbf16, #tpu.memory_space<vmem>>, vector<1x16x32xbf16>
    %99 = vector.shape_cast %98 : vector<1x16x32xbf16> to vector<16x32xbf16>
    %cst_69 = arith.constant dense<0.000000e+00> : vector<277x32xf32>
    %100 = tpu.matmul %97, %99, %cst_69 {dimension_numbers = #tpu.dot_dimension_numbers<[1], [0], [0], [1], [0, 0, 1, 1], [], []>} : vector<277x16xbf16>, vector<16x32xbf16>, vector<277x32xf32> -> vector<277x32xf32>
    %101 = arith.addf %95, %100 : vector<277x32xf32>
    %c38 = arith.constant 38 : index
    %c0_70 = arith.constant 0 : index
    %102 = tpu.strided_load %arg13[%c38, %c0_70] {strides = array<i32: 2, 1>} : memref<648x16xf32, #tpu.memory_space<vmem>>, vector<277x16xf32>
    %103 = arith.truncf %102 : vector<277x16xf32> to vector<277x16xbf16>
    %c12 = arith.constant 12 : index
    %c0_71 = arith.constant 0 : index
    %c0_72 = arith.constant 0 : index
    %104 = vector.load %arg2[%c12, %c0_71, %c0_72] : memref<25x16x32xbf16, #tpu.memory_space<vmem>>, vector<1x16x32xbf16>
    %105 = vector.shape_cast %104 : vector<1x16x32xbf16> to vector<16x32xbf16>
    %cst_73 = arith.constant dense<0.000000e+00> : vector<277x32xf32>
    %106 = tpu.matmul %103, %105, %cst_73 {dimension_numbers = #tpu.dot_dimension_numbers<[1], [0], [0], [1], [0, 0, 1, 1], [], []>} : vector<277x16xbf16>, vector<16x32xbf16>, vector<277x32xf32> -> vector<277x32xf32>
    %107 = arith.addf %101, %106 : vector<277x32xf32>
    %c39 = arith.constant 39 : index
    %c0_74 = arith.constant 0 : index
    %108 = tpu.strided_load %arg13[%c39, %c0_74] {strides = array<i32: 2, 1>} : memref<648x16xf32, #tpu.memory_space<vmem>>, vector<277x16xf32>
    %109 = arith.truncf %108 : vector<277x16xf32> to vector<277x16xbf16>
    %c13 = arith.constant 13 : index
    %c0_75 = arith.constant 0 : index
    %c0_76 = arith.constant 0 : index
    %110 = vector.load %arg2[%c13, %c0_75, %c0_76] : memref<25x16x32xbf16, #tpu.memory_space<vmem>>, vector<1x16x32xbf16>
    %111 = vector.shape_cast %110 : vector<1x16x32xbf16> to vector<16x32xbf16>
    %cst_77 = arith.constant dense<0.000000e+00> : vector<277x32xf32>
    %112 = tpu.matmul %109, %111, %cst_77 {dimension_numbers = #tpu.dot_dimension_numbers<[1], [0], [0], [1], [0, 0, 1, 1], [], []>} : vector<277x16xbf16>, vector<16x32xbf16>, vector<277x32xf32> -> vector<277x32xf32>
    %113 = arith.addf %107, %112 : vector<277x32xf32>
    %c40 = arith.constant 40 : index
    %c0_78 = arith.constant 0 : index
    %114 = tpu.strided_load %arg13[%c40, %c0_78] {strides = array<i32: 2, 1>} : memref<648x16xf32, #tpu.memory_space<vmem>>, vector<277x16xf32>
    %115 = arith.truncf %114 : vector<277x16xf32> to vector<277x16xbf16>
    %c14 = arith.constant 14 : index
    %c0_79 = arith.constant 0 : index
    %c0_80 = arith.constant 0 : index
    %116 = vector.load %arg2[%c14, %c0_79, %c0_80] : memref<25x16x32xbf16, #tpu.memory_space<vmem>>, vector<1x16x32xbf16>
    %117 = vector.shape_cast %116 : vector<1x16x32xbf16> to vector<16x32xbf16>
    %cst_81 = arith.constant dense<0.000000e+00> : vector<277x32xf32>
    %118 = tpu.matmul %115, %117, %cst_81 {dimension_numbers = #tpu.dot_dimension_numbers<[1], [0], [0], [1], [0, 0, 1, 1], [], []>} : vector<277x16xbf16>, vector<16x32xbf16>, vector<277x32xf32> -> vector<277x32xf32>
    %119 = arith.addf %113, %118 : vector<277x32xf32>
    %c54 = arith.constant 54 : index
    %c0_82 = arith.constant 0 : index
    %120 = tpu.strided_load %arg13[%c54, %c0_82] {strides = array<i32: 2, 1>} : memref<648x16xf32, #tpu.memory_space<vmem>>, vector<277x16xf32>
    %121 = arith.truncf %120 : vector<277x16xf32> to vector<277x16xbf16>
    %c15 = arith.constant 15 : index
    %c0_83 = arith.constant 0 : index
    %c0_84 = arith.constant 0 : index
    %122 = vector.load %arg2[%c15, %c0_83, %c0_84] : memref<25x16x32xbf16, #tpu.memory_space<vmem>>, vector<1x16x32xbf16>
    %123 = vector.shape_cast %122 : vector<1x16x32xbf16> to vector<16x32xbf16>
    %cst_85 = arith.constant dense<0.000000e+00> : vector<277x32xf32>
    %124 = tpu.matmul %121, %123, %cst_85 {dimension_numbers = #tpu.dot_dimension_numbers<[1], [0], [0], [1], [0, 0, 1, 1], [], []>} : vector<277x16xbf16>, vector<16x32xbf16>, vector<277x32xf32> -> vector<277x32xf32>
    %125 = arith.addf %119, %124 : vector<277x32xf32>
    %c55 = arith.constant 55 : index
    %c0_86 = arith.constant 0 : index
    %126 = tpu.strided_load %arg13[%c55, %c0_86] {strides = array<i32: 2, 1>} : memref<648x16xf32, #tpu.memory_space<vmem>>, vector<277x16xf32>
    %127 = arith.truncf %126 : vector<277x16xf32> to vector<277x16xbf16>
    %c16 = arith.constant 16 : index
    %c0_87 = arith.constant 0 : index
    %c0_88 = arith.constant 0 : index
    %128 = vector.load %arg2[%c16, %c0_87, %c0_88] : memref<25x16x32xbf16, #tpu.memory_space<vmem>>, vector<1x16x32xbf16>
    %129 = vector.shape_cast %128 : vector<1x16x32xbf16> to vector<16x32xbf16>
    %cst_89 = arith.constant dense<0.000000e+00> : vector<277x32xf32>
    %130 = tpu.matmul %127, %129, %cst_89 {dimension_numbers = #tpu.dot_dimension_numbers<[1], [0], [0], [1], [0, 0, 1, 1], [], []>} : vector<277x16xbf16>, vector<16x32xbf16>, vector<277x32xf32> -> vector<277x32xf32>
    %131 = arith.addf %125, %130 : vector<277x32xf32>
    %c56 = arith.constant 56 : index
    %c0_90 = arith.constant 0 : index
    %132 = tpu.strided_load %arg13[%c56, %c0_90] {strides = array<i32: 2, 1>} : memref<648x16xf32, #tpu.memory_space<vmem>>, vector<277x16xf32>
    %133 = arith.truncf %132 : vector<277x16xf32> to vector<277x16xbf16>
    %c17 = arith.constant 17 : index
    %c0_91 = arith.constant 0 : index
    %c0_92 = arith.constant 0 : index
    %134 = vector.load %arg2[%c17, %c0_91, %c0_92] : memref<25x16x32xbf16, #tpu.memory_space<vmem>>, vector<1x16x32xbf16>
    %135 = vector.shape_cast %134 : vector<1x16x32xbf16> to vector<16x32xbf16>
    %cst_93 = arith.constant dense<0.000000e+00> : vector<277x32xf32>
    %136 = tpu.matmul %133, %135, %cst_93 {dimension_numbers = #tpu.dot_dimension_numbers<[1], [0], [0], [1], [0, 0, 1, 1], [], []>} : vector<277x16xbf16>, vector<16x32xbf16>, vector<277x32xf32> -> vector<277x32xf32>
    %137 = arith.addf %131, %136 : vector<277x32xf32>
    %c57 = arith.constant 57 : index
    %c0_94 = arith.constant 0 : index
    %138 = tpu.strided_load %arg13[%c57, %c0_94] {strides = array<i32: 2, 1>} : memref<648x16xf32, #tpu.memory_space<vmem>>, vector<277x16xf32>
    %139 = arith.truncf %138 : vector<277x16xf32> to vector<277x16xbf16>
    %c18_95 = arith.constant 18 : index
    %c0_96 = arith.constant 0 : index
    %c0_97 = arith.constant 0 : index
    %140 = vector.load %arg2[%c18_95, %c0_96, %c0_97] : memref<25x16x32xbf16, #tpu.memory_space<vmem>>, vector<1x16x32xbf16>
    %141 = vector.shape_cast %140 : vector<1x16x32xbf16> to vector<16x32xbf16>
    %cst_98 = arith.constant dense<0.000000e+00> : vector<277x32xf32>
    %142 = tpu.matmul %139, %141, %cst_98 {dimension_numbers = #tpu.dot_dimension_numbers<[1], [0], [0], [1], [0, 0, 1, 1], [], []>} : vector<277x16xbf16>, vector<16x32xbf16>, vector<277x32xf32> -> vector<277x32xf32>
    %143 = arith.addf %137, %142 : vector<277x32xf32>
    %c58 = arith.constant 58 : index
    %c0_99 = arith.constant 0 : index
    %144 = tpu.strided_load %arg13[%c58, %c0_99] {strides = array<i32: 2, 1>} : memref<648x16xf32, #tpu.memory_space<vmem>>, vector<277x16xf32>
    %145 = arith.truncf %144 : vector<277x16xf32> to vector<277x16xbf16>
    %c19_100 = arith.constant 19 : index
    %c0_101 = arith.constant 0 : index
    %c0_102 = arith.constant 0 : index
    %146 = vector.load %arg2[%c19_100, %c0_101, %c0_102] : memref<25x16x32xbf16, #tpu.memory_space<vmem>>, vector<1x16x32xbf16>
    %147 = vector.shape_cast %146 : vector<1x16x32xbf16> to vector<16x32xbf16>
    %cst_103 = arith.constant dense<0.000000e+00> : vector<277x32xf32>
    %148 = tpu.matmul %145, %147, %cst_103 {dimension_numbers = #tpu.dot_dimension_numbers<[1], [0], [0], [1], [0, 0, 1, 1], [], []>} : vector<277x16xbf16>, vector<16x32xbf16>, vector<277x32xf32> -> vector<277x32xf32>
    %149 = arith.addf %143, %148 : vector<277x32xf32>
    %c72 = arith.constant 72 : index
    %c0_104 = arith.constant 0 : index
    %150 = tpu.strided_load %arg13[%c72, %c0_104] {strides = array<i32: 2, 1>} : memref<648x16xf32, #tpu.memory_space<vmem>>, vector<277x16xf32>
    %151 = arith.truncf %150 : vector<277x16xf32> to vector<277x16xbf16>
    %c20_105 = arith.constant 20 : index
    %c0_106 = arith.constant 0 : index
    %c0_107 = arith.constant 0 : index
    %152 = vector.load %arg2[%c20_105, %c0_106, %c0_107] : memref<25x16x32xbf16, #tpu.memory_space<vmem>>, vector<1x16x32xbf16>
    %153 = vector.shape_cast %152 : vector<1x16x32xbf16> to vector<16x32xbf16>
    %cst_108 = arith.constant dense<0.000000e+00> : vector<277x32xf32>
    %154 = tpu.matmul %151, %153, %cst_108 {dimension_numbers = #tpu.dot_dimension_numbers<[1], [0], [0], [1], [0, 0, 1, 1], [], []>} : vector<277x16xbf16>, vector<16x32xbf16>, vector<277x32xf32> -> vector<277x32xf32>
    %155 = arith.addf %149, %154 : vector<277x32xf32>
    %c73 = arith.constant 73 : index
    %c0_109 = arith.constant 0 : index
    %156 = tpu.strided_load %arg13[%c73, %c0_109] {strides = array<i32: 2, 1>} : memref<648x16xf32, #tpu.memory_space<vmem>>, vector<277x16xf32>
    %157 = arith.truncf %156 : vector<277x16xf32> to vector<277x16xbf16>
    %c21_110 = arith.constant 21 : index
    %c0_111 = arith.constant 0 : index
    %c0_112 = arith.constant 0 : index
    %158 = vector.load %arg2[%c21_110, %c0_111, %c0_112] : memref<25x16x32xbf16, #tpu.memory_space<vmem>>, vector<1x16x32xbf16>
    %159 = vector.shape_cast %158 : vector<1x16x32xbf16> to vector<16x32xbf16>
    %cst_113 = arith.constant dense<0.000000e+00> : vector<277x32xf32>
    %160 = tpu.matmul %157, %159, %cst_113 {dimension_numbers = #tpu.dot_dimension_numbers<[1], [0], [0], [1], [0, 0, 1, 1], [], []>} : vector<277x16xbf16>, vector<16x32xbf16>, vector<277x32xf32> -> vector<277x32xf32>
    %161 = arith.addf %155, %160 : vector<277x32xf32>
    %c74 = arith.constant 74 : index
    %c0_114 = arith.constant 0 : index
    %162 = tpu.strided_load %arg13[%c74, %c0_114] {strides = array<i32: 2, 1>} : memref<648x16xf32, #tpu.memory_space<vmem>>, vector<277x16xf32>
    %163 = arith.truncf %162 : vector<277x16xf32> to vector<277x16xbf16>
    %c22_115 = arith.constant 22 : index
    %c0_116 = arith.constant 0 : index
    %c0_117 = arith.constant 0 : index
    %164 = vector.load %arg2[%c22_115, %c0_116, %c0_117] : memref<25x16x32xbf16, #tpu.memory_space<vmem>>, vector<1x16x32xbf16>
    %165 = vector.shape_cast %164 : vector<1x16x32xbf16> to vector<16x32xbf16>
    %cst_118 = arith.constant dense<0.000000e+00> : vector<277x32xf32>
    %166 = tpu.matmul %163, %165, %cst_118 {dimension_numbers = #tpu.dot_dimension_numbers<[1], [0], [0], [1], [0, 0, 1, 1], [], []>} : vector<277x16xbf16>, vector<16x32xbf16>, vector<277x32xf32> -> vector<277x32xf32>
    %167 = arith.addf %161, %166 : vector<277x32xf32>
    %c75 = arith.constant 75 : index
    %c0_119 = arith.constant 0 : index
    %168 = tpu.strided_load %arg13[%c75, %c0_119] {strides = array<i32: 2, 1>} : memref<648x16xf32, #tpu.memory_space<vmem>>, vector<277x16xf32>
    %169 = arith.truncf %168 : vector<277x16xf32> to vector<277x16xbf16>
    %c23 = arith.constant 23 : index
    %c0_120 = arith.constant 0 : index
    %c0_121 = arith.constant 0 : index
    %170 = vector.load %arg2[%c23, %c0_120, %c0_121] : memref<25x16x32xbf16, #tpu.memory_space<vmem>>, vector<1x16x32xbf16>
    %171 = vector.shape_cast %170 : vector<1x16x32xbf16> to vector<16x32xbf16>
    %cst_122 = arith.constant dense<0.000000e+00> : vector<277x32xf32>
    %172 = tpu.matmul %169, %171, %cst_122 {dimension_numbers = #tpu.dot_dimension_numbers<[1], [0], [0], [1], [0, 0, 1, 1], [], []>} : vector<277x16xbf16>, vector<16x32xbf16>, vector<277x32xf32> -> vector<277x32xf32>
    %173 = arith.addf %167, %172 : vector<277x32xf32>
    %c76 = arith.constant 76 : index
    %c0_123 = arith.constant 0 : index
    %174 = tpu.strided_load %arg13[%c76, %c0_123] {strides = array<i32: 2, 1>} : memref<648x16xf32, #tpu.memory_space<vmem>>, vector<277x16xf32>
    %175 = arith.truncf %174 : vector<277x16xf32> to vector<277x16xbf16>
    %c24 = arith.constant 24 : index
    %c0_124 = arith.constant 0 : index
    %c0_125 = arith.constant 0 : index
    %176 = vector.load %arg2[%c24, %c0_124, %c0_125] : memref<25x16x32xbf16, #tpu.memory_space<vmem>>, vector<1x16x32xbf16>
    %177 = vector.shape_cast %176 : vector<1x16x32xbf16> to vector<16x32xbf16>
    %cst_126 = arith.constant dense<0.000000e+00> : vector<277x32xf32>
    %178 = tpu.matmul %175, %177, %cst_126 {dimension_numbers = #tpu.dot_dimension_numbers<[1], [0], [0], [1], [0, 0, 1, 1], [], []>} : vector<277x16xbf16>, vector<16x32xbf16>, vector<277x32xf32> -> vector<277x32xf32>
    %179 = arith.addf %173, %178 : vector<277x32xf32>
    %c0_127 = arith.constant 0 : index
    %c0_128 = arith.constant 0 : index
    %180 = vector.load %arg8[%c0_127, %c0_128] : memref<1x32xf32, #tpu.memory_space<vmem>>, vector<1x32xf32>
    %c0_129 = arith.constant 0 : index
    %c0_130 = arith.constant 0 : index
    %181 = vector.load %arg9[%c0_129, %c0_130] : memref<1x32xf32, #tpu.memory_space<vmem>>, vector<1x32xf32>
    %c0_131 = arith.constant 0 : index
    %c0_132 = arith.constant 0 : index
    %182 = vector.load %arg10[%c0_131, %c0_132] : memref<277x1xf32, #tpu.memory_space<vmem>>, vector<277x1xf32>
    %183 = vector.broadcast %182 : vector<277x1xf32> to vector<277x32xf32>
    %184 = arith.mulf %179, %183 : vector<277x32xf32>
    %cst_133 = arith.constant dense<0.000000e+00> : vector<32xf32>
    %185 = vector.multi_reduction <add>, %184, %cst_133 [0] : vector<277x32xf32> to vector<32xf32>
    %186 = vector.shape_cast %185 : vector<32xf32> to vector<1x32xf32>
    %cst_134 = arith.constant 0.0102040814 : f32
    %187 = vector.broadcast %cst_134 : f32 to vector<1x32xf32>
    %188 = arith.mulf %186, %187 : vector<1x32xf32>
    %189 = vector.broadcast %188 : vector<1x32xf32> to vector<277x32xf32>
    %190 = arith.subf %179, %189 : vector<277x32xf32>
    %191 = arith.mulf %190, %190 : vector<277x32xf32>
    %192 = vector.broadcast %182 : vector<277x1xf32> to vector<277x32xf32>
    %193 = arith.mulf %191, %192 : vector<277x32xf32>
    %cst_135 = arith.constant dense<0.000000e+00> : vector<32xf32>
    %194 = vector.multi_reduction <add>, %193, %cst_135 [0] : vector<277x32xf32> to vector<32xf32>
    %195 = vector.shape_cast %194 : vector<32xf32> to vector<1x32xf32>
    %cst_136 = arith.constant 0.0102040814 : f32
    %196 = vector.broadcast %cst_136 : f32 to vector<1x32xf32>
    %197 = arith.mulf %195, %196 : vector<1x32xf32>
    %cst_137 = arith.constant 9.99999974E-6 : f32
    %198 = vector.broadcast %cst_137 : f32 to vector<1x32xf32>
    %199 = arith.addf %197, %198 : vector<1x32xf32>
    %200 = math.rsqrt %199 : vector<1x32xf32>
    %201 = arith.mulf %180, %200 : vector<1x32xf32>
    %202 = arith.mulf %188, %201 : vector<1x32xf32>
    %203 = arith.subf %181, %202 : vector<1x32xf32>
    %204 = vector.broadcast %201 : vector<1x32xf32> to vector<277x32xf32>
    %205 = arith.mulf %179, %204 : vector<277x32xf32>
    %206 = vector.broadcast %203 : vector<1x32xf32> to vector<277x32xf32>
    %207 = arith.addf %205, %206 : vector<277x32xf32>
    %cst_138 = arith.constant 0.000000e+00 : f32
    %208 = vector.broadcast %cst_138 : f32 to vector<277x32xf32>
    %209 = arith.maximumf %207, %208 : vector<277x32xf32>
    %c0_139 = arith.constant 0 : index
    %c0_140 = arith.constant 0 : index
    %210 = vector.load %arg14[%c0_139, %c0_140] : memref<277x32xf32, #tpu.memory_space<vmem>>, vector<277x32xf32>
    tpu.vector_store %arg14[%c0_139, %c0_140], %209 {strides = array<i32>} : memref<277x32xf32, #tpu.memory_space<vmem>>, vector<277x32xf32>,
    %cst_141 = arith.constant 0.000000e+00 : f32
    %211 = vector.broadcast %cst_141 : f32 to vector<101x32xf32>
    %c0_142 = arith.constant 0 : index
    %c0_143 = arith.constant 0 : index
    %212 = tpu.strided_load %arg14[%c0_142, %c0_143] {strides = array<i32: 2, 1>} : memref<277x32xf32, #tpu.memory_space<vmem>>, vector<101x32xf32>
    %213 = arith.truncf %212 : vector<101x32xf32> to vector<101x32xbf16>
    %c0_144 = arith.constant 0 : index
    %c0_145 = arith.constant 0 : index
    %c0_146 = arith.constant 0 : index
    %214 = vector.load %arg3[%c0_144, %c0_145, %c0_146] : memref<25x32x32xbf16, #tpu.memory_space<vmem>>, vector<1x32x32xbf16>
    %215 = vector.shape_cast %214 : vector<1x32x32xbf16> to vector<32x32xbf16>
    %cst_147 = arith.constant dense<0.000000e+00> : vector<101x32xf32>
    %216 = tpu.matmul %213, %215, %cst_147 {dimension_numbers = #tpu.dot_dimension_numbers<[1], [0], [0], [1], [0, 0, 1, 1], [], []>} : vector<101x32xbf16>, vector<32x32xbf16>, vector<101x32xf32> -> vector<101x32xf32>
    %217 = arith.addf %211, %216 : vector<101x32xf32>
    %c1_148 = arith.constant 1 : index
    %c0_149 = arith.constant 0 : index
    %218 = tpu.strided_load %arg14[%c1_148, %c0_149] {strides = array<i32: 2, 1>} : memref<277x32xf32, #tpu.memory_space<vmem>>, vector<101x32xf32>
    %219 = arith.truncf %218 : vector<101x32xf32> to vector<101x32xbf16>
    %c1_150 = arith.constant 1 : index
    %c0_151 = arith.constant 0 : index
    %c0_152 = arith.constant 0 : index
    %220 = vector.load %arg3[%c1_150, %c0_151, %c0_152] : memref<25x32x32xbf16, #tpu.memory_space<vmem>>, vector<1x32x32xbf16>
    %221 = vector.shape_cast %220 : vector<1x32x32xbf16> to vector<32x32xbf16>
    %cst_153 = arith.constant dense<0.000000e+00> : vector<101x32xf32>
    %222 = tpu.matmul %219, %221, %cst_153 {dimension_numbers = #tpu.dot_dimension_numbers<[1], [0], [0], [1], [0, 0, 1, 1], [], []>} : vector<101x32xbf16>, vector<32x32xbf16>, vector<101x32xf32> -> vector<101x32xf32>
    %223 = arith.addf %217, %222 : vector<101x32xf32>
    %c2_154 = arith.constant 2 : index
    %c0_155 = arith.constant 0 : index
    %224 = tpu.strided_load %arg14[%c2_154, %c0_155] {strides = array<i32: 2, 1>} : memref<277x32xf32, #tpu.memory_space<vmem>>, vector<101x32xf32>
    %225 = arith.truncf %224 : vector<101x32xf32> to vector<101x32xbf16>
    %c2_156 = arith.constant 2 : index
    %c0_157 = arith.constant 0 : index
    %c0_158 = arith.constant 0 : index
    %226 = vector.load %arg3[%c2_156, %c0_157, %c0_158] : memref<25x32x32xbf16, #tpu.memory_space<vmem>>, vector<1x32x32xbf16>
    %227 = vector.shape_cast %226 : vector<1x32x32xbf16> to vector<32x32xbf16>
    %cst_159 = arith.constant dense<0.000000e+00> : vector<101x32xf32>
    %228 = tpu.matmul %225, %227, %cst_159 {dimension_numbers = #tpu.dot_dimension_numbers<[1], [0], [0], [1], [0, 0, 1, 1], [], []>} : vector<101x32xbf16>, vector<32x32xbf16>, vector<101x32xf32> -> vector<101x32xf32>
    %229 = arith.addf %223, %228 : vector<101x32xf32>
    %c3_160 = arith.constant 3 : index
    %c0_161 = arith.constant 0 : index
    %230 = tpu.strided_load %arg14[%c3_160, %c0_161] {strides = array<i32: 2, 1>} : memref<277x32xf32, #tpu.memory_space<vmem>>, vector<101x32xf32>
    %231 = arith.truncf %230 : vector<101x32xf32> to vector<101x32xbf16>
    %c3_162 = arith.constant 3 : index
    %c0_163 = arith.constant 0 : index
    %c0_164 = arith.constant 0 : index
    %232 = vector.load %arg3[%c3_162, %c0_163, %c0_164] : memref<25x32x32xbf16, #tpu.memory_space<vmem>>, vector<1x32x32xbf16>
    %233 = vector.shape_cast %232 : vector<1x32x32xbf16> to vector<32x32xbf16>
    %cst_165 = arith.constant dense<0.000000e+00> : vector<101x32xf32>
    %234 = tpu.matmul %231, %233, %cst_165 {dimension_numbers = #tpu.dot_dimension_numbers<[1], [0], [0], [1], [0, 0, 1, 1], [], []>} : vector<101x32xbf16>, vector<32x32xbf16>, vector<101x32xf32> -> vector<101x32xf32>
    %235 = arith.addf %229, %234 : vector<101x32xf32>
    %c4_166 = arith.constant 4 : index
    %c0_167 = arith.constant 0 : index
    %236 = tpu.strided_load %arg14[%c4_166, %c0_167] {strides = array<i32: 2, 1>} : memref<277x32xf32, #tpu.memory_space<vmem>>, vector<101x32xf32>
    %237 = arith.truncf %236 : vector<101x32xf32> to vector<101x32xbf16>
    %c4_168 = arith.constant 4 : index
    %c0_169 = arith.constant 0 : index
    %c0_170 = arith.constant 0 : index
    %238 = vector.load %arg3[%c4_168, %c0_169, %c0_170] : memref<25x32x32xbf16, #tpu.memory_space<vmem>>, vector<1x32x32xbf16>
    %239 = vector.shape_cast %238 : vector<1x32x32xbf16> to vector<32x32xbf16>
    %cst_171 = arith.constant dense<0.000000e+00> : vector<101x32xf32>
    %240 = tpu.matmul %237, %239, %cst_171 {dimension_numbers = #tpu.dot_dimension_numbers<[1], [0], [0], [1], [0, 0, 1, 1], [], []>} : vector<101x32xbf16>, vector<32x32xbf16>, vector<101x32xf32> -> vector<101x32xf32>
    %241 = arith.addf %235, %240 : vector<101x32xf32>
    %c18_172 = arith.constant 18 : index
    %c0_173 = arith.constant 0 : index
    %242 = tpu.strided_load %arg14[%c18_172, %c0_173] {strides = array<i32: 2, 1>} : memref<277x32xf32, #tpu.memory_space<vmem>>, vector<101x32xf32>
    %243 = arith.truncf %242 : vector<101x32xf32> to vector<101x32xbf16>
    %c5_174 = arith.constant 5 : index
    %c0_175 = arith.constant 0 : index
    %c0_176 = arith.constant 0 : index
    %244 = vector.load %arg3[%c5_174, %c0_175, %c0_176] : memref<25x32x32xbf16, #tpu.memory_space<vmem>>, vector<1x32x32xbf16>
    %245 = vector.shape_cast %244 : vector<1x32x32xbf16> to vector<32x32xbf16>
    %cst_177 = arith.constant dense<0.000000e+00> : vector<101x32xf32>
    %246 = tpu.matmul %243, %245, %cst_177 {dimension_numbers = #tpu.dot_dimension_numbers<[1], [0], [0], [1], [0, 0, 1, 1], [], []>} : vector<101x32xbf16>, vector<32x32xbf16>, vector<101x32xf32> -> vector<101x32xf32>
    %247 = arith.addf %241, %246 : vector<101x32xf32>
    %c19_178 = arith.constant 19 : index
    %c0_179 = arith.constant 0 : index
    %248 = tpu.strided_load %arg14[%c19_178, %c0_179] {strides = array<i32: 2, 1>} : memref<277x32xf32, #tpu.memory_space<vmem>>, vector<101x32xf32>
    %249 = arith.truncf %248 : vector<101x32xf32> to vector<101x32xbf16>
    %c6_180 = arith.constant 6 : index
    %c0_181 = arith.constant 0 : index
    %c0_182 = arith.constant 0 : index
    %250 = vector.load %arg3[%c6_180, %c0_181, %c0_182] : memref<25x32x32xbf16, #tpu.memory_space<vmem>>, vector<1x32x32xbf16>
    %251 = vector.shape_cast %250 : vector<1x32x32xbf16> to vector<32x32xbf16>
    %cst_183 = arith.constant dense<0.000000e+00> : vector<101x32xf32>
    %252 = tpu.matmul %249, %251, %cst_183 {dimension_numbers = #tpu.dot_dimension_numbers<[1], [0], [0], [1], [0, 0, 1, 1], [], []>} : vector<101x32xbf16>, vector<32x32xbf16>, vector<101x32xf32> -> vector<101x32xf32>
    %253 = arith.addf %247, %252 : vector<101x32xf32>
    %c20_184 = arith.constant 20 : index
    %c0_185 = arith.constant 0 : index
    %254 = tpu.strided_load %arg14[%c20_184, %c0_185] {strides = array<i32: 2, 1>} : memref<277x32xf32, #tpu.memory_space<vmem>>, vector<101x32xf32>
    %255 = arith.truncf %254 : vector<101x32xf32> to vector<101x32xbf16>
    %c7_186 = arith.constant 7 : index
    %c0_187 = arith.constant 0 : index
    %c0_188 = arith.constant 0 : index
    %256 = vector.load %arg3[%c7_186, %c0_187, %c0_188] : memref<25x32x32xbf16, #tpu.memory_space<vmem>>, vector<1x32x32xbf16>
    %257 = vector.shape_cast %256 : vector<1x32x32xbf16> to vector<32x32xbf16>
    %cst_189 = arith.constant dense<0.000000e+00> : vector<101x32xf32>
    %258 = tpu.matmul %255, %257, %cst_189 {dimension_numbers = #tpu.dot_dimension_numbers<[1], [0], [0], [1], [0, 0, 1, 1], [], []>} : vector<101x32xbf16>, vector<32x32xbf16>, vector<101x32xf32> -> vector<101x32xf32>
    %259 = arith.addf %253, %258 : vector<101x32xf32>
    %c21_190 = arith.constant 21 : index
    %c0_191 = arith.constant 0 : index
    %260 = tpu.strided_load %arg14[%c21_190, %c0_191] {strides = array<i32: 2, 1>} : memref<277x32xf32, #tpu.memory_space<vmem>>, vector<101x32xf32>
    %261 = arith.truncf %260 : vector<101x32xf32> to vector<101x32xbf16>
    %c8_192 = arith.constant 8 : index
    %c0_193 = arith.constant 0 : index
    %c0_194 = arith.constant 0 : index
    %262 = vector.load %arg3[%c8_192, %c0_193, %c0_194] : memref<25x32x32xbf16, #tpu.memory_space<vmem>>, vector<1x32x32xbf16>
    %263 = vector.shape_cast %262 : vector<1x32x32xbf16> to vector<32x32xbf16>
    %cst_195 = arith.constant dense<0.000000e+00> : vector<101x32xf32>
    %264 = tpu.matmul %261, %263, %cst_195 {dimension_numbers = #tpu.dot_dimension_numbers<[1], [0], [0], [1], [0, 0, 1, 1], [], []>} : vector<101x32xbf16>, vector<32x32xbf16>, vector<101x32xf32> -> vector<101x32xf32>
    %265 = arith.addf %259, %264 : vector<101x32xf32>
    %c22_196 = arith.constant 22 : index
    %c0_197 = arith.constant 0 : index
    %266 = tpu.strided_load %arg14[%c22_196, %c0_197] {strides = array<i32: 2, 1>} : memref<277x32xf32, #tpu.memory_space<vmem>>, vector<101x32xf32>
    %267 = arith.truncf %266 : vector<101x32xf32> to vector<101x32xbf16>
    %c9_198 = arith.constant 9 : index
    %c0_199 = arith.constant 0 : index
    %c0_200 = arith.constant 0 : index
    %268 = vector.load %arg3[%c9_198, %c0_199, %c0_200] : memref<25x32x32xbf16, #tpu.memory_space<vmem>>, vector<1x32x32xbf16>
    %269 = vector.shape_cast %268 : vector<1x32x32xbf16> to vector<32x32xbf16>
    %cst_201 = arith.constant dense<0.000000e+00> : vector<101x32xf32>
    %270 = tpu.matmul %267, %269, %cst_201 {dimension_numbers = #tpu.dot_dimension_numbers<[1], [0], [0], [1], [0, 0, 1, 1], [], []>} : vector<101x32xbf16>, vector<32x32xbf16>, vector<101x32xf32> -> vector<101x32xf32>
    %271 = arith.addf %265, %270 : vector<101x32xf32>
    %c36_202 = arith.constant 36 : index
    %c0_203 = arith.constant 0 : index
    %272 = tpu.strided_load %arg14[%c36_202, %c0_203] {strides = array<i32: 2, 1>} : memref<277x32xf32, #tpu.memory_space<vmem>>, vector<101x32xf32>
    %273 = arith.truncf %272 : vector<101x32xf32> to vector<101x32xbf16>
    %c10_204 = arith.constant 10 : index
    %c0_205 = arith.constant 0 : index
    %c0_206 = arith.constant 0 : index
    %274 = vector.load %arg3[%c10_204, %c0_205, %c0_206] : memref<25x32x32xbf16, #tpu.memory_space<vmem>>, vector<1x32x32xbf16>
    %275 = vector.shape_cast %274 : vector<1x32x32xbf16> to vector<32x32xbf16>
    %cst_207 = arith.constant dense<0.000000e+00> : vector<101x32xf32>
    %276 = tpu.matmul %273, %275, %cst_207 {dimension_numbers = #tpu.dot_dimension_numbers<[1], [0], [0], [1], [0, 0, 1, 1], [], []>} : vector<101x32xbf16>, vector<32x32xbf16>, vector<101x32xf32> -> vector<101x32xf32>
    %277 = arith.addf %271, %276 : vector<101x32xf32>
    %c37_208 = arith.constant 37 : index
    %c0_209 = arith.constant 0 : index
    %278 = tpu.strided_load %arg14[%c37_208, %c0_209] {strides = array<i32: 2, 1>} : memref<277x32xf32, #tpu.memory_space<vmem>>, vector<101x32xf32>
    %279 = arith.truncf %278 : vector<101x32xf32> to vector<101x32xbf16>
    %c11_210 = arith.constant 11 : index
    %c0_211 = arith.constant 0 : index
    %c0_212 = arith.constant 0 : index
    %280 = vector.load %arg3[%c11_210, %c0_211, %c0_212] : memref<25x32x32xbf16, #tpu.memory_space<vmem>>, vector<1x32x32xbf16>
    %281 = vector.shape_cast %280 : vector<1x32x32xbf16> to vector<32x32xbf16>
    %cst_213 = arith.constant dense<0.000000e+00> : vector<101x32xf32>
    %282 = tpu.matmul %279, %281, %cst_213 {dimension_numbers = #tpu.dot_dimension_numbers<[1], [0], [0], [1], [0, 0, 1, 1], [], []>} : vector<101x32xbf16>, vector<32x32xbf16>, vector<101x32xf32> -> vector<101x32xf32>
    %283 = arith.addf %277, %282 : vector<101x32xf32>
    %c38_214 = arith.constant 38 : index
    %c0_215 = arith.constant 0 : index
    %284 = tpu.strided_load %arg14[%c38_214, %c0_215] {strides = array<i32: 2, 1>} : memref<277x32xf32, #tpu.memory_space<vmem>>, vector<101x32xf32>
    %285 = arith.truncf %284 : vector<101x32xf32> to vector<101x32xbf16>
    %c12_216 = arith.constant 12 : index
    %c0_217 = arith.constant 0 : index
    %c0_218 = arith.constant 0 : index
    %286 = vector.load %arg3[%c12_216, %c0_217, %c0_218] : memref<25x32x32xbf16, #tpu.memory_space<vmem>>, vector<1x32x32xbf16>
    %287 = vector.shape_cast %286 : vector<1x32x32xbf16> to vector<32x32xbf16>
    %cst_219 = arith.constant dense<0.000000e+00> : vector<101x32xf32>
    %288 = tpu.matmul %285, %287, %cst_219 {dimension_numbers = #tpu.dot_dimension_numbers<[1], [0], [0], [1], [0, 0, 1, 1], [], []>} : vector<101x32xbf16>, vector<32x32xbf16>, vector<101x32xf32> -> vector<101x32xf32>
    %289 = arith.addf %283, %288 : vector<101x32xf32>
    %c39_220 = arith.constant 39 : index
    %c0_221 = arith.constant 0 : index
    %290 = tpu.strided_load %arg14[%c39_220, %c0_221] {strides = array<i32: 2, 1>} : memref<277x32xf32, #tpu.memory_space<vmem>>, vector<101x32xf32>
    %291 = arith.truncf %290 : vector<101x32xf32> to vector<101x32xbf16>
    %c13_222 = arith.constant 13 : index
    %c0_223 = arith.constant 0 : index
    %c0_224 = arith.constant 0 : index
    %292 = vector.load %arg3[%c13_222, %c0_223, %c0_224] : memref<25x32x32xbf16, #tpu.memory_space<vmem>>, vector<1x32x32xbf16>
    %293 = vector.shape_cast %292 : vector<1x32x32xbf16> to vector<32x32xbf16>
    %cst_225 = arith.constant dense<0.000000e+00> : vector<101x32xf32>
    %294 = tpu.matmul %291, %293, %cst_225 {dimension_numbers = #tpu.dot_dimension_numbers<[1], [0], [0], [1], [0, 0, 1, 1], [], []>} : vector<101x32xbf16>, vector<32x32xbf16>, vector<101x32xf32> -> vector<101x32xf32>
    %295 = arith.addf %289, %294 : vector<101x32xf32>
    %c40_226 = arith.constant 40 : index
    %c0_227 = arith.constant 0 : index
    %296 = tpu.strided_load %arg14[%c40_226, %c0_227] {strides = array<i32: 2, 1>} : memref<277x32xf32, #tpu.memory_space<vmem>>, vector<101x32xf32>
    %297 = arith.truncf %296 : vector<101x32xf32> to vector<101x32xbf16>
    %c14_228 = arith.constant 14 : index
    %c0_229 = arith.constant 0 : index
    %c0_230 = arith.constant 0 : index
    %298 = vector.load %arg3[%c14_228, %c0_229, %c0_230] : memref<25x32x32xbf16, #tpu.memory_space<vmem>>, vector<1x32x32xbf16>
    %299 = vector.shape_cast %298 : vector<1x32x32xbf16> to vector<32x32xbf16>
    %cst_231 = arith.constant dense<0.000000e+00> : vector<101x32xf32>
    %300 = tpu.matmul %297, %299, %cst_231 {dimension_numbers = #tpu.dot_dimension_numbers<[1], [0], [0], [1], [0, 0, 1, 1], [], []>} : vector<101x32xbf16>, vector<32x32xbf16>, vector<101x32xf32> -> vector<101x32xf32>
    %301 = arith.addf %295, %300 : vector<101x32xf32>
    %c54_232 = arith.constant 54 : index
    %c0_233 = arith.constant 0 : index
    %302 = tpu.strided_load %arg14[%c54_232, %c0_233] {strides = array<i32: 2, 1>} : memref<277x32xf32, #tpu.memory_space<vmem>>, vector<101x32xf32>
    %303 = arith.truncf %302 : vector<101x32xf32> to vector<101x32xbf16>
    %c15_234 = arith.constant 15 : index
    %c0_235 = arith.constant 0 : index
    %c0_236 = arith.constant 0 : index
    %304 = vector.load %arg3[%c15_234, %c0_235, %c0_236] : memref<25x32x32xbf16, #tpu.memory_space<vmem>>, vector<1x32x32xbf16>
    %305 = vector.shape_cast %304 : vector<1x32x32xbf16> to vector<32x32xbf16>
    %cst_237 = arith.constant dense<0.000000e+00> : vector<101x32xf32>
    %306 = tpu.matmul %303, %305, %cst_237 {dimension_numbers = #tpu.dot_dimension_numbers<[1], [0], [0], [1], [0, 0, 1, 1], [], []>} : vector<101x32xbf16>, vector<32x32xbf16>, vector<101x32xf32> -> vector<101x32xf32>
    %307 = arith.addf %301, %306 : vector<101x32xf32>
    %c55_238 = arith.constant 55 : index
    %c0_239 = arith.constant 0 : index
    %308 = tpu.strided_load %arg14[%c55_238, %c0_239] {strides = array<i32: 2, 1>} : memref<277x32xf32, #tpu.memory_space<vmem>>, vector<101x32xf32>
    %309 = arith.truncf %308 : vector<101x32xf32> to vector<101x32xbf16>
    %c16_240 = arith.constant 16 : index
    %c0_241 = arith.constant 0 : index
    %c0_242 = arith.constant 0 : index
    %310 = vector.load %arg3[%c16_240, %c0_241, %c0_242] : memref<25x32x32xbf16, #tpu.memory_space<vmem>>, vector<1x32x32xbf16>
    %311 = vector.shape_cast %310 : vector<1x32x32xbf16> to vector<32x32xbf16>
    %cst_243 = arith.constant dense<0.000000e+00> : vector<101x32xf32>
    %312 = tpu.matmul %309, %311, %cst_243 {dimension_numbers = #tpu.dot_dimension_numbers<[1], [0], [0], [1], [0, 0, 1, 1], [], []>} : vector<101x32xbf16>, vector<32x32xbf16>, vector<101x32xf32> -> vector<101x32xf32>
    %313 = arith.addf %307, %312 : vector<101x32xf32>
    %c56_244 = arith.constant 56 : index
    %c0_245 = arith.constant 0 : index
    %314 = tpu.strided_load %arg14[%c56_244, %c0_245] {strides = array<i32: 2, 1>} : memref<277x32xf32, #tpu.memory_space<vmem>>, vector<101x32xf32>
    %315 = arith.truncf %314 : vector<101x32xf32> to vector<101x32xbf16>
    %c17_246 = arith.constant 17 : index
    %c0_247 = arith.constant 0 : index
    %c0_248 = arith.constant 0 : index
    %316 = vector.load %arg3[%c17_246, %c0_247, %c0_248] : memref<25x32x32xbf16, #tpu.memory_space<vmem>>, vector<1x32x32xbf16>
    %317 = vector.shape_cast %316 : vector<1x32x32xbf16> to vector<32x32xbf16>
    %cst_249 = arith.constant dense<0.000000e+00> : vector<101x32xf32>
    %318 = tpu.matmul %315, %317, %cst_249 {dimension_numbers = #tpu.dot_dimension_numbers<[1], [0], [0], [1], [0, 0, 1, 1], [], []>} : vector<101x32xbf16>, vector<32x32xbf16>, vector<101x32xf32> -> vector<101x32xf32>
    %319 = arith.addf %313, %318 : vector<101x32xf32>
    %c57_250 = arith.constant 57 : index
    %c0_251 = arith.constant 0 : index
    %320 = tpu.strided_load %arg14[%c57_250, %c0_251] {strides = array<i32: 2, 1>} : memref<277x32xf32, #tpu.memory_space<vmem>>, vector<101x32xf32>
    %321 = arith.truncf %320 : vector<101x32xf32> to vector<101x32xbf16>
    %c18_252 = arith.constant 18 : index
    %c0_253 = arith.constant 0 : index
    %c0_254 = arith.constant 0 : index
    %322 = vector.load %arg3[%c18_252, %c0_253, %c0_254] : memref<25x32x32xbf16, #tpu.memory_space<vmem>>, vector<1x32x32xbf16>
    %323 = vector.shape_cast %322 : vector<1x32x32xbf16> to vector<32x32xbf16>
    %cst_255 = arith.constant dense<0.000000e+00> : vector<101x32xf32>
    %324 = tpu.matmul %321, %323, %cst_255 {dimension_numbers = #tpu.dot_dimension_numbers<[1], [0], [0], [1], [0, 0, 1, 1], [], []>} : vector<101x32xbf16>, vector<32x32xbf16>, vector<101x32xf32> -> vector<101x32xf32>
    %325 = arith.addf %319, %324 : vector<101x32xf32>
    %c58_256 = arith.constant 58 : index
    %c0_257 = arith.constant 0 : index
    %326 = tpu.strided_load %arg14[%c58_256, %c0_257] {strides = array<i32: 2, 1>} : memref<277x32xf32, #tpu.memory_space<vmem>>, vector<101x32xf32>
    %327 = arith.truncf %326 : vector<101x32xf32> to vector<101x32xbf16>
    %c19_258 = arith.constant 19 : index
    %c0_259 = arith.constant 0 : index
    %c0_260 = arith.constant 0 : index
    %328 = vector.load %arg3[%c19_258, %c0_259, %c0_260] : memref<25x32x32xbf16, #tpu.memory_space<vmem>>, vector<1x32x32xbf16>
    %329 = vector.shape_cast %328 : vector<1x32x32xbf16> to vector<32x32xbf16>
    %cst_261 = arith.constant dense<0.000000e+00> : vector<101x32xf32>
    %330 = tpu.matmul %327, %329, %cst_261 {dimension_numbers = #tpu.dot_dimension_numbers<[1], [0], [0], [1], [0, 0, 1, 1], [], []>} : vector<101x32xbf16>, vector<32x32xbf16>, vector<101x32xf32> -> vector<101x32xf32>
    %331 = arith.addf %325, %330 : vector<101x32xf32>
    %c72_262 = arith.constant 72 : index
    %c0_263 = arith.constant 0 : index
    %332 = tpu.strided_load %arg14[%c72_262, %c0_263] {strides = array<i32: 2, 1>} : memref<277x32xf32, #tpu.memory_space<vmem>>, vector<101x32xf32>
    %333 = arith.truncf %332 : vector<101x32xf32> to vector<101x32xbf16>
    %c20_264 = arith.constant 20 : index
    %c0_265 = arith.constant 0 : index
    %c0_266 = arith.constant 0 : index
    %334 = vector.load %arg3[%c20_264, %c0_265, %c0_266] : memref<25x32x32xbf16, #tpu.memory_space<vmem>>, vector<1x32x32xbf16>
    %335 = vector.shape_cast %334 : vector<1x32x32xbf16> to vector<32x32xbf16>
    %cst_267 = arith.constant dense<0.000000e+00> : vector<101x32xf32>
    %336 = tpu.matmul %333, %335, %cst_267 {dimension_numbers = #tpu.dot_dimension_numbers<[1], [0], [0], [1], [0, 0, 1, 1], [], []>} : vector<101x32xbf16>, vector<32x32xbf16>, vector<101x32xf32> -> vector<101x32xf32>
    %337 = arith.addf %331, %336 : vector<101x32xf32>
    %c73_268 = arith.constant 73 : index
    %c0_269 = arith.constant 0 : index
    %338 = tpu.strided_load %arg14[%c73_268, %c0_269] {strides = array<i32: 2, 1>} : memref<277x32xf32, #tpu.memory_space<vmem>>, vector<101x32xf32>
    %339 = arith.truncf %338 : vector<101x32xf32> to vector<101x32xbf16>
    %c21_270 = arith.constant 21 : index
    %c0_271 = arith.constant 0 : index
    %c0_272 = arith.constant 0 : index
    %340 = vector.load %arg3[%c21_270, %c0_271, %c0_272] : memref<25x32x32xbf16, #tpu.memory_space<vmem>>, vector<1x32x32xbf16>
    %341 = vector.shape_cast %340 : vector<1x32x32xbf16> to vector<32x32xbf16>
    %cst_273 = arith.constant dense<0.000000e+00> : vector<101x32xf32>
    %342 = tpu.matmul %339, %341, %cst_273 {dimension_numbers = #tpu.dot_dimension_numbers<[1], [0], [0], [1], [0, 0, 1, 1], [], []>} : vector<101x32xbf16>, vector<32x32xbf16>, vector<101x32xf32> -> vector<101x32xf32>
    %343 = arith.addf %337, %342 : vector<101x32xf32>
    %c74_274 = arith.constant 74 : index
    %c0_275 = arith.constant 0 : index
    %344 = tpu.strided_load %arg14[%c74_274, %c0_275] {strides = array<i32: 2, 1>} : memref<277x32xf32, #tpu.memory_space<vmem>>, vector<101x32xf32>
    %345 = arith.truncf %344 : vector<101x32xf32> to vector<101x32xbf16>
    %c22_276 = arith.constant 22 : index
    %c0_277 = arith.constant 0 : index
    %c0_278 = arith.constant 0 : index
    %346 = vector.load %arg3[%c22_276, %c0_277, %c0_278] : memref<25x32x32xbf16, #tpu.memory_space<vmem>>, vector<1x32x32xbf16>
    %347 = vector.shape_cast %346 : vector<1x32x32xbf16> to vector<32x32xbf16>
    %cst_279 = arith.constant dense<0.000000e+00> : vector<101x32xf32>
    %348 = tpu.matmul %345, %347, %cst_279 {dimension_numbers = #tpu.dot_dimension_numbers<[1], [0], [0], [1], [0, 0, 1, 1], [], []>} : vector<101x32xbf16>, vector<32x32xbf16>, vector<101x32xf32> -> vector<101x32xf32>
    %349 = arith.addf %343, %348 : vector<101x32xf32>
    %c75_280 = arith.constant 75 : index
    %c0_281 = arith.constant 0 : index
    %350 = tpu.strided_load %arg14[%c75_280, %c0_281] {strides = array<i32: 2, 1>} : memref<277x32xf32, #tpu.memory_space<vmem>>, vector<101x32xf32>
    %351 = arith.truncf %350 : vector<101x32xf32> to vector<101x32xbf16>
    %c23_282 = arith.constant 23 : index
    %c0_283 = arith.constant 0 : index
    %c0_284 = arith.constant 0 : index
    %352 = vector.load %arg3[%c23_282, %c0_283, %c0_284] : memref<25x32x32xbf16, #tpu.memory_space<vmem>>, vector<1x32x32xbf16>
    %353 = vector.shape_cast %352 : vector<1x32x32xbf16> to vector<32x32xbf16>
    %cst_285 = arith.constant dense<0.000000e+00> : vector<101x32xf32>
    %354 = tpu.matmul %351, %353, %cst_285 {dimension_numbers = #tpu.dot_dimension_numbers<[1], [0], [0], [1], [0, 0, 1, 1], [], []>} : vector<101x32xbf16>, vector<32x32xbf16>, vector<101x32xf32> -> vector<101x32xf32>
    %355 = arith.addf %349, %354 : vector<101x32xf32>
    %c76_286 = arith.constant 76 : index
    %c0_287 = arith.constant 0 : index
    %356 = tpu.strided_load %arg14[%c76_286, %c0_287] {strides = array<i32: 2, 1>} : memref<277x32xf32, #tpu.memory_space<vmem>>, vector<101x32xf32>
    %357 = arith.truncf %356 : vector<101x32xf32> to vector<101x32xbf16>
    %c24_288 = arith.constant 24 : index
    %c0_289 = arith.constant 0 : index
    %c0_290 = arith.constant 0 : index
    %358 = vector.load %arg3[%c24_288, %c0_289, %c0_290] : memref<25x32x32xbf16, #tpu.memory_space<vmem>>, vector<1x32x32xbf16>
    %359 = vector.shape_cast %358 : vector<1x32x32xbf16> to vector<32x32xbf16>
    %cst_291 = arith.constant dense<0.000000e+00> : vector<101x32xf32>
    %360 = tpu.matmul %357, %359, %cst_291 {dimension_numbers = #tpu.dot_dimension_numbers<[1], [0], [0], [1], [0, 0, 1, 1], [], []>} : vector<101x32xbf16>, vector<32x32xbf16>, vector<101x32xf32> -> vector<101x32xf32>
    %361 = arith.addf %355, %360 : vector<101x32xf32>
    %c0_292 = arith.constant 0 : index
    %c0_293 = arith.constant 0 : index
    %362 = vector.load %arg8[%c0_292, %c0_293] : memref<1x32xf32, #tpu.memory_space<vmem>>, vector<1x32xf32>
    %c0_294 = arith.constant 0 : index
    %c0_295 = arith.constant 0 : index
    %363 = vector.load %arg9[%c0_294, %c0_295] : memref<1x32xf32, #tpu.memory_space<vmem>>, vector<1x32xf32>
    %c0_296 = arith.constant 0 : index
    %c0_297 = arith.constant 0 : index
    %364 = vector.load %arg11[%c0_296, %c0_297] : memref<101x1xf32, #tpu.memory_space<vmem>>, vector<101x1xf32>
    %365 = vector.broadcast %364 : vector<101x1xf32> to vector<101x32xf32>
    %366 = arith.mulf %361, %365 : vector<101x32xf32>
    %cst_298 = arith.constant dense<0.000000e+00> : vector<32xf32>
    %367 = vector.multi_reduction <add>, %366, %cst_298 [0] : vector<101x32xf32> to vector<32xf32>
    %368 = vector.shape_cast %367 : vector<32xf32> to vector<1x32xf32>
    %cst_299 = arith.constant 1.250000e-01 : f32
    %369 = vector.broadcast %cst_299 : f32 to vector<1x32xf32>
    %370 = arith.mulf %368, %369 : vector<1x32xf32>
    %371 = vector.broadcast %370 : vector<1x32xf32> to vector<101x32xf32>
    %372 = arith.subf %361, %371 : vector<101x32xf32>
    %373 = arith.mulf %372, %372 : vector<101x32xf32>
    %374 = vector.broadcast %364 : vector<101x1xf32> to vector<101x32xf32>
    %375 = arith.mulf %373, %374 : vector<101x32xf32>
    %cst_300 = arith.constant dense<0.000000e+00> : vector<32xf32>
    %376 = vector.multi_reduction <add>, %375, %cst_300 [0] : vector<101x32xf32> to vector<32xf32>
    %377 = vector.shape_cast %376 : vector<32xf32> to vector<1x32xf32>
    %cst_301 = arith.constant 1.250000e-01 : f32
    %378 = vector.broadcast %cst_301 : f32 to vector<1x32xf32>
    %379 = arith.mulf %377, %378 : vector<1x32xf32>
    %cst_302 = arith.constant 9.99999974E-6 : f32
    %380 = vector.broadcast %cst_302 : f32 to vector<1x32xf32>
    %381 = arith.addf %379, %380 : vector<1x32xf32>
    %382 = math.rsqrt %381 : vector<1x32xf32>
    %383 = arith.mulf %362, %382 : vector<1x32xf32>
    %384 = arith.mulf %370, %383 : vector<1x32xf32>
    %385 = arith.subf %363, %384 : vector<1x32xf32>
    %386 = vector.broadcast %383 : vector<1x32xf32> to vector<101x32xf32>
    %387 = arith.mulf %361, %386 : vector<101x32xf32>
    %388 = vector.broadcast %385 : vector<1x32xf32> to vector<101x32xf32>
    %389 = arith.addf %387, %388 : vector<101x32xf32>
    %cst_303 = arith.constant 0.000000e+00 : f32
    %390 = vector.broadcast %cst_303 : f32 to vector<101x32xf32>
    %391 = arith.maximumf %389, %390 : vector<101x32xf32>
    %c0_304 = arith.constant 0 : index
    %c0_305 = arith.constant 0 : index
    %392 = vector.load %arg15[%c0_304, %c0_305] : memref<101x32xf32, #tpu.memory_space<vmem>>, vector<101x32xf32>
    tpu.vector_store %arg15[%c0_304, %c0_305], %391 {strides = array<i32>} : memref<101x32xf32, #tpu.memory_space<vmem>>, vector<101x32xf32>,
    %cst_306 = arith.constant 0.000000e+00 : f32
    %393 = vector.broadcast %cst_306 : f32 to vector<1x6xf32>
    %c0_307 = arith.constant 0 : index
    %c0_308 = arith.constant 0 : index
    %394 = vector.load %arg15[%c0_307, %c0_308] : memref<101x32xf32, #tpu.memory_space<vmem>>, vector<1x32xf32>
    %395 = arith.truncf %394 : vector<1x32xf32> to vector<1x32xbf16>
    %c0_309 = arith.constant 0 : index
    %c0_310 = arith.constant 0 : index
    %c0_311 = arith.constant 0 : index
    %396 = vector.load %arg4[%c0_309, %c0_310, %c0_311] : memref<4x32x6xbf16, #tpu.memory_space<vmem>>, vector<1x32x6xbf16>
    %397 = vector.shape_cast %396 : vector<1x32x6xbf16> to vector<32x6xbf16>
    %cst_312 = arith.constant dense<0.000000e+00> : vector<1x6xf32>
    %398 = tpu.matmul %395, %397, %cst_312 {dimension_numbers = #tpu.dot_dimension_numbers<[1], [0], [0], [1], [0, 0, 1, 1], [], []>} : vector<1x32xbf16>, vector<32x6xbf16>, vector<1x6xf32> -> vector<1x6xf32>
    %399 = arith.addf %393, %398 : vector<1x6xf32>
    %c1_313 = arith.constant 1 : index
    %c0_314 = arith.constant 0 : index
    %400 = vector.load %arg15[%c1_313, %c0_314] : memref<101x32xf32, #tpu.memory_space<vmem>>, vector<1x32xf32>
    %401 = arith.truncf %400 : vector<1x32xf32> to vector<1x32xbf16>
    %c1_315 = arith.constant 1 : index
    %c0_316 = arith.constant 0 : index
    %c0_317 = arith.constant 0 : index
    %402 = vector.load %arg4[%c1_315, %c0_316, %c0_317] : memref<4x32x6xbf16, #tpu.memory_space<vmem>>, vector<1x32x6xbf16>
    %403 = vector.shape_cast %402 : vector<1x32x6xbf16> to vector<32x6xbf16>
    %cst_318 = arith.constant dense<0.000000e+00> : vector<1x6xf32>
    %404 = tpu.matmul %401, %403, %cst_318 {dimension_numbers = #tpu.dot_dimension_numbers<[1], [0], [0], [1], [0, 0, 1, 1], [], []>} : vector<1x32xbf16>, vector<32x6xbf16>, vector<1x6xf32> -> vector<1x6xf32>
    %405 = arith.addf %399, %404 : vector<1x6xf32>
    %c18_319 = arith.constant 18 : index
    %c0_320 = arith.constant 0 : index
    %406 = vector.load %arg15[%c18_319, %c0_320] : memref<101x32xf32, #tpu.memory_space<vmem>>, vector<1x32xf32>
    %407 = arith.truncf %406 : vector<1x32xf32> to vector<1x32xbf16>
    %c2_321 = arith.constant 2 : index
    %c0_322 = arith.constant 0 : index
    %c0_323 = arith.constant 0 : index
    %408 = vector.load %arg4[%c2_321, %c0_322, %c0_323] : memref<4x32x6xbf16, #tpu.memory_space<vmem>>, vector<1x32x6xbf16>
    %409 = vector.shape_cast %408 : vector<1x32x6xbf16> to vector<32x6xbf16>
    %cst_324 = arith.constant dense<0.000000e+00> : vector<1x6xf32>
    %410 = tpu.matmul %407, %409, %cst_324 {dimension_numbers = #tpu.dot_dimension_numbers<[1], [0], [0], [1], [0, 0, 1, 1], [], []>} : vector<1x32xbf16>, vector<32x6xbf16>, vector<1x6xf32> -> vector<1x6xf32>
    %411 = arith.addf %405, %410 : vector<1x6xf32>
    %c19_325 = arith.constant 19 : index
    %c0_326 = arith.constant 0 : index
    %412 = vector.load %arg15[%c19_325, %c0_326] : memref<101x32xf32, #tpu.memory_space<vmem>>, vector<1x32xf32>
    %413 = arith.truncf %412 : vector<1x32xf32> to vector<1x32xbf16>
    %c3_327 = arith.constant 3 : index
    %c0_328 = arith.constant 0 : index
    %c0_329 = arith.constant 0 : index
    %414 = vector.load %arg4[%c3_327, %c0_328, %c0_329] : memref<4x32x6xbf16, #tpu.memory_space<vmem>>, vector<1x32x6xbf16>
    %415 = vector.shape_cast %414 : vector<1x32x6xbf16> to vector<32x6xbf16>
    %cst_330 = arith.constant dense<0.000000e+00> : vector<1x6xf32>
    %416 = tpu.matmul %413, %415, %cst_330 {dimension_numbers = #tpu.dot_dimension_numbers<[1], [0], [0], [1], [0, 0, 1, 1], [], []>} : vector<1x32xbf16>, vector<32x6xbf16>, vector<1x6xf32> -> vector<1x6xf32>
    %417 = arith.addf %411, %416 : vector<1x6xf32>
    %c0_331 = arith.constant 0 : index
    %c0_332 = arith.constant 0 : index
    %418 = vector.load %arg5[%c0_331, %c0_332] : memref<1x6xf32, #tpu.memory_space<vmem>>, vector<1x6xf32>
    %419 = arith.addf %417, %418 : vector<1x6xf32>
    %c0_333 = arith.constant 0 : index
    %c0_334 = arith.constant 0 : index
    %420 = vector.load %arg12[%c0_333, %c0_334] : memref<2x6xf32, #tpu.memory_space<vmem>>, vector<1x6xf32>
    tpu.vector_store %arg12[%c0_333, %c0_334], %419 {strides = array<i32>} : memref<2x6xf32, #tpu.memory_space<vmem>>, vector<1x6xf32>,
    %cst_335 = arith.constant 0.000000e+00 : f32
    %421 = vector.broadcast %cst_335 : f32 to vector<1x6xf32>
    %c81 = arith.constant 81 : index
    %c0_336 = arith.constant 0 : index
    %422 = vector.load %arg15[%c81, %c0_336] : memref<101x32xf32, #tpu.memory_space<vmem>>, vector<1x32xf32>
    %423 = arith.truncf %422 : vector<1x32xf32> to vector<1x32xbf16>
    %c0_337 = arith.constant 0 : index
    %c0_338 = arith.constant 0 : index
    %c0_339 = arith.constant 0 : index
    %424 = vector.load %arg4[%c0_337, %c0_338, %c0_339] : memref<4x32x6xbf16, #tpu.memory_space<vmem>>, vector<1x32x6xbf16>
    %425 = vector.shape_cast %424 : vector<1x32x6xbf16> to vector<32x6xbf16>
    %cst_340 = arith.constant dense<0.000000e+00> : vector<1x6xf32>
    %426 = tpu.matmul %423, %425, %cst_340 {dimension_numbers = #tpu.dot_dimension_numbers<[1], [0], [0], [1], [0, 0, 1, 1], [], []>} : vector<1x32xbf16>, vector<32x6xbf16>, vector<1x6xf32> -> vector<1x6xf32>
    %427 = arith.addf %421, %426 : vector<1x6xf32>
    %c82 = arith.constant 82 : index
    %c0_341 = arith.constant 0 : index
    %428 = vector.load %arg15[%c82, %c0_341] : memref<101x32xf32, #tpu.memory_space<vmem>>, vector<1x32xf32>
    %429 = arith.truncf %428 : vector<1x32xf32> to vector<1x32xbf16>
    %c1_342 = arith.constant 1 : index
    %c0_343 = arith.constant 0 : index
    %c0_344 = arith.constant 0 : index
    %430 = vector.load %arg4[%c1_342, %c0_343, %c0_344] : memref<4x32x6xbf16, #tpu.memory_space<vmem>>, vector<1x32x6xbf16>
    %431 = vector.shape_cast %430 : vector<1x32x6xbf16> to vector<32x6xbf16>
    %cst_345 = arith.constant dense<0.000000e+00> : vector<1x6xf32>
    %432 = tpu.matmul %429, %431, %cst_345 {dimension_numbers = #tpu.dot_dimension_numbers<[1], [0], [0], [1], [0, 0, 1, 1], [], []>} : vector<1x32xbf16>, vector<32x6xbf16>, vector<1x6xf32> -> vector<1x6xf32>
    %433 = arith.addf %427, %432 : vector<1x6xf32>
    %c99 = arith.constant 99 : index
    %c0_346 = arith.constant 0 : index
    %434 = vector.load %arg15[%c99, %c0_346] : memref<101x32xf32, #tpu.memory_space<vmem>>, vector<1x32xf32>
    %435 = arith.truncf %434 : vector<1x32xf32> to vector<1x32xbf16>
    %c2_347 = arith.constant 2 : index
    %c0_348 = arith.constant 0 : index
    %c0_349 = arith.constant 0 : index
    %436 = vector.load %arg4[%c2_347, %c0_348, %c0_349] : memref<4x32x6xbf16, #tpu.memory_space<vmem>>, vector<1x32x6xbf16>
    %437 = vector.shape_cast %436 : vector<1x32x6xbf16> to vector<32x6xbf16>
    %cst_350 = arith.constant dense<0.000000e+00> : vector<1x6xf32>
    %438 = tpu.matmul %435, %437, %cst_350 {dimension_numbers = #tpu.dot_dimension_numbers<[1], [0], [0], [1], [0, 0, 1, 1], [], []>} : vector<1x32xbf16>, vector<32x6xbf16>, vector<1x6xf32> -> vector<1x6xf32>
    %439 = arith.addf %433, %438 : vector<1x6xf32>
    %c100 = arith.constant 100 : index
    %c0_351 = arith.constant 0 : index
    %440 = vector.load %arg15[%c100, %c0_351] : memref<101x32xf32, #tpu.memory_space<vmem>>, vector<1x32xf32>
    %441 = arith.truncf %440 : vector<1x32xf32> to vector<1x32xbf16>
    %c3_352 = arith.constant 3 : index
    %c0_353 = arith.constant 0 : index
    %c0_354 = arith.constant 0 : index
    %442 = vector.load %arg4[%c3_352, %c0_353, %c0_354] : memref<4x32x6xbf16, #tpu.memory_space<vmem>>, vector<1x32x6xbf16>
    %443 = vector.shape_cast %442 : vector<1x32x6xbf16> to vector<32x6xbf16>
    %cst_355 = arith.constant dense<0.000000e+00> : vector<1x6xf32>
    %444 = tpu.matmul %441, %443, %cst_355 {dimension_numbers = #tpu.dot_dimension_numbers<[1], [0], [0], [1], [0, 0, 1, 1], [], []>} : vector<1x32xbf16>, vector<32x6xbf16>, vector<1x6xf32> -> vector<1x6xf32>
    %445 = arith.addf %439, %444 : vector<1x6xf32>
    %c0_356 = arith.constant 0 : index
    %c0_357 = arith.constant 0 : index
    %446 = vector.load %arg5[%c0_356, %c0_357] : memref<1x6xf32, #tpu.memory_space<vmem>>, vector<1x6xf32>
    %447 = arith.addf %445, %446 : vector<1x6xf32>
    %c1_358 = arith.constant 1 : index
    %c0_359 = arith.constant 0 : index
    %448 = vector.load %arg12[%c1_358, %c0_359] : memref<2x6xf32, #tpu.memory_space<vmem>>, vector<1x6xf32>
    tpu.vector_store %arg12[%c1_358, %c0_359], %447 {strides = array<i32>} : memref<2x6xf32, #tpu.memory_space<vmem>>, vector<1x6xf32>,
    return
  }
}

</mosaic_0001>

<bundles_post_ra>
// kernel: cnn_forward.1
= control target key start
LH: loop header
LB: loop body
LE: loop exit
PB: predicated region body
PF: predicated region fallthrough
CT: control target
= control target key end

     0   :  { %v25178_v1 = vmov 0.0   ;;  %vm21198_vm0 = vmmov 0   ;;  %s25165_s0 = inlined_call_operand.vmem [shape: bf16[648,128], index: 0, kind: input, shape index: {}]   ;;  %s25166_s1 = inlined_call_operand.vmem [shape: bf16[128,16], index: 1, kind: input, shape index: {}]   ;;  %s25167_s2 = inlined_call_operand.vmem [shape: bf16[25,16,32], index: 2, kind: input, shape index: {}]   ;;  %s25168_s3 = inlined_call_operand.vmem [shape: bf16[25,32,32], index: 3, kind: input, shape index: {}]   ;;  %s25169_s4 = inlined_call_operand.vmem [shape: bf16[4,32,6], index: 4, kind: input, shape index: {}]   ;;  %s25170_s5 = inlined_call_operand.vmem [shape: f32[1,6], index: 5, kind: input, shape index: {}]   ;;  %s25171_s6 = inlined_call_operand.vmem [shape: f32[1,16], index: 6, kind: input, shape index: {}]   ;;  %s25172_s7 = inlined_call_operand.vmem [shape: f32[1,16], index: 7, kind: input, shape index: {}]   ;;  %s25173_s8 = inlined_call_operand.vmem [shape: f32[1,32], index: 8, kind: input, shape index: {}]   ;;  %s25174_s9 = inlined_call_operand.vmem [shape: f32[1,32], index: 9, kind: input, shape index: {}]   ;;  %s25175_s10 = inlined_call_operand.vmem [shape: f32[277,1], index: 10, kind: input, shape index: {}]   ;;  %s25176_s11 = inlined_call_operand.vmem [shape: f32[101,1], index: 11, kind: input, shape index: {}]   ;;  %s25177_s12 = inlined_call_operand.hbm [shape: f32[2,6], index: 12, kind: output, shape index: {}]  }
   0x1   :  { %v21027_v0 = vld [vmem:[%s25166_s1] sm:$0xff]   ;;  %17491 = vmatprep.subr.bf16.mxu0 %v25178_v1  ;;  %v21028_v2 = vld [vmem:[%s25166_s1 + $0x8] sm:$0xff]   ;;  %17507 = vmatprep.mubr.msk.bf16.mxu0 %vm21198_vm0, %v25178_v1  ;;  %v21029_v3 = vld [vmem:[%s25166_s1 + $0x10] sm:$0xff]  }
   0x2   :  { %17492 = vmatpush3.bf16.msra.mxu0 %v21027_v0  ;;  %v21030_v4 = vld [vmem:[%s25166_s1 + $0x18] sm:$0xff]   ;;  %v21031_v5 = vld [vmem:[%s25166_s1 + $0x20] sm:$0xff]   ;;  %v21032_v6 = vld [vmem:[%s25166_s1 + $0x28] sm:$0xff]  }
   0x3   :  { %17493 = vmatprep.subr.bf16.mxu0 %v25178_v1  ;;  %v21033_v7 = vld [vmem:[%s25166_s1 + $0x30] sm:$0xff]   ;;  %v21034_v8 = vld [vmem:[%s25166_s1 + $0x38] sm:$0xff]   ;;  %v21035_v9 = vld [vmem:[%s25165_s0] sm:$0xff]  }
   0x4   :  { %v21036_v10 = vld [vmem:[%s25165_s0 + $0x8] sm:$0xff]   ;;  %v21037_v11 = vld [vmem:[%s25165_s0 + $0x10] sm:$0xff]   ;;  %v21038_v12 = vld [vmem:[%s25165_s0 + $0x18] sm:$0xff]  }
   0x5   :  { %v21039_v13 = vld [vmem:[%s25165_s0 + $0x20] sm:$0xff]   ;;  %v21040_v14 = vld [vmem:[%s25165_s0 + $0x28] sm:$0xff]   ;;  %v21041_v15 = vld [vmem:[%s25165_s0 + $0x30] sm:$0xff]  }
   0x6   :  { %17494 = vmatpush3.bf16.msra.mxu0 %v21028_v2  ;;  %v21042_v16 = vld [vmem:[%s25165_s0 + $0x38] sm:$0xff]   ;;  %v21043_v17 = vld [vmem:[%s25165_s0 + $0x40] sm:$0xff]   ;;  %v21044_v18 = vld [vmem:[%s25165_s0 + $0x48] sm:$0xff]  }
   0x7   :  { %17495 = vmatprep.subr.bf16.mxu0 %v25178_v1 }
   0xa   :  { %17496 = vmatpush3.bf16.msra.mxu0 %v21029_v3 }
   0xb   :  { %17497 = vmatprep.subr.bf16.mxu0 %v25178_v1 }
   0xe   :  { %17498 = vmatpush3.bf16.msra.mxu0 %v21030_v4 }
   0xf   :  { %17499 = vmatprep.subr.bf16.mxu0 %v25178_v1 }
  0x12   :  { %17500 = vmatpush3.bf16.msra.mxu0 %v21031_v5 }
  0x13   :  { %17501 = vmatprep.subr.bf16.mxu0 %v25178_v1 }
  0x16   :  { %17502 = vmatpush3.bf16.msra.mxu0 %v21032_v6 }
  0x17   :  { %17503 = vmatprep.subr.bf16.mxu0 %v25178_v1 }
  0x1a   :  { %17504 = vmatpush3.bf16.msra.mxu0 %v21033_v7 }
  0x1b   :  { %17505 = vmatprep.subr.bf16.mxu0 %v25178_v1 }
  0x1e   :  { %17506 = vmatpush3.bf16.msra.mxu0 %v21034_v8 }
  0x1f   :  { %18621 = vmatprep.subr.bf16.mxu0 %v25178_v1 }
  0x21   :  { %17508 = vmatmul.mubr.bf16.vlgmr.msra.gmra.mrb[0].mxu0 %v21035_v9 }
  0x22   :  { %17511 = vmatprep.mubr.msk.bf16.mxu0 %vm21198_vm0, %v25178_v1 }
  0x29   :  { %17512 = vmatmul.mubr.bf16.gmra.mrb[4].mxu0 %v21036_v10 }
  0x2a   :  { %17515 = vmatprep.mubr.msk.bf16.mxu0 %vm21198_vm0, %v25178_v1 }
  0x31   :  { %17516 = vmatmul.mubr.bf16.gmra.mrb[8].mxu0 %v21037_v11 }
  0x32   :  { %17519 = vmatprep.mubr.msk.bf16.mxu0 %vm21198_vm0, %v25178_v1 }
  0x39   :  { %17520 = vmatmul.mubr.bf16.gmra.mrb[12].mxu0 %v21038_v12 }
  0x3a   :  { %17523 = vmatprep.mubr.msk.bf16.mxu0 %vm21198_vm0, %v25178_v1 }
  0x41   :  { %17524 = vmatmul.mubr.bf16.gmra.mrb[16].mxu0 %v21039_v13 }
  0x42   :  { %17527 = vmatprep.mubr.msk.bf16.mxu0 %vm21198_vm0, %v25178_v1 }
  0x49   :  { %17528 = vmatmul.mubr.bf16.gmra.mrb[20].mxu0 %v21040_v14 }
  0x4a   :  { %17531 = vmatprep.mubr.msk.bf16.mxu0 %vm21198_vm0, %v25178_v1 }
  0x51   :  { %17532 = vmatmul.mubr.bf16.gmra.mrb[24].mxu0 %v21041_v15 }
  0x52   :  { %17535 = vmatprep.mubr.msk.bf16.mxu0 %vm21198_vm0, %v25178_v1 }
  0x59   :  { %17536 = vmatmul.mubr.bf16.gmra.mrb[28].mxu0 %v21042_v16 }
  0x5a   :  { %17539 = vmatprep.mubr.msk.bf16.mxu0 %vm21198_vm0, %v25178_v1 }
  0x61   :  { %17540 = vmatmul.mubr.bf16.gmra.mrb[32].mxu0 %v21043_v17 }
  0x62   :  { %17543 = vmatprep.mubr.msk.bf16.mxu0 %vm21198_vm0, %v25178_v1 }
  0x63   :  { %17 = vsyncpa [#allocation6], 0  ;;  %v21045_v19 = vld [vmem:[%s25165_s0 + $0x50] sm:$0xff]   ;;  %v21046_v20 = vld [vmem:[%s25165_s0 + $0x58] sm:$0xff]   ;;  %vm794_vm1 = vcmask 130048   ;;  %vm10452_vm2 = vcmask 261120  }
  0x64   :  { %v21047_v21 = vld [vmem:[%s25165_s0 + $0x60] sm:$0xff]   ;;  %v21048_v22 = vld [vmem:[%s25165_s0 + $0x68] sm:$0xff]   ;;  %v21049_v23 = vld [vmem:[%s25165_s0 + $0x70] sm:$0xff]   ;;  %vm10520_vm3 = vcmask 258048   ;;  %vm15512_vm4 = vcmask 40960   ;;  %s21200_s25 = smov [#allocation5]  }
  0x65   :  { %v21050_v24 = vld [vmem:[%s25165_s0 + $0x78] sm:$0xff]   ;;  %v21051_v25 = vld [vmem:[%s25165_s0 + $0x80] sm:$0xff]   ;;  %v21052_v26 = vld [vmem:[%s25165_s0 + $0x88] sm:$0xff]  }
  0x66   :  { %v21053_v27 = vld [vmem:[%s25165_s0 + $0x90] sm:$0xff]   ;;  %v21054_v28 = vld [vmem:[%s25165_s0 + $0x98] sm:$0xff]   ;;  %v21055_v29 = vld [vmem:[%s25165_s0 + $0xa0] sm:$0xff]  }
  0x67   :  { %v21056_v30 = vld [vmem:[%s25165_s0 + $0xa8] sm:$0xff]   ;;  %v21057_v31 = vld [vmem:[%s25165_s0 + $0xb0] sm:$0xff]   ;;  %v21058_v32 = vld [vmem:[%s25165_s0 + $0xb8] sm:$0xff]  }
  0x68   :  { %v21059_v33 = vld [vmem:[%s25165_s0 + $0xc0] sm:$0xff]   ;;  %v21060_v34 = vld [vmem:[%s25165_s0 + $0xc8] sm:$0xff]   ;;  %v21061_v35 = vld [vmem:[%s25165_s0 + $0xd0] sm:$0xff]  }
  0x69   :  { %17544 = vmatmul.mubr.bf16.gmra.mrb[36].mxu0 %v21044_v18  ;;  %v21062_v38 = vld [vmem:[%s25165_s0 + $0xd8] sm:$0xff]   ;;  %v21063_v47 = vld [vmem:[%s25165_s0 + $0xe0] sm:$0xff]   ;;  %v21064_v56 = vld [vmem:[%s25165_s0 + $0xe8] sm:$0xff]  }
  0x6a   :  { %17547 = vmatprep.mubr.msk.bf16.mxu0 %vm21198_vm0, %v25178_v1  ;;  %v21065_v2 = vld [vmem:[%s25165_s0 + $0xf0] sm:$0xff]   ;;  %v21066_v11 = vld [vmem:[%s25165_s0 + $0xf8] sm:$0xff]  }
  0x71   :  { %17548 = vmatmul.mubr.bf16.gmra.mrb[40].mxu0 %v21045_v19 }
  0x72   :  { %17551 = vmatprep.mubr.msk.bf16.mxu0 %vm21198_vm0, %v25178_v1 }
  0x79   :  { %17552 = vmatmul.mubr.bf16.gmra.mrb[44].mxu0 %v21046_v20  ;;  %v21067_v20 = vld [vmem:[%s25165_s0 + $0x100] sm:$0xff]  }
  0x7a   :  { %17555 = vmatprep.mubr.msk.bf16.mxu0 %vm21198_vm0, %v25178_v1 }
  0x81   :  { %17556 = vmatmul.mubr.bf16.gmra.mrb[48].mxu0 %v21047_v21 }
  0x82   :  { %17559 = vmatprep.mubr.msk.bf16.mxu0 %vm21198_vm0, %v25178_v1 }
  0x89   :  { %17560 = vmatmul.mubr.bf16.gmra.mrb[52].mxu0 %v21048_v22 }
  0x8a   :  { %17563 = vmatprep.mubr.msk.bf16.mxu0 %vm21198_vm0, %v25178_v1 }
  0x91   :  { %17564 = vmatmul.mubr.bf16.gmra.mrb[56].mxu0 %v21049_v23 }
  0x92   :  { %17567 = vmatprep.mubr.msk.bf16.mxu0 %vm21198_vm0, %v25178_v1 }
  0x99   :  { %17568 = vmatmul.mubr.bf16.gmra.mrb[60].mxu0 %v21050_v24 }
  0x9a   :  { %17571 = vmatprep.mubr.msk.bf16.mxu0 %vm21198_vm0, %v25178_v1 }
  0xa1   :  { %17572 = vmatmul.mubr.bf16.gmra.mrb[64].mxu0 %v21051_v25 }
  0xa2   :  { %17575 = vmatprep.mubr.msk.bf16.mxu0 %vm21198_vm0, %v25178_v1 }
  0xa9   :  { %17576 = vmatmul.mubr.bf16.gmra.mrb[68].mxu0 %v21052_v26 }
  0xaa   :  { %17579 = vmatprep.mubr.msk.bf16.mxu0 %vm21198_vm0, %v25178_v1 }
  0xb1   :  { %17580 = vmatmul.mubr.bf16.gmra.mrb[72].mxu0 %v21053_v27 }
  0xb2   :  { %17583 = vmatprep.mubr.msk.bf16.mxu0 %vm21198_vm0, %v25178_v1 }
  0xb9   :  { %17584 = vmatmul.mubr.bf16.gmra.mrb[76].mxu0 %v21054_v28 }
  0xba   :  { %17587 = vmatprep.mubr.msk.bf16.mxu0 %vm21198_vm0, %v25178_v1 }
  0xc1   :  { %17588 = vmatmul.mubr.bf16.gmra.mrb[80].mxu0 %v21055_v29  ;;  %v21068_v29 = vld [vmem:[%s25165_s0 + $0x108] sm:$0xff]  }
  0xc2   :  { %17591 = vmatprep.mubr.msk.bf16.mxu0 %vm21198_vm0, %v25178_v1 }
  0xc9   :  { %17592 = vmatmul.mubr.bf16.gmra.mrb[84].mxu0 %v21056_v30 }
  0xca   :  { %17595 = vmatprep.mubr.msk.bf16.mxu0 %vm21198_vm0, %v25178_v1 }
  0xd1   :  { %17596 = vmatmul.mubr.bf16.gmra.mrb[88].mxu0 %v21057_v31 }
  0xd2   :  { %17599 = vmatprep.mubr.msk.bf16.mxu0 %vm21198_vm0, %v25178_v1 }
  0xd9   :  { %17600 = vmatmul.mubr.bf16.gmra.mrb[92].mxu0 %v21058_v32 }
  0xda   :  { %17603 = vmatprep.mubr.msk.bf16.mxu0 %vm21198_vm0, %v25178_v1 }
  0xe1   :  { %17604 = vmatmul.mubr.bf16.gmra.mrb[96].mxu0 %v21059_v33 }
  0xe2   :  { %17607 = vmatprep.mubr.msk.bf16.mxu0 %vm21198_vm0, %v25178_v1 }
  0xe9   :  { %17608 = vmatmul.mubr.bf16.gmra.mrb[100].mxu0 %v21060_v34 }
  0xea   :  { %17611 = vmatprep.mubr.msk.bf16.mxu0 %vm21198_vm0, %v25178_v1 }
  0xf1   :  { %17612 = vmatmul.mubr.bf16.gmra.mrb[104].mxu0 %v21061_v35 }
  0xf2   :  { %17615 = vmatprep.mubr.msk.bf16.mxu0 %vm21198_vm0, %v25178_v1 }
  0xf4   :  { %v21436_v36 = vpop.f32.mrb[0].mxu0 }
  0xf5   :  { %v17509_v37 = vpop.f32.mrb[1].mxu0  ;;  %v795_v40 = vsel %vm794_vm1, %v21436_v36, 0.0 }
  0xf6   :  { %v21441_v39 = vpop.f32.mrb[2].mxu0 }
  0xf7   :  { %v796_v41 = vsel %vm794_vm1, %v21441_v39, 0.0  ;;  %v17510_v42 = vpop.f32.mrb[3].mxu0 }
  0xf8   :  { %v797_v43 = vadd.f32 %v796_v41, %v795_v40  ;;  %v21069_v40 = vld [vmem:[%s25165_s0 + $0x110] sm:$0xff]  }
  0xf9   :  { %17616 = vmatmul.mubr.bf16.gmra.mrb[108].mxu0 %v21062_v38 }
  0xfa   :  { %17619 = vmatprep.mubr.msk.bf16.mxu0 %vm21198_vm0, %v25178_v1 }
  0xfc   :  { %v21449_v44 = vpop.f32.mrb[4].mxu0 }
  0xfd   :  { %v798_v45 = vsel %vm794_vm1, %v21449_v44, 0.0  ;;  %v17513_v46 = vpop.f32.mrb[5].mxu0 }
  0xfe   :  { %v799_v48 = vadd.f32 %v798_v45, %v797_v43  ;;  %v21456_v49 = vpop.f32.mrb[6].mxu0 }
  0xff   :  { %25289 = vst [vmem:[#allocation8_spill] sm:$0xff] %v21456_v49  ;;  %v800_v50 = vsel %vm794_vm1, %v21456_v49, 0.0  ;;  %v17514_v51 = vpop.f32.mrb[7].mxu0 }
 0x100   :  { %v801_v52 = vadd.f32 %v800_v50, %v799_v48  ;;  %v21070_v51 = vld [vmem:[%s25165_s0 + $0x118] sm:$0xff]  }
 0x101   :  { %17620 = vmatmul.mubr.bf16.gmra.mrb[112].mxu0 %v21063_v47 }
 0x102   :  { %17623 = vmatprep.mubr.msk.bf16.mxu0 %vm21198_vm0, %v25178_v1 }
 0x104   :  { %v21462_v53 = vpop.f32.mrb[8].mxu0 }
 0x105   :  { %25290 = vst [vmem:[#allocation9_spill] sm:$0xff] %v21462_v53  ;;  %v802_v54 = vsel %vm794_vm1, %v21462_v53, 0.0  ;;  %v17517_v55 = vpop.f32.mrb[9].mxu0 }
 0x106   :  { %v803_v57 = vadd.f32 %v802_v54, %v801_v52  ;;  %v21469_v58 = vpop.f32.mrb[10].mxu0 }
 0x107   :  { %25291 = vst [vmem:[#allocation10_spill] sm:$0xff] %v21469_v58  ;;  %v804_v59 = vsel %vm794_vm1, %v21469_v58, 0.0  ;;  %v17518_v60 = vpop.f32.mrb[11].mxu0 }
 0x108   :  { %v805_v61 = vadd.f32 %v804_v59, %v803_v57 }
 0x109   :  { %17624 = vmatmul.mubr.bf16.gmra.mrb[116].mxu0 %v21064_v56 }
 0x10a   :  { %17627 = vmatprep.mubr.msk.bf16.mxu0 %vm21198_vm0, %v25178_v1 }
 0x10c   :  { %v21475_v62 = vpop.f32.mrb[12].mxu0 }
 0x10d   :  { %v806_v63 = vsel %vm794_vm1, %v21475_v62, 0.0  ;;  %v17521_v0 = vpop.f32.mrb[13].mxu0 }
 0x10e   :  { %v807_v3 = vadd.f32 %v806_v63, %v805_v61  ;;  %v21482_v4 = vpop.f32.mrb[14].mxu0  ;;  %v21071_v63 = vld [vmem:[%s25165_s0 + $0x120] sm:$0xff]  }
 0x10f   :  { %v808_v5 = vsel %vm794_vm1, %v21482_v4, 0.0  ;;  %v17522_v6 = vpop.f32.mrb[15].mxu0 }
 0x110   :  { %v809_v7 = vadd.f32 %v808_v5, %v807_v3 }
 0x111   :  { %17628 = vmatmul.mubr.bf16.gmra.mrb[120].mxu0 %v21065_v2 }
 0x112   :  { %17631 = vmatprep.mubr.msk.bf16.mxu0 %vm21198_vm0, %v25178_v1 }
 0x114   :  { %v21488_v8 = vpop.f32.mrb[16].mxu0 }
 0x115   :  { %v810_v9 = vsel %vm794_vm1, %v21488_v8, 0.0  ;;  %v17525_v10 = vpop.f32.mrb[17].mxu0 }
 0x116   :  { %v811_v12 = vadd.f32 %v810_v9, %v809_v7  ;;  %v21495_v13 = vpop.f32.mrb[18].mxu0 }
 0x117   :  { %v812_v14 = vsel %vm794_vm1, %v21495_v13, 0.0  ;;  %v17526_v15 = vpop.f32.mrb[19].mxu0 }
 0x118   :  { %v813_v16 = vadd.f32 %v812_v14, %v811_v12 }
 0x119   :  { %17632 = vmatmul.mubr.bf16.gmra.mrb[124].mxu0 %v21066_v11  ;;  %v21072_v11 = vld [vmem:[%s25165_s0 + $0x128] sm:$0xff]  }
 0x11a   :  { %17635 = vmatprep.mubr.msk.bf16.mxu0 %vm21198_vm0, %v25178_v1 }
 0x11c   :  { %v21501_v17 = vpop.f32.mrb[20].mxu0 }
 0x11d   :  { %v814_v18 = vsel %vm794_vm1, %v21501_v17, 0.0  ;;  %v17529_v19 = vpop.f32.mrb[21].mxu0 }
 0x11e   :  { %v815_v21 = vadd.f32 %v814_v18, %v813_v16  ;;  %v21508_v22 = vpop.f32.mrb[22].mxu0 }
 0x11f   :  { %v816_v23 = vsel %vm794_vm1, %v21508_v22, 0.0  ;;  %v17530_v24 = vpop.f32.mrb[23].mxu0 }
 0x120   :  { %v817_v25 = vadd.f32 %v816_v23, %v815_v21  ;;  %v21073_v23 = vld [vmem:[%s25165_s0 + $0x130] sm:$0xff]  }
 0x121   :  { %17636 = vmatmul.mubr.bf16.gmra.mrb[128].mxu0 %v21067_v20 }
 0x122   :  { %17639 = vmatprep.mubr.msk.bf16.mxu0 %vm21198_vm0, %v25178_v1 }
 0x124   :  { %v21514_v26 = vpop.f32.mrb[24].mxu0 }
 0x125   :  { %v818_v27 = vsel %vm794_vm1, %v21514_v26, 0.0  ;;  %v17533_v28 = vpop.f32.mrb[25].mxu0 }
 0x126   :  { %v819_v30 = vadd.f32 %v818_v27, %v817_v25  ;;  %v21521_v31 = vpop.f32.mrb[26].mxu0 }
 0x127   :  { %v820_v32 = vsel %vm794_vm1, %v21521_v31, 0.0  ;;  %v17534_v33 = vpop.f32.mrb[27].mxu0 }
 0x128   :  { %v821_v34 = vadd.f32 %v820_v32, %v819_v30 }
 0x129   :  { %17640 = vmatmul.mubr.bf16.gmra.mrb[132].mxu0 %v21068_v29 }
 0x12a   :  { %17643 = vmatprep.mubr.msk.bf16.mxu0 %vm21198_vm0, %v25178_v1 }
 0x12c   :  { %v21527_v35 = vpop.f32.mrb[28].mxu0 }
 0x12d   :  { %v822_v37 = vsel %vm794_vm1, %v21527_v35, 0.0  ;;  %v17537_v38 = vpop.f32.mrb[29].mxu0 }
 0x12e   :  { %v823_v41 = vadd.f32 %v822_v37, %v821_v34  ;;  %v21534_v42 = vpop.f32.mrb[30].mxu0  ;;  %v21074_v34 = vld [vmem:[%s25165_s0 + $0x138] sm:$0xff]  }
 0x12f   :  { %v824_v43 = vsel %vm794_vm1, %v21534_v42, 0.0  ;;  %v17538_v45 = vpop.f32.mrb[31].mxu0 }
 0x130   :  { %v825_v46 = vadd.f32 %v824_v43, %v823_v41 }
 0x131   :  { %17644 = vmatmul.mubr.bf16.gmra.mrb[136].mxu0 %v21069_v40 }
 0x132   :  { %17647 = vmatprep.mubr.msk.bf16.mxu0 %vm21198_vm0, %v25178_v1 }
 0x134   :  { %v21540_v47 = vpop.f32.mrb[32].mxu0 }
 0x135   :  { %v826_v48 = vsel %vm794_vm1, %v21540_v47, 0.0  ;;  %v17541_v50 = vpop.f32.mrb[33].mxu0 }
 0x136   :  { %v827_v52 = vadd.f32 %v826_v48, %v825_v46  ;;  %v21547_v54 = vpop.f32.mrb[34].mxu0  ;;  %v21075_v50 = vld [vmem:[%s25165_s0 + $0x140] ss:$0 sps:$4 sm:$0xff]  }
 0x137   :  { %v828_v55 = vsel %vm794_vm1, %v21547_v54, 0.0  ;;  %v17542_v56 = vpop.f32.mrb[35].mxu0 }
 0x138   :  { %v829_v57 = vadd.f32 %v828_v55, %v827_v52 }
 0x139   :  { %17648 = vmatmul.mubr.bf16.gmra.mrb[140].mxu0 %v21070_v51 }
 0x13a   :  { %17651 = vmatprep.mubr.msk.bf16.mxu0 %vm21198_vm0, %v25178_v1 }
 0x13c   :  { %v21553_v59 = vpop.f32.mrb[36].mxu0 }
 0x13d   :  { %v830_v60 = vsel %vm794_vm1, %v21553_v59, 0.0  ;;  %v17545_v61 = vpop.f32.mrb[37].mxu0 }
 0x13e   :  { %v831_v0 = vadd.f32 %v830_v60, %v829_v57  ;;  %v21560_v2 = vpop.f32.mrb[38].mxu0 }
 0x13f   :  { %v832_v3 = vsel %vm794_vm1, %v21560_v2, 0.0  ;;  %v17546_v5 = vpop.f32.mrb[39].mxu0 }
 0x140   :  { %v833_v6 = vadd.f32 %v832_v3, %v831_v0 }
 0x141   :  { %17652 = vmatmul.mubr.bf16.gmra.mrb[144].mxu0 %v21071_v63 }
 0x142   :  { %17655 = vmatprep.mubr.msk.bf16.mxu0 %vm21198_vm0, %v25178_v1 }
 0x144   :  { %v21566_v7 = vpop.f32.mrb[40].mxu0 }
 0x145   :  { %v834_v9 = vsel %vm794_vm1, %v21566_v7, 0.0  ;;  %v17549_v10 = vpop.f32.mrb[41].mxu0 }
 0x146   :  { %v835_v12 = vadd.f32 %v834_v9, %v833_v6  ;;  %v21573_v14 = vpop.f32.mrb[42].mxu0 }
 0x147   :  { %v836_v15 = vsel %vm794_vm1, %v21573_v14, 0.0  ;;  %v17550_v16 = vpop.f32.mrb[43].mxu0 }
 0x148   :  { %v837_v18 = vadd.f32 %v836_v15, %v835_v12 }
 0x149   :  { %17656 = vmatmul.mubr.bf16.gmra.mrb[148].mxu0 %v21072_v11 }
 0x14a   :  { %17659 = vmatprep.mubr.msk.bf16.mxu0 %vm21198_vm0, %v25178_v1 }
 0x14c   :  { %v21579_v19 = vpop.f32.mrb[44].mxu0 }
 0x14d   :  { %v838_v20 = vsel %vm794_vm1, %v21579_v19, 0.0  ;;  %v17553_v21 = vpop.f32.mrb[45].mxu0 }
 0x14e   :  { %v839_v24 = vadd.f32 %v838_v20, %v837_v18  ;;  %v21586_v25 = vpop.f32.mrb[46].mxu0 }
 0x14f   :  { %v840_v27 = vsel %vm794_vm1, %v21586_v25, 0.0  ;;  %v17554_v28 = vpop.f32.mrb[47].mxu0 }
 0x150   :  { %v841_v29 = vadd.f32 %v840_v27, %v839_v24 }
 0x151   :  { %17660 = vmatmul.mubr.bf16.gmra.mrb[152].mxu0 %v21073_v23 }
 0x152   :  { %17663 = vmatprep.mubr.msk.bf16.mxu0 %vm21198_vm0, %v25178_v1 }
 0x154   :  { %v21592_v30 = vpop.f32.mrb[48].mxu0 }
 0x155   :  { %v842_v32 = vsel %vm794_vm1, %v21592_v30, 0.0  ;;  %v17557_v33 = vpop.f32.mrb[49].mxu0 }
 0x156   :  { %v843_v37 = vadd.f32 %v842_v32, %v841_v29  ;;  %v21599_v38 = vpop.f32.mrb[50].mxu0 }
 0x157   :  { %v844_v40 = vsel %vm794_vm1, %v21599_v38, 0.0  ;;  %v17558_v41 = vpop.f32.mrb[51].mxu0 }
 0x158   :  { %v845_v43 = vadd.f32 %v844_v40, %v843_v37 }
 0x159   :  { %17664 = vmatmul.mubr.bf16.gmra.mrb[156].mxu0 %v21074_v34 }
 0x15a   :  { %17667 = vmatprep.mubr.msk.bf16.mxu0 %vm21198_vm0, %v25178_v1 }
 0x15c   :  { %v21605_v45 = vpop.f32.mrb[52].mxu0 }
 0x15d   :  { %v846_v46 = vsel %vm794_vm1, %v21605_v45, 0.0  ;;  %v17561_v48 = vpop.f32.mrb[53].mxu0 }
 0x15e   :  { %v847_v51 = vadd.f32 %v846_v46, %v845_v43  ;;  %v21612_v52 = vpop.f32.mrb[54].mxu0 }
 0x15f   :  { %v848_v55 = vsel %vm794_vm1, %v21612_v52, 0.0  ;;  %v17562_v56 = vpop.f32.mrb[55].mxu0 }
 0x160   :  { %v849_v57 = vadd.f32 %v848_v55, %v847_v51 }
 0x161   :  { %17668 = vmatmul.mubr.bf16.gmra.mrb[160].mxu0 %v21075_v50 }
 0x162   :  { %18625 = vmatprep.mubr.msk.bf16.mxu0 %vm21198_vm0, %v25178_v1 }
 0x164   :  { %v21618_v60 = vpop.f32.mrb[56].mxu0 }
 0x165   :  { %v850_v61 = vsel %vm794_vm1, %v21618_v60, 0.0  ;;  %v17565_v63 = vpop.f32.mrb[57].mxu0 }
 0x166   :  { %v851_v0 = vadd.f32 %v850_v61, %v849_v57  ;;  %v21622_v3 = vpop.f32.mrb[58].mxu0 }
 0x167   :  { %v852_v5 = vsel %vm794_vm1, %v21622_v3, 0.0  ;;  %v17566_v6 = vpop.f32.mrb[59].mxu0 }
 0x168   :  { %v853_v9 = vadd.f32 %v852_v5, %v851_v0 }
 0x16c   :  { %v21626_v10 = vpop.f32.mrb[60].mxu0 }
 0x16d   :  { %v854_v11 = vsel %vm794_vm1, %v21626_v10, 0.0  ;;  %v17569_v12 = vpop.f32.mrb[61].mxu0 }
 0x16e   :  { %v855_v15 = vadd.f32 %v854_v11, %v853_v9  ;;  %v21630_v16 = vpop.f32.mrb[62].mxu0 }
 0x16f   :  { %v856_v18 = vsel %vm794_vm1, %v21630_v16, 0.0  ;;  %v17570_v20 = vpop.f32.mrb[63].mxu0 }
 0x170   :  { %v857_v21 = vadd.f32 %v856_v18, %v855_v15 }
 0x174   :  { %v21634_v23 = vpop.f32.mrb[64].mxu0 }
 0x175   :  { %v858_v24 = vsel %vm794_vm1, %v21634_v23, 0.0  ;;  %v17573_v27 = vpop.f32.mrb[65].mxu0 }
 0x176   :  { %v859_v28 = vadd.f32 %v858_v24, %v857_v21  ;;  %v21638_v29 = vpop.f32.mrb[66].mxu0 }
 0x177   :  { %v860_v32 = vsel %vm794_vm1, %v21638_v29, 0.0  ;;  %v17574_v33 = vpop.f32.mrb[67].mxu0 }
 0x178   :  { %v861_v34 = vadd.f32 %v860_v32, %v859_v28 }
 0x17c   :  { %v21642_v37 = vpop.f32.mrb[68].mxu0 }
 0x17d   :  { %v862_v40 = vsel %vm794_vm1, %v21642_v37, 0.0  ;;  %v17577_v41 = vpop.f32.mrb[69].mxu0 }
 0x17e   :  { %v863_v43 = vadd.f32 %v862_v40, %v861_v34  ;;  %v21646_v46 = vpop.f32.mrb[70].mxu0 }
 0x17f   :  { %v864_v48 = vsel %vm794_vm1, %v21646_v46, 0.0  ;;  %v17578_v50 = vpop.f32.mrb[71].mxu0 }
 0x180   :  { %v865_v51 = vadd.f32 %v864_v48, %v863_v43 }
 0x184   :  { %v21650_v55 = vpop.f32.mrb[72].mxu0 }
 0x185   :  { %v866_v56 = vsel %vm794_vm1, %v21650_v55, 0.0  ;;  %v17581_v57 = vpop.f32.mrb[73].mxu0 }
 0x186   :  { %v867_v61 = vadd.f32 %v866_v56, %v865_v51  ;;  %v21654_v63 = vpop.f32.mrb[74].mxu0 }
 0x187   :  { %v868_v0 = vsel %vm794_vm1, %v21654_v63, 0.0  ;;  %v17582_v5 = vpop.f32.mrb[75].mxu0 }
 0x188   :  { %v869_v6 = vadd.f32 %v868_v0, %v867_v61 }
 0x18c   :  { %v21658_v9 = vpop.f32.mrb[76].mxu0 }
 0x18d   :  { %v870_v11 = vsel %vm794_vm1, %v21658_v9, 0.0  ;;  %v17585_v12 = vpop.f32.mrb[77].mxu0 }
 0x18e   :  { %v871_v15 = vadd.f32 %v870_v11, %v869_v6  ;;  %v21662_v18 = vpop.f32.mrb[78].mxu0 }
 0x18f   :  { %v872_v20 = vsel %vm794_vm1, %v21662_v18, 0.0  ;;  %v17586_v21 = vpop.f32.mrb[79].mxu0 }
 0x190   :  { %v873_v24 = vadd.f32 %v872_v20, %v871_v15 }
 0x194   :  { %v21666_v27 = vpop.f32.mrb[80].mxu0 }
 0x195   :  { %v874_v28 = vsel %vm794_vm1, %v21666_v27, 0.0  ;;  %v17589_v32 = vpop.f32.mrb[81].mxu0 }
 0x196   :  { %v875_v33 = vadd.f32 %v874_v28, %v873_v24  ;;  %v21670_v34 = vpop.f32.mrb[82].mxu0 }
 0x197   :  { %v876_v40 = vsel %vm794_vm1, %v21670_v34, 0.0  ;;  %v17590_v41 = vpop.f32.mrb[83].mxu0 }
 0x198   :  { %v877_v43 = vadd.f32 %v876_v40, %v875_v33 }
 0x19c   :  { %v21674_v48 = vpop.f32.mrb[84].mxu0 }
 0x19d   :  { %v878_v50 = vsel %vm794_vm1, %v21674_v48, 0.0  ;;  %v17593_v51 = vpop.f32.mrb[85].mxu0 }
 0x19e   :  { %v879_v56 = vadd.f32 %v878_v50, %v877_v43  ;;  %v21678_v57 = vpop.f32.mrb[86].mxu0 }
 0x19f   :  { %25292 = vst [vmem:[#allocation11_spill] sm:$0xff] %v21678_v57  ;;  %v880_v61 = vsel %vm794_vm1, %v21678_v57, 0.0  ;;  %v17594_v0 = vpop.f32.mrb[87].mxu0 }
 0x1a0   :  { %v881_v5 = vadd.f32 %v880_v61, %v879_v56 }
 0x1a4   :  { %v21682_v6 = vpop.f32.mrb[88].mxu0 }
 0x1a5   :  { %25293 = vst [vmem:[#allocation12_spill] sm:$0xff] %v21682_v6  ;;  %v882_v11 = vsel %vm794_vm1, %v21682_v6, 0.0  ;;  %v17597_v12 = vpop.f32.mrb[89].mxu0 }
 0x1a6   :  { %v883_v15 = vadd.f32 %v882_v11, %v881_v5  ;;  %v21686_v20 = vpop.f32.mrb[90].mxu0 }
 0x1a7   :  { %25294 = vst [vmem:[#allocation13_spill] sm:$0xff] %v21686_v20  ;;  %v884_v21 = vsel %vm794_vm1, %v21686_v20, 0.0  ;;  %v17598_v24 = vpop.f32.mrb[91].mxu0 }
 0x1a8   :  { %v885_v28 = vadd.f32 %v884_v21, %v883_v15 }
 0x1ac   :  { %v21690_v32 = vpop.f32.mrb[92].mxu0 }
 0x1ad   :  { %25295 = vst [vmem:[#allocation14_spill] sm:$0xff] %v21690_v32  ;;  %v886_v33 = vsel %vm794_vm1, %v21690_v32, 0.0  ;;  %v17601_v40 = vpop.f32.mrb[93].mxu0 }
 0x1ae   :  { %v887_v41 = vadd.f32 %v886_v33, %v885_v28  ;;  %v21694_v43 = vpop.f32.mrb[94].mxu0 }
 0x1af   :  { %25296 = vst [vmem:[#allocation15_spill] sm:$0xff] %v21694_v43  ;;  %v888_v50 = vsel %vm794_vm1, %v21694_v43, 0.0  ;;  %v17602_v51 = vpop.f32.mrb[95].mxu0 }
 0x1b0   :  { %v889_v56 = vadd.f32 %v888_v50, %v887_v41 }
 0x1b4   :  { %v21698_v61 = vpop.f32.mrb[96].mxu0 }
 0x1b5   :  { %25297 = vst [vmem:[#allocation16_spill] sm:$0xff] %v21698_v61  ;;  %v890_v0 = vsel %vm794_vm1, %v21698_v61, 0.0  ;;  %v17605_v5 = vpop.f32.mrb[97].mxu0 }
 0x1b6   :  { %v891_v11 = vadd.f32 %v890_v0, %v889_v56  ;;  %v21702_v12 = vpop.f32.mrb[98].mxu0 }
 0x1b7   :  { %25298 = vst [vmem:[#allocation17_spill] sm:$0xff] %v21702_v12  ;;  %v892_v15 = vsel %vm794_vm1, %v21702_v12, 0.0  ;;  %v17606_v21 = vpop.f32.mrb[99].mxu0 }
 0x1b8   :  { %v893_v24 = vadd.f32 %v892_v15, %v891_v11 }
 0x1bc   :  { %v21706_v28 = vpop.f32.mrb[100].mxu0 }
 0x1bd   :  { %25299 = vst [vmem:[#allocation18_spill] sm:$0xff] %v21706_v28  ;;  %v894_v33 = vsel %vm794_vm1, %v21706_v28, 0.0  ;;  %v17609_v40 = vpop.f32.mrb[101].mxu0 }
 0x1be   :  { %v895_v41 = vadd.f32 %v894_v33, %v893_v24  ;;  %v21710_v50 = vpop.f32.mrb[102].mxu0 }
 0x1bf   :  { %25300 = vst [vmem:[#allocation19_spill] sm:$0xff] %v21710_v50  ;;  %v896_v51 = vsel %vm794_vm1, %v21710_v50, 0.0  ;;  %v17610_v56 = vpop.f32.mrb[103].mxu0 }
 0x1c0   :  { %v897_v0 = vadd.f32 %v896_v51, %v895_v41 }
 0x1c4   :  { %v21714_v5 = vpop.f32.mrb[104].mxu0 }
 0x1c5   :  { %25301 = vst [vmem:[#allocation20_spill] sm:$0xff] %v21714_v5  ;;  %v898_v21 = vsel %vm794_vm1, %v21714_v5, 0.0  ;;  %v17613_v11 = vpop.f32.mrb[105].mxu0 }
 0x1c6   :  { %v899_v15 = vadd.f32 %v898_v21, %v897_v0  ;;  %v21718_v1 = vpop.f32.mrb[106].mxu0 }
 0x1c7   :  { %25302 = vst [vmem:[#allocation21_spill] sm:$0xff] %v21718_v1  ;;  %v900_v40 = vsel %vm794_vm1, %v21718_v1, 0.0  ;;  %v17614_v24 = vpop.f32.mrb[107].mxu0 }
 0x1c8   :  { %v901_v33 = vadd.f32 %v900_v40, %v899_v15 }
 0x1cc   :  { %v21722_v28 = vpop.f32.mrb[108].mxu0 }
 0x1cd   :  { %25303 = vst [vmem:[#allocation22_spill] sm:$0xff] %v21722_v28  ;;  %v902_v56 = vsel %vm794_vm1, %v21722_v28, 0.0  ;;  %v17617_v41 = vpop.f32.mrb[109].mxu0 }
 0x1ce   :  { %v903_v51 = vadd.f32 %v902_v56, %v901_v33  ;;  %v21726_v50 = vpop.f32.mrb[110].mxu0 }
 0x1cf   :  { %25304 = vst [vmem:[#allocation23_spill] sm:$0xff] %v21726_v50  ;;  %v904_v11 = vsel %vm794_vm1, %v21726_v50, 0.0  ;;  %v17618_v0 = vpop.f32.mrb[111].mxu0 }
 0x1d0   :  { %v905_v21 = vadd.f32 %v904_v11, %v903_v51 }
 0x1d4   :  { %v21730_v5 = vpop.f32.mrb[112].mxu0 }
 0x1d5   :  { %25305 = vst [vmem:[#allocation24_spill] sm:$0xff] %v21730_v5  ;;  %v906_v24 = vsel %vm794_vm1, %v21730_v5, 0.0  ;;  %v17621_v15 = vpop.f32.mrb[113].mxu0 }
 0x1d6   :  { %v907_v40 = vadd.f32 %v906_v24, %v905_v21  ;;  %v21734_v1 = vpop.f32.mrb[114].mxu0 }
 0x1d7   :  { %25306 = vst [vmem:[#allocation25_spill] sm:$0xff] %v21734_v1  ;;  %v908_v41 = vsel %vm794_vm1, %v21734_v1, 0.0  ;;  %v17622_v33 = vpop.f32.mrb[115].mxu0 }
 0x1d8   :  { %v909_v56 = vadd.f32 %v908_v41, %v907_v40 }
 0x1dc   :  { %v21738_v28 = vpop.f32.mrb[116].mxu0 }
 0x1dd   :  { %25307 = vst [vmem:[#allocation26_spill] sm:$0xff] %v21738_v28  ;;  %v910_v0 = vsel %vm794_vm1, %v21738_v28, 0.0  ;;  %v17625_v51 = vpop.f32.mrb[117].mxu0 }
 0x1de   :  { %v911_v11 = vadd.f32 %v910_v0, %v909_v56  ;;  %v21742_v50 = vpop.f32.mrb[118].mxu0 }
 0x1df   :  { %25308 = vst [vmem:[#allocation27_spill] sm:$0xff] %v21742_v50  ;;  %v912_v15 = vsel %vm794_vm1, %v21742_v50, 0.0  ;;  %v17626_v21 = vpop.f32.mrb[119].mxu0 }
 0x1e0   :  { %v913_v24 = vadd.f32 %v912_v15, %v911_v11 }
 0x1e4   :  { %v21746_v5 = vpop.f32.mrb[120].mxu0 }
 0x1e5   :  { %25309 = vst [vmem:[#allocation28_spill] sm:$0xff] %v21746_v5  ;;  %v914_v33 = vsel %vm794_vm1, %v21746_v5, 0.0  ;;  %v17629_v40 = vpop.f32.mrb[121].mxu0 }
 0x1e6   :  { %v915_v41 = vadd.f32 %v914_v33, %v913_v24  ;;  %v21750_v1 = vpop.f32.mrb[122].mxu0 }
 0x1e7   :  { %25310 = vst [vmem:[#allocation29_spill] sm:$0xff] %v21750_v1  ;;  %v916_v51 = vsel %vm794_vm1, %v21750_v1, 0.0  ;;  %v17630_v56 = vpop.f32.mrb[123].mxu0 }
 0x1e8   :  { %v917_v0 = vadd.f32 %v916_v51, %v915_v41 }
 0x1ec   :  { %v21754_v28 = vpop.f32.mrb[124].mxu0 }
 0x1ed   :  { %25311 = vst [vmem:[#allocation30_spill] sm:$0xff] %v21754_v28  ;;  %v918_v21 = vsel %vm794_vm1, %v21754_v28, 0.0  ;;  %v17633_v11 = vpop.f32.mrb[125].mxu0 }
 0x1ee   :  { %v919_v15 = vadd.f32 %v918_v21, %v917_v0  ;;  %v21758_v50 = vpop.f32.mrb[126].mxu0 }
 0x1ef   :  { %25312 = vst [vmem:[#allocation31_spill] sm:$0xff] %v21758_v50  ;;  %v920_v40 = vsel %vm794_vm1, %v21758_v50, 0.0  ;;  %v17634_v24 = vpop.f32.mrb[127].mxu0 }
 0x1f0   :  { %v921_v33 = vadd.f32 %v920_v40, %v919_v15 }
 0x1f4   :  { %v21762_v5 = vpop.f32.mrb[128].mxu0 }
 0x1f5   :  { %25313 = vst [vmem:[#allocation32_spill] sm:$0xff] %v21762_v5  ;;  %v922_v56 = vsel %vm794_vm1, %v21762_v5, 0.0  ;;  %v17637_v41 = vpop.f32.mrb[129].mxu0 }
 0x1f6   :  { %v923_v51 = vadd.f32 %v922_v56, %v921_v33  ;;  %v21766_v1 = vpop.f32.mrb[130].mxu0 }
 0x1f7   :  { %25314 = vst [vmem:[#allocation33_spill] sm:$0xff] %v21766_v1  ;;  %v924_v11 = vsel %vm794_vm1, %v21766_v1, 0.0  ;;  %v17638_v0 = vpop.f32.mrb[131].mxu0 }
 0x1f8   :  { %v925_v21 = vadd.f32 %v924_v11, %v923_v51 }
 0x1fc   :  { %v21770_v28 = vpop.f32.mrb[132].mxu0 }
 0x1fd   :  { %25315 = vst [vmem:[#allocation34_spill] sm:$0xff] %v21770_v28  ;;  %v926_v24 = vsel %vm794_vm1, %v21770_v28, 0.0  ;;  %v17641_v15 = vpop.f32.mrb[133].mxu0 }
 0x1fe   :  { %v927_v40 = vadd.f32 %v926_v24, %v925_v21  ;;  %v21774_v50 = vpop.f32.mrb[134].mxu0 }
 0x1ff   :  { %25316 = vst [vmem:[#allocation35_spill] sm:$0xff] %v21774_v50  ;;  %v928_v41 = vsel %vm794_vm1, %v21774_v50, 0.0  ;;  %v17642_v33 = vpop.f32.mrb[135].mxu0 }
 0x200   :  { %v929_v56 = vadd.f32 %v928_v41, %v927_v40 }
 0x204   :  { %v21778_v5 = vpop.f32.mrb[136].mxu0 }
 0x205   :  { %25317 = vst [vmem:[#allocation36_spill] sm:$0xff] %v21778_v5  ;;  %v930_v0 = vsel %vm794_vm1, %v21778_v5, 0.0  ;;  %v17645_v51 = vpop.f32.mrb[137].mxu0 }
 0x206   :  { %v931_v11 = vadd.f32 %v930_v0, %v929_v56  ;;  %v21782_v1 = vpop.f32.mrb[138].mxu0 }
 0x207   :  { %25318 = vst [vmem:[#allocation37_spill] sm:$0xff] %v21782_v1  ;;  %v932_v15 = vsel %vm794_vm1, %v21782_v1, 0.0  ;;  %v17646_v21 = vpop.f32.mrb[139].mxu0 }
 0x208   :  { %v933_v24 = vadd.f32 %v932_v15, %v931_v11 }
 0x20c   :  { %v21786_v28 = vpop.f32.mrb[140].mxu0 }
 0x20d   :  { %25319 = vst [vmem:[#allocation38_spill] sm:$0xff] %v21786_v28  ;;  %v934_v33 = vsel %vm794_vm1, %v21786_v28, 0.0  ;;  %v17649_v40 = vpop.f32.mrb[141].mxu0 }
 0x20e   :  { %v935_v41 = vadd.f32 %v934_v33, %v933_v24  ;;  %v21790_v50 = vpop.f32.mrb[142].mxu0 }
 0x20f   :  { %25320 = vst [vmem:[#allocation39_spill] sm:$0xff] %v21790_v50  ;;  %v936_v51 = vsel %vm794_vm1, %v21790_v50, 0.0  ;;  %v17650_v56 = vpop.f32.mrb[143].mxu0 }
 0x210   :  { %v937_v0 = vadd.f32 %v936_v51, %v935_v41 }
 0x214   :  { %v21794_v5 = vpop.f32.mrb[144].mxu0 }
 0x215   :  { %25321 = vst [vmem:[#allocation40_spill] sm:$0xff] %v21794_v5  ;;  %v938_v21 = vsel %vm794_vm1, %v21794_v5, 0.0  ;;  %v17653_v11 = vpop.f32.mrb[145].mxu0 }
 0x216   :  { %v939_v15 = vadd.f32 %v938_v21, %v937_v0  ;;  %v21798_v1 = vpop.f32.mrb[146].mxu0 }
 0x217   :  { %25322 = vst [vmem:[#allocation41_spill] sm:$0xff] %v21798_v1  ;;  %v940_v40 = vsel %vm794_vm1, %v21798_v1, 0.0  ;;  %v17654_v24 = vpop.f32.mrb[147].mxu0 }
 0x218   :  { %v941_v33 = vadd.f32 %v940_v40, %v939_v15 }
 0x21c   :  { %v21802_v28 = vpop.f32.mrb[148].mxu0 }
 0x21d   :  { %25323 = vst [vmem:[#allocation42_spill] sm:$0xff] %v21802_v28  ;;  %v942_v56 = vsel %vm794_vm1, %v21802_v28, 0.0  ;;  %v17657_v41 = vpop.f32.mrb[149].mxu0 }
 0x21e   :  { %v943_v51 = vadd.f32 %v942_v56, %v941_v33  ;;  %v21806_v50 = vpop.f32.mrb[150].mxu0 }
 0x21f   :  { %25324 = vst [vmem:[#allocation43_spill] sm:$0xff] %v21806_v50  ;;  %v944_v11 = vsel %vm794_vm1, %v21806_v50, 0.0  ;;  %v17658_v0 = vpop.f32.mrb[151].mxu0 }
 0x220   :  { %v945_v21 = vadd.f32 %v944_v11, %v943_v51 }
 0x224   :  { %v21810_v5 = vpop.f32.mrb[152].mxu0 }
 0x225   :  { %25325 = vst [vmem:[#allocation44_spill] sm:$0xff] %v21810_v5  ;;  %v946_v24 = vsel %vm794_vm1, %v21810_v5, 0.0  ;;  %v17661_v15 = vpop.f32.mrb[153].mxu0 }
 0x226   :  { %v947_v40 = vadd.f32 %v946_v24, %v945_v21  ;;  %v21814_v1 = vpop.f32.mrb[154].mxu0 }
 0x227   :  { %25326 = vst [vmem:[#allocation45_spill] sm:$0xff] %v21814_v1  ;;  %v948_v41 = vsel %vm794_vm1, %v21814_v1, 0.0  ;;  %v17662_v33 = vpop.f32.mrb[155].mxu0 }
 0x228   :  { %v949_v56 = vadd.f32 %v948_v41, %v947_v40 }
 0x22c   :  { %v21818_v28 = vpop.f32.mrb[156].mxu0 }
 0x22d   :  { %25327 = vst [vmem:[#allocation46_spill] sm:$0xff] %v21818_v28  ;;  %v950_v0 = vsel %vm794_vm1, %v21818_v28, 0.0  ;;  %v17665_v51 = vpop.f32.mrb[157].mxu0 }
 0x22e   :  { %v951_v11 = vadd.f32 %v950_v0, %v949_v56  ;;  %v21822_v50 = vpop.f32.mrb[158].mxu0 }
 0x22f   :  { %v952_v15 = vsel %vm794_vm1, %v21822_v50, 0.0  ;;  %v17666_v21 = vpop.f32.mrb[159].mxu0 }
 0x230   :  { %v953_v24 = vadd.f32 %v952_v15, %v951_v11 }
 0x234   :  { %v21826_v5 = vpop.f32.mrb[160].mxu0 }
 0x235   :  { %v954_v33 = vsel %vm794_vm1, %v21826_v5, 0.0  ;;  %v17669_v40 = vpop.f32.mrb[161].mxu0 }
 0x236   :  { %v955_v41 = vadd.f32 %v954_v33, %v953_v24  ;;  %v789_v1 = vpop.f32.mrb[162].mxu0 }
 0x237   :  { %v17670_v12 = vpop.f32.mrb[163].mxu0 }
 0x238   :  { %v956_v61 = vrot.slane %v955_v41, 4 }
 0x23a   :  { %v957_v28 = vadd.f32 %v956_v61, %v955_v41 }
 0x23c   :  { %v958_v51 = vrot.slane %v957_v28, 2 }
 0x23e   :  { %v959_v56 = vadd.f32 %v958_v51, %v957_v28 }
 0x240   :  { %v960_v0 = vrot.slane %v959_v56, 1 }
 0x242   :  { %v961_v43 = vadd.f32 %v960_v0, %v959_v56 }
 0x244   :  { %v21830_v32 = vmul.f32 0.0015432099, %v961_v43 }
 0x246   :  { %v964_v11 = vsub.f32 %v21436_v36, %v21830_v32  ;;  %v965_v15 = vsub.f32 %v21441_v39, %v21830_v32  ;;  %v966_v21 = vsub.f32 %v21449_v44, %v21830_v32  ;;  %v967_v1 = vsub.f32 %v21456_v49, %v21830_v32 }
 0x247   :  { %v968_v28 = vsub.f32 %v21462_v53, %v21830_v32  ;;  %v969_v43 = vsub.f32 %v21469_v58, %v21830_v32  ;;  %v970_v56 = vsub.f32 %v21475_v62, %v21830_v32  ;;  %v971_v53 = vsub.f32 %v21482_v4, %v21830_v32 }
 0x248   :  { %v1045_v12 = vmul.f32 %v964_v11, %v964_v11  ;;  %v1046_v61 = vmul.f32 %v965_v15, %v965_v15  ;;  %v1047_v24 = vmul.f32 %v966_v21, %v966_v21  ;;  %v1048_v33 = vmul.f32 %v967_v1, %v967_v1 }
 0x249   :  { %v1049_v0 = vmul.f32 %v968_v28, %v968_v28  ;;  %v1050_v21 = vmul.f32 %v969_v43, %v969_v43  ;;  %v972_v1 = vsub.f32 %v21488_v8, %v21830_v32  ;;  %v973_v28 = vsub.f32 %v21495_v13, %v21830_v32 }
 0x24a   :  { %v1126_v40 = vsel %vm794_vm1, %v1045_v12, 0.0  ;;  %v1127_v41 = vsel %vm794_vm1, %v1046_v61, 0.0  ;;  %v1129_v11 = vsel %vm794_vm1, %v1047_v24, 0.0  ;;  %v1131_v49 = vsel %vm794_vm1, %v1048_v33, 0.0 }
 0x24b   :  { %v1128_v51 = vadd.f32 %v1127_v41, %v1126_v40  ;;  %v1051_v12 = vmul.f32 %v970_v56, %v970_v56  ;;  %v1133_v61 = vsel %vm794_vm1, %v1049_v0, 0.0  ;;  %v1052_v41 = vmul.f32 %v971_v53, %v971_v53 }
 0x24c   :  { %v1135_v24 = vsel %vm794_vm1, %v1050_v21, 0.0  ;;  %v974_v43 = vsub.f32 %v21501_v17, %v21830_v32  ;;  %v975_v56 = vsub.f32 %v21508_v22, %v21830_v32  ;;  %v976_v53 = vsub.f32 %v21514_v26, %v21830_v32 }
 0x24d   :  { %v1130_v15 = vadd.f32 %v1129_v11, %v1128_v51  ;;  %v1053_v11 = vmul.f32 %v972_v1, %v972_v1  ;;  %v977_v1 = vsub.f32 %v21521_v31, %v21830_v32 }
 0x24f   :  { %v1132_v58 = vadd.f32 %v1131_v49, %v1130_v15  ;;  %v1137_v49 = vsel %vm794_vm1, %v1051_v12, 0.0  ;;  %v1054_v15 = vmul.f32 %v973_v28, %v973_v28  ;;  %v1141_v21 = vsel %vm794_vm1, %v1053_v11, 0.0 }
 0x250   :  { %v978_v28 = vsub.f32 %v21527_v35, %v21830_v32 }
 0x251   :  { %v1134_v40 = vadd.f32 %v1133_v61, %v1132_v58  ;;  %v1139_v58 = vsel %vm794_vm1, %v1052_v41, 0.0  ;;  %v1055_v61 = vmul.f32 %v974_v43, %v974_v43  ;;  %v1143_v12 = vsel %vm794_vm1, %v1054_v15, 0.0 }
 0x252   :  { %v979_v43 = vsub.f32 %v21534_v42, %v21830_v32 }
 0x253   :  { %v1136_v51 = vadd.f32 %v1135_v24, %v1134_v40  ;;  %v1056_v24 = vmul.f32 %v975_v56, %v975_v56  ;;  %v1145_v41 = vsel %vm794_vm1, %v1055_v61, 0.0  ;;  %v980_v56 = vsub.f32 %v21540_v47, %v21830_v32 }
 0x255   :  { %v1138_v33 = vadd.f32 %v1137_v49, %v1136_v51  ;;  %v1057_v49 = vmul.f32 %v976_v53, %v976_v53  ;;  %v1147_v11 = vsel %vm794_vm1, %v1056_v24, 0.0  ;;  %v981_v53 = vsub.f32 %v21547_v54, %v21830_v32 }
 0x257   :  { %v1140_v0 = vadd.f32 %v1139_v58, %v1138_v33  ;;  %v1058_v58 = vmul.f32 %v977_v1, %v977_v1  ;;  %v1149_v15 = vsel %vm794_vm1, %v1057_v49, 0.0  ;;  %v982_v1 = vsub.f32 %v21553_v59, %v21830_v32 }
 0x259   :  { %v1142_v40 = vadd.f32 %v1141_v21, %v1140_v0  ;;  %v1059_v21 = vmul.f32 %v978_v28, %v978_v28  ;;  %v1151_v61 = vsel %vm794_vm1, %v1058_v58, 0.0  ;;  %v983_v28 = vsub.f32 %v21560_v2, %v21830_v32 }
 0x25b   :  { %v1144_v51 = vadd.f32 %v1143_v12, %v1142_v40  ;;  %v1060_v12 = vmul.f32 %v979_v43, %v979_v43  ;;  %v1153_v24 = vsel %vm794_vm1, %v1059_v21, 0.0  ;;  %v984_v43 = vsub.f32 %v21566_v7, %v21830_v32 }
 0x25d   :  { %v1146_v33 = vadd.f32 %v1145_v41, %v1144_v51  ;;  %v1061_v41 = vmul.f32 %v980_v56, %v980_v56  ;;  %v1155_v49 = vsel %vm794_vm1, %v1060_v12, 0.0  ;;  %v985_v56 = vsub.f32 %v21573_v14, %v21830_v32 }
 0x25f   :  { %v1148_v0 = vadd.f32 %v1147_v11, %v1146_v33  ;;  %v1062_v11 = vmul.f32 %v981_v53, %v981_v53  ;;  %v1157_v58 = vsel %vm794_vm1, %v1061_v41, 0.0  ;;  %v986_v53 = vsub.f32 %v21579_v19, %v21830_v32 }
 0x261   :  { %v1150_v40 = vadd.f32 %v1149_v15, %v1148_v0  ;;  %v1063_v15 = vmul.f32 %v982_v1, %v982_v1  ;;  %v1159_v21 = vsel %vm794_vm1, %v1062_v11, 0.0  ;;  %v987_v1 = vsub.f32 %v21586_v25, %v21830_v32 }
 0x263   :  { %v1152_v51 = vadd.f32 %v1151_v61, %v1150_v40  ;;  %v1064_v61 = vmul.f32 %v983_v28, %v983_v28  ;;  %v1161_v12 = vsel %vm794_vm1, %v1063_v15, 0.0  ;;  %v988_v28 = vsub.f32 %v21592_v30, %v21830_v32 }
 0x265   :  { %v1154_v33 = vadd.f32 %v1153_v24, %v1152_v51  ;;  %v1065_v24 = vmul.f32 %v984_v43, %v984_v43  ;;  %v1163_v41 = vsel %vm794_vm1, %v1064_v61, 0.0  ;;  %v989_v43 = vsub.f32 %v21599_v38, %v21830_v32 }
 0x267   :  { %v1156_v0 = vadd.f32 %v1155_v49, %v1154_v33  ;;  %v1066_v49 = vmul.f32 %v985_v56, %v985_v56  ;;  %v1165_v11 = vsel %vm794_vm1, %v1065_v24, 0.0  ;;  %v990_v56 = vsub.f32 %v21605_v45, %v21830_v32 }
 0x269   :  { %v1158_v40 = vadd.f32 %v1157_v58, %v1156_v0  ;;  %v1067_v58 = vmul.f32 %v986_v53, %v986_v53  ;;  %v1167_v15 = vsel %vm794_vm1, %v1066_v49, 0.0  ;;  %v991_v53 = vsub.f32 %v21612_v52, %v21830_v32 }
 0x26b   :  { %v1160_v51 = vadd.f32 %v1159_v21, %v1158_v40  ;;  %v1068_v21 = vmul.f32 %v987_v1, %v987_v1  ;;  %v1169_v61 = vsel %vm794_vm1, %v1067_v58, 0.0  ;;  %v992_v1 = vsub.f32 %v21618_v60, %v21830_v32 }
 0x26d   :  { %v1162_v33 = vadd.f32 %v1161_v12, %v1160_v51  ;;  %v1069_v12 = vmul.f32 %v988_v28, %v988_v28  ;;  %v1171_v24 = vsel %vm794_vm1, %v1068_v21, 0.0  ;;  %v993_v28 = vsub.f32 %v21622_v3, %v21830_v32 }
 0x26f   :  { %v1164_v0 = vadd.f32 %v1163_v41, %v1162_v33  ;;  %v1070_v41 = vmul.f32 %v989_v43, %v989_v43  ;;  %v1173_v49 = vsel %vm794_vm1, %v1069_v12, 0.0  ;;  %v994_v43 = vsub.f32 %v21626_v10, %v21830_v32 }
 0x271   :  { %v1166_v40 = vadd.f32 %v1165_v11, %v1164_v0  ;;  %v1071_v11 = vmul.f32 %v990_v56, %v990_v56  ;;  %v1175_v58 = vsel %vm794_vm1, %v1070_v41, 0.0  ;;  %v995_v56 = vsub.f32 %v21630_v16, %v21830_v32 }
 0x273   :  { %v1168_v51 = vadd.f32 %v1167_v15, %v1166_v40  ;;  %v1072_v15 = vmul.f32 %v991_v53, %v991_v53  ;;  %v1177_v21 = vsel %vm794_vm1, %v1071_v11, 0.0  ;;  %v996_v53 = vsub.f32 %v21634_v23, %v21830_v32 }
 0x275   :  { %v1170_v33 = vadd.f32 %v1169_v61, %v1168_v51  ;;  %v1073_v61 = vmul.f32 %v992_v1, %v992_v1  ;;  %v1179_v12 = vsel %vm794_vm1, %v1072_v15, 0.0  ;;  %v997_v1 = vsub.f32 %v21638_v29, %v21830_v32 }
 0x277   :  { %v1172_v0 = vadd.f32 %v1171_v24, %v1170_v33  ;;  %v1074_v24 = vmul.f32 %v993_v28, %v993_v28  ;;  %v1181_v41 = vsel %vm794_vm1, %v1073_v61, 0.0  ;;  %v998_v28 = vsub.f32 %v21642_v37, %v21830_v32 }
 0x279   :  { %v1174_v40 = vadd.f32 %v1173_v49, %v1172_v0  ;;  %v1075_v49 = vmul.f32 %v994_v43, %v994_v43  ;;  %v1183_v11 = vsel %vm794_vm1, %v1074_v24, 0.0  ;;  %v999_v43 = vsub.f32 %v21646_v46, %v21830_v32 }
 0x27b   :  { %v1176_v51 = vadd.f32 %v1175_v58, %v1174_v40  ;;  %v1076_v58 = vmul.f32 %v995_v56, %v995_v56  ;;  %v1185_v15 = vsel %vm794_vm1, %v1075_v49, 0.0  ;;  %v1000_v56 = vsub.f32 %v21650_v55, %v21830_v32 }
 0x27d   :  { %v1178_v33 = vadd.f32 %v1177_v21, %v1176_v51  ;;  %v1077_v21 = vmul.f32 %v996_v53, %v996_v53  ;;  %v1187_v61 = vsel %vm794_vm1, %v1076_v58, 0.0  ;;  %v1001_v53 = vsub.f32 %v21654_v63, %v21830_v32 }
 0x27f   :  { %v1180_v0 = vadd.f32 %v1179_v12, %v1178_v33  ;;  %v1078_v12 = vmul.f32 %v997_v1, %v997_v1  ;;  %v1189_v24 = vsel %vm794_vm1, %v1077_v21, 0.0  ;;  %v1002_v1 = vsub.f32 %v21658_v9, %v21830_v32 }
 0x281   :  { %v1182_v40 = vadd.f32 %v1181_v41, %v1180_v0  ;;  %v1079_v41 = vmul.f32 %v998_v28, %v998_v28  ;;  %v1191_v49 = vsel %vm794_vm1, %v1078_v12, 0.0  ;;  %v1003_v28 = vsub.f32 %v21662_v18, %v21830_v32 }
 0x283   :  { %v1184_v51 = vadd.f32 %v1183_v11, %v1182_v40  ;;  %v1080_v11 = vmul.f32 %v999_v43, %v999_v43  ;;  %v1193_v58 = vsel %vm794_vm1, %v1079_v41, 0.0  ;;  %v1004_v43 = vsub.f32 %v21666_v27, %v21830_v32 }
 0x285   :  { %v1186_v33 = vadd.f32 %v1185_v15, %v1184_v51  ;;  %v1081_v15 = vmul.f32 %v1000_v56, %v1000_v56  ;;  %v1195_v21 = vsel %vm794_vm1, %v1080_v11, 0.0  ;;  %v1005_v56 = vsub.f32 %v21670_v34, %v21830_v32 }
 0x287   :  { %v1188_v0 = vadd.f32 %v1187_v61, %v1186_v33  ;;  %v1082_v61 = vmul.f32 %v1001_v53, %v1001_v53  ;;  %v1197_v12 = vsel %vm794_vm1, %v1081_v15, 0.0  ;;  %v1006_v53 = vsub.f32 %v21674_v48, %v21830_v32 }
 0x289   :  { %v1190_v40 = vadd.f32 %v1189_v24, %v1188_v0  ;;  %v1083_v24 = vmul.f32 %v1002_v1, %v1002_v1  ;;  %v1199_v41 = vsel %vm794_vm1, %v1082_v61, 0.0  ;;  %v1007_v1 = vsub.f32 %v21678_v57, %v21830_v32 }
 0x28b   :  { %v1192_v51 = vadd.f32 %v1191_v49, %v1190_v40  ;;  %v1084_v49 = vmul.f32 %v1003_v28, %v1003_v28  ;;  %v1201_v11 = vsel %vm794_vm1, %v1083_v24, 0.0  ;;  %v1008_v28 = vsub.f32 %v21682_v6, %v21830_v32 }
 0x28d   :  { %v1194_v33 = vadd.f32 %v1193_v58, %v1192_v51  ;;  %v1085_v58 = vmul.f32 %v1004_v43, %v1004_v43  ;;  %v1203_v15 = vsel %vm794_vm1, %v1084_v49, 0.0  ;;  %v1009_v43 = vsub.f32 %v21686_v20, %v21830_v32 }
 0x28e   :  { %v1089_v57 = vmul.f32 %v1008_v28, %v1008_v28 }
 0x28f   :  { %v1196_v0 = vadd.f32 %v1195_v21, %v1194_v33  ;;  %v1086_v21 = vmul.f32 %v1005_v56, %v1005_v56  ;;  %v1205_v61 = vsel %vm794_vm1, %v1085_v58, 0.0  ;;  %v1090_v6 = vmul.f32 %v1009_v43, %v1009_v43 }
 0x291   :  { %v1198_v40 = vadd.f32 %v1197_v12, %v1196_v0  ;;  %v1087_v12 = vmul.f32 %v1006_v53, %v1006_v53  ;;  %v1207_v24 = vsel %vm794_vm1, %v1086_v21, 0.0  ;;  %v1213_v21 = vsel %vm794_vm1, %v1089_v57, 0.0 }
 0x293   :  { %v1200_v51 = vadd.f32 %v1199_v41, %v1198_v40  ;;  %v1088_v41 = vmul.f32 %v1007_v1, %v1007_v1  ;;  %v1209_v49 = vsel %vm794_vm1, %v1087_v12, 0.0  ;;  %v1215_v12 = vsel %vm794_vm1, %v1090_v6, 0.0 }
 0x295   :  { %v1202_v33 = vadd.f32 %v1201_v11, %v1200_v51  ;;  %v25328_v11 = vld [vmem:[#allocation14_spill] sm:$0xff]  ;;  %v1211_v58 = vsel %vm794_vm1, %v1088_v41, 0.0 }
 0x296   :  { %v1010_v56 = vsub.f32 %v25328_v11, %v21830_v32 }
 0x297   :  { %v1204_v0 = vadd.f32 %v1203_v15, %v1202_v33  ;;  %v25329_v15 = vld [vmem:[#allocation15_spill] sm:$0xff] }
 0x298   :  { %v1011_v53 = vsub.f32 %v25329_v15, %v21830_v32  ;;  %v1091_v20 = vmul.f32 %v1010_v56, %v1010_v56 }
 0x299   :  { %v1206_v40 = vadd.f32 %v1205_v61, %v1204_v0  ;;  %v25330_v61 = vld [vmem:[#allocation16_spill] sm:$0xff] }
 0x29a   :  { %v1012_v1 = vsub.f32 %v25330_v61, %v21830_v32  ;;  %v1092_v11 = vmul.f32 %v1011_v53, %v1011_v53  ;;  %v1217_v41 = vsel %vm794_vm1, %v1091_v20, 0.0 }
 0x29b   :  { %v1208_v51 = vadd.f32 %v1207_v24, %v1206_v40  ;;  %v25331_v24 = vld [vmem:[#allocation17_spill] sm:$0xff] }
 0x29c   :  { %v1013_v28 = vsub.f32 %v25331_v24, %v21830_v32  ;;  %v1093_v15 = vmul.f32 %v1012_v1, %v1012_v1  ;;  %v1219_v57 = vsel %vm794_vm1, %v1092_v11, 0.0 }
 0x29d   :  { %v1210_v33 = vadd.f32 %v1209_v49, %v1208_v51  ;;  %v25332_v49 = vld [vmem:[#allocation18_spill] sm:$0xff] }
 0x29e   :  { %v1014_v43 = vsub.f32 %v25332_v49, %v21830_v32  ;;  %v1094_v61 = vmul.f32 %v1013_v28, %v1013_v28  ;;  %v1221_v6 = vsel %vm794_vm1, %v1093_v15, 0.0 }
 0x29f   :  { %v1212_v0 = vadd.f32 %v1211_v58, %v1210_v33  ;;  %v25333_v58 = vld [vmem:[#allocation19_spill] sm:$0xff] }
 0x2a0   :  { %v1015_v56 = vsub.f32 %v25333_v58, %v21830_v32  ;;  %v1095_v24 = vmul.f32 %v1014_v43, %v1014_v43  ;;  %v1223_v20 = vsel %vm794_vm1, %v1094_v61, 0.0 }
 0x2a1   :  { %v1214_v40 = vadd.f32 %v1213_v21, %v1212_v0  ;;  %v25334_v21 = vld [vmem:[#allocation20_spill] sm:$0xff] }
 0x2a2   :  { %v1016_v53 = vsub.f32 %v25334_v21, %v21830_v32  ;;  %v1096_v49 = vmul.f32 %v1015_v56, %v1015_v56  ;;  %v1225_v11 = vsel %vm794_vm1, %v1095_v24, 0.0 }
 0x2a3   :  { %v1216_v51 = vadd.f32 %v1215_v12, %v1214_v40  ;;  %v25335_v12 = vld [vmem:[#allocation21_spill] sm:$0xff] }
 0x2a4   :  { %v1017_v1 = vsub.f32 %v25335_v12, %v21830_v32  ;;  %v1097_v58 = vmul.f32 %v1016_v53, %v1016_v53  ;;  %v1227_v15 = vsel %vm794_vm1, %v1096_v49, 0.0 }
 0x2a5   :  { %v1218_v33 = vadd.f32 %v1217_v41, %v1216_v51  ;;  %v25336_v41 = vld [vmem:[#allocation22_spill] sm:$0xff] }
 0x2a6   :  { %v1018_v28 = vsub.f32 %v25336_v41, %v21830_v32  ;;  %v1098_v21 = vmul.f32 %v1017_v1, %v1017_v1  ;;  %v1229_v61 = vsel %vm794_vm1, %v1097_v58, 0.0 }
 0x2a7   :  { %v1220_v0 = vadd.f32 %v1219_v57, %v1218_v33  ;;  %v25337_v57 = vld [vmem:[#allocation23_spill] sm:$0xff] }
 0x2a8   :  { %v1019_v43 = vsub.f32 %v25337_v57, %v21830_v32  ;;  %v1099_v12 = vmul.f32 %v1018_v28, %v1018_v28  ;;  %v1231_v24 = vsel %vm794_vm1, %v1098_v21, 0.0 }
 0x2a9   :  { %v1222_v40 = vadd.f32 %v1221_v6, %v1220_v0  ;;  %v25338_v6 = vld [vmem:[#allocation24_spill] sm:$0xff] }
 0x2aa   :  { %v1020_v56 = vsub.f32 %v25338_v6, %v21830_v32  ;;  %v1100_v41 = vmul.f32 %v1019_v43, %v1019_v43  ;;  %v1233_v49 = vsel %vm794_vm1, %v1099_v12, 0.0 }
 0x2ab   :  { %v1224_v51 = vadd.f32 %v1223_v20, %v1222_v40  ;;  %v25339_v20 = vld [vmem:[#allocation25_spill] sm:$0xff] }
 0x2ac   :  { %v1021_v53 = vsub.f32 %v25339_v20, %v21830_v32  ;;  %v1101_v57 = vmul.f32 %v1020_v56, %v1020_v56  ;;  %v1235_v58 = vsel %vm794_vm1, %v1100_v41, 0.0 }
 0x2ad   :  { %v1226_v33 = vadd.f32 %v1225_v11, %v1224_v51  ;;  %v25340_v11 = vld [vmem:[#allocation26_spill] sm:$0xff] }
 0x2ae   :  { %v1022_v1 = vsub.f32 %v25340_v11, %v21830_v32  ;;  %v1102_v6 = vmul.f32 %v1021_v53, %v1021_v53  ;;  %v1237_v21 = vsel %vm794_vm1, %v1101_v57, 0.0 }
 0x2af   :  { %v1228_v0 = vadd.f32 %v1227_v15, %v1226_v33  ;;  %v25341_v15 = vld [vmem:[#allocation27_spill] sm:$0xff] }
 0x2b0   :  { %v1023_v28 = vsub.f32 %v25341_v15, %v21830_v32  ;;  %v1103_v20 = vmul.f32 %v1022_v1, %v1022_v1  ;;  %v1239_v12 = vsel %vm794_vm1, %v1102_v6, 0.0 }
 0x2b1   :  { %v1230_v40 = vadd.f32 %v1229_v61, %v1228_v0  ;;  %v25342_v61 = vld [vmem:[#allocation28_spill] sm:$0xff] }
 0x2b2   :  { %v1024_v43 = vsub.f32 %v25342_v61, %v21830_v32  ;;  %v1104_v11 = vmul.f32 %v1023_v28, %v1023_v28  ;;  %v1241_v41 = vsel %vm794_vm1, %v1103_v20, 0.0 }
 0x2b3   :  { %v1232_v51 = vadd.f32 %v1231_v24, %v1230_v40  ;;  %v25343_v24 = vld [vmem:[#allocation29_spill] sm:$0xff] }
 0x2b4   :  { %v1025_v56 = vsub.f32 %v25343_v24, %v21830_v32  ;;  %v1105_v15 = vmul.f32 %v1024_v43, %v1024_v43  ;;  %v1243_v57 = vsel %vm794_vm1, %v1104_v11, 0.0 }
 0x2b5   :  { %v1234_v33 = vadd.f32 %v1233_v49, %v1232_v51  ;;  %v25344_v49 = vld [vmem:[#allocation30_spill] sm:$0xff] }
 0x2b6   :  { %v1026_v53 = vsub.f32 %v25344_v49, %v21830_v32  ;;  %v1106_v61 = vmul.f32 %v1025_v56, %v1025_v56  ;;  %v1245_v6 = vsel %vm794_vm1, %v1105_v15, 0.0 }
 0x2b7   :  { %v1236_v0 = vadd.f32 %v1235_v58, %v1234_v33  ;;  %v25345_v58 = vld [vmem:[#allocation31_spill] sm:$0xff] }
 0x2b8   :  { %v1027_v1 = vsub.f32 %v25345_v58, %v21830_v32  ;;  %v1107_v24 = vmul.f32 %v1026_v53, %v1026_v53  ;;  %v1247_v20 = vsel %vm794_vm1, %v1106_v61, 0.0 }
 0x2b9   :  { %v1238_v40 = vadd.f32 %v1237_v21, %v1236_v0  ;;  %v25346_v21 = vld [vmem:[#allocation32_spill] sm:$0xff] }
 0x2ba   :  { %v1028_v28 = vsub.f32 %v25346_v21, %v21830_v32  ;;  %v1108_v49 = vmul.f32 %v1027_v1, %v1027_v1  ;;  %v1249_v11 = vsel %vm794_vm1, %v1107_v24, 0.0  ;;  %v22041_v24 = vld [vmem:[%s25167_s2] sm:$0xff]  }
 0x2bb   :  { %v1240_v51 = vadd.f32 %v1239_v12, %v1238_v40  ;;  %v25347_v12 = vld [vmem:[#allocation33_spill] sm:$0xff]  ;;  %25351 = vst [vmem:[#allocation47_spill] sm:$0xff] %v22041_v24 }
 0x2bc   :  { %v1029_v43 = vsub.f32 %v25347_v12, %v21830_v32  ;;  %v1109_v58 = vmul.f32 %v1028_v28, %v1028_v28  ;;  %v1251_v15 = vsel %vm794_vm1, %v1108_v49, 0.0  ;;  %v21076_v28 = vld [vmem:[%s25167_s2 + $0x8] sm:$0xff]  }
 0x2bd   :  { %v1242_v33 = vadd.f32 %v1241_v41, %v1240_v51  ;;  %v25348_v41 = vld [vmem:[#allocation34_spill] sm:$0xff]  ;;  %17671 = vmatprep.subr.bf16.mxu1 %v21076_v28 }
 0x2be   :  { %v1030_v56 = vsub.f32 %v25348_v41, %v21830_v32  ;;  %v1110_v21 = vmul.f32 %v1029_v43, %v1029_v43  ;;  %v1253_v61 = vsel %vm794_vm1, %v1109_v58, 0.0  ;;  %v25352_v43 = vld [vmem:[#allocation37_spill] sm:$0xff]  ;;  %v25353_v58 = vld [vmem:[#allocation38_spill] sm:$0xff]  ;;  %17672 = vmatpush3.bf16.msra.mxu1 %v21076_v28 }
 0x2bf   :  { %v1244_v0 = vadd.f32 %v1243_v57, %v1242_v33  ;;  %v25349_v57 = vld [vmem:[#allocation35_spill] sm:$0xff]  ;;  %v1033_v49 = vsub.f32 %v25352_v43, %v21830_v32  ;;  %17709 = vmatprep.subr.bf16.mxu1 %v22041_v24 }
 0x2c0   :  { %v1031_v53 = vsub.f32 %v25349_v57, %v21830_v32  ;;  %v1111_v12 = vmul.f32 %v1030_v56, %v1030_v56  ;;  %v1034_v56 = vsub.f32 %v25353_v58, %v21830_v32 }
 0x2c1   :  { %v1246_v40 = vadd.f32 %v1245_v6, %v1244_v0  ;;  %v25350_v6 = vld [vmem:[#allocation36_spill] sm:$0xff]  ;;  %v1114_v57 = vmul.f32 %v1033_v49, %v1033_v49 }
 0x2c2   :  { %v1032_v1 = vsub.f32 %v25350_v6, %v21830_v32 }
 0x2c3   :  { %v1248_v51 = vadd.f32 %v1247_v20, %v1246_v40  ;;  %v1112_v20 = vmul.f32 %v1031_v53, %v1031_v53 }
 0x2c5   :  { %v1250_v33 = vadd.f32 %v1249_v11, %v1248_v51  ;;  %v1255_v51 = vsel %vm794_vm1, %v1110_v21, 0.0  ;;  %v1259_v53 = vsel %vm794_vm1, %v1112_v20, 0.0  ;;  %v25355_v21 = vld [vmem:[#allocation40_spill] sm:$0xff] }
 0x2c7   :  { %v1252_v0 = vadd.f32 %v1251_v15, %v1250_v33  ;;  %v1113_v33 = vmul.f32 %v1032_v1, %v1032_v1  ;;  %v1257_v15 = vsel %vm794_vm1, %v1111_v12, 0.0  ;;  %v25356_v12 = vld [vmem:[#allocation41_spill] sm:$0xff] }
 0x2c8   :  { %v1037_v28 = vsub.f32 %v25356_v12, %v21830_v32 }
 0x2c9   :  { %v1254_v40 = vadd.f32 %v1253_v61, %v1252_v0  ;;  %v25354_v61 = vld [vmem:[#allocation39_spill] sm:$0xff]  ;;  %v1261_v58 = vsel %vm794_vm1, %v1113_v33, 0.0  ;;  %v25359_v33 = vld [vmem:[#allocation44_spill] sm:$0xff] }
 0x2ca   :  { %v1035_v6 = vsub.f32 %v25354_v61, %v21830_v32  ;;  %v25357_v61 = vld [vmem:[#allocation42_spill] sm:$0xff] }
 0x2cb   :  { %v1256_v11 = vadd.f32 %v1255_v51, %v1254_v40  ;;  %v1036_v40 = vsub.f32 %v25355_v21, %v21830_v32  ;;  %v1115_v51 = vmul.f32 %v1034_v56, %v1034_v56  ;;  %v1038_v49 = vsub.f32 %v25357_v61, %v21830_v32 }
 0x2cc   :  { %v1118_v21 = vmul.f32 %v1037_v28, %v1037_v28 }
 0x2cd   :  { %v1258_v0 = vadd.f32 %v1257_v15, %v1256_v11  ;;  %v1116_v11 = vmul.f32 %v1035_v6, %v1035_v6  ;;  %v1263_v15 = vsel %vm794_vm1, %v1114_v57, 0.0  ;;  %v1117_v41 = vmul.f32 %v1036_v40, %v1036_v40 }
 0x2ce   :  { %v1265_v20 = vsel %vm794_vm1, %v1115_v51, 0.0  ;;  %v1040_v6 = vsub.f32 %v25359_v33, %v21830_v32  ;;  %v1119_v12 = vmul.f32 %v1038_v49, %v1038_v49  ;;  %v1043_v49 = vsub.f32 %v21822_v50, %v21830_v32 }
 0x2cf   :  { %v1260_v43 = vadd.f32 %v1259_v53, %v1258_v0  ;;  %v25358_v53 = vld [vmem:[#allocation43_spill] sm:$0xff]  ;;  %v1269_v57 = vsel %vm794_vm1, %v1117_v41, 0.0 }
 0x2d0   :  { %v1039_v56 = vsub.f32 %v25358_v53, %v21830_v32  ;;  %v1121_v53 = vmul.f32 %v1040_v6, %v1040_v6 }
 0x2d1   :  { %v1262_v1 = vadd.f32 %v1261_v58, %v1260_v43  ;;  %v1267_v43 = vsel %vm794_vm1, %v1116_v11, 0.0  ;;  %v1273_v11 = vsel %vm794_vm1, %v1119_v12, 0.0 }
 0x2d2   :  { %v1120_v61 = vmul.f32 %v1039_v56, %v1039_v56  ;;  %v1044_v56 = vsub.f32 %v21826_v5, %v21830_v32 }
 0x2d3   :  { %v1264_v24 = vadd.f32 %v1263_v15, %v1262_v1  ;;  %v25360_v15 = vld [vmem:[#allocation45_spill] sm:$0xff] }
 0x2d4   :  { %v1041_v40 = vsub.f32 %v25360_v15, %v21830_v32  ;;  %v1275_v41 = vsel %vm794_vm1, %v1120_v61, 0.0  ;;  %v1125_v12 = vmul.f32 %v1044_v56, %v1044_v56 }
 0x2d5   :  { %v1266_v0 = vadd.f32 %v1265_v20, %v1264_v24  ;;  %v1271_v24 = vsel %vm794_vm1, %v1118_v21, 0.0  ;;  %v25361_v20 = vld [vmem:[#allocation46_spill] sm:$0xff]  ;;  %v1277_v21 = vsel %vm794_vm1, %v1121_v53, 0.0 }
 0x2d6   :  { %v1042_v28 = vsub.f32 %v25361_v20, %v21830_v32  ;;  %v1285_v61 = vsel %vm794_vm1, %v1125_v12, 0.0 }
 0x2d7   :  { %v1268_v58 = vadd.f32 %v1267_v43, %v1266_v0  ;;  %v1122_v43 = vmul.f32 %v1041_v40, %v1041_v40 }
 0x2d9   :  { %v1270_v1 = vadd.f32 %v1269_v57, %v1268_v58  ;;  %v1123_v57 = vmul.f32 %v1042_v28, %v1042_v28  ;;  %v1279_v6 = vsel %vm794_vm1, %v1122_v43, 0.0  ;;  %v1300_v43 = vlaneseq }
 0x2db   :  { %v1272_v51 = vadd.f32 %v1271_v24, %v1270_v1  ;;  %v1124_v24 = vmul.f32 %v1043_v49, %v1043_v49  ;;  %v1301_v56 = vshrl.u32 %v1300_v43, 7  ;;  %v25367_v43 = vld [vmem:[#allocation12_spill] sm:$0xff] }
 0x2dd   :  { %v1274_v0 = vadd.f32 %v1273_v11, %v1272_v51  ;;  %v1281_v51 = vsel %vm794_vm1, %v1123_v57, 0.0  ;;  %v1283_v50 = vsel %vm794_vm1, %v1124_v24, 0.0  ;;  %v22087_v57 = vsub.s32 0, %v1301_v56  ;;  %v25368_v56 = vld [vmem:[#allocation13_spill] sm:$0xff] }
 0x2df   :  { %v1276_v58 = vadd.f32 %v1275_v41, %v1274_v0  ;;  %25362 = vst [vmem:[#allocation44_spill] sm:$0xff] %v22087_v57 }
 0x2e1   :  { %v1278_v1 = vadd.f32 %v1277_v21, %v1276_v58 }
 0x2e3   :  { %v1280_v20 = vadd.f32 %v1279_v6, %v1278_v1  ;;  %v793_v6 = vld [vmem:[%s25172_s7] sm:$0x1] }
 0x2e5   :  { %v1282_v11 = vadd.f32 %v1281_v51, %v1280_v20  ;;  %v792_v20 = vld [vmem:[%s25171_s6] sm:$0x1] }
 0x2e7   :  { %v1284_v40 = vadd.f32 %v1283_v50, %v1282_v11 }
 0x2e9   :  { %v1286_v0 = vadd.f32 %v1285_v61, %v1284_v40  ;;  %v25363_v61 = vld [vmem:[#allocation8_spill] sm:$0xff] }
 0x2eb   :  { %v1287_v41 = vrot.slane %v1286_v0, 4 }
 0x2ed   :  { %v1288_v5 = vadd.f32 %v1287_v41, %v1286_v0 }
 0x2ef   :  { %v1289_v28 = vrot.slane %v1288_v5, 2 }
 0x2f1   :  { %v1290_v15 = vadd.f32 %v1289_v28, %v1288_v5  ;;  %v25365_v5 = vld [vmem:[#allocation10_spill] sm:$0xff] }
 0x2f3   :  { %v1291_v53 = vrot.slane %v1290_v15, 1 }
 0x2f5   :  { %v1292_v58 = vadd.f32 %v1291_v53, %v1290_v15 }
 0x2f7   :  { %v1293_v49 = vmul.f32 0.0015432099, %v1292_v58 }
 0x2f9   :  { %v1294_v21 = vadd.f32 1e-05, %v1293_v49 }
 0x2fb   :  { %21167 = vrsqrt.f32 %v1294_v21  ;;  %v25366_v21 = vld [vmem:[#allocation11_spill] sm:$0xff] }
 0x305   :  { %v21168_v1 = vpop.eup %21167 }
 0x306   :  { %v1296_v24 = vmul.f32 %v21168_v1, %v792_v20  ;;  %v25369_v20 = vld [vmem:[#allocation14_spill] sm:$0xff]  ;;  %v25370_v1 = vld [vmem:[#allocation15_spill] sm:$0xff] }
 0x308   :  { %v1297_v12 = vmul.f32 %v1296_v24, %v21830_v32  ;;  %v22094_v15 = vrot.slane %v1296_v24, %v22087_v57  ;;  %v25364_v32 = vld [vmem:[#allocation9_spill] sm:$0xff]  ;;  %v25371_v24 = vld [vmem:[#allocation16_spill] sm:$0xff] }
 0x30a   :  { %v1298_v51 = vsub.f32 %v793_v6, %v1297_v12  ;;  %v22098_v11 = vmul.f32 %v22094_v15, %v21436_v36  ;;  %v22102_v50 = vmul.f32 %v22094_v15, %v21441_v39  ;;  %v22106_v40 = vmul.f32 %v22094_v15, %v21449_v44  ;;  %v25372_v12 = vld [vmem:[#allocation17_spill] sm:$0xff] }
 0x30b   :  { %v22110_v0 = vmul.f32 %v22094_v15, %v25363_v61  ;;  %v22114_v41 = vmul.f32 %v22094_v15, %v25364_v32  ;;  %v22118_v36 = vmul.f32 %v22094_v15, %v25365_v5  ;;  %v22125_v39 = vmul.f32 %v22094_v15, %v21475_v62  ;;  %v25373_v61 = vld [vmem:[#allocation18_spill] sm:$0xff]  ;;  %v25375_v5 = vld [vmem:[#allocation19_spill] sm:$0xff] }
 0x30c   :  { %v22121_v28 = vrot.slane %v1298_v51, %v22087_v57  ;;  %v22129_v44 = vmul.f32 %v22094_v15, %v21482_v4  ;;  %v22133_v53 = vmul.f32 %v22094_v15, %v21488_v8  ;;  %v22137_v58 = vmul.f32 %v22094_v15, %v21495_v13  ;;  %v25383_v57 = vld [vmem:[#allocation23_spill] sm:$0xff] }
 0x30d   :  { %v22141_v49 = vmul.f32 %v22094_v15, %v21501_v17  ;;  %v22145_v62 = vmul.f32 %v22094_v15, %v21508_v22  ;;  %v22149_v4 = vmul.f32 %v22094_v15, %v21514_v26  ;;  %v22153_v8 = vmul.f32 %v22094_v15, %v21521_v31 }
 0x30e   :  { %v22157_v13 = vmul.f32 %v22094_v15, %v21527_v35  ;;  %v22161_v17 = vmul.f32 %v22094_v15, %v21534_v42  ;;  %v22165_v22 = vmul.f32 %v22094_v15, %v21540_v47  ;;  %v22169_v26 = vmul.f32 %v22094_v15, %v21547_v54 }
 0x30f   :  { %v22173_v31 = vmul.f32 %v22094_v15, %v21553_v59  ;;  %v22177_v35 = vmul.f32 %v22094_v15, %v21560_v2  ;;  %v22181_v42 = vmul.f32 %v22094_v15, %v21566_v7  ;;  %v22185_v47 = vmul.f32 %v22094_v15, %v21573_v14 }
 0x310   :  { %v22189_v54 = vmul.f32 %v22094_v15, %v21579_v19  ;;  %v22193_v59 = vmul.f32 %v22094_v15, %v21586_v25  ;;  %v22197_v2 = vmul.f32 %v22094_v15, %v21592_v30  ;;  %v22201_v7 = vmul.f32 %v22094_v15, %v21599_v38 }
 0x311   :  { %v22205_v14 = vmul.f32 %v22094_v15, %v21605_v45  ;;  %v22209_v19 = vmul.f32 %v22094_v15, %v21612_v52  ;;  %v22213_v25 = vmul.f32 %v22094_v15, %v21618_v60  ;;  %v22217_v30 = vmul.f32 %v22094_v15, %v21622_v3 }
 0x312   :  { %v22221_v38 = vmul.f32 %v22094_v15, %v21626_v10  ;;  %v22225_v45 = vmul.f32 %v22094_v15, %v21630_v16  ;;  %v22229_v52 = vmul.f32 %v22094_v15, %v21634_v23  ;;  %v22233_v60 = vmul.f32 %v22094_v15, %v21638_v29 }
 0x313   :  { %v22237_v3 = vmul.f32 %v22094_v15, %v21642_v37  ;;  %v22241_v10 = vmul.f32 %v22094_v15, %v21646_v46  ;;  %v22245_v16 = vmul.f32 %v22094_v15, %v21650_v55  ;;  %v22249_v23 = vmul.f32 %v22094_v15, %v21654_v63 }
 0x314   :  { %v22253_v29 = vmul.f32 %v22094_v15, %v21658_v9  ;;  %v22257_v37 = vmul.f32 %v22094_v15, %v21662_v18  ;;  %v22261_v46 = vmul.f32 %v22094_v15, %v21666_v27  ;;  %v22265_v55 = vmul.f32 %v22094_v15, %v21670_v34 }
 0x315   :  { %v22269_v63 = vmul.f32 %v22094_v15, %v21674_v48  ;;  %v22273_v9 = vmul.f32 %v22094_v15, %v25366_v21  ;;  %v22277_v18 = vmul.f32 %v22094_v15, %v25367_v43  ;;  %v22281_v27 = vmul.f32 %v22094_v15, %v25368_v56  ;;  %v25377_v43 = vld [vmem:[#allocation20_spill] sm:$0xff] }
 0x316   :  { %v22285_v34 = vmul.f32 %v22094_v15, %v25369_v20  ;;  %v22289_v48 = vmul.f32 %v22094_v15, %v25370_v1  ;;  %v22293_v6 = vmul.f32 %v22094_v15, %v25371_v24  ;;  %v22297_v51 = vmul.f32 %v22094_v15, %v25372_v12  ;;  %v25379_v20 = vld [vmem:[#allocation21_spill] sm:$0xff]  ;;  %v25381_v24 = vld [vmem:[#allocation22_spill] sm:$0xff] }
 0x317   :  { %v22301_v32 = vmul.f32 %v22094_v15, %v25373_v61  ;;  %v22305_v21 = vmul.f32 %v22094_v15, %v25375_v5  ;;  %v22309_v56 = vmul.f32 %v22094_v15, %v25377_v43  ;;  %v22313_v1 = vmul.f32 %v22094_v15, %v25379_v20 }
 0x318   :  { %v22317_v12 = vmul.f32 %v22094_v15, %v25381_v24  ;;  %v22321_v61 = vmul.f32 %v22094_v15, %v25383_v57 }
 0x319   :  { %25374 = vst [vmem:[#allocation8_spill] sm:$0xff] %v22301_v32  ;;  %25376 = vst [vmem:[#allocation9_spill] sm:$0xff] %v22305_v21  ;;  %v25385_v32 = vld [vmem:[#allocation24_spill] sm:$0xff]  ;;  %v25387_v21 = vld [vmem:[#allocation25_spill] sm:$0xff] }
 0x31a   :  { %25378 = vst [vmem:[#allocation10_spill] sm:$0xff] %v22309_v56  ;;  %25380 = vst [vmem:[#allocation11_spill] sm:$0xff] %v22313_v1  ;;  %v22325_v5 = vmul.f32 %v22094_v15, %v25385_v32  ;;  %v22329_v43 = vmul.f32 %v22094_v15, %v25387_v21  ;;  %v25389_v56 = vld [vmem:[#allocation26_spill] sm:$0xff]  ;;  %v25391_v1 = vld [vmem:[#allocation27_spill] sm:$0xff] }
 0x31b   :  { %25382 = vst [vmem:[#allocation12_spill] sm:$0xff] %v22317_v12  ;;  %25384 = vst [vmem:[#allocation13_spill] sm:$0xff] %v22321_v61  ;;  %v22333_v20 = vmul.f32 %v22094_v15, %v25389_v56  ;;  %v22337_v24 = vmul.f32 %v22094_v15, %v25391_v1  ;;  %v25393_v12 = vld [vmem:[#allocation28_spill] sm:$0xff]  ;;  %v25395_v61 = vld [vmem:[#allocation29_spill] sm:$0xff] }
 0x31c   :  { %25386 = vst [vmem:[#allocation14_spill] sm:$0xff] %v22325_v5  ;;  %25388 = vst [vmem:[#allocation15_spill] sm:$0xff] %v22329_v43  ;;  %v22341_v57 = vmul.f32 %v22094_v15, %v25393_v12  ;;  %v22345_v32 = vmul.f32 %v22094_v15, %v25395_v61  ;;  %v25397_v5 = vld [vmem:[#allocation30_spill] sm:$0xff]  ;;  %v25399_v43 = vld [vmem:[#allocation31_spill] sm:$0xff] }
 0x31d   :  { %25390 = vst [vmem:[#allocation16_spill] sm:$0xff] %v22333_v20  ;;  %25392 = vst [vmem:[#allocation17_spill] sm:$0xff] %v22337_v24  ;;  %v22349_v21 = vmul.f32 %v22094_v15, %v25397_v5  ;;  %v22353_v56 = vmul.f32 %v22094_v15, %v25399_v43  ;;  %v25401_v20 = vld [vmem:[#allocation32_spill] sm:$0xff]  ;;  %v25403_v24 = vld [vmem:[#allocation33_spill] sm:$0xff] }
 0x31e   :  { %25394 = vst [vmem:[#allocation18_spill] sm:$0xff] %v22341_v57  ;;  %25396 = vst [vmem:[#allocation19_spill] sm:$0xff] %v22345_v32  ;;  %v22357_v1 = vmul.f32 %v22094_v15, %v25401_v20  ;;  %v22361_v12 = vmul.f32 %v22094_v15, %v25403_v24  ;;  %v25405_v57 = vld [vmem:[#allocation34_spill] sm:$0xff]  ;;  %v25407_v32 = vld [vmem:[#allocation35_spill] sm:$0xff] }
 0x31f   :  { %25398 = vst [vmem:[#allocation20_spill] sm:$0xff] %v22349_v21  ;;  %25400 = vst [vmem:[#allocation21_spill] sm:$0xff] %v22353_v56  ;;  %v22365_v61 = vmul.f32 %v22094_v15, %v25405_v57  ;;  %v22369_v5 = vmul.f32 %v22094_v15, %v25407_v32  ;;  %v25409_v21 = vld [vmem:[#allocation36_spill] sm:$0xff]  ;;  %v25411_v56 = vld [vmem:[#allocation37_spill] sm:$0xff] }
 0x320   :  { %25402 = vst [vmem:[#allocation22_spill] sm:$0xff] %v22357_v1  ;;  %25404 = vst [vmem:[#allocation23_spill] sm:$0xff] %v22361_v12  ;;  %v22373_v43 = vmul.f32 %v22094_v15, %v25409_v21  ;;  %v22377_v20 = vmul.f32 %v22094_v15, %v25411_v56  ;;  %v25413_v1 = vld [vmem:[#allocation38_spill] sm:$0xff]  ;;  %v25414_v12 = vld [vmem:[#allocation39_spill] sm:$0xff] }
 0x321   :  { %25406 = vst [vmem:[#allocation24_spill] sm:$0xff] %v22365_v61  ;;  %25408 = vst [vmem:[#allocation25_spill] sm:$0xff] %v22369_v5  ;;  %v22381_v24 = vmul.f32 %v22094_v15, %v25413_v1  ;;  %v22385_v57 = vmul.f32 %v22094_v15, %v25414_v12  ;;  %v25416_v61 = vld [vmem:[#allocation40_spill] sm:$0xff]  ;;  %v25418_v5 = vld [vmem:[#allocation41_spill] sm:$0xff]  ;;  %v22405_v12 = vmul.f32 %v22094_v15, %v25359_v33 }
 0x322   :  { %25410 = vst [vmem:[#allocation26_spill] sm:$0xff] %v22373_v43  ;;  %25412 = vst [vmem:[#allocation27_spill] sm:$0xff] %v22377_v20  ;;  %v22389_v32 = vmul.f32 %v22094_v15, %v25416_v61  ;;  %v22393_v21 = vmul.f32 %v22094_v15, %v25418_v5  ;;  %v25419_v43 = vld [vmem:[#allocation42_spill] sm:$0xff]  ;;  %v25420_v20 = vld [vmem:[#allocation43_spill] sm:$0xff]  ;;  %v22425_v33 = vadd.f32 %v22121_v28, %v22106_v40 }
 0x323   :  { %25415 = vst [vmem:[#allocation28_spill] sm:$0xff] %v22385_v57  ;;  %v22397_v56 = vmul.f32 %v22094_v15, %v25419_v43  ;;  %v22401_v1 = vmul.f32 %v22094_v15, %v25420_v20  ;;  %v25421_v57 = vld [vmem:[#allocation45_spill] sm:$0xff]  ;;  %v22417_v43 = vadd.f32 %v22121_v28, %v22098_v11  ;;  %v22421_v20 = vadd.f32 %v22121_v28, %v22102_v50 }
 0x324   :  { %25417 = vst [vmem:[#allocation29_spill] sm:$0xff] %v22389_v32  ;;  %v22409_v61 = vmul.f32 %v22094_v15, %v25421_v57  ;;  %v25422_v32 = vld [vmem:[#allocation46_spill] sm:$0xff]  ;;  %v22429_v57 = vadd.f32 %v22121_v28, %v22110_v0  ;;  %v22437_v11 = vadd.f32 %v22121_v28, %v22118_v36  ;;  %v22441_v50 = vadd.f32 %v22121_v28, %v22125_v39 }
 0x325   :  { %v22413_v5 = vmul.f32 %v22094_v15, %v25422_v32  ;;  %v22433_v15 = vadd.f32 %v22121_v28, %v22114_v41  ;;  %v22445_v40 = vadd.f32 %v22121_v28, %v22129_v44  ;;  %v22449_v0 = vadd.f32 %v22121_v28, %v22133_v53  ;;  %v25428_v32 = vld [vmem:[#allocation8_spill] sm:$0xff] }
 0x326   :  { %v22453_v41 = vadd.f32 %v22121_v28, %v22137_v58  ;;  %v22457_v36 = vadd.f32 %v22121_v28, %v22141_v49  ;;  %v22461_v39 = vadd.f32 %v22121_v28, %v22145_v62  ;;  %v22465_v44 = vadd.f32 %v22121_v28, %v22149_v4 }
 0x327   :  { %v22469_v53 = vadd.f32 %v22121_v28, %v22153_v8  ;;  %v22473_v58 = vadd.f32 %v22121_v28, %v22157_v13  ;;  %v22477_v49 = vadd.f32 %v22121_v28, %v22161_v17  ;;  %v22481_v62 = vadd.f32 %v22121_v28, %v22165_v22 }
 0x328   :  { %v22485_v4 = vadd.f32 %v22121_v28, %v22169_v26  ;;  %v22489_v8 = vadd.f32 %v22121_v28, %v22173_v31  ;;  %v22493_v13 = vadd.f32 %v22121_v28, %v22177_v35  ;;  %v22497_v17 = vadd.f32 %v22121_v28, %v22181_v42 }
 0x329   :  { %v22501_v22 = vadd.f32 %v22121_v28, %v22185_v47  ;;  %v22505_v26 = vadd.f32 %v22121_v28, %v22189_v54  ;;  %v22509_v31 = vadd.f32 %v22121_v28, %v22193_v59  ;;  %v22513_v35 = vadd.f32 %v22121_v28, %v22197_v2 }
 0x32a   :  { %v22517_v42 = vadd.f32 %v22121_v28, %v22201_v7  ;;  %v22521_v47 = vadd.f32 %v22121_v28, %v22205_v14  ;;  %v22525_v54 = vadd.f32 %v22121_v28, %v22209_v19  ;;  %v22529_v59 = vadd.f32 %v22121_v28, %v22213_v25 }
 0x32b   :  { %v22533_v2 = vadd.f32 %v22121_v28, %v22217_v30  ;;  %v22537_v7 = vadd.f32 %v22121_v28, %v22221_v38  ;;  %v22541_v14 = vadd.f32 %v22121_v28, %v22225_v45  ;;  %v22545_v19 = vadd.f32 %v22121_v28, %v22229_v52 }
 0x32c   :  { %v22549_v25 = vadd.f32 %v22121_v28, %v22233_v60  ;;  %v22553_v30 = vadd.f32 %v22121_v28, %v22237_v3  ;;  %v22557_v38 = vadd.f32 %v22121_v28, %v22241_v10  ;;  %v22561_v45 = vadd.f32 %v22121_v28, %v22245_v16 }
 0x32d   :  { %v22565_v52 = vadd.f32 %v22121_v28, %v22249_v23  ;;  %v22569_v60 = vadd.f32 %v22121_v28, %v22253_v29  ;;  %v22573_v3 = vadd.f32 %v22121_v28, %v22257_v37  ;;  %v22577_v10 = vadd.f32 %v22121_v28, %v22261_v46 }
 0x32e   :  { %v22581_v16 = vadd.f32 %v22121_v28, %v22265_v55  ;;  %v22585_v23 = vadd.f32 %v22121_v28, %v22269_v63  ;;  %v22589_v29 = vadd.f32 %v22121_v28, %v22273_v9  ;;  %v22593_v37 = vadd.f32 %v22121_v28, %v22277_v18 }
 0x32f   :  { %v22597_v46 = vadd.f32 %v22121_v28, %v22281_v27  ;;  %v22601_v55 = vadd.f32 %v22121_v28, %v22285_v34  ;;  %v22605_v63 = vadd.f32 %v22121_v28, %v22289_v48  ;;  %v22609_v9 = vadd.f32 %v22121_v28, %v22293_v6 }
 0x330   :  { %v22613_v18 = vadd.f32 %v22121_v28, %v22297_v51  ;;  %v22617_v27 = vadd.f32 %v22121_v28, %v25428_v32 }
 0x331   :  { %25423 = vst [vmem:[#allocation30_spill] sm:$0xff] %v22597_v46  ;;  %25424 = vst [vmem:[#allocation31_spill] sm:$0xff] %v22601_v55  ;;  %v25430_v46 = vld [vmem:[#allocation9_spill] sm:$0xff]  ;;  %v25432_v55 = vld [vmem:[#allocation10_spill] sm:$0xff] }
 0x332   :  { %25425 = vst [vmem:[#allocation32_spill] sm:$0xff] %v22605_v63  ;;  %25426 = vst [vmem:[#allocation33_spill] sm:$0xff] %v22609_v9  ;;  %v22621_v34 = vadd.f32 %v22121_v28, %v25430_v46  ;;  %v22625_v48 = vadd.f32 %v22121_v28, %v25432_v55  ;;  %v25434_v63 = vld [vmem:[#allocation11_spill] sm:$0xff]  ;;  %v25436_v9 = vld [vmem:[#allocation12_spill] sm:$0xff] }
 0x333   :  { %25427 = vst [vmem:[#allocation34_spill] sm:$0xff] %v22613_v18  ;;  %25429 = vst [vmem:[#allocation35_spill] sm:$0xff] %v22617_v27  ;;  %v22629_v6 = vadd.f32 %v22121_v28, %v25434_v63  ;;  %v22633_v51 = vadd.f32 %v22121_v28, %v25436_v9  ;;  %v25438_v18 = vld [vmem:[#allocation13_spill] sm:$0xff]  ;;  %v25440_v27 = vld [vmem:[#allocation14_spill] sm:$0xff] }
 0x334   :  { %25431 = vst [vmem:[#allocation36_spill] sm:$0xff] %v22621_v34  ;;  %25433 = vst [vmem:[#allocation37_spill] sm:$0xff] %v22625_v48  ;;  %v22637_v32 = vadd.f32 %v22121_v28, %v25438_v18  ;;  %v22641_v46 = vadd.f32 %v22121_v28, %v25440_v27  ;;  %v25442_v34 = vld [vmem:[#allocation15_spill] sm:$0xff]  ;;  %v25444_v48 = vld [vmem:[#allocation16_spill] sm:$0xff] }
 0x335   :  { %25435 = vst [vmem:[#allocation38_spill] sm:$0xff] %v22629_v6  ;;  %25437 = vst [vmem:[#allocation39_spill] sm:$0xff] %v22633_v51  ;;  %v22645_v55 = vadd.f32 %v22121_v28, %v25442_v34  ;;  %v22649_v63 = vadd.f32 %v22121_v28, %v25444_v48  ;;  %v25446_v6 = vld [vmem:[#allocation17_spill] sm:$0xff]  ;;  %v25448_v51 = vld [vmem:[#allocation18_spill] sm:$0xff] }
 0x336   :  { %25439 = vst [vmem:[#allocation40_spill] sm:$0xff] %v22637_v32  ;;  %25441 = vst [vmem:[#allocation41_spill] sm:$0xff] %v22641_v46  ;;  %v22653_v9 = vadd.f32 %v22121_v28, %v25446_v6  ;;  %v22657_v18 = vadd.f32 %v22121_v28, %v25448_v51  ;;  %v25450_v32 = vld [vmem:[#allocation19_spill] sm:$0xff]  ;;  %v25452_v46 = vld [vmem:[#allocation20_spill] sm:$0xff] }
 0x337   :  { %25443 = vst [vmem:[#allocation42_spill] sm:$0xff] %v22645_v55  ;;  %25445 = vst [vmem:[#allocation43_spill] sm:$0xff] %v22649_v63  ;;  %v22661_v27 = vadd.f32 %v22121_v28, %v25450_v32  ;;  %v22665_v34 = vadd.f32 %v22121_v28, %v25452_v46  ;;  %v25454_v55 = vld [vmem:[#allocation21_spill] sm:$0xff]  ;;  %v25456_v63 = vld [vmem:[#allocation22_spill] sm:$0xff] }
 0x338   :  { %25447 = vst [vmem:[#allocation45_spill] sm:$0xff] %v22653_v9  ;;  %25449 = vst [vmem:[#allocation46_spill] sm:$0xff] %v22657_v18  ;;  %v22669_v48 = vadd.f32 %v22121_v28, %v25454_v55  ;;  %v22673_v6 = vadd.f32 %v22121_v28, %v25456_v63  ;;  %v25457_v9 = vld [vmem:[#allocation23_spill] sm:$0xff]  ;;  %v25459_v18 = vld [vmem:[#allocation24_spill] sm:$0xff] }
 0x339   :  { %25451 = vst [vmem:[#allocation8_spill] sm:$0xff] %v22661_v27  ;;  %25453 = vst [vmem:[#allocation9_spill] sm:$0xff] %v22665_v34  ;;  %v22677_v51 = vadd.f32 %v22121_v28, %v25457_v9  ;;  %v22681_v32 = vadd.f32 %v22121_v28, %v25459_v18  ;;  %v25461_v27 = vld [vmem:[#allocation25_spill] sm:$0xff]  ;;  %v25462_v34 = vld [vmem:[#allocation26_spill] sm:$0xff]  ;;  %v22697_v9 = vadd.f32 %v22121_v28, %v22381_v24 }
 0x33a   :  { %25455 = vst [vmem:[#allocation10_spill] sm:$0xff] %v22669_v48  ;;  %v22685_v46 = vadd.f32 %v22121_v28, %v25461_v27  ;;  %v22689_v55 = vadd.f32 %v22121_v28, %v25462_v34  ;;  %v25463_v48 = vld [vmem:[#allocation27_spill] sm:$0xff]  ;;  %v22709_v34 = vadd.f32 %v22121_v28, %v22393_v21  ;;  %v22717_v24 = vadd.f32 %v22121_v28, %v22401_v1 }
 0x33b   :  { %25458 = vst [vmem:[#allocation11_spill] sm:$0xff] %v22677_v51  ;;  %25460 = vst [vmem:[#allocation12_spill] sm:$0xff] %v22681_v32  ;;  %v22693_v63 = vadd.f32 %v22121_v28, %v25463_v48  ;;  %v25464_v51 = vld [vmem:[#allocation28_spill] sm:$0xff]  ;;  %v25465_v32 = vld [vmem:[#allocation29_spill] sm:$0xff]  ;;  %v22713_v48 = vadd.f32 %v22121_v28, %v22397_v56  ;;  %v22729_v21 = vadd.f32 %v22121_v28, %v22413_v5  ;;  %v1474_v56 = vmax.f32 %v22421_v20, 0.0 }
 0x33c   :  { %v22701_v18 = vadd.f32 %v22121_v28, %v25464_v51  ;;  %v22705_v27 = vadd.f32 %v22121_v28, %v25465_v32  ;;  %25466 = vst [vmem:[#allocation13_spill] sm:$0xff] %v22709_v34  ;;  %25468 = vst [vmem:[#allocation15_spill] sm:$0xff] %v22717_v24  ;;  %v22721_v51 = vadd.f32 %v22121_v28, %v22405_v12  ;;  %v1473_v34 = vmax.f32 %v22417_v43, 0.0 }
 0x33d   :  { %25467 = vst [vmem:[#allocation14_spill] sm:$0xff] %v22713_v48  ;;  %v22725_v32 = vadd.f32 %v22121_v28, %v22409_v61  ;;  %v1475_v48 = vmax.f32 %v22425_v33, 0.0  ;;  %v1476_v1 = vmax.f32 %v22429_v57, 0.0  ;;  %v1477_v24 = vmax.f32 %v22433_v15, 0.0  ;;  %1555 = vst.msk [vmem:[#allocation2 + $0x8] sm:$0xff] %vm794_vm1, %v1474_v56  ;;  %v25479_v56 = vld [vmem:[#allocation38_spill] sm:$0xff] }
 0x33e   :  { %25469 = vst [vmem:[#allocation16_spill] sm:$0xff] %v22721_v51  ;;  %v1478_v12 = vmax.f32 %v22437_v11, 0.0  ;;  %v1479_v51 = vmax.f32 %v22441_v50, 0.0  ;;  %v1480_v61 = vmax.f32 %v22445_v40, 0.0  ;;  %v1482_v28 = vmax.f32 %v22453_v41, 0.0  ;;  %1554 = vst.msk [vmem:[#allocation2] sm:$0xff] %vm794_vm1, %v1473_v34 }
 0x33f   :  { %25470 = vst [vmem:[#allocation17_spill] sm:$0xff] %v22725_v32  ;;  %v1481_v32 = vmax.f32 %v22449_v0, 0.0  ;;  %v1483_v5 = vmax.f32 %v22457_v36, 0.0  ;;  %1556 = vst.msk [vmem:[#allocation2 + $0x10] sm:$0xff] %vm794_vm1, %v1475_v48  ;;  %v1484_v43 = vmax.f32 %v22461_v39, 0.0  ;;  %v1485_v20 = vmax.f32 %v22465_v44, 0.0 }
 0x340   :  { %v1486_v33 = vmax.f32 %v22469_v53, 0.0  ;;  %v1487_v57 = vmax.f32 %v22473_v58, 0.0  ;;  %1557 = vst.msk [vmem:[#allocation2 + $0x18] sm:$0xff] %vm794_vm1, %v1476_v1  ;;  %1558 = vst.msk [vmem:[#allocation2 + $0x20] sm:$0xff] %vm794_vm1, %v1477_v24  ;;  %v1488_v15 = vmax.f32 %v22477_v49, 0.0  ;;  %v1489_v11 = vmax.f32 %v22481_v62, 0.0 }
 0x341   :  { %1559 = vst.msk [vmem:[#allocation2 + $0x28] sm:$0xff] %vm794_vm1, %v1478_v12  ;;  %1560 = vst.msk [vmem:[#allocation2 + $0x30] sm:$0xff] %vm794_vm1, %v1479_v51  ;;  %v1490_v50 = vmax.f32 %v22485_v4, 0.0  ;;  %v1491_v40 = vmax.f32 %v22489_v8, 0.0  ;;  %v1492_v0 = vmax.f32 %v22493_v13, 0.0  ;;  %v1493_v41 = vmax.f32 %v22497_v17, 0.0 }
 0x342   :  { %1561 = vst.msk [vmem:[#allocation2 + $0x38] sm:$0xff] %vm794_vm1, %v1480_v61  ;;  %1562 = vst.msk [vmem:[#allocation2 + $0x40] sm:$0xff] %vm794_vm1, %v1481_v32  ;;  %v1494_v36 = vmax.f32 %v22501_v22, 0.0  ;;  %v1495_v39 = vmax.f32 %v22505_v26, 0.0  ;;  %v1496_v44 = vmax.f32 %v22509_v31, 0.0  ;;  %v1497_v53 = vmax.f32 %v22513_v35, 0.0 }
 0x343   :  { %1563 = vst.msk [vmem:[#allocation2 + $0x48] sm:$0xff] %vm794_vm1, %v1482_v28  ;;  %1564 = vst.msk [vmem:[#allocation2 + $0x50] sm:$0xff] %vm794_vm1, %v1483_v5  ;;  %v1498_v58 = vmax.f32 %v22517_v42, 0.0  ;;  %v1499_v49 = vmax.f32 %v22521_v47, 0.0  ;;  %v1500_v62 = vmax.f32 %v22525_v54, 0.0  ;;  %v1501_v4 = vmax.f32 %v22529_v59, 0.0 }
 0x344   :  { %1565 = vst.msk [vmem:[#allocation2 + $0x58] sm:$0xff] %vm794_vm1, %v1484_v43  ;;  %1566 = vst.msk [vmem:[#allocation2 + $0x60] sm:$0xff] %vm794_vm1, %v1485_v20  ;;  %v1502_v8 = vmax.f32 %v22533_v2, 0.0  ;;  %v1503_v13 = vmax.f32 %v22537_v7, 0.0  ;;  %v1504_v17 = vmax.f32 %v22541_v14, 0.0  ;;  %v1505_v22 = vmax.f32 %v22545_v19, 0.0 }
 0x345   :  { %1567 = vst.msk [vmem:[#allocation2 + $0x68] sm:$0xff] %vm794_vm1, %v1486_v33  ;;  %1568 = vst.msk [vmem:[#allocation2 + $0x70] sm:$0xff] %vm794_vm1, %v1487_v57  ;;  %v1506_v26 = vmax.f32 %v22549_v25, 0.0  ;;  %v1507_v31 = vmax.f32 %v22553_v30, 0.0  ;;  %v1508_v35 = vmax.f32 %v22557_v38, 0.0  ;;  %v1509_v42 = vmax.f32 %v22561_v45, 0.0 }
 0x346   :  { %1569 = vst.msk [vmem:[#allocation2 + $0x78] sm:$0xff] %vm794_vm1, %v1488_v15  ;;  %1570 = vst.msk [vmem:[#allocation2 + $0x80] sm:$0xff] %vm794_vm1, %v1489_v11  ;;  %v1510_v47 = vmax.f32 %v22565_v52, 0.0  ;;  %v1511_v54 = vmax.f32 %v22569_v60, 0.0  ;;  %v1512_v59 = vmax.f32 %v22573_v3, 0.0  ;;  %v1513_v2 = vmax.f32 %v22577_v10, 0.0 }
 0x347   :  { %1571 = vst.msk [vmem:[#allocation2 + $0x88] sm:$0xff] %vm794_vm1, %v1490_v50  ;;  %1572 = vst.msk [vmem:[#allocation2 + $0x90] sm:$0xff] %vm794_vm1, %v1491_v40  ;;  %v1514_v7 = vmax.f32 %v22581_v16, 0.0  ;;  %v1515_v14 = vmax.f32 %v22585_v23, 0.0  ;;  %v1516_v19 = vmax.f32 %v22589_v29, 0.0  ;;  %v1517_v25 = vmax.f32 %v22593_v37, 0.0 }
 0x348   :  { %1573 = vst.msk [vmem:[#allocation2 + $0x98] sm:$0xff] %vm794_vm1, %v1492_v0  ;;  %1574 = vst.msk [vmem:[#allocation2 + $0xa0] sm:$0xff] %vm794_vm1, %v1493_v41  ;;  %v25471_v30 = vld [vmem:[#allocation30_spill] sm:$0xff]  ;;  %v25472_v45 = vld [vmem:[#allocation31_spill] sm:$0xff]  ;;  %v1526_v1 = vmax.f32 %v25479_v56, 0.0 }
 0x349   :  { %1575 = vst.msk [vmem:[#allocation2 + $0xa8] sm:$0xff] %vm794_vm1, %v1494_v36  ;;  %1576 = vst.msk [vmem:[#allocation2 + $0xb0] sm:$0xff] %vm794_vm1, %v1495_v39  ;;  %v1518_v38 = vmax.f32 %v25471_v30, 0.0  ;;  %v1519_v52 = vmax.f32 %v25472_v45, 0.0  ;;  %v25473_v60 = vld [vmem:[#allocation32_spill] sm:$0xff]  ;;  %v25474_v10 = vld [vmem:[#allocation33_spill] sm:$0xff] }
 0x34a   :  { %1577 = vst.msk [vmem:[#allocation2 + $0xb8] sm:$0xff] %vm794_vm1, %v1496_v44  ;;  %1578 = vst.msk [vmem:[#allocation2 + $0xc0] sm:$0xff] %vm794_vm1, %v1497_v53  ;;  %v1520_v3 = vmax.f32 %v25473_v60, 0.0  ;;  %v1521_v16 = vmax.f32 %v25474_v10, 0.0  ;;  %v25475_v23 = vld [vmem:[#allocation34_spill] sm:$0xff]  ;;  %v25476_v34 = vld [vmem:[#allocation35_spill] sm:$0xff] }
 0x34b   :  { %1579 = vst.msk [vmem:[#allocation2 + $0xc8] sm:$0xff] %vm794_vm1, %v1498_v58  ;;  %1580 = vst.msk [vmem:[#allocation2 + $0xd0] sm:$0xff] %vm794_vm1, %v1499_v49  ;;  %v1522_v29 = vmax.f32 %v25475_v23, 0.0  ;;  %v1523_v37 = vmax.f32 %v25476_v34, 0.0  ;;  %v25477_v48 = vld [vmem:[#allocation36_spill] sm:$0xff]  ;;  %v25478_v51 = vld [vmem:[#allocation37_spill] sm:$0xff] }
 0x34c   :  { %1581 = vst.msk [vmem:[#allocation2 + $0xd8] sm:$0xff] %vm794_vm1, %v1500_v62  ;;  %1582 = vst.msk [vmem:[#allocation2 + $0xe0] sm:$0xff] %vm794_vm1, %v1501_v4  ;;  %v1524_v24 = vmax.f32 %v25477_v48, 0.0  ;;  %v1525_v32 = vmax.f32 %v25478_v51, 0.0  ;;  %v25480_v12 = vld [vmem:[#allocation39_spill] sm:$0xff]  ;;  %v25481_v28 = vld [vmem:[#allocation40_spill] sm:$0xff] }
 0x34d   :  { %1583 = vst.msk [vmem:[#allocation2 + $0xe8] sm:$0xff] %vm794_vm1, %v1502_v8  ;;  %1584 = vst.msk [vmem:[#allocation2 + $0xf0] sm:$0xff] %vm794_vm1, %v1503_v13  ;;  %v1527_v61 = vmax.f32 %v25480_v12, 0.0  ;;  %v1528_v5 = vmax.f32 %v25481_v28, 0.0  ;;  %v25482_v43 = vld [vmem:[#allocation41_spill] sm:$0xff]  ;;  %v25483_v33 = vld [vmem:[#allocation42_spill] sm:$0xff] }
 0x34e   :  { %1585 = vst.msk [vmem:[#allocation2 + $0xf8] sm:$0xff] %vm794_vm1, %v1504_v17  ;;  %1586 = vst.msk [vmem:[#allocation2 + $0x100] sm:$0xff] %vm794_vm1, %v1505_v22  ;;  %v1529_v20 = vmax.f32 %v25482_v43, 0.0  ;;  %v1530_v57 = vmax.f32 %v25483_v33, 0.0  ;;  %v25484_v15 = vld [vmem:[#allocation43_spill] sm:$0xff]  ;;  %v25485_v50 = vld [vmem:[#allocation45_spill] sm:$0xff] }
 0x34f   :  { %1587 = vst.msk [vmem:[#allocation2 + $0x108] sm:$0xff] %vm794_vm1, %v1506_v26  ;;  %1588 = vst.msk [vmem:[#allocation2 + $0x110] sm:$0xff] %vm794_vm1, %v1507_v31  ;;  %v1531_v11 = vmax.f32 %v25484_v15, 0.0  ;;  %v1532_v40 = vmax.f32 %v25485_v50, 0.0  ;;  %v25486_v0 = vld [vmem:[#allocation46_spill] sm:$0xff]  ;;  %v25487_v36 = vld [vmem:[#allocation8_spill] sm:$0xff] }
 0x350   :  { %1589 = vst.msk [vmem:[#allocation2 + $0x118] sm:$0xff] %vm794_vm1, %v1508_v35  ;;  %1590 = vst.msk [vmem:[#allocation2 + $0x120] sm:$0xff] %vm794_vm1, %v1509_v42  ;;  %v1533_v41 = vmax.f32 %v25486_v0, 0.0  ;;  %v1534_v39 = vmax.f32 %v25487_v36, 0.0  ;;  %v25488_v44 = vld [vmem:[#allocation9_spill] sm:$0xff]  ;;  %v25489_v62 = vld [vmem:[#allocation10_spill] sm:$0xff] }
 0x351   :  { %1591 = vst.msk [vmem:[#allocation2 + $0x128] sm:$0xff] %vm794_vm1, %v1510_v47  ;;  %1592 = vst.msk [vmem:[#allocation2 + $0x130] sm:$0xff] %vm794_vm1, %v1511_v54  ;;  %v1535_v53 = vmax.f32 %v25488_v44, 0.0  ;;  %v1725_v58 = vld [vmem:[#allocation2 + $0x1] ss:$2 sm:$0xff]  ;;  %v1536_v4 = vmax.f32 %v25489_v62, 0.0 }
 0x352   :  { %1593 = vst.msk [vmem:[#allocation2 + $0x138] sm:$0xff] %vm794_vm1, %v1512_v59  ;;  %1594 = vst.msk [vmem:[#allocation2 + $0x140] sm:$0xff] %vm794_vm1, %v1513_v2  ;;  %v1727_v49 = vld [vmem:[#allocation2 + $0x11] ss:$2 sm:$0xff]  ;;  %v1537_v8 = vmax.f32 %v22673_v6, 0.0  ;;  %v25490_v13 = vld [vmem:[#allocation11_spill] sm:$0xff] }
 0x353   :  { %1595 = vst.msk [vmem:[#allocation2 + $0x148] sm:$0xff] %vm794_vm1, %v1514_v7  ;;  %1596 = vst.msk [vmem:[#allocation2 + $0x150] sm:$0xff] %vm794_vm1, %v1515_v14  ;;  %v1538_v17 = vmax.f32 %v25490_v13, 0.0  ;;  %v25491_v22 = vld [vmem:[#allocation12_spill] sm:$0xff]  ;;  %v1540_v35 = vmax.f32 %v22685_v46, 0.0  ;;  %v1541_v42 = vmax.f32 %v22689_v55, 0.0 }
 0x354   :  { %1597 = vst.msk [vmem:[#allocation2 + $0x158] sm:$0xff] %vm794_vm1, %v1516_v19  ;;  %1598 = vst.msk [vmem:[#allocation2 + $0x160] sm:$0xff] %vm794_vm1, %v1517_v25  ;;  %v1539_v26 = vmax.f32 %v25491_v22, 0.0  ;;  %v1729_v31 = vld [vmem:[#allocation2 + $0x21] ss:$2 sm:$0xff]  ;;  %v1542_v47 = vmax.f32 %v22693_v63, 0.0 }
 0x355   :  { %1599 = vst.msk [vmem:[#allocation2 + $0x168] sm:$0xff] %vm794_vm1, %v1518_v38  ;;  %1600 = vst.msk [vmem:[#allocation2 + $0x170] sm:$0xff] %vm794_vm1, %v1519_v52  ;;  %v1543_v6 = vmax.f32 %v22697_v9, 0.0  ;;  %v1731_v54 = vld [vmem:[#allocation2 + $0x31] ss:$2 sm:$0xff]  ;;  %v1544_v59 = vmax.f32 %v22701_v18, 0.0  ;;  %v1794_v52 = vpack.c.bf16 %v1727_v49, %v1725_v58 }
 0x356   :  { %1601 = vst.msk [vmem:[#allocation2 + $0x178] sm:$0xff] %vm794_vm1, %v1520_v3  ;;  %1602 = vst.msk [vmem:[#allocation2 + $0x180] sm:$0xff] %vm794_vm1, %v1521_v16  ;;  %v1545_v2 = vmax.f32 %v22705_v27, 0.0  ;;  %v25492_v46 = vld [vmem:[#allocation13_spill] sm:$0xff]  ;;  %v25493_v55 = vld [vmem:[#allocation14_spill] sm:$0xff]  ;;  %v1551_v27 = vmax.f32 %v22729_v21, 0.0  ;;  %v1795_v60 = vpack.c.bf16 %v1731_v54, %v1729_v31 }
 0x357   :  { %1603 = vst.msk [vmem:[#allocation2 + $0x188] sm:$0xff] %vm794_vm1, %v1522_v29  ;;  %1604 = vst.msk [vmem:[#allocation2 + $0x190] sm:$0xff] %vm794_vm1, %v1523_v37  ;;  %v1546_v7 = vmax.f32 %v25492_v46, 0.0  ;;  %v1547_v14 = vmax.f32 %v25493_v55, 0.0  ;;  %v1733_v63 = vld [vmem:[#allocation2 + $0x41] ss:$2 sm:$0xff]  ;;  %17673 = vmatprep.mubr.msk.bf16.mxu1 %vm794_vm1, %v1794_v52 }
 0x358   :  { %1605 = vst.msk [vmem:[#allocation2 + $0x198] sm:$0xff] %vm794_vm1, %v1524_v24  ;;  %1606 = vst.msk [vmem:[#allocation2 + $0x1a0] sm:$0xff] %vm794_vm1, %v1525_v32  ;;  %v25494_v9 = vld [vmem:[#allocation15_spill] sm:$0xff]  ;;  %v25495_v25 = vld [vmem:[#allocation16_spill] sm:$0xff]  ;;  %17674 = vmatmul.mubr.msk.bf16.vlgmr.msra.gmra.mrb[0].mxu1 %vm794_vm1, %v1795_v60 }
 0x359   :  { %1607 = vst.msk [vmem:[#allocation2 + $0x1a8] sm:$0xff] %vm794_vm1, %v1526_v1  ;;  %1608 = vst.msk [vmem:[#allocation2 + $0x1b0] sm:$0xff] %vm794_vm1, %v1527_v61  ;;  %v1548_v19 = vmax.f32 %v25494_v9, 0.0  ;;  %v1549_v30 = vmax.f32 %v25495_v25, 0.0  ;;  %v25496_v18 = vld [vmem:[#allocation17_spill] sm:$0xff]  ;;  %v25497_v10 = vld [vmem:[#allocation47_spill] sm:$0xff] }
 0x35a   :  { %1609 = vst.msk [vmem:[#allocation2 + $0x1b8] sm:$0xff] %vm794_vm1, %v1528_v5  ;;  %1610 = vst.msk [vmem:[#allocation2 + $0x1c0] sm:$0xff] %vm794_vm1, %v1529_v20  ;;  %v1550_v38 = vmax.f32 %v25496_v18, 0.0  ;;  %v1735_v45 = vld [vmem:[#allocation2 + $0x51] ss:$2 sm:$0xff]  ;;  %17710 = vmatpush3.bf16.msra.mxu1 %v25497_v10 }
 0x35b   :  { %1611 = vst.msk [vmem:[#allocation2 + $0x1c8] sm:$0xff] %vm794_vm1, %v1530_v57  ;;  %1612 = vst.msk [vmem:[#allocation2 + $0x1d0] sm:$0xff] %vm794_vm1, %v1531_v11  ;;  %v22892_v21 = vld [vmem:[%s25167_s2 + $0x10] sm:$0xff]   ;;  %v1796_v3 = vpack.c.bf16 %v1735_v45, %v1733_v63  ;;  %v1737_v16 = vld [vmem:[#allocation2 + $0x61] ss:$2 sm:$0xff] }
 0x35c   :  { %1613 = vst.msk [vmem:[#allocation2 + $0x1d8] sm:$0xff] %vm794_vm1, %v1532_v40  ;;  %1614 = vst.msk [vmem:[#allocation2 + $0x1e0] sm:$0xff] %vm794_vm1, %v1533_v41  ;;  %17747 = vmatprep.subr.bf16.mxu1 %v22892_v21  ;;  %v1739_v23 = vld [vmem:[#allocation2 + $0x71] ss:$2 sm:$0xff]  ;;  %v1741_v29 = vld [vmem:[#allocation2 + $0x81] ss:$2 sm:$0xff] }
 0x35d   :  { %1615 = vst.msk [vmem:[#allocation2 + $0x1e8] sm:$0xff] %vm794_vm1, %v1534_v39  ;;  %1616 = vst.msk [vmem:[#allocation2 + $0x1f0] sm:$0xff] %vm794_vm1, %v1535_v53  ;;  %17677 = vmatprep.mubr.msk.bf16.mxu1 %vm794_vm1, %v1796_v3  ;;  %v1743_v34 = vld [vmem:[#allocation2 + $0x91] ss:$2 sm:$0xff]  ;;  %v1797_v37 = vpack.c.bf16 %v1739_v23, %v1737_v16  ;;  %v1745_v24 = vld [vmem:[#allocation2 + $0xa1] ss:$2 sm:$0xff] }
 0x35e   :  { %1617 = vst.msk [vmem:[#allocation2 + $0x1f8] sm:$0xff] %vm794_vm1, %v1536_v4  ;;  %1618 = vst.msk [vmem:[#allocation2 + $0x200] sm:$0xff] %vm794_vm1, %v1537_v8  ;;  %v1798_v48 = vpack.c.bf16 %v1743_v34, %v1741_v29  ;;  %v1747_v51 = vld [vmem:[#allocation2 + $0xb1] ss:$2 sm:$0xff]  ;;  %v1749_v32 = vld [vmem:[#allocation2 + $0xc1] ss:$2 sm:$0xff] }
 0x35f   :  { %1619 = vst.msk [vmem:[#allocation2 + $0x208] sm:$0xff] %vm794_vm1, %v1538_v17  ;;  %1620 = vst.msk [vmem:[#allocation2 + $0x210] sm:$0xff] %vm794_vm1, %v1539_v26  ;;  %v1751_v56 = vld [vmem:[#allocation2 + $0xd1] ss:$2 sm:$0xff]  ;;  %v1799_v1 = vpack.c.bf16 %v1747_v51, %v1745_v24  ;;  %v1753_v61 = vld [vmem:[#allocation2 + $0xe1] ss:$2 sm:$0xff] }
 0x360   :  { %1621 = vst.msk [vmem:[#allocation2 + $0x218] sm:$0xff] %vm794_vm1, %v1540_v35  ;;  %1622 = vst.msk [vmem:[#allocation2 + $0x220] sm:$0xff] %vm794_vm1, %v1541_v42  ;;  %17678 = vmatmul.mubr.msk.bf16.gmra.mrb[4].mxu1 %vm794_vm1, %v1797_v37  ;;  %v1800_v12 = vpack.c.bf16 %v1751_v56, %v1749_v32  ;;  %v1755_v28 = vld [vmem:[#allocation2 + $0xf1] ss:$2 sm:$0xff]  ;;  %v1757_v5 = vld [vmem:[#allocation2 + $0x101] ss:$2 sm:$0xff] }
 0x361   :  { %1623 = vst.msk [vmem:[#allocation2 + $0x228] sm:$0xff] %vm794_vm1, %v1542_v47  ;;  %1624 = vst.msk [vmem:[#allocation2 + $0x230] sm:$0xff] %vm794_vm1, %v1543_v6  ;;  %17681 = vmatprep.mubr.msk.bf16.mxu1 %vm794_vm1, %v1798_v48  ;;  %v1759_v43 = vld [vmem:[#allocation2 + $0x111] ss:$2 sm:$0xff]  ;;  %v1801_v20 = vpack.c.bf16 %v1755_v28, %v1753_v61  ;;  %v1761_v57 = vld [vmem:[#allocation2 + $0x121] ss:$2 sm:$0xff] }
 0x362   :  { %1625 = vst.msk [vmem:[#allocation2 + $0x238] sm:$0xff] %vm794_vm1, %v1544_v59  ;;  %1626 = vst.msk [vmem:[#allocation2 + $0x240] sm:$0xff] %vm794_vm1, %v1545_v2  ;;  %v1802_v33 = vpack.c.bf16 %v1759_v43, %v1757_v5  ;;  %v1763_v15 = vld [vmem:[#allocation2 + $0x131] ss:$2 sm:$0xff]  ;;  %v1765_v11 = vld [vmem:[#allocation2 + $0x141] ss:$2 sm:$0xff] }
 0x363   :  { %1627 = vst.msk [vmem:[#allocation2 + $0x248] sm:$0xff] %vm794_vm1, %v1546_v7  ;;  %1628 = vst.msk [vmem:[#allocation2 + $0x250] sm:$0xff] %vm794_vm1, %v1547_v14  ;;  %v1767_v50 = vld [vmem:[#allocation2 + $0x151] ss:$2 sm:$0xff]  ;;  %v1803_v40 = vpack.c.bf16 %v1763_v15, %v1761_v57  ;;  %v1769_v41 = vld [vmem:[#allocation2 + $0x161] ss:$2 sm:$0xff] }
 0x364   :  { %1629 = vst.msk [vmem:[#allocation2 + $0x258] sm:$0xff] %vm794_vm1, %v1548_v19  ;;  %1630 = vst.msk [vmem:[#allocation2 + $0x260] sm:$0xff] %vm794_vm1, %v1549_v30  ;;  %v1804_v0 = vpack.c.bf16 %v1767_v50, %v1765_v11  ;;  %v1771_v36 = vld [vmem:[#allocation2 + $0x171] ss:$2 sm:$0xff]  ;;  %v1773_v39 = vld [vmem:[#allocation2 + $0x181] ss:$2 sm:$0xff] }
 0x365   :  { %1631 = vst.msk [vmem:[#allocation2 + $0x268] sm:$0xff] %vm794_vm1, %v1550_v38  ;;  %1632 = vst.msk [vmem:[#allocation2 + $0x270] sm:$0xff] %vm794_vm1, %v1551_v27  ;;  %v1775_v44 = vld [vmem:[#allocation2 + $0x191] ss:$2 sm:$0xff]  ;;  %v1805_v53 = vpack.c.bf16 %v1771_v36, %v1769_v41  ;;  %v1777_v49 = vld [vmem:[#allocation2 + $0x1a1] ss:$2 sm:$0xff] }
 0x366   :  { %v1806_v58 = vpack.c.bf16 %v1775_v44, %v1773_v39  ;;  %v1779_v62 = vld [vmem:[#allocation2 + $0x1b1] ss:$2 sm:$0xff]  ;;  %v1781_v4 = vld [vmem:[#allocation2 + $0x1c1] ss:$2 sm:$0xff]  ;;  %v1635_v54 = vld [vmem:[#allocation2] ss:$2 sm:$0xff] }
 0x367   :  { %v1783_v8 = vld [vmem:[#allocation2 + $0x1d1] ss:$2 sm:$0xff]  ;;  %v1807_v13 = vpack.c.bf16 %v1779_v62, %v1777_v49  ;;  %v1785_v22 = vld [vmem:[#allocation2 + $0x1e1] ss:$2 sm:$0xff]  ;;  %v1637_v59 = vld [vmem:[#allocation2 + $0x10] ss:$2 sm:$0xff] }
 0x368   :  { %17682 = vmatmul.mubr.msk.bf16.gmra.mrb[8].mxu1 %vm794_vm1, %v1799_v1  ;;  %v1808_v17 = vpack.c.bf16 %v1783_v8, %v1781_v4  ;;  %v1787_v26 = vld [vmem:[#allocation2 + $0x1f1] ss:$2 sm:$0xff]  ;;  %v1789_v31 = vld [vmem:[#allocation2 + $0x201] ss:$2 sm:$0xff]  ;;  %v1704_v46 = vpack.c.bf16 %v1637_v59, %v1635_v54  ;;  %v1639_v7 = vld [vmem:[#allocation2 + $0x20] ss:$2 sm:$0xff] }
 0x369   :  { %17685 = vmatprep.mubr.msk.bf16.mxu1 %vm794_vm1, %v1800_v12  ;;  %v1791_v35 = vld [vmem:[#allocation2 + $0x211] ss:$2 sm:$0xff]  ;;  %v1809_v42 = vpack.c.bf16 %v1787_v26, %v1785_v22  ;;  %v1793_v6 = vld [vmem:[#allocation2 + $0x221] ss:$2 sm:$0x1f] }
 0x36a   :  { %v1810_v47 = vpack.c.bf16 %v1791_v35, %v1789_v31  ;;  %v1811_v2 = vpack.c.bf16 %v1793_v6, %v1793_v6  ;;  %v1641_v55 = vld [vmem:[#allocation2 + $0x30] ss:$2 sm:$0xff]  ;;  %v1643_v14 = vld [vmem:[#allocation2 + $0x40] ss:$2 sm:$0xff] }
 0x36b   :  { %v1645_v63 = vld [vmem:[#allocation2 + $0x50] ss:$2 sm:$0xff]  ;;  %v1705_v9 = vpack.c.bf16 %v1641_v55, %v1639_v7  ;;  %v1647_v30 = vld [vmem:[#allocation2 + $0x60] ss:$2 sm:$0xff] }
 0x36c   :  { %v22918_v19 = vld [vmem:[%s25167_s2 + $0x18] sm:$0xff]   ;;  %v1706_v25 = vpack.c.bf16 %v1645_v63, %v1643_v14  ;;  %v1651_v38 = vld [vmem:[#allocation2 + $0x80] ss:$2 sm:$0xff] }
 0x36d   :  { %v1649_v18 = vld [vmem:[#allocation2 + $0x70] ss:$2 sm:$0xff]  ;;  %v1655_v60 = vld [vmem:[#allocation2 + $0xa0] ss:$2 sm:$0xff] }
 0x36e   :  { %v1653_v27 = vld [vmem:[#allocation2 + $0x90] ss:$2 sm:$0xff]  ;;  %v1707_v45 = vpack.c.bf16 %v1649_v18, %v1647_v30  ;;  %v1659_v10 = vld [vmem:[#allocation2 + $0xc0] ss:$2 sm:$0xff] }
 0x36f   :  { %v1708_v52 = vpack.c.bf16 %v1653_v27, %v1651_v38  ;;  %v1657_v3 = vld [vmem:[#allocation2 + $0xb0] ss:$2 sm:$0xff]  ;;  %v1663_v29 = vld [vmem:[#allocation2 + $0xe0] ss:$2 sm:$0xff] }
 0x370   :  { %17686 = vmatmul.mubr.msk.bf16.gmra.mrb[12].mxu1 %vm794_vm1, %v1801_v20  ;;  %v1661_v16 = vld [vmem:[#allocation2 + $0xd0] ss:$2 sm:$0xff]  ;;  %v1709_v23 = vpack.c.bf16 %v1657_v3, %v1655_v60  ;;  %v1667_v37 = vld [vmem:[#allocation2 + $0x100] ss:$2 sm:$0xff] }
 0x371   :  { %17689 = vmatprep.mubr.msk.bf16.mxu1 %vm794_vm1, %v1802_v33  ;;  %v1665_v34 = vld [vmem:[#allocation2 + $0xf0] ss:$2 sm:$0xff]  ;;  %v1671_v32 = vld [vmem:[#allocation2 + $0x120] ss:$2 sm:$0xff] }
 0x372   :  { %v1669_v48 = vld [vmem:[#allocation2 + $0x110] ss:$2 sm:$0xff]  ;;  %v1711_v24 = vpack.c.bf16 %v1665_v34, %v1663_v29  ;;  %v1675_v1 = vld [vmem:[#allocation2 + $0x140] ss:$2 sm:$0xff] }
 0x373   :  { %v1712_v51 = vpack.c.bf16 %v1669_v48, %v1667_v37  ;;  %v1673_v56 = vld [vmem:[#allocation2 + $0x130] ss:$2 sm:$0xff]  ;;  %v1679_v5 = vld [vmem:[#allocation2 + $0x160] ss:$2 sm:$0xff] }
 0x374   :  { %v1677_v12 = vld [vmem:[#allocation2 + $0x150] ss:$2 sm:$0xff]  ;;  %v1713_v61 = vpack.c.bf16 %v1673_v56, %v1671_v32  ;;  %v1683_v20 = vld [vmem:[#allocation2 + $0x180] ss:$2 sm:$0xff] }
 0x375   :  { %v1714_v28 = vpack.c.bf16 %v1677_v12, %v1675_v1  ;;  %v1681_v43 = vld [vmem:[#allocation2 + $0x170] ss:$2 sm:$0xff]  ;;  %v1687_v11 = vld [vmem:[#allocation2 + $0x1a0] ss:$2 sm:$0xff] }
 0x376   :  { %v1685_v33 = vld [vmem:[#allocation2 + $0x190] ss:$2 sm:$0xff]  ;;  %v1715_v57 = vpack.c.bf16 %v1681_v43, %v1679_v5  ;;  %v1695_v39 = vld [vmem:[#allocation2 + $0x1e0] ss:$2 sm:$0xff] }
 0x377   :  { %v1716_v15 = vpack.c.bf16 %v1685_v33, %v1683_v20  ;;  %v1689_v50 = vld [vmem:[#allocation2 + $0x1b0] ss:$2 sm:$0xff]  ;;  %v1703_v4 = vld [vmem:[#allocation2 + $0x220] ss:$2 sm:$0x1f] }
 0x378   :  { %17690 = vmatmul.mubr.msk.bf16.gmra.mrb[16].mxu1 %vm794_vm1, %v1803_v40  ;;  %v1691_v40 = vld [vmem:[#allocation2 + $0x1c0] ss:$2 sm:$0xff]  ;;  %v1717_v41 = vpack.c.bf16 %v1689_v50, %v1687_v11  ;;  %v1697_v44 = vld [vmem:[#allocation2 + $0x1f0] ss:$2 sm:$0xff] }
 0x379   :  { %17693 = vmatprep.mubr.msk.bf16.mxu1 %vm794_vm1, %v1804_v0  ;;  %v1693_v0 = vld [vmem:[#allocation2 + $0x1d0] ss:$2 sm:$0xff]  ;;  %v1719_v49 = vpack.c.bf16 %v1697_v44, %v1695_v39  ;;  %v22943_v6 = vld [vmem:[%s25167_s2 + $0x20] sm:$0xff]  }
 0x37a   :  { %v1718_v36 = vpack.c.bf16 %v1693_v0, %v1691_v40  ;;  %v2288_v8 = vld [vmem:[#allocation2 + $0x2] ss:$2 sm:$0xff]  ;;  %v2294_v31 = vld [vmem:[#allocation2 + $0x32] ss:$2 sm:$0xff]  ;;  %v2650_v0 = vld [vmem:[#allocation2 + $0x3] ss:$2 sm:$0xff] }
 0x37b   :  { %v2292_v26 = vld [vmem:[#allocation2 + $0x22] ss:$2 sm:$0xff]  ;;  %v2306_v7 = vld [vmem:[#allocation2 + $0x92] ss:$2 sm:$0xff]  ;;  %v2654_v44 = vld [vmem:[#allocation2 + $0x23] ss:$2 sm:$0xff] }
 0x37c   :  { %v2296_v35 = vld [vmem:[#allocation2 + $0x42] ss:$2 sm:$0xff]  ;;  %v2314_v30 = vld [vmem:[#allocation2 + $0xd2] ss:$2 sm:$0xff] }
 0x37d   :  { %v2300_v59 = vld [vmem:[#allocation2 + $0x62] ss:$2 sm:$0xff]  ;;  %v2318_v27 = vld [vmem:[#allocation2 + $0xf2] ss:$2 sm:$0xff] }
 0x37e   :  { %v2308_v63 = vld [vmem:[#allocation2 + $0xa2] ss:$2 sm:$0xff]  ;;  %v2334_v48 = vld [vmem:[#allocation2 + $0x172] ss:$2 sm:$0xff] }
 0x37f   :  { %v2316_v38 = vld [vmem:[#allocation2 + $0xe2] ss:$2 sm:$0xff]  ;;  %v2342_v12 = vld [vmem:[#allocation2 + $0x1b2] ss:$2 sm:$0xff] }
 0x380   :  { %17694 = vmatmul.mubr.msk.bf16.gmra.mrb[20].mxu1 %vm794_vm1, %v1805_v53  ;;  %v1699_v53 = vld [vmem:[#allocation2 + $0x200] ss:$2 sm:$0xff]  ;;  %v2364_v60 = vpack.c.bf16 %v2318_v27, %v2316_v38 }
 0x381   :  { %17697 = vmatprep.mubr.msk.bf16.mxu1 %vm794_vm1, %v1806_v58  ;;  %v1701_v58 = vld [vmem:[#allocation2 + $0x210] ss:$2 sm:$0xff]  ;;  %v2356_v40 = vld [vmem:[#allocation2 + $0x222] ss:$2 sm:$0x1f] }
 0x382   :  { %v1720_v62 = vpack.c.bf16 %v1701_v58, %v1699_v53  ;;  %v2332_v37 = vld [vmem:[#allocation2 + $0x162] ss:$2 sm:$0xff]  ;;  %v2350_v33 = vld [vmem:[#allocation2 + $0x1f2] ss:$2 sm:$0xff]  ;;  %v2656_v53 = vld [vmem:[#allocation2 + $0x33] ss:$2 sm:$0xff] }
 0x383   :  { %v2368_v32 = vpack.c.bf16 %v2334_v48, %v2332_v37  ;;  %v2340_v1 = vld [vmem:[#allocation2 + $0x1a2] ss:$2 sm:$0xff]  ;;  %v2658_v58 = vld [vmem:[#allocation2 + $0x43] ss:$2 sm:$0xff] }
 0x384   :  { %v2370_v5 = vpack.c.bf16 %v2342_v12, %v2340_v1  ;;  %v2348_v20 = vld [vmem:[#allocation2 + $0x1e2] ss:$2 sm:$0xff] }
 0x385   :  { %v2372_v11 = vpack.c.bf16 %v2350_v33, %v2348_v20  ;;  %v3016_v33 = vld [vmem:[#allocation2 + $0x24] ss:$2 sm:$0xff] }
 0x388   :  { %17698 = vmatmul.mubr.msk.bf16.gmra.mrb[24].mxu1 %vm794_vm1, %v1807_v13  ;;  %v2290_v13 = vld [vmem:[#allocation2 + $0x12] ss:$2 sm:$0xff] }
 0x389   :  { %17701 = vmatprep.mubr.msk.bf16.mxu1 %vm794_vm1, %v1808_v17  ;;  %v1721_v17 = vpack.c.bf16 %v1703_v4, %v1703_v4  ;;  %v2357_v22 = vpack.c.bf16 %v2290_v13, %v2288_v8  ;;  %v22968_v4 = vld [vmem:[%s25167_s2 + $0x28] sm:$0xff]  }
 0x38a   :  { %v2662_v13 = vld [vmem:[#allocation2 + $0x63] ss:$2 sm:$0xff] }
 0x390   :  { %17702 = vmatmul.mubr.msk.bf16.gmra.mrb[28].mxu1 %vm794_vm1, %v1809_v42  ;;  %v2298_v42 = vld [vmem:[#allocation2 + $0x52] ss:$2 sm:$0xff] }
 0x391   :  { %17705 = vmatprep.mubr.msk.bf16.mxu1 %vm794_vm1, %v1810_v47  ;;  %v2358_v47 = vpack.c.bf16 %v2294_v31, %v2292_v26  ;;  %v2359_v54 = vpack.c.bf16 %v2298_v42, %v2296_v35  ;;  %v2668_v26 = vld [vmem:[#allocation2 + $0x93] ss:$2 sm:$0xff]  ;;  %v2670_v42 = vld [vmem:[#allocation2 + $0xa3] ss:$2 sm:$0xff] }
 0x398   :  { %17706 = vmatmul.mubr.msk.bf16.gmra.mrb[32].mxu1 %vm794_vm1, %v1811_v2  ;;  %v2302_v2 = vld [vmem:[#allocation2 + $0x72] ss:$2 sm:$0xff] }
 0x399   :  { %17711 = vmatprep.mubr.msk.bf16.mxu1 %vm794_vm1, %v1704_v46  ;;  %v2304_v46 = vld [vmem:[#allocation2 + $0x82] ss:$2 sm:$0xff]  ;;  %v2360_v55 = vpack.c.bf16 %v2302_v2, %v2300_v59  ;;  %v2676_v59 = vld [vmem:[#allocation2 + $0xd3] ss:$2 sm:$0xff] }
 0x39a   :  { %v2361_v14 = vpack.c.bf16 %v2306_v7, %v2304_v46  ;;  %v2678_v46 = vld [vmem:[#allocation2 + $0xe3] ss:$2 sm:$0xff]  ;;  %v2680_v7 = vld [vmem:[#allocation2 + $0xf3] ss:$2 sm:$0xff] }
 0x3a0   :  { %17712 = vmatmul.mubr.msk.bf16.vlgmr.msra.gmra.mrb[0].mxu1 %vm794_vm1, %v1705_v9  ;;  %v2310_v9 = vld [vmem:[#allocation2 + $0xb2] ss:$2 sm:$0xff] }
 0x3a1   :  { %17748 = vmatpush3.bf16.msra.mxu1 %v22892_v21  ;;  %17715 = vmatprep.mubr.msk.bf16.mxu1 %vm794_vm1, %v1706_v25  ;;  %v1710_v21 = vpack.c.bf16 %v1661_v16, %v1659_v10  ;;  %v2312_v25 = vld [vmem:[#allocation2 + $0xc2] ss:$2 sm:$0xff]  ;;  %v2362_v18 = vpack.c.bf16 %v2310_v9, %v2308_v63  ;;  %v2326_v16 = vld [vmem:[#allocation2 + $0x132] ss:$2 sm:$0xff]  ;;  %v2726_v63 = vpack.c.bf16 %v2680_v7, %v2678_v46 }
 0x3a2   :  { %17785 = vmatprep.subr.bf16.mxu1 %v22918_v19  ;;  %v2324_v10 = vld [vmem:[#allocation2 + $0x122] ss:$2 sm:$0xff] }
 0x3a3   :  { %v2366_v29 = vpack.c.bf16 %v2326_v16, %v2324_v10 }
 0x3a8   :  { %17716 = vmatmul.mubr.msk.bf16.gmra.mrb[4].mxu1 %vm794_vm1, %v1707_v45  ;;  %v2320_v45 = vld [vmem:[#allocation2 + $0x102] ss:$2 sm:$0xff] }
 0x3a9   :  { %17719 = vmatprep.mubr.msk.bf16.mxu1 %vm794_vm1, %v1708_v52  ;;  %v2322_v52 = vld [vmem:[#allocation2 + $0x112] ss:$2 sm:$0xff] }
 0x3aa   :  { %v2365_v3 = vpack.c.bf16 %v2322_v52, %v2320_v45  ;;  %v2694_v45 = vld [vmem:[#allocation2 + $0x163] ss:$2 sm:$0xff]  ;;  %v2696_v52 = vld [vmem:[#allocation2 + $0x173] ss:$2 sm:$0xff] }
 0x3ab   :  { %v2730_v10 = vpack.c.bf16 %v2696_v52, %v2694_v45 }
 0x3b0   :  { %17720 = vmatmul.mubr.msk.bf16.gmra.mrb[8].mxu1 %vm794_vm1, %v1709_v23  ;;  %v2328_v23 = vld [vmem:[#allocation2 + $0x142] ss:$2 sm:$0xff] }
 0x3b1   :  { %17723 = vmatprep.mubr.msk.bf16.mxu1 %vm794_vm1, %v1710_v21  ;;  %v2330_v21 = vld [vmem:[#allocation2 + $0x152] ss:$2 sm:$0xff] }
 0x3b2   :  { %v2367_v34 = vpack.c.bf16 %v2330_v21, %v2328_v23  ;;  %v2702_v23 = vld [vmem:[#allocation2 + $0x1a3] ss:$2 sm:$0xff]  ;;  %v2704_v21 = vld [vmem:[#allocation2 + $0x1b3] ss:$2 sm:$0xff] }
 0x3b3   :  { %v2732_v37 = vpack.c.bf16 %v2704_v21, %v2702_v23 }
 0x3b8   :  { %17724 = vmatmul.mubr.msk.bf16.gmra.mrb[12].mxu1 %vm794_vm1, %v1711_v24  ;;  %v2336_v24 = vld [vmem:[#allocation2 + $0x182] ss:$2 sm:$0xff] }
 0x3b9   :  { %17727 = vmatprep.mubr.msk.bf16.mxu1 %vm794_vm1, %v1712_v51  ;;  %v2338_v51 = vld [vmem:[#allocation2 + $0x192] ss:$2 sm:$0xff] }
 0x3ba   :  { %v2369_v56 = vpack.c.bf16 %v2338_v51, %v2336_v24  ;;  %v2710_v24 = vld [vmem:[#allocation2 + $0x1e3] ss:$2 sm:$0xff]  ;;  %v2712_v51 = vld [vmem:[#allocation2 + $0x1f3] ss:$2 sm:$0xff] }
 0x3bb   :  { %v2734_v1 = vpack.c.bf16 %v2712_v51, %v2710_v24  ;;  %v3375_v51 = vld [vmem:[#allocation2 + $0x32] ss:$2 sm:$0xff] }
 0x3c0   :  { %17728 = vmatmul.mubr.msk.bf16.gmra.mrb[16].mxu1 %vm794_vm1, %v1713_v61  ;;  %v2344_v61 = vld [vmem:[#allocation2 + $0x1c2] ss:$2 sm:$0xff] }
 0x3c1   :  { %17731 = vmatprep.mubr.msk.bf16.mxu1 %vm794_vm1, %v1714_v28  ;;  %v2346_v28 = vld [vmem:[#allocation2 + $0x1d2] ss:$2 sm:$0xff] }
 0x3c2   :  { %v2371_v43 = vpack.c.bf16 %v2346_v28, %v2344_v61  ;;  %v2718_v61 = vld [vmem:[#allocation2 + $0x223] ss:$2 sm:$0x1f]  ;;  %v3012_v28 = vld [vmem:[#allocation2 + $0x4] ss:$2 sm:$0xff] }
 0x3c8   :  { %17732 = vmatmul.mubr.msk.bf16.gmra.mrb[20].mxu1 %vm794_vm1, %v1715_v57  ;;  %v2352_v57 = vld [vmem:[#allocation2 + $0x202] ss:$2 sm:$0xff] }
 0x3c9   :  { %17735 = vmatprep.mubr.msk.bf16.mxu1 %vm794_vm1, %v1716_v15  ;;  %v2354_v15 = vld [vmem:[#allocation2 + $0x212] ss:$2 sm:$0xff] }
 0x3ca   :  { %v2373_v50 = vpack.c.bf16 %v2354_v15, %v2352_v57  ;;  %v3018_v57 = vld [vmem:[#allocation2 + $0x34] ss:$2 sm:$0xff]  ;;  %v3020_v15 = vld [vmem:[#allocation2 + $0x44] ss:$2 sm:$0xff] }
 0x3d0   :  { %17736 = vmatmul.mubr.msk.bf16.gmra.mrb[24].mxu1 %vm794_vm1, %v1717_v41  ;;  %v2652_v41 = vld [vmem:[#allocation2 + $0x13] ss:$2 sm:$0xff] }
 0x3d1   :  { %17739 = vmatprep.mubr.msk.bf16.mxu1 %vm794_vm1, %v1718_v36  ;;  %v2374_v36 = vpack.c.bf16 %v2356_v40, %v2356_v40  ;;  %v2719_v39 = vpack.c.bf16 %v2652_v41, %v2650_v0  ;;  %v22993_v40 = vld [vmem:[%s25167_s2 + $0x30] sm:$0xff]  }
 0x3d2   :  { %v3024_v41 = vld [vmem:[#allocation2 + $0x64] ss:$2 sm:$0xff] }
 0x3d8   :  { %17740 = vmatmul.mubr.msk.bf16.gmra.mrb[28].mxu1 %vm794_vm1, %v1719_v49  ;;  %v2660_v49 = vld [vmem:[#allocation2 + $0x53] ss:$2 sm:$0xff] }
 0x3d9   :  { %17743 = vmatprep.mubr.msk.bf16.mxu1 %vm794_vm1, %v1720_v62  ;;  %v2720_v62 = vpack.c.bf16 %v2656_v53, %v2654_v44  ;;  %v2721_v8 = vpack.c.bf16 %v2660_v49, %v2658_v58  ;;  %v3030_v44 = vld [vmem:[#allocation2 + $0x94] ss:$2 sm:$0xff]  ;;  %v3032_v49 = vld [vmem:[#allocation2 + $0xa4] ss:$2 sm:$0xff] }
 0x3e0   :  { %17744 = vmatmul.mubr.msk.bf16.gmra.mrb[32].mxu1 %vm794_vm1, %v1721_v17  ;;  %v2664_v17 = vld [vmem:[#allocation2 + $0x73] ss:$2 sm:$0xff] }
 0x3e1   :  { %17749 = vmatprep.mubr.msk.bf16.mxu1 %vm794_vm1, %v2357_v22  ;;  %v2666_v22 = vld [vmem:[#allocation2 + $0x83] ss:$2 sm:$0xff]  ;;  %v2722_v31 = vpack.c.bf16 %v2664_v17, %v2662_v13  ;;  %v3038_v13 = vld [vmem:[#allocation2 + $0xd4] ss:$2 sm:$0xff] }
 0x3e2   :  { %v2723_v35 = vpack.c.bf16 %v2668_v26, %v2666_v22  ;;  %v3040_v22 = vld [vmem:[#allocation2 + $0xe4] ss:$2 sm:$0xff]  ;;  %v3042_v26 = vld [vmem:[#allocation2 + $0xf4] ss:$2 sm:$0xff] }
 0x3e8   :  { %17750 = vmatmul.mubr.msk.bf16.vlgmr.msra.gmra.mrb[0].mxu1 %vm794_vm1, %v2358_v47  ;;  %v2672_v47 = vld [vmem:[#allocation2 + $0xb3] ss:$2 sm:$0xff] }
 0x3e9   :  { %17786 = vmatpush3.bf16.msra.mxu1 %v22918_v19  ;;  %17753 = vmatprep.mubr.msk.bf16.mxu1 %vm794_vm1, %v2359_v54  ;;  %v2363_v19 = vpack.c.bf16 %v2314_v30, %v2312_v25  ;;  %v2674_v54 = vld [vmem:[#allocation2 + $0xc3] ss:$2 sm:$0xff]  ;;  %v2724_v2 = vpack.c.bf16 %v2672_v47, %v2670_v42  ;;  %v2688_v30 = vld [vmem:[#allocation2 + $0x133] ss:$2 sm:$0xff]  ;;  %v3088_v42 = vpack.c.bf16 %v3042_v26, %v3040_v22 }
 0x3ea   :  { %17823 = vmatprep.subr.bf16.mxu1 %v22943_v6  ;;  %v2686_v25 = vld [vmem:[#allocation2 + $0x123] ss:$2 sm:$0xff] }
 0x3eb   :  { %v2728_v38 = vpack.c.bf16 %v2688_v30, %v2686_v25 }
 0x3f0   :  { %17754 = vmatmul.mubr.msk.bf16.gmra.mrb[4].mxu1 %vm794_vm1, %v2360_v55  ;;  %v2682_v55 = vld [vmem:[#allocation2 + $0x103] ss:$2 sm:$0xff] }
 0x3f1   :  { %17757 = vmatprep.mubr.msk.bf16.mxu1 %vm794_vm1, %v2361_v14  ;;  %v2684_v14 = vld [vmem:[#allocation2 + $0x113] ss:$2 sm:$0xff] }
 0x3f2   :  { %v2727_v9 = vpack.c.bf16 %v2684_v14, %v2682_v55  ;;  %v3056_v55 = vld [vmem:[#allocation2 + $0x164] ss:$2 sm:$0xff]  ;;  %v3058_v14 = vld [vmem:[#allocation2 + $0x174] ss:$2 sm:$0xff] }
 0x3f3   :  { %v3092_v25 = vpack.c.bf16 %v3058_v14, %v3056_v55 }
 0x3f8   :  { %17758 = vmatmul.mubr.msk.bf16.gmra.mrb[8].mxu1 %vm794_vm1, %v2362_v18  ;;  %v2690_v18 = vld [vmem:[#allocation2 + $0x143] ss:$2 sm:$0xff] }
 0x3f9   :  { %17761 = vmatprep.mubr.msk.bf16.mxu1 %vm794_vm1, %v2363_v19  ;;  %v2692_v19 = vld [vmem:[#allocation2 + $0x153] ss:$2 sm:$0xff] }
 0x3fa   :  { %v2729_v27 = vpack.c.bf16 %v2692_v19, %v2690_v18  ;;  %v3064_v18 = vld [vmem:[#allocation2 + $0x1a4] ss:$2 sm:$0xff]  ;;  %v3066_v19 = vld [vmem:[#allocation2 + $0x1b4] ss:$2 sm:$0xff] }
 0x3fb   :  { %v3094_v45 = vpack.c.bf16 %v3066_v19, %v3064_v18 }
 0x400   :  { %17762 = vmatmul.mubr.msk.bf16.gmra.mrb[12].mxu1 %vm794_vm1, %v2364_v60  ;;  %v2698_v60 = vld [vmem:[#allocation2 + $0x183] ss:$2 sm:$0xff] }
 0x401   :  { %17765 = vmatprep.mubr.msk.bf16.mxu1 %vm794_vm1, %v2365_v3  ;;  %v2700_v3 = vld [vmem:[#allocation2 + $0x193] ss:$2 sm:$0xff] }
 0x402   :  { %v2731_v16 = vpack.c.bf16 %v2700_v3, %v2698_v60  ;;  %v3072_v60 = vld [vmem:[#allocation2 + $0x1e4] ss:$2 sm:$0xff]  ;;  %v3074_v3 = vld [vmem:[#allocation2 + $0x1f4] ss:$2 sm:$0xff] }
 0x403   :  { %v3096_v23 = vpack.c.bf16 %v3074_v3, %v3072_v60  ;;  %v3703_v3 = vld [vmem:[#allocation2 + $0x33] ss:$2 sm:$0xff] }
 0x408   :  { %17766 = vmatmul.mubr.msk.bf16.gmra.mrb[16].mxu1 %vm794_vm1, %v2366_v29  ;;  %v2706_v29 = vld [vmem:[#allocation2 + $0x1c3] ss:$2 sm:$0xff] }
 0x409   :  { %17769 = vmatprep.mubr.msk.bf16.mxu1 %vm794_vm1, %v2367_v34  ;;  %v2708_v34 = vld [vmem:[#allocation2 + $0x1d3] ss:$2 sm:$0xff] }
 0x40a   :  { %v2733_v48 = vpack.c.bf16 %v2708_v34, %v2706_v29  ;;  %v3080_v29 = vld [vmem:[#allocation2 + $0x224] ss:$2 sm:$0x1f]  ;;  %v3373_v34 = vld [vmem:[#allocation2 + $0x12] ss:$2 sm:$0xff] }
 0x410   :  { %17770 = vmatmul.mubr.msk.bf16.gmra.mrb[20].mxu1 %vm794_vm1, %v2368_v32  ;;  %v2714_v32 = vld [vmem:[#allocation2 + $0x203] ss:$2 sm:$0xff] }
 0x411   :  { %17773 = vmatprep.mubr.msk.bf16.mxu1 %vm794_vm1, %v2369_v56  ;;  %v2716_v56 = vld [vmem:[#allocation2 + $0x213] ss:$2 sm:$0xff] }
 0x412   :  { %v2735_v12 = vpack.c.bf16 %v2716_v56, %v2714_v32  ;;  %v3376_v32 = vld [vmem:[#allocation2 + $0x42] ss:$2 sm:$0xff]  ;;  %v3377_v56 = vld [vmem:[#allocation2 + $0x52] ss:$2 sm:$0xff] }
 0x418   :  { %17774 = vmatmul.mubr.msk.bf16.gmra.mrb[24].mxu1 %vm794_vm1, %v2370_v5  ;;  %v3014_v5 = vld [vmem:[#allocation2 + $0x14] ss:$2 sm:$0xff] }
 0x419   :  { %17777 = vmatprep.mubr.msk.bf16.mxu1 %vm794_vm1, %v2371_v43  ;;  %v2736_v43 = vpack.c.bf16 %v2718_v61, %v2718_v61  ;;  %v3081_v20 = vpack.c.bf16 %v3014_v5, %v3012_v28  ;;  %v23018_v61 = vld [vmem:[%s25167_s2 + $0x38] sm:$0xff]  }
 0x41a   :  { %v3379_v5 = vld [vmem:[#allocation2 + $0x72] ss:$2 sm:$0xff] }
 0x420   :  { %17778 = vmatmul.mubr.msk.bf16.gmra.mrb[28].mxu1 %vm794_vm1, %v2372_v11  ;;  %v3022_v11 = vld [vmem:[#allocation2 + $0x54] ss:$2 sm:$0xff] }
 0x421   :  { %17781 = vmatprep.mubr.msk.bf16.mxu1 %vm794_vm1, %v2373_v50  ;;  %v3082_v50 = vpack.c.bf16 %v3018_v57, %v3016_v33  ;;  %v3083_v0 = vpack.c.bf16 %v3022_v11, %v3020_v15  ;;  %v3382_v33 = vld [vmem:[#allocation2 + $0xa2] ss:$2 sm:$0xff]  ;;  %v3383_v11 = vld [vmem:[#allocation2 + $0xb2] ss:$2 sm:$0xff] }
 0x428   :  { %17782 = vmatmul.mubr.msk.bf16.gmra.mrb[32].mxu1 %vm794_vm1, %v2374_v36  ;;  %v3026_v36 = vld [vmem:[#allocation2 + $0x74] ss:$2 sm:$0xff] }
 0x429   :  { %17787 = vmatprep.mubr.msk.bf16.mxu1 %vm794_vm1, %v2719_v39  ;;  %v3028_v39 = vld [vmem:[#allocation2 + $0x84] ss:$2 sm:$0xff]  ;;  %v3084_v53 = vpack.c.bf16 %v3026_v36, %v3024_v41 }
 0x42a   :  { %v3085_v58 = vpack.c.bf16 %v3030_v44, %v3028_v39  ;;  %v3386_v41 = vld [vmem:[#allocation2 + $0xe2] ss:$2 sm:$0xff]  ;;  %v3387_v39 = vld [vmem:[#allocation2 + $0xf2] ss:$2 sm:$0xff] }
 0x42b   :  { %v3388_v44 = vld [vmem:[#allocation2 + $0x102] ss:$2 sm:$0xff] }
 0x430   :  { %17788 = vmatmul.mubr.msk.bf16.vlgmr.msra.gmra.mrb[0].mxu1 %vm794_vm1, %v2720_v62  ;;  %v3034_v62 = vld [vmem:[#allocation2 + $0xb4] ss:$2 sm:$0xff] }
 0x431   :  { %17824 = vmatpush3.bf16.msra.mxu1 %v22943_v6  ;;  %17791 = vmatprep.mubr.msk.bf16.mxu1 %vm794_vm1, %v2721_v8  ;;  %v2725_v6 = vpack.c.bf16 %v2676_v59, %v2674_v54  ;;  %v3036_v8 = vld [vmem:[#allocation2 + $0xc4] ss:$2 sm:$0xff]  ;;  %v3086_v17 = vpack.c.bf16 %v3034_v62, %v3032_v49  ;;  %v3050_v59 = vld [vmem:[#allocation2 + $0x134] ss:$2 sm:$0xff]  ;;  %v3416_v49 = vpack.c.bf16 %v3388_v44, %v3387_v39 }
 0x432   :  { %17861 = vmatprep.subr.bf16.mxu1 %v22968_v4  ;;  %v3048_v54 = vld [vmem:[#allocation2 + $0x124] ss:$2 sm:$0xff] }
 0x433   :  { %v3090_v46 = vpack.c.bf16 %v3050_v59, %v3048_v54 }
 0x438   :  { %17792 = vmatmul.mubr.msk.bf16.gmra.mrb[4].mxu1 %vm794_vm1, %v2722_v31  ;;  %v3044_v31 = vld [vmem:[#allocation2 + $0x104] ss:$2 sm:$0xff] }
 0x439   :  { %17795 = vmatprep.mubr.msk.bf16.mxu1 %vm794_vm1, %v2723_v35  ;;  %v3046_v35 = vld [vmem:[#allocation2 + $0x114] ss:$2 sm:$0xff] }
 0x43a   :  { %v3089_v47 = vpack.c.bf16 %v3046_v35, %v3044_v31  ;;  %v3395_v31 = vld [vmem:[#allocation2 + $0x172] ss:$2 sm:$0xff]  ;;  %v3396_v35 = vld [vmem:[#allocation2 + $0x182] ss:$2 sm:$0xff] }
 0x43b   :  { %v3420_v54 = vpack.c.bf16 %v3396_v35, %v3395_v31 }
 0x440   :  { %17796 = vmatmul.mubr.msk.bf16.gmra.mrb[8].mxu1 %vm794_vm1, %v2724_v2  ;;  %v3052_v2 = vld [vmem:[#allocation2 + $0x144] ss:$2 sm:$0xff] }
 0x441   :  { %17799 = vmatprep.mubr.msk.bf16.mxu1 %vm794_vm1, %v2725_v6  ;;  %v3054_v6 = vld [vmem:[#allocation2 + $0x154] ss:$2 sm:$0xff] }
 0x442   :  { %v3091_v7 = vpack.c.bf16 %v3054_v6, %v3052_v2  ;;  %v3399_v2 = vld [vmem:[#allocation2 + $0x1b2] ss:$2 sm:$0xff]  ;;  %v3400_v6 = vld [vmem:[#allocation2 + $0x1c2] ss:$2 sm:$0xff] }
 0x443   :  { %v3422_v55 = vpack.c.bf16 %v3400_v6, %v3399_v2 }
 0x448   :  { %17800 = vmatmul.mubr.msk.bf16.gmra.mrb[12].mxu1 %vm794_vm1, %v2726_v63  ;;  %v3060_v63 = vld [vmem:[#allocation2 + $0x184] ss:$2 sm:$0xff] }
 0x449   :  { %17803 = vmatprep.mubr.msk.bf16.mxu1 %vm794_vm1, %v2727_v9  ;;  %v3062_v9 = vld [vmem:[#allocation2 + $0x194] ss:$2 sm:$0xff] }
 0x44a   :  { %v3093_v30 = vpack.c.bf16 %v3062_v9, %v3060_v63  ;;  %v3403_v63 = vld [vmem:[#allocation2 + $0x1f2] ss:$2 sm:$0xff]  ;;  %v3404_v9 = vld [vmem:[#allocation2 + $0x202] ss:$2 sm:$0xff] }
 0x44b   :  { %v3424_v18 = vpack.c.bf16 %v3404_v9, %v3403_v63  ;;  %v4031_v9 = vld [vmem:[#allocation2 + $0x34] ss:$2 sm:$0xff] }
 0x450   :  { %17804 = vmatmul.mubr.msk.bf16.gmra.mrb[16].mxu1 %vm794_vm1, %v2728_v38  ;;  %v3068_v38 = vld [vmem:[#allocation2 + $0x1c4] ss:$2 sm:$0xff] }
 0x451   :  { %17807 = vmatprep.mubr.msk.bf16.mxu1 %vm794_vm1, %v2729_v27  ;;  %v3070_v27 = vld [vmem:[#allocation2 + $0x1d4] ss:$2 sm:$0xff] }
 0x452   :  { %v3095_v52 = vpack.c.bf16 %v3070_v27, %v3068_v38  ;;  %v3408_v38 = vld [vmem:[#allocation2 + $0x232] ss:$2 sm:$0x1f]  ;;  %v3701_v27 = vld [vmem:[#allocation2 + $0x13] ss:$2 sm:$0xff] }
 0x458   :  { %17808 = vmatmul.mubr.msk.bf16.gmra.mrb[20].mxu1 %vm794_vm1, %v2730_v10  ;;  %v3076_v10 = vld [vmem:[#allocation2 + $0x204] ss:$2 sm:$0xff] }
 0x459   :  { %17811 = vmatprep.mubr.msk.bf16.mxu1 %vm794_vm1, %v2731_v16  ;;  %v3078_v16 = vld [vmem:[#allocation2 + $0x214] ss:$2 sm:$0xff] }
 0x45a   :  { %v3097_v21 = vpack.c.bf16 %v3078_v16, %v3076_v10  ;;  %v3704_v10 = vld [vmem:[#allocation2 + $0x43] ss:$2 sm:$0xff]  ;;  %v3705_v16 = vld [vmem:[#allocation2 + $0x53] ss:$2 sm:$0xff] }
 0x460   :  { %17812 = vmatmul.mubr.msk.bf16.gmra.mrb[24].mxu1 %vm794_vm1, %v2732_v37  ;;  %v3374_v37 = vld [vmem:[#allocation2 + $0x22] ss:$2 sm:$0xff] }
 0x461   :  { %17815 = vmatprep.mubr.msk.bf16.mxu1 %vm794_vm1, %v2733_v48  ;;  %v3098_v48 = vpack.c.bf16 %v3080_v29, %v3080_v29  ;;  %v3409_v24 = vpack.c.bf16 %v3374_v37, %v3373_v34  ;;  %v23043_v29 = vld [vmem:[%s25167_s2 + $0x40] sm:$0xff]  }
 0x462   :  { %v3707_v37 = vld [vmem:[#allocation2 + $0x73] ss:$2 sm:$0xff] }
 0x468   :  { %17816 = vmatmul.mubr.msk.bf16.gmra.mrb[28].mxu1 %vm794_vm1, %v2734_v1  ;;  %v3378_v1 = vld [vmem:[#allocation2 + $0x62] ss:$2 sm:$0xff] }
 0x469   :  { %17819 = vmatprep.mubr.msk.bf16.mxu1 %vm794_vm1, %v2735_v12  ;;  %v3410_v12 = vpack.c.bf16 %v3376_v32, %v3375_v51  ;;  %v3411_v28 = vpack.c.bf16 %v3378_v1, %v3377_v56  ;;  %v3710_v51 = vld [vmem:[#allocation2 + $0xa3] ss:$2 sm:$0xff]  ;;  %v3711_v1 = vld [vmem:[#allocation2 + $0xb3] ss:$2 sm:$0xff] }
 0x470   :  { %17820 = vmatmul.mubr.msk.bf16.gmra.mrb[32].mxu1 %vm794_vm1, %v2736_v43  ;;  %v3380_v43 = vld [vmem:[#allocation2 + $0x82] ss:$2 sm:$0xff] }
 0x471   :  { %17825 = vmatprep.mubr.msk.bf16.mxu1 %vm794_vm1, %v3081_v20  ;;  %v3381_v20 = vld [vmem:[#allocation2 + $0x92] ss:$2 sm:$0xff]  ;;  %v3412_v57 = vpack.c.bf16 %v3380_v43, %v3379_v5  ;;  %v3714_v5 = vld [vmem:[#allocation2 + $0xe3] ss:$2 sm:$0xff] }
 0x472   :  { %v3413_v15 = vpack.c.bf16 %v3382_v33, %v3381_v20  ;;  %v3715_v20 = vld [vmem:[#allocation2 + $0xf3] ss:$2 sm:$0xff]  ;;  %v3716_v33 = vld [vmem:[#allocation2 + $0x103] ss:$2 sm:$0xff] }
 0x478   :  { %17826 = vmatmul.mubr.msk.bf16.vlgmr.msra.gmra.mrb[0].mxu1 %vm794_vm1, %v3082_v50  ;;  %v3384_v50 = vld [vmem:[#allocation2 + $0xc2] ss:$2 sm:$0xff] }
 0x479   :  { %17862 = vmatpush3.bf16.msra.mxu1 %v22968_v4  ;;  %17829 = vmatprep.mubr.msk.bf16.mxu1 %vm794_vm1, %v3083_v0  ;;  %v3087_v4 = vpack.c.bf16 %v3038_v13, %v3036_v8  ;;  %v3385_v0 = vld [vmem:[#allocation2 + $0xd2] ss:$2 sm:$0xff]  ;;  %v3414_v36 = vpack.c.bf16 %v3384_v50, %v3383_v11  ;;  %v3392_v13 = vld [vmem:[#allocation2 + $0x142] ss:$2 sm:$0xff]  ;;  %v3744_v11 = vpack.c.bf16 %v3716_v33, %v3715_v20 }
 0x47a   :  { %17899 = vmatprep.subr.bf16.mxu1 %v22993_v40  ;;  %v3391_v8 = vld [vmem:[#allocation2 + $0x132] ss:$2 sm:$0xff] }
 0x47b   :  { %v3418_v22 = vpack.c.bf16 %v3392_v13, %v3391_v8 }
 0x480   :  { %17830 = vmatmul.mubr.msk.bf16.gmra.mrb[4].mxu1 %vm794_vm1, %v3084_v53  ;;  %v3389_v53 = vld [vmem:[#allocation2 + $0x112] ss:$2 sm:$0xff] }
 0x481   :  { %17833 = vmatprep.mubr.msk.bf16.mxu1 %vm794_vm1, %v3085_v58  ;;  %v3390_v58 = vld [vmem:[#allocation2 + $0x122] ss:$2 sm:$0xff] }
 0x482   :  { %v3417_v62 = vpack.c.bf16 %v3390_v58, %v3389_v53  ;;  %v3723_v53 = vld [vmem:[#allocation2 + $0x173] ss:$2 sm:$0xff]  ;;  %v3724_v58 = vld [vmem:[#allocation2 + $0x183] ss:$2 sm:$0xff] }
 0x483   :  { %v3748_v8 = vpack.c.bf16 %v3724_v58, %v3723_v53 }
 0x488   :  { %17834 = vmatmul.mubr.msk.bf16.gmra.mrb[8].mxu1 %vm794_vm1, %v3086_v17  ;;  %v3393_v17 = vld [vmem:[#allocation2 + $0x152] ss:$2 sm:$0xff] }
 0x489   :  { %17837 = vmatprep.mubr.msk.bf16.mxu1 %vm794_vm1, %v3087_v4  ;;  %v3394_v4 = vld [vmem:[#allocation2 + $0x162] ss:$2 sm:$0xff] }
 0x48a   :  { %v3419_v26 = vpack.c.bf16 %v3394_v4, %v3393_v17  ;;  %v3727_v17 = vld [vmem:[#allocation2 + $0x1b3] ss:$2 sm:$0xff]  ;;  %v3728_v4 = vld [vmem:[#allocation2 + $0x1c3] ss:$2 sm:$0xff] }
 0x48b   :  { %v3750_v31 = vpack.c.bf16 %v3728_v4, %v3727_v17 }
 0x490   :  { %17838 = vmatmul.mubr.msk.bf16.gmra.mrb[12].mxu1 %vm794_vm1, %v3088_v42  ;;  %v3397_v42 = vld [vmem:[#allocation2 + $0x192] ss:$2 sm:$0xff] }
 0x491   :  { %17841 = vmatprep.mubr.msk.bf16.mxu1 %vm794_vm1, %v3089_v47  ;;  %v3398_v47 = vld [vmem:[#allocation2 + $0x1a2] ss:$2 sm:$0xff] }
 0x492   :  { %v3421_v59 = vpack.c.bf16 %v3398_v47, %v3397_v42  ;;  %v3731_v42 = vld [vmem:[#allocation2 + $0x1f3] ss:$2 sm:$0xff]  ;;  %v3732_v47 = vld [vmem:[#allocation2 + $0x203] ss:$2 sm:$0xff] }
 0x493   :  { %v3752_v2 = vpack.c.bf16 %v3732_v47, %v3731_v42  ;;  %v4362_v47 = vld [vmem:[#allocation2 + $0x35] ss:$2 sm:$0xff] }
 0x498   :  { %17842 = vmatmul.mubr.msk.bf16.gmra.mrb[16].mxu1 %vm794_vm1, %v3090_v46  ;;  %v3401_v46 = vld [vmem:[#allocation2 + $0x1d2] ss:$2 sm:$0xff] }
 0x499   :  { %17845 = vmatprep.mubr.msk.bf16.mxu1 %vm794_vm1, %v3091_v7  ;;  %v3402_v7 = vld [vmem:[#allocation2 + $0x1e2] ss:$2 sm:$0xff] }
 0x49a   :  { %v3423_v14 = vpack.c.bf16 %v3402_v7, %v3401_v46  ;;  %v3736_v46 = vld [vmem:[#allocation2 + $0x233] ss:$2 sm:$0x1f]  ;;  %v4029_v7 = vld [vmem:[#allocation2 + $0x14] ss:$2 sm:$0xff] }
 0x4a0   :  { %17846 = vmatmul.mubr.msk.bf16.gmra.mrb[20].mxu1 %vm794_vm1, %v3092_v25  ;;  %v3405_v25 = vld [vmem:[#allocation2 + $0x212] ss:$2 sm:$0xff] }
 0x4a1   :  { %17849 = vmatprep.mubr.msk.bf16.mxu1 %vm794_vm1, %v3093_v30  ;;  %v3406_v30 = vld [vmem:[#allocation2 + $0x222] ss:$2 sm:$0xff] }
 0x4a2   :  { %v3425_v19 = vpack.c.bf16 %v3406_v30, %v3405_v25  ;;  %v4032_v25 = vld [vmem:[#allocation2 + $0x44] ss:$2 sm:$0xff]  ;;  %v4033_v30 = vld [vmem:[#allocation2 + $0x54] ss:$2 sm:$0xff] }
 0x4a8   :  { %17850 = vmatmul.mubr.msk.bf16.gmra.mrb[24].mxu1 %vm794_vm1, %v3094_v45  ;;  %v3702_v45 = vld [vmem:[#allocation2 + $0x23] ss:$2 sm:$0xff] }
 0x4a9   :  { %17853 = vmatprep.mubr.msk.bf16.mxu1 %vm794_vm1, %v3095_v52  ;;  %v3426_v52 = vpack.c.bf16 %v3408_v38, %v3408_v38  ;;  %v3737_v60 = vpack.c.bf16 %v3702_v45, %v3701_v27  ;;  %v23068_v38 = vld [vmem:[%s25167_s2 + $0x48] sm:$0xff]   ;;  %v4035_v45 = vld [vmem:[#allocation2 + $0x74] ss:$2 sm:$0xff] }
 0x4b0   :  { %17854 = vmatmul.mubr.msk.bf16.gmra.mrb[28].mxu1 %vm794_vm1, %v3096_v23  ;;  %v3706_v23 = vld [vmem:[#allocation2 + $0x63] ss:$2 sm:$0xff] }
 0x4b1   :  { %17857 = vmatprep.mubr.msk.bf16.mxu1 %vm794_vm1, %v3097_v21  ;;  %v3738_v21 = vpack.c.bf16 %v3704_v10, %v3703_v3  ;;  %v3739_v34 = vpack.c.bf16 %v3706_v23, %v3705_v16  ;;  %v4038_v3 = vld [vmem:[#allocation2 + $0xa4] ss:$2 sm:$0xff]  ;;  %v4039_v23 = vld [vmem:[#allocation2 + $0xb4] ss:$2 sm:$0xff] }
 0x4b8   :  { %17858 = vmatmul.mubr.msk.bf16.gmra.mrb[32].mxu1 %vm794_vm1, %v3098_v48  ;;  %v3708_v48 = vld [vmem:[#allocation2 + $0x83] ss:$2 sm:$0xff] }
 0x4b9   :  { %17863 = vmatprep.mubr.msk.bf16.mxu1 %vm794_vm1, %v3409_v24  ;;  %v3709_v24 = vld [vmem:[#allocation2 + $0x93] ss:$2 sm:$0xff]  ;;  %v3740_v32 = vpack.c.bf16 %v3708_v48, %v3707_v37  ;;  %v4042_v37 = vld [vmem:[#allocation2 + $0xe4] ss:$2 sm:$0xff] }
 0x4ba   :  { %v3741_v56 = vpack.c.bf16 %v3710_v51, %v3709_v24  ;;  %v4043_v24 = vld [vmem:[#allocation2 + $0xf4] ss:$2 sm:$0xff]  ;;  %v4044_v51 = vld [vmem:[#allocation2 + $0x104] ss:$2 sm:$0xff] }
 0x4c0   :  { %17864 = vmatmul.mubr.msk.bf16.vlgmr.msra.gmra.mrb[0].mxu1 %vm794_vm1, %v3410_v12  ;;  %v3712_v12 = vld [vmem:[#allocation2 + $0xc3] ss:$2 sm:$0xff] }
 0x4c1   :  { %17900 = vmatpush3.bf16.msra.mxu1 %v22993_v40  ;;  %17867 = vmatprep.mubr.msk.bf16.mxu1 %vm794_vm1, %v3411_v28  ;;  %v3415_v40 = vpack.c.bf16 %v3386_v41, %v3385_v0  ;;  %v3713_v28 = vld [vmem:[#allocation2 + $0xd3] ss:$2 sm:$0xff]  ;;  %v3742_v43 = vpack.c.bf16 %v3712_v12, %v3711_v1  ;;  %v3720_v41 = vld [vmem:[#allocation2 + $0x143] ss:$2 sm:$0xff]  ;;  %v4072_v1 = vpack.c.bf16 %v4044_v51, %v4043_v24 }
 0x4c2   :  { %17937 = vmatprep.subr.bf16.mxu1 %v23018_v61  ;;  %v3719_v0 = vld [vmem:[#allocation2 + $0x133] ss:$2 sm:$0xff] }
 0x4c3   :  { %v3746_v39 = vpack.c.bf16 %v3720_v41, %v3719_v0 }
 0x4c8   :  { %17868 = vmatmul.mubr.msk.bf16.gmra.mrb[4].mxu1 %vm794_vm1, %v3412_v57  ;;  %v3717_v57 = vld [vmem:[#allocation2 + $0x113] ss:$2 sm:$0xff] }
 0x4c9   :  { %17871 = vmatprep.mubr.msk.bf16.mxu1 %vm794_vm1, %v3413_v15  ;;  %v3718_v15 = vld [vmem:[#allocation2 + $0x123] ss:$2 sm:$0xff] }
 0x4ca   :  { %v3745_v50 = vpack.c.bf16 %v3718_v15, %v3717_v57  ;;  %v4051_v57 = vld [vmem:[#allocation2 + $0x174] ss:$2 sm:$0xff]  ;;  %v4052_v15 = vld [vmem:[#allocation2 + $0x184] ss:$2 sm:$0xff] }
 0x4cb   :  { %v4076_v0 = vpack.c.bf16 %v4052_v15, %v4051_v57 }
 0x4d0   :  { %17872 = vmatmul.mubr.msk.bf16.gmra.mrb[8].mxu1 %vm794_vm1, %v3414_v36  ;;  %v3721_v36 = vld [vmem:[#allocation2 + $0x153] ss:$2 sm:$0xff] }
 0x4d1   :  { %17875 = vmatprep.mubr.msk.bf16.mxu1 %vm794_vm1, %v3415_v40  ;;  %v3722_v40 = vld [vmem:[#allocation2 + $0x163] ss:$2 sm:$0xff] }
 0x4d2   :  { %v3747_v44 = vpack.c.bf16 %v3722_v40, %v3721_v36  ;;  %v4055_v36 = vld [vmem:[#allocation2 + $0x1b4] ss:$2 sm:$0xff]  ;;  %v4056_v40 = vld [vmem:[#allocation2 + $0x1c4] ss:$2 sm:$0xff] }
 0x4d3   :  { %v4078_v53 = vpack.c.bf16 %v4056_v40, %v4055_v36 }
 0x4d8   :  { %17876 = vmatmul.mubr.msk.bf16.gmra.mrb[12].mxu1 %vm794_vm1, %v3416_v49  ;;  %v3725_v49 = vld [vmem:[#allocation2 + $0x193] ss:$2 sm:$0xff] }
 0x4d9   :  { %17879 = vmatprep.mubr.msk.bf16.mxu1 %vm794_vm1, %v3417_v62  ;;  %v3726_v62 = vld [vmem:[#allocation2 + $0x1a3] ss:$2 sm:$0xff] }
 0x4da   :  { %v3749_v13 = vpack.c.bf16 %v3726_v62, %v3725_v49  ;;  %v4059_v49 = vld [vmem:[#allocation2 + $0x1f4] ss:$2 sm:$0xff]  ;;  %v4060_v62 = vld [vmem:[#allocation2 + $0x204] ss:$2 sm:$0xff] }
 0x4db   :  { %v4080_v17 = vpack.c.bf16 %v4060_v62, %v4059_v49  ;;  %v4724_v62 = vld [vmem:[#allocation2 + $0x36] ss:$2 sm:$0xff] }
 0x4e0   :  { %17880 = vmatmul.mubr.msk.bf16.gmra.mrb[16].mxu1 %vm794_vm1, %v3418_v22  ;;  %v3729_v22 = vld [vmem:[#allocation2 + $0x1d3] ss:$2 sm:$0xff] }
 0x4e1   :  { %17883 = vmatprep.mubr.msk.bf16.mxu1 %vm794_vm1, %v3419_v26  ;;  %v3730_v26 = vld [vmem:[#allocation2 + $0x1e3] ss:$2 sm:$0xff] }
 0x4e2   :  { %v3751_v35 = vpack.c.bf16 %v3730_v26, %v3729_v22  ;;  %v4064_v22 = vld [vmem:[#allocation2 + $0x234] ss:$2 sm:$0x1f]  ;;  %v4358_v26 = vld [vmem:[#allocation2 + $0x15] ss:$2 sm:$0xff] }
 0x4e8   :  { %17884 = vmatmul.mubr.msk.bf16.gmra.mrb[20].mxu1 %vm794_vm1, %v3420_v54  ;;  %v3733_v54 = vld [vmem:[#allocation2 + $0x213] ss:$2 sm:$0xff] }
 0x4e9   :  { %17887 = vmatprep.mubr.msk.bf16.mxu1 %vm794_vm1, %v3421_v59  ;;  %v3734_v59 = vld [vmem:[#allocation2 + $0x223] ss:$2 sm:$0xff] }
 0x4ea   :  { %v3753_v6 = vpack.c.bf16 %v3734_v59, %v3733_v54  ;;  %v4364_v54 = vld [vmem:[#allocation2 + $0x45] ss:$2 sm:$0xff]  ;;  %v4366_v59 = vld [vmem:[#allocation2 + $0x55] ss:$2 sm:$0xff] }
 0x4f0   :  { %17888 = vmatmul.mubr.msk.bf16.gmra.mrb[24].mxu1 %vm794_vm1, %v3422_v55  ;;  %v4030_v55 = vld [vmem:[#allocation2 + $0x24] ss:$2 sm:$0xff] }
 0x4f1   :  { %17891 = vmatprep.mubr.msk.bf16.mxu1 %vm794_vm1, %v3423_v14  ;;  %v3754_v14 = vpack.c.bf16 %v3736_v46, %v3736_v46  ;;  %v4065_v63 = vpack.c.bf16 %v4030_v55, %v4029_v7  ;;  %v23093_v46 = vld [vmem:[%s25167_s2 + $0x50] sm:$0xff]  }
 0x4f2   :  { %v4370_v55 = vld [vmem:[#allocation2 + $0x75] ss:$2 sm:$0xff] }
 0x4f8   :  { %17892 = vmatmul.mubr.msk.bf16.gmra.mrb[28].mxu1 %vm794_vm1, %v3424_v18  ;;  %v4034_v18 = vld [vmem:[#allocation2 + $0x64] ss:$2 sm:$0xff] }
 0x4f9   :  { %17895 = vmatprep.mubr.msk.bf16.mxu1 %vm794_vm1, %v3425_v19  ;;  %v4066_v19 = vpack.c.bf16 %v4032_v25, %v4031_v9  ;;  %v4067_v27 = vpack.c.bf16 %v4034_v18, %v4033_v30  ;;  %v4376_v9 = vld [vmem:[#allocation2 + $0xa5] ss:$2 sm:$0xff]  ;;  %v4378_v18 = vld [vmem:[#allocation2 + $0xb5] ss:$2 sm:$0xff] }
 0x500   :  { %17896 = vmatmul.mubr.msk.bf16.gmra.mrb[32].mxu1 %vm794_vm1, %v3426_v52  ;;  %v4036_v52 = vld [vmem:[#allocation2 + $0x84] ss:$2 sm:$0xff] }
 0x501   :  { %17901 = vmatprep.mubr.msk.bf16.mxu1 %vm794_vm1, %v3737_v60  ;;  %v4037_v60 = vld [vmem:[#allocation2 + $0x94] ss:$2 sm:$0xff]  ;;  %v4068_v10 = vpack.c.bf16 %v4036_v52, %v4035_v45  ;;  %v4384_v45 = vld [vmem:[#allocation2 + $0xe5] ss:$2 sm:$0xff] }
 0x502   :  { %v4069_v16 = vpack.c.bf16 %v4038_v3, %v4037_v60  ;;  %v4386_v60 = vld [vmem:[#allocation2 + $0xf5] ss:$2 sm:$0xff]  ;;  %v4388_v3 = vld [vmem:[#allocation2 + $0x105] ss:$2 sm:$0xff] }
 0x508   :  { %17902 = vmatmul.mubr.msk.bf16.vlgmr.msra.gmra.mrb[0].mxu1 %vm794_vm1, %v3738_v21  ;;  %v4040_v21 = vld [vmem:[#allocation2 + $0xc4] ss:$2 sm:$0xff] }
 0x509   :  { %17938 = vmatpush3.bf16.msra.mxu1 %v23018_v61  ;;  %17905 = vmatprep.mubr.msk.bf16.mxu1 %vm794_vm1, %v3739_v34  ;;  %v3743_v61 = vpack.c.bf16 %v3714_v5, %v3713_v28  ;;  %v4041_v34 = vld [vmem:[#allocation2 + $0xd4] ss:$2 sm:$0xff]  ;;  %v4070_v48 = vpack.c.bf16 %v4040_v21, %v4039_v23  ;;  %v4048_v5 = vld [vmem:[#allocation2 + $0x144] ss:$2 sm:$0xff]  ;;  %v4434_v23 = vpack.c.bf16 %v4388_v3, %v4386_v60 }
 0x50a   :  { %17975 = vmatprep.subr.bf16.mxu1 %v23043_v29  ;;  %v4047_v28 = vld [vmem:[#allocation2 + $0x134] ss:$2 sm:$0xff] }
 0x50b   :  { %v4074_v20 = vpack.c.bf16 %v4048_v5, %v4047_v28 }
 0x510   :  { %17906 = vmatmul.mubr.msk.bf16.gmra.mrb[4].mxu1 %vm794_vm1, %v3740_v32  ;;  %v4045_v32 = vld [vmem:[#allocation2 + $0x114] ss:$2 sm:$0xff] }
 0x511   :  { %17909 = vmatprep.mubr.msk.bf16.mxu1 %vm794_vm1, %v3741_v56  ;;  %v4046_v56 = vld [vmem:[#allocation2 + $0x124] ss:$2 sm:$0xff] }
 0x512   :  { %v4073_v12 = vpack.c.bf16 %v4046_v56, %v4045_v32  ;;  %v4402_v32 = vld [vmem:[#allocation2 + $0x175] ss:$2 sm:$0xff]  ;;  %v4404_v56 = vld [vmem:[#allocation2 + $0x185] ss:$2 sm:$0xff] }
 0x513   :  { %v4438_v28 = vpack.c.bf16 %v4404_v56, %v4402_v32 }
 0x518   :  { %17910 = vmatmul.mubr.msk.bf16.gmra.mrb[8].mxu1 %vm794_vm1, %v3742_v43  ;;  %v4049_v43 = vld [vmem:[#allocation2 + $0x154] ss:$2 sm:$0xff] }
 0x519   :  { %17913 = vmatprep.mubr.msk.bf16.mxu1 %vm794_vm1, %v3743_v61  ;;  %v4050_v61 = vld [vmem:[#allocation2 + $0x164] ss:$2 sm:$0xff] }
 0x51a   :  { %v4075_v33 = vpack.c.bf16 %v4050_v61, %v4049_v43  ;;  %v4410_v43 = vld [vmem:[#allocation2 + $0x1b5] ss:$2 sm:$0xff]  ;;  %v4412_v61 = vld [vmem:[#allocation2 + $0x1c5] ss:$2 sm:$0xff] }
 0x51b   :  { %v4440_v57 = vpack.c.bf16 %v4412_v61, %v4410_v43 }
 0x520   :  { %17914 = vmatmul.mubr.msk.bf16.gmra.mrb[12].mxu1 %vm794_vm1, %v3744_v11  ;;  %v4053_v11 = vld [vmem:[#allocation2 + $0x194] ss:$2 sm:$0xff] }
 0x521   :  { %17917 = vmatprep.mubr.msk.bf16.mxu1 %vm794_vm1, %v3745_v50  ;;  %v4054_v50 = vld [vmem:[#allocation2 + $0x1a4] ss:$2 sm:$0xff] }
 0x522   :  { %v4077_v41 = vpack.c.bf16 %v4054_v50, %v4053_v11  ;;  %v4418_v11 = vld [vmem:[#allocation2 + $0x1f5] ss:$2 sm:$0xff]  ;;  %v4420_v50 = vld [vmem:[#allocation2 + $0x205] ss:$2 sm:$0xff] }
 0x523   :  { %v4442_v36 = vpack.c.bf16 %v4420_v50, %v4418_v11  ;;  %v5083_v50 = vld [vmem:[#allocation2 + $0x44] ss:$2 sm:$0xff] }
 0x528   :  { %17918 = vmatmul.mubr.msk.bf16.gmra.mrb[16].mxu1 %vm794_vm1, %v3746_v39  ;;  %v4057_v39 = vld [vmem:[#allocation2 + $0x1d4] ss:$2 sm:$0xff] }
 0x529   :  { %17921 = vmatprep.mubr.msk.bf16.mxu1 %vm794_vm1, %v3747_v44  ;;  %v4058_v44 = vld [vmem:[#allocation2 + $0x1e4] ss:$2 sm:$0xff] }
 0x52a   :  { %v4079_v58 = vpack.c.bf16 %v4058_v44, %v4057_v39  ;;  %v4426_v39 = vld [vmem:[#allocation2 + $0x235] ss:$2 sm:$0x1f]  ;;  %v4720_v44 = vld [vmem:[#allocation2 + $0x16] ss:$2 sm:$0xff] }
 0x530   :  { %17922 = vmatmul.mubr.msk.bf16.gmra.mrb[20].mxu1 %vm794_vm1, %v3748_v8  ;;  %v4061_v8 = vld [vmem:[#allocation2 + $0x214] ss:$2 sm:$0xff] }
 0x531   :  { %17925 = vmatprep.mubr.msk.bf16.mxu1 %vm794_vm1, %v3749_v13  ;;  %v4062_v13 = vld [vmem:[#allocation2 + $0x224] ss:$2 sm:$0xff] }
 0x532   :  { %v4081_v4 = vpack.c.bf16 %v4062_v13, %v4061_v8  ;;  %v4726_v8 = vld [vmem:[#allocation2 + $0x46] ss:$2 sm:$0xff]  ;;  %v4728_v13 = vld [vmem:[#allocation2 + $0x56] ss:$2 sm:$0xff] }
 0x538   :  { %17926 = vmatmul.mubr.msk.bf16.gmra.mrb[24].mxu1 %vm794_vm1, %v3750_v31  ;;  %v4360_v31 = vld [vmem:[#allocation2 + $0x25] ss:$2 sm:$0xff] }
 0x539   :  { %17929 = vmatprep.mubr.msk.bf16.mxu1 %vm794_vm1, %v3751_v35  ;;  %v4082_v35 = vpack.c.bf16 %v4064_v22, %v4064_v22  ;;  %v4427_v42 = vpack.c.bf16 %v4360_v31, %v4358_v26  ;;  %v23118_v22 = vld [vmem:[%s25167_s2 + $0x58] sm:$0xff]  }
 0x53a   :  { %v4732_v31 = vld [vmem:[#allocation2 + $0x76] ss:$2 sm:$0xff] }
 0x540   :  { %17930 = vmatmul.mubr.msk.bf16.gmra.mrb[28].mxu1 %vm794_vm1, %v3752_v2  ;;  %v4368_v2 = vld [vmem:[#allocation2 + $0x65] ss:$2 sm:$0xff] }
 0x541   :  { %17933 = vmatprep.mubr.msk.bf16.mxu1 %vm794_vm1, %v3753_v6  ;;  %v4428_v6 = vpack.c.bf16 %v4364_v54, %v4362_v47  ;;  %v4429_v7 = vpack.c.bf16 %v4368_v2, %v4366_v59  ;;  %v4738_v47 = vld [vmem:[#allocation2 + $0xa6] ss:$2 sm:$0xff]  ;;  %v4740_v2 = vld [vmem:[#allocation2 + $0xb6] ss:$2 sm:$0xff] }
 0x548   :  { %17934 = vmatmul.mubr.msk.bf16.gmra.mrb[32].mxu1 %vm794_vm1, %v3754_v14  ;;  %v4372_v14 = vld [vmem:[#allocation2 + $0x85] ss:$2 sm:$0xff] }
 0x549   :  { %17939 = vmatprep.mubr.msk.bf16.mxu1 %vm794_vm1, %v4065_v63  ;;  %v4374_v63 = vld [vmem:[#allocation2 + $0x95] ss:$2 sm:$0xff]  ;;  %v4430_v25 = vpack.c.bf16 %v4372_v14, %v4370_v55  ;;  %v4746_v55 = vld [vmem:[#allocation2 + $0xe6] ss:$2 sm:$0xff] }
 0x54a   :  { %v4431_v30 = vpack.c.bf16 %v4376_v9, %v4374_v63  ;;  %v4748_v63 = vld [vmem:[#allocation2 + $0xf6] ss:$2 sm:$0xff]  ;;  %v4750_v9 = vld [vmem:[#allocation2 + $0x106] ss:$2 sm:$0xff] }
 0x550   :  { %17940 = vmatmul.mubr.msk.bf16.vlgmr.msra.gmra.mrb[0].mxu1 %vm794_vm1, %v4066_v19  ;;  %v4380_v19 = vld [vmem:[#allocation2 + $0xc5] ss:$2 sm:$0xff] }
 0x551   :  { %17976 = vmatpush3.bf16.msra.mxu1 %v23043_v29  ;;  %17943 = vmatprep.mubr.msk.bf16.mxu1 %vm794_vm1, %v4067_v27  ;;  %v4071_v29 = vpack.c.bf16 %v4042_v37, %v4041_v34  ;;  %v4382_v27 = vld [vmem:[#allocation2 + $0xd5] ss:$2 sm:$0xff]  ;;  %v4432_v52 = vpack.c.bf16 %v4380_v19, %v4378_v18  ;;  %v4396_v37 = vld [vmem:[#allocation2 + $0x145] ss:$2 sm:$0xff]  ;;  %v4796_v18 = vpack.c.bf16 %v4750_v9, %v4748_v63 }
 0x552   :  { %18013 = vmatprep.subr.bf16.mxu1 %v23068_v38  ;;  %v4394_v34 = vld [vmem:[#allocation2 + $0x135] ss:$2 sm:$0xff] }
 0x553   :  { %v4436_v24 = vpack.c.bf16 %v4396_v37, %v4394_v34 }
 0x558   :  { %17944 = vmatmul.mubr.msk.bf16.gmra.mrb[4].mxu1 %vm794_vm1, %v4068_v10  ;;  %v4390_v10 = vld [vmem:[#allocation2 + $0x115] ss:$2 sm:$0xff] }
 0x559   :  { %17947 = vmatprep.mubr.msk.bf16.mxu1 %vm794_vm1, %v4069_v16  ;;  %v4392_v16 = vld [vmem:[#allocation2 + $0x125] ss:$2 sm:$0xff] }
 0x55a   :  { %v4435_v21 = vpack.c.bf16 %v4392_v16, %v4390_v10  ;;  %v4764_v10 = vld [vmem:[#allocation2 + $0x176] ss:$2 sm:$0xff]  ;;  %v4766_v16 = vld [vmem:[#allocation2 + $0x186] ss:$2 sm:$0xff] }
 0x55b   :  { %v4800_v34 = vpack.c.bf16 %v4766_v16, %v4764_v10 }
 0x560   :  { %17948 = vmatmul.mubr.msk.bf16.gmra.mrb[8].mxu1 %vm794_vm1, %v4070_v48  ;;  %v4398_v48 = vld [vmem:[#allocation2 + $0x155] ss:$2 sm:$0xff] }
 0x561   :  { %17951 = vmatprep.mubr.msk.bf16.mxu1 %vm794_vm1, %v4071_v29  ;;  %v4400_v29 = vld [vmem:[#allocation2 + $0x165] ss:$2 sm:$0xff] }
 0x562   :  { %v4437_v51 = vpack.c.bf16 %v4400_v29, %v4398_v48  ;;  %v4772_v48 = vld [vmem:[#allocation2 + $0x1b6] ss:$2 sm:$0xff]  ;;  %v4774_v29 = vld [vmem:[#allocation2 + $0x1c6] ss:$2 sm:$0xff] }
 0x563   :  { %v4802_v32 = vpack.c.bf16 %v4774_v29, %v4772_v48 }
 0x568   :  { %17952 = vmatmul.mubr.msk.bf16.gmra.mrb[12].mxu1 %vm794_vm1, %v4072_v1  ;;  %v4406_v1 = vld [vmem:[#allocation2 + $0x195] ss:$2 sm:$0xff] }
 0x569   :  { %17955 = vmatprep.mubr.msk.bf16.mxu1 %vm794_vm1, %v4073_v12  ;;  %v4408_v12 = vld [vmem:[#allocation2 + $0x1a5] ss:$2 sm:$0xff] }
 0x56a   :  { %v4439_v5 = vpack.c.bf16 %v4408_v12, %v4406_v1  ;;  %v4780_v1 = vld [vmem:[#allocation2 + $0x1f6] ss:$2 sm:$0xff]  ;;  %v4782_v12 = vld [vmem:[#allocation2 + $0x206] ss:$2 sm:$0xff] }
 0x56b   :  { %v4804_v43 = vpack.c.bf16 %v4782_v12, %v4780_v1  ;;  %v5411_v12 = vld [vmem:[#allocation2 + $0x45] ss:$2 sm:$0xff] }
 0x570   :  { %17956 = vmatmul.mubr.msk.bf16.gmra.mrb[16].mxu1 %vm794_vm1, %v4074_v20  ;;  %v4414_v20 = vld [vmem:[#allocation2 + $0x1d5] ss:$2 sm:$0xff] }
 0x571   :  { %17959 = vmatprep.mubr.msk.bf16.mxu1 %vm794_vm1, %v4075_v33  ;;  %v4416_v33 = vld [vmem:[#allocation2 + $0x1e5] ss:$2 sm:$0xff] }
 0x572   :  { %v4441_v15 = vpack.c.bf16 %v4416_v33, %v4414_v20  ;;  %v4788_v20 = vld [vmem:[#allocation2 + $0x236] ss:$2 sm:$0x1f]  ;;  %v5081_v33 = vld [vmem:[#allocation2 + $0x24] ss:$2 sm:$0xff] }
 0x578   :  { %17960 = vmatmul.mubr.msk.bf16.gmra.mrb[20].mxu1 %vm794_vm1, %v4076_v0  ;;  %v4422_v0 = vld [vmem:[#allocation2 + $0x215] ss:$2 sm:$0xff] }
 0x579   :  { %17963 = vmatprep.mubr.msk.bf16.mxu1 %vm794_vm1, %v4077_v41  ;;  %v4424_v41 = vld [vmem:[#allocation2 + $0x225] ss:$2 sm:$0xff] }
 0x57a   :  { %v4443_v40 = vpack.c.bf16 %v4424_v41, %v4422_v0  ;;  %v5084_v0 = vld [vmem:[#allocation2 + $0x54] ss:$2 sm:$0xff]  ;;  %v5085_v41 = vld [vmem:[#allocation2 + $0x64] ss:$2 sm:$0xff] }
 0x580   :  { %17964 = vmatmul.mubr.msk.bf16.gmra.mrb[24].mxu1 %vm794_vm1, %v4078_v53  ;;  %v4722_v53 = vld [vmem:[#allocation2 + $0x26] ss:$2 sm:$0xff] }
 0x581   :  { %17967 = vmatprep.mubr.msk.bf16.mxu1 %vm794_vm1, %v4079_v58  ;;  %v4444_v58 = vpack.c.bf16 %v4426_v39, %v4426_v39  ;;  %v4789_v49 = vpack.c.bf16 %v4722_v53, %v4720_v44  ;;  %v23143_v39 = vld [vmem:[%s25167_s2 + $0x60] sm:$0xff]  }
 0x582   :  { %v5087_v53 = vld [vmem:[#allocation2 + $0x84] ss:$2 sm:$0xff] }
 0x588   :  { %17968 = vmatmul.mubr.msk.bf16.gmra.mrb[28].mxu1 %vm794_vm1, %v4080_v17  ;;  %v4730_v17 = vld [vmem:[#allocation2 + $0x66] ss:$2 sm:$0xff] }
 0x589   :  { %17971 = vmatprep.mubr.msk.bf16.mxu1 %vm794_vm1, %v4081_v4  ;;  %v4790_v4 = vpack.c.bf16 %v4726_v8, %v4724_v62  ;;  %v4791_v26 = vpack.c.bf16 %v4730_v17, %v4728_v13  ;;  %v5090_v62 = vld [vmem:[#allocation2 + $0xb4] ss:$2 sm:$0xff]  ;;  %v5091_v17 = vld [vmem:[#allocation2 + $0xc4] ss:$2 sm:$0xff] }
 0x590   :  { %17972 = vmatmul.mubr.msk.bf16.gmra.mrb[32].mxu1 %vm794_vm1, %v4082_v35  ;;  %v4734_v35 = vld [vmem:[#allocation2 + $0x86] ss:$2 sm:$0xff] }
 0x591   :  { %17977 = vmatprep.mubr.msk.bf16.mxu1 %vm794_vm1, %v4427_v42  ;;  %v4736_v42 = vld [vmem:[#allocation2 + $0x96] ss:$2 sm:$0xff]  ;;  %v4792_v54 = vpack.c.bf16 %v4734_v35, %v4732_v31 }
 0x592   :  { %v4793_v59 = vpack.c.bf16 %v4738_v47, %v4736_v42  ;;  %v5094_v31 = vld [vmem:[#allocation2 + $0xf4] ss:$2 sm:$0xff]  ;;  %v5095_v42 = vld [vmem:[#allocation2 + $0x104] ss:$2 sm:$0xff] }
 0x593   :  { %v5096_v47 = vld [vmem:[#allocation2 + $0x114] ss:$2 sm:$0xff] }
 0x598   :  { %17978 = vmatmul.mubr.msk.bf16.vlgmr.msra.gmra.mrb[0].mxu1 %vm794_vm1, %v4428_v6  ;;  %v4742_v6 = vld [vmem:[#allocation2 + $0xc6] ss:$2 sm:$0xff] }
 0x599   :  { %18014 = vmatpush3.bf16.msra.mxu1 %v23068_v38  ;;  %17981 = vmatprep.mubr.msk.bf16.mxu1 %vm794_vm1, %v4429_v7  ;;  %v4433_v38 = vpack.c.bf16 %v4384_v45, %v4382_v27  ;;  %v4744_v7 = vld [vmem:[#allocation2 + $0xd6] ss:$2 sm:$0xff]  ;;  %v4794_v14 = vpack.c.bf16 %v4742_v6, %v4740_v2  ;;  %v4758_v45 = vld [vmem:[#allocation2 + $0x146] ss:$2 sm:$0xff]  ;;  %v5124_v2 = vpack.c.bf16 %v5096_v47, %v5095_v42 }
 0x59a   :  { %18051 = vmatprep.subr.bf16.mxu1 %v23093_v46  ;;  %v4756_v27 = vld [vmem:[#allocation2 + $0x136] ss:$2 sm:$0xff] }
 0x59b   :  { %v4798_v60 = vpack.c.bf16 %v4758_v45, %v4756_v27 }
 0x5a0   :  { %17982 = vmatmul.mubr.msk.bf16.gmra.mrb[4].mxu1 %vm794_vm1, %v4430_v25  ;;  %v4752_v25 = vld [vmem:[#allocation2 + $0x116] ss:$2 sm:$0xff] }
 0x5a1   :  { %17985 = vmatprep.mubr.msk.bf16.mxu1 %vm794_vm1, %v4431_v30  ;;  %v4754_v30 = vld [vmem:[#allocation2 + $0x126] ss:$2 sm:$0xff] }
 0x5a2   :  { %v4797_v19 = vpack.c.bf16 %v4754_v30, %v4752_v25  ;;  %v5103_v25 = vld [vmem:[#allocation2 + $0x184] ss:$2 sm:$0xff]  ;;  %v5104_v30 = vld [vmem:[#allocation2 + $0x194] ss:$2 sm:$0xff] }
 0x5a3   :  { %v5128_v27 = vpack.c.bf16 %v5104_v30, %v5103_v25 }
 0x5a8   :  { %17986 = vmatmul.mubr.msk.bf16.gmra.mrb[8].mxu1 %vm794_vm1, %v4432_v52  ;;  %v4760_v52 = vld [vmem:[#allocation2 + $0x156] ss:$2 sm:$0xff] }
 0x5a9   :  { %17989 = vmatprep.mubr.msk.bf16.mxu1 %vm794_vm1, %v4433_v38  ;;  %v4762_v38 = vld [vmem:[#allocation2 + $0x166] ss:$2 sm:$0xff] }
 0x5aa   :  { %v4799_v3 = vpack.c.bf16 %v4762_v38, %v4760_v52  ;;  %v5107_v52 = vld [vmem:[#allocation2 + $0x1c4] ss:$2 sm:$0xff]  ;;  %v5108_v38 = vld [vmem:[#allocation2 + $0x1d4] ss:$2 sm:$0xff] }
 0x5ab   :  { %v5130_v10 = vpack.c.bf16 %v5108_v38, %v5107_v52 }
 0x5b0   :  { %17990 = vmatmul.mubr.msk.bf16.gmra.mrb[12].mxu1 %vm794_vm1, %v4434_v23  ;;  %v4768_v23 = vld [vmem:[#allocation2 + $0x196] ss:$2 sm:$0xff] }
 0x5b1   :  { %17993 = vmatprep.mubr.msk.bf16.mxu1 %vm794_vm1, %v4435_v21  ;;  %v4770_v21 = vld [vmem:[#allocation2 + $0x1a6] ss:$2 sm:$0xff] }
 0x5b2   :  { %v4801_v37 = vpack.c.bf16 %v4770_v21, %v4768_v23  ;;  %v5111_v23 = vld [vmem:[#allocation2 + $0x204] ss:$2 sm:$0xff]  ;;  %v5112_v21 = vld [vmem:[#allocation2 + $0x214] ss:$2 sm:$0xff] }
 0x5b3   :  { %v5132_v48 = vpack.c.bf16 %v5112_v21, %v5111_v23  ;;  %v5739_v21 = vld [vmem:[#allocation2 + $0x46] ss:$2 sm:$0xff] }
 0x5b8   :  { %17994 = vmatmul.mubr.msk.bf16.gmra.mrb[16].mxu1 %vm794_vm1, %v4436_v24  ;;  %v4776_v24 = vld [vmem:[#allocation2 + $0x1d6] ss:$2 sm:$0xff] }
 0x5b9   :  { %17997 = vmatprep.mubr.msk.bf16.mxu1 %vm794_vm1, %v4437_v51  ;;  %v4778_v51 = vld [vmem:[#allocation2 + $0x1e6] ss:$2 sm:$0xff] }
 0x5ba   :  { %v4803_v56 = vpack.c.bf16 %v4778_v51, %v4776_v24  ;;  %v5116_v24 = vld [vmem:[#allocation2 + $0x244] ss:$2 sm:$0x1f]  ;;  %v5409_v51 = vld [vmem:[#allocation2 + $0x25] ss:$2 sm:$0xff] }
 0x5c0   :  { %17998 = vmatmul.mubr.msk.bf16.gmra.mrb[20].mxu1 %vm794_vm1, %v4438_v28  ;;  %v4784_v28 = vld [vmem:[#allocation2 + $0x216] ss:$2 sm:$0xff] }
 0x5c1   :  { %18001 = vmatprep.mubr.msk.bf16.mxu1 %vm794_vm1, %v4439_v5  ;;  %v4786_v5 = vld [vmem:[#allocation2 + $0x226] ss:$2 sm:$0xff] }
 0x5c2   :  { %v4805_v61 = vpack.c.bf16 %v4786_v5, %v4784_v28  ;;  %v5412_v28 = vld [vmem:[#allocation2 + $0x55] ss:$2 sm:$0xff]  ;;  %v5413_v5 = vld [vmem:[#allocation2 + $0x65] ss:$2 sm:$0xff] }
 0x5c8   :  { %18002 = vmatmul.mubr.msk.bf16.gmra.mrb[24].mxu1 %vm794_vm1, %v4440_v57  ;;  %v5082_v57 = vld [vmem:[#allocation2 + $0x34] ss:$2 sm:$0xff] }
 0x5c9   :  { %18005 = vmatprep.mubr.msk.bf16.mxu1 %vm794_vm1, %v4441_v15  ;;  %v4806_v15 = vpack.c.bf16 %v4788_v20, %v4788_v20  ;;  %v5117_v11 = vpack.c.bf16 %v5082_v57, %v5081_v33  ;;  %v23168_v20 = vld [vmem:[%s25167_s2 + $0x68] sm:$0xff]  }
 0x5ca   :  { %v5415_v57 = vld [vmem:[#allocation2 + $0x85] ss:$2 sm:$0xff] }
 0x5d0   :  { %18006 = vmatmul.mubr.msk.bf16.gmra.mrb[28].mxu1 %vm794_vm1, %v4442_v36  ;;  %v5086_v36 = vld [vmem:[#allocation2 + $0x74] ss:$2 sm:$0xff] }
 0x5d1   :  { %18009 = vmatprep.mubr.msk.bf16.mxu1 %vm794_vm1, %v4443_v40  ;;  %v5118_v40 = vpack.c.bf16 %v5084_v0, %v5083_v50  ;;  %v5119_v44 = vpack.c.bf16 %v5086_v36, %v5085_v41  ;;  %v5418_v50 = vld [vmem:[#allocation2 + $0xb5] ss:$2 sm:$0xff]  ;;  %v5419_v36 = vld [vmem:[#allocation2 + $0xc5] ss:$2 sm:$0xff] }
 0x5d8   :  { %18010 = vmatmul.mubr.msk.bf16.gmra.mrb[32].mxu1 %vm794_vm1, %v4444_v58  ;;  %v5088_v58 = vld [vmem:[#allocation2 + $0x94] ss:$2 sm:$0xff] }
 0x5d9   :  { %18015 = vmatprep.mubr.msk.bf16.mxu1 %vm794_vm1, %v4789_v49  ;;  %v5089_v49 = vld [vmem:[#allocation2 + $0xa4] ss:$2 sm:$0xff]  ;;  %v5120_v8 = vpack.c.bf16 %v5088_v58, %v5087_v53  ;;  %v5422_v53 = vld [vmem:[#allocation2 + $0xf5] ss:$2 sm:$0xff] }
 0x5da   :  { %v5121_v13 = vpack.c.bf16 %v5090_v62, %v5089_v49  ;;  %v5423_v49 = vld [vmem:[#allocation2 + $0x105] ss:$2 sm:$0xff]  ;;  %v5424_v62 = vld [vmem:[#allocation2 + $0x115] ss:$2 sm:$0xff] }
 0x5e0   :  { %18016 = vmatmul.mubr.msk.bf16.vlgmr.msra.gmra.mrb[0].mxu1 %vm794_vm1, %v4790_v4  ;;  %v5092_v4 = vld [vmem:[#allocation2 + $0xd4] ss:$2 sm:$0xff] }
 0x5e1   :  { %18052 = vmatpush3.bf16.msra.mxu1 %v23093_v46  ;;  %18019 = vmatprep.mubr.msk.bf16.mxu1 %vm794_vm1, %v4791_v26  ;;  %v4795_v46 = vpack.c.bf16 %v4746_v55, %v4744_v7  ;;  %v5093_v26 = vld [vmem:[#allocation2 + $0xe4] ss:$2 sm:$0xff]  ;;  %v5122_v35 = vpack.c.bf16 %v5092_v4, %v5091_v17  ;;  %v5100_v55 = vld [vmem:[#allocation2 + $0x154] ss:$2 sm:$0xff]  ;;  %v5452_v17 = vpack.c.bf16 %v5424_v62, %v5423_v49 }
 0x5e2   :  { %18089 = vmatprep.subr.bf16.mxu1 %v23118_v22  ;;  %v5099_v7 = vld [vmem:[#allocation2 + $0x144] ss:$2 sm:$0xff] }
 0x5e3   :  { %v5126_v63 = vpack.c.bf16 %v5100_v55, %v5099_v7 }
 0x5e8   :  { %18020 = vmatmul.mubr.msk.bf16.gmra.mrb[4].mxu1 %vm794_vm1, %v4792_v54  ;;  %v5097_v54 = vld [vmem:[#allocation2 + $0x124] ss:$2 sm:$0xff] }
 0x5e9   :  { %18023 = vmatprep.mubr.msk.bf16.mxu1 %vm794_vm1, %v4793_v59  ;;  %v5098_v59 = vld [vmem:[#allocation2 + $0x134] ss:$2 sm:$0xff] }
 0x5ea   :  { %v5125_v6 = vpack.c.bf16 %v5098_v59, %v5097_v54  ;;  %v5431_v54 = vld [vmem:[#allocation2 + $0x185] ss:$2 sm:$0xff]  ;;  %v5432_v59 = vld [vmem:[#allocation2 + $0x195] ss:$2 sm:$0xff] }
 0x5eb   :  { %v5456_v7 = vpack.c.bf16 %v5432_v59, %v5431_v54 }
 0x5f0   :  { %18024 = vmatmul.mubr.msk.bf16.gmra.mrb[8].mxu1 %vm794_vm1, %v4794_v14  ;;  %v5101_v14 = vld [vmem:[#allocation2 + $0x164] ss:$2 sm:$0xff] }
 0x5f1   :  { %18027 = vmatprep.mubr.msk.bf16.mxu1 %vm794_vm1, %v4795_v46  ;;  %v5102_v46 = vld [vmem:[#allocation2 + $0x174] ss:$2 sm:$0xff] }
 0x5f2   :  { %v5127_v9 = vpack.c.bf16 %v5102_v46, %v5101_v14  ;;  %v5435_v14 = vld [vmem:[#allocation2 + $0x1c5] ss:$2 sm:$0xff]  ;;  %v5436_v46 = vld [vmem:[#allocation2 + $0x1d5] ss:$2 sm:$0xff] }
 0x5f3   :  { %v5458_v25 = vpack.c.bf16 %v5436_v46, %v5435_v14 }
 0x5f8   :  { %18028 = vmatmul.mubr.msk.bf16.gmra.mrb[12].mxu1 %vm794_vm1, %v4796_v18  ;;  %v5105_v18 = vld [vmem:[#allocation2 + $0x1a4] ss:$2 sm:$0xff] }
 0x5f9   :  { %18031 = vmatprep.mubr.msk.bf16.mxu1 %vm794_vm1, %v4797_v19  ;;  %v5106_v19 = vld [vmem:[#allocation2 + $0x1b4] ss:$2 sm:$0xff] }
 0x5fa   :  { %v5129_v45 = vpack.c.bf16 %v5106_v19, %v5105_v18  ;;  %v5439_v18 = vld [vmem:[#allocation2 + $0x205] ss:$2 sm:$0xff]  ;;  %v5440_v19 = vld [vmem:[#allocation2 + $0x215] ss:$2 sm:$0xff] }
 0x5fb   :  { %v5460_v52 = vpack.c.bf16 %v5440_v19, %v5439_v18  ;;  %v6070_v19 = vld [vmem:[#allocation2 + $0x47] ss:$2 sm:$0xff] }
 0x600   :  { %18032 = vmatmul.mubr.msk.bf16.gmra.mrb[16].mxu1 %vm794_vm1, %v4798_v60  ;;  %v5109_v60 = vld [vmem:[#allocation2 + $0x1e4] ss:$2 sm:$0xff] }
 0x601   :  { %18035 = vmatprep.mubr.msk.bf16.mxu1 %vm794_vm1, %v4799_v3  ;;  %v5110_v3 = vld [vmem:[#allocation2 + $0x1f4] ss:$2 sm:$0xff] }
 0x602   :  { %v5131_v16 = vpack.c.bf16 %v5110_v3, %v5109_v60  ;;  %v5444_v60 = vld [vmem:[#allocation2 + $0x245] ss:$2 sm:$0x1f]  ;;  %v5737_v3 = vld [vmem:[#allocation2 + $0x26] ss:$2 sm:$0xff] }
 0x608   :  { %18036 = vmatmul.mubr.msk.bf16.gmra.mrb[20].mxu1 %vm794_vm1, %v4800_v34  ;;  %v5113_v34 = vld [vmem:[#allocation2 + $0x224] ss:$2 sm:$0xff] }
 0x609   :  { %18039 = vmatprep.mubr.msk.bf16.mxu1 %vm794_vm1, %v4801_v37  ;;  %v5114_v37 = vld [vmem:[#allocation2 + $0x234] ss:$2 sm:$0xff] }
 0x60a   :  { %v5133_v29 = vpack.c.bf16 %v5114_v37, %v5113_v34  ;;  %v5740_v34 = vld [vmem:[#allocation2 + $0x56] ss:$2 sm:$0xff]  ;;  %v5741_v37 = vld [vmem:[#allocation2 + $0x66] ss:$2 sm:$0xff] }
 0x610   :  { %18040 = vmatmul.mubr.msk.bf16.gmra.mrb[24].mxu1 %vm794_vm1, %v4802_v32  ;;  %v5410_v32 = vld [vmem:[#allocation2 + $0x35] ss:$2 sm:$0xff] }
 0x611   :  { %18043 = vmatprep.mubr.msk.bf16.mxu1 %vm794_vm1, %v4803_v56  ;;  %v5134_v56 = vpack.c.bf16 %v5116_v24, %v5116_v24  ;;  %v5445_v1 = vpack.c.bf16 %v5410_v32, %v5409_v51  ;;  %v23193_v24 = vld [vmem:[%s25167_s2 + $0x70] sm:$0xff]  }
 0x612   :  { %v5743_v32 = vld [vmem:[#allocation2 + $0x86] ss:$2 sm:$0xff] }
 0x618   :  { %18044 = vmatmul.mubr.msk.bf16.gmra.mrb[28].mxu1 %vm794_vm1, %v4804_v43  ;;  %v5414_v43 = vld [vmem:[#allocation2 + $0x75] ss:$2 sm:$0xff] }
 0x619   :  { %18047 = vmatprep.mubr.msk.bf16.mxu1 %vm794_vm1, %v4805_v61  ;;  %v5446_v61 = vpack.c.bf16 %v5412_v28, %v5411_v12  ;;  %v5447_v33 = vpack.c.bf16 %v5414_v43, %v5413_v5  ;;  %v5746_v12 = vld [vmem:[#allocation2 + $0xb6] ss:$2 sm:$0xff]  ;;  %v5747_v43 = vld [vmem:[#allocation2 + $0xc6] ss:$2 sm:$0xff] }
 0x620   :  { %18048 = vmatmul.mubr.msk.bf16.gmra.mrb[32].mxu1 %vm794_vm1, %v4806_v15  ;;  %v5416_v15 = vld [vmem:[#allocation2 + $0x95] ss:$2 sm:$0xff] }
 0x621   :  { %18053 = vmatprep.mubr.msk.bf16.mxu1 %vm794_vm1, %v5117_v11  ;;  %v5417_v11 = vld [vmem:[#allocation2 + $0xa5] ss:$2 sm:$0xff]  ;;  %v5448_v0 = vpack.c.bf16 %v5416_v15, %v5415_v57  ;;  %v5750_v57 = vld [vmem:[#allocation2 + $0xf6] ss:$2 sm:$0xff] }
 0x622   :  { %v5449_v41 = vpack.c.bf16 %v5418_v50, %v5417_v11  ;;  %v5751_v11 = vld [vmem:[#allocation2 + $0x106] ss:$2 sm:$0xff]  ;;  %v5752_v50 = vld [vmem:[#allocation2 + $0x116] ss:$2 sm:$0xff] }
 0x628   :  { %18054 = vmatmul.mubr.msk.bf16.vlgmr.msra.gmra.mrb[0].mxu1 %vm794_vm1, %v5118_v40  ;;  %v5420_v40 = vld [vmem:[#allocation2 + $0xd5] ss:$2 sm:$0xff] }
 0x629   :  { %18090 = vmatpush3.bf16.msra.mxu1 %v23118_v22  ;;  %18057 = vmatprep.mubr.msk.bf16.mxu1 %vm794_vm1, %v5119_v44  ;;  %v5123_v22 = vpack.c.bf16 %v5094_v31, %v5093_v26  ;;  %v5421_v44 = vld [vmem:[#allocation2 + $0xe5] ss:$2 sm:$0xff]  ;;  %v5450_v58 = vpack.c.bf16 %v5420_v40, %v5419_v36  ;;  %v5428_v31 = vld [vmem:[#allocation2 + $0x155] ss:$2 sm:$0xff]  ;;  %v5780_v36 = vpack.c.bf16 %v5752_v50, %v5751_v11 }
 0x62a   :  { %18127 = vmatprep.subr.bf16.mxu1 %v23143_v39  ;;  %v5427_v26 = vld [vmem:[#allocation2 + $0x145] ss:$2 sm:$0xff] }
 0x62b   :  { %v5454_v42 = vpack.c.bf16 %v5428_v31, %v5427_v26 }
 0x630   :  { %18058 = vmatmul.mubr.msk.bf16.gmra.mrb[4].mxu1 %vm794_vm1, %v5120_v8  ;;  %v5425_v8 = vld [vmem:[#allocation2 + $0x125] ss:$2 sm:$0xff] }
 0x631   :  { %18061 = vmatprep.mubr.msk.bf16.mxu1 %vm794_vm1, %v5121_v13  ;;  %v5426_v13 = vld [vmem:[#allocation2 + $0x135] ss:$2 sm:$0xff] }
 0x632   :  { %v5453_v4 = vpack.c.bf16 %v5426_v13, %v5425_v8  ;;  %v5759_v8 = vld [vmem:[#allocation2 + $0x186] ss:$2 sm:$0xff]  ;;  %v5760_v13 = vld [vmem:[#allocation2 + $0x196] ss:$2 sm:$0xff] }
 0x633   :  { %v5784_v26 = vpack.c.bf16 %v5760_v13, %v5759_v8 }
 0x638   :  { %18062 = vmatmul.mubr.msk.bf16.gmra.mrb[8].mxu1 %vm794_vm1, %v5122_v35  ;;  %v5429_v35 = vld [vmem:[#allocation2 + $0x165] ss:$2 sm:$0xff] }
 0x639   :  { %18065 = vmatprep.mubr.msk.bf16.mxu1 %vm794_vm1, %v5123_v22  ;;  %v5430_v22 = vld [vmem:[#allocation2 + $0x175] ss:$2 sm:$0xff] }
 0x63a   :  { %v5455_v47 = vpack.c.bf16 %v5430_v22, %v5429_v35  ;;  %v5763_v35 = vld [vmem:[#allocation2 + $0x1c6] ss:$2 sm:$0xff]  ;;  %v5764_v22 = vld [vmem:[#allocation2 + $0x1d6] ss:$2 sm:$0xff] }
 0x63b   :  { %v5786_v54 = vpack.c.bf16 %v5764_v22, %v5763_v35 }
 0x640   :  { %18066 = vmatmul.mubr.msk.bf16.gmra.mrb[12].mxu1 %vm794_vm1, %v5124_v2  ;;  %v5433_v2 = vld [vmem:[#allocation2 + $0x1a5] ss:$2 sm:$0xff] }
 0x641   :  { %18069 = vmatprep.mubr.msk.bf16.mxu1 %vm794_vm1, %v5125_v6  ;;  %v5434_v6 = vld [vmem:[#allocation2 + $0x1b5] ss:$2 sm:$0xff] }
 0x642   :  { %v5457_v55 = vpack.c.bf16 %v5434_v6, %v5433_v2  ;;  %v5767_v2 = vld [vmem:[#allocation2 + $0x206] ss:$2 sm:$0xff]  ;;  %v5768_v6 = vld [vmem:[#allocation2 + $0x216] ss:$2 sm:$0xff] }
 0x643   :  { %v5788_v14 = vpack.c.bf16 %v5768_v6, %v5767_v2  ;;  %v6432_v6 = vld [vmem:[#allocation2 + $0x48] ss:$2 sm:$0xff] }
 0x648   :  { %18070 = vmatmul.mubr.msk.bf16.gmra.mrb[16].mxu1 %vm794_vm1, %v5126_v63  ;;  %v5437_v63 = vld [vmem:[#allocation2 + $0x1e5] ss:$2 sm:$0xff] }
 0x649   :  { %18073 = vmatprep.mubr.msk.bf16.mxu1 %vm794_vm1, %v5127_v9  ;;  %v5438_v9 = vld [vmem:[#allocation2 + $0x1f5] ss:$2 sm:$0xff] }
 0x64a   :  { %v5459_v30 = vpack.c.bf16 %v5438_v9, %v5437_v63  ;;  %v5772_v63 = vld [vmem:[#allocation2 + $0x246] ss:$2 sm:$0x1f]  ;;  %v6066_v9 = vld [vmem:[#allocation2 + $0x27] ss:$2 sm:$0xff] }
 0x650   :  { %18074 = vmatmul.mubr.msk.bf16.gmra.mrb[20].mxu1 %vm794_vm1, %v5128_v27  ;;  %v5441_v27 = vld [vmem:[#allocation2 + $0x225] ss:$2 sm:$0xff] }
 0x651   :  { %18077 = vmatprep.mubr.msk.bf16.mxu1 %vm794_vm1, %v5129_v45  ;;  %v5442_v45 = vld [vmem:[#allocation2 + $0x235] ss:$2 sm:$0xff] }
 0x652   :  { %v5461_v38 = vpack.c.bf16 %v5442_v45, %v5441_v27  ;;  %v6072_v27 = vld [vmem:[#allocation2 + $0x57] ss:$2 sm:$0xff]  ;;  %v6074_v45 = vld [vmem:[#allocation2 + $0x67] ss:$2 sm:$0xff] }
 0x658   :  { %18078 = vmatmul.mubr.msk.bf16.gmra.mrb[24].mxu1 %vm794_vm1, %v5130_v10  ;;  %v5738_v10 = vld [vmem:[#allocation2 + $0x36] ss:$2 sm:$0xff] }
 0x659   :  { %18081 = vmatprep.mubr.msk.bf16.mxu1 %vm794_vm1, %v5131_v16  ;;  %v5462_v16 = vpack.c.bf16 %v5444_v60, %v5444_v60  ;;  %v5773_v23 = vpack.c.bf16 %v5738_v10, %v5737_v3  ;;  %v23218_v60 = vld [vmem:[%s25167_s2 + $0x78] sm:$0xff]   ;;  %v6078_v10 = vld [vmem:[#allocation2 + $0x87] ss:$2 sm:$0xff] }
 0x660   :  { %18082 = vmatmul.mubr.msk.bf16.gmra.mrb[28].mxu1 %vm794_vm1, %v5132_v48  ;;  %v5742_v48 = vld [vmem:[#allocation2 + $0x76] ss:$2 sm:$0xff] }
 0x661   :  { %18085 = vmatprep.mubr.msk.bf16.mxu1 %vm794_vm1, %v5133_v29  ;;  %v5774_v29 = vpack.c.bf16 %v5740_v34, %v5739_v21  ;;  %v5775_v51 = vpack.c.bf16 %v5742_v48, %v5741_v37  ;;  %v6084_v21 = vld [vmem:[#allocation2 + $0xb7] ss:$2 sm:$0xff]  ;;  %v6086_v48 = vld [vmem:[#allocation2 + $0xc7] ss:$2 sm:$0xff] }
 0x668   :  { %18086 = vmatmul.mubr.msk.bf16.gmra.mrb[32].mxu1 %vm794_vm1, %v5134_v56  ;;  %v5744_v56 = vld [vmem:[#allocation2 + $0x96] ss:$2 sm:$0xff] }
 0x669   :  { %18091 = vmatprep.mubr.msk.bf16.mxu1 %vm794_vm1, %v5445_v1  ;;  %v5745_v1 = vld [vmem:[#allocation2 + $0xa6] ss:$2 sm:$0xff]  ;;  %v5776_v28 = vpack.c.bf16 %v5744_v56, %v5743_v32  ;;  %v6092_v32 = vld [vmem:[#allocation2 + $0xf7] ss:$2 sm:$0xff] }
 0x66a   :  { %v5777_v5 = vpack.c.bf16 %v5746_v12, %v5745_v1  ;;  %v6094_v1 = vld [vmem:[#allocation2 + $0x107] ss:$2 sm:$0xff]  ;;  %v6096_v12 = vld [vmem:[#allocation2 + $0x117] ss:$2 sm:$0xff] }
 0x670   :  { %18092 = vmatmul.mubr.msk.bf16.vlgmr.msra.gmra.mrb[0].mxu1 %vm794_vm1, %v5446_v61  ;;  %v5748_v61 = vld [vmem:[#allocation2 + $0xd6] ss:$2 sm:$0xff] }
 0x671   :  { %18128 = vmatpush3.bf16.msra.mxu1 %v23143_v39  ;;  %18095 = vmatprep.mubr.msk.bf16.mxu1 %vm794_vm1, %v5447_v33  ;;  %v5451_v39 = vpack.c.bf16 %v5422_v53, %v5421_v44  ;;  %v5749_v33 = vld [vmem:[#allocation2 + $0xe6] ss:$2 sm:$0xff]  ;;  %v5778_v15 = vpack.c.bf16 %v5748_v61, %v5747_v43  ;;  %v5756_v53 = vld [vmem:[#allocation2 + $0x156] ss:$2 sm:$0xff]  ;;  %v6142_v43 = vpack.c.bf16 %v6096_v12, %v6094_v1 }
 0x672   :  { %18165 = vmatprep.subr.bf16.mxu1 %v23168_v20  ;;  %v5755_v44 = vld [vmem:[#allocation2 + $0x146] ss:$2 sm:$0xff] }
 0x673   :  { %v5782_v49 = vpack.c.bf16 %v5756_v53, %v5755_v44 }
 0x678   :  { %18096 = vmatmul.mubr.msk.bf16.gmra.mrb[4].mxu1 %vm794_vm1, %v5448_v0  ;;  %v5753_v0 = vld [vmem:[#allocation2 + $0x126] ss:$2 sm:$0xff] }
 0x679   :  { %18099 = vmatprep.mubr.msk.bf16.mxu1 %vm794_vm1, %v5449_v41  ;;  %v5754_v41 = vld [vmem:[#allocation2 + $0x136] ss:$2 sm:$0xff] }
 0x67a   :  { %v5781_v40 = vpack.c.bf16 %v5754_v41, %v5753_v0  ;;  %v6110_v0 = vld [vmem:[#allocation2 + $0x187] ss:$2 sm:$0xff]  ;;  %v6112_v41 = vld [vmem:[#allocation2 + $0x197] ss:$2 sm:$0xff] }
 0x67b   :  { %v6146_v44 = vpack.c.bf16 %v6112_v41, %v6110_v0 }
 0x680   :  { %18100 = vmatmul.mubr.msk.bf16.gmra.mrb[8].mxu1 %vm794_vm1, %v5450_v58  ;;  %v5757_v58 = vld [vmem:[#allocation2 + $0x166] ss:$2 sm:$0xff] }
 0x681   :  { %18103 = vmatprep.mubr.msk.bf16.mxu1 %vm794_vm1, %v5451_v39  ;;  %v5758_v39 = vld [vmem:[#allocation2 + $0x176] ss:$2 sm:$0xff] }
 0x682   :  { %v5783_v62 = vpack.c.bf16 %v5758_v39, %v5757_v58  ;;  %v6118_v58 = vld [vmem:[#allocation2 + $0x1c7] ss:$2 sm:$0xff]  ;;  %v6120_v39 = vld [vmem:[#allocation2 + $0x1d7] ss:$2 sm:$0xff] }
 0x683   :  { %v6148_v8 = vpack.c.bf16 %v6120_v39, %v6118_v58 }
 0x688   :  { %18104 = vmatmul.mubr.msk.bf16.gmra.mrb[12].mxu1 %vm794_vm1, %v5452_v17  ;;  %v5761_v17 = vld [vmem:[#allocation2 + $0x1a6] ss:$2 sm:$0xff] }
 0x689   :  { %18107 = vmatprep.mubr.msk.bf16.mxu1 %vm794_vm1, %v5453_v4  ;;  %v5762_v4 = vld [vmem:[#allocation2 + $0x1b6] ss:$2 sm:$0xff] }
 0x68a   :  { %v5785_v31 = vpack.c.bf16 %v5762_v4, %v5761_v17  ;;  %v6126_v17 = vld [vmem:[#allocation2 + $0x207] ss:$2 sm:$0xff]  ;;  %v6128_v4 = vld [vmem:[#allocation2 + $0x217] ss:$2 sm:$0xff] }
 0x68b   :  { %v6150_v35 = vpack.c.bf16 %v6128_v4, %v6126_v17  ;;  %v6791_v4 = vld [vmem:[#allocation2 + $0x56] ss:$2 sm:$0xff] }
 0x690   :  { %18108 = vmatmul.mubr.msk.bf16.gmra.mrb[16].mxu1 %vm794_vm1, %v5454_v42  ;;  %v5765_v42 = vld [vmem:[#allocation2 + $0x1e6] ss:$2 sm:$0xff] }
 0x691   :  { %18111 = vmatprep.mubr.msk.bf16.mxu1 %vm794_vm1, %v5455_v47  ;;  %v5766_v47 = vld [vmem:[#allocation2 + $0x1f6] ss:$2 sm:$0xff] }
 0x692   :  { %v5787_v59 = vpack.c.bf16 %v5766_v47, %v5765_v42  ;;  %v6134_v42 = vld [vmem:[#allocation2 + $0x247] ss:$2 sm:$0x1f]  ;;  %v6428_v47 = vld [vmem:[#allocation2 + $0x28] ss:$2 sm:$0xff] }
 0x698   :  { %18112 = vmatmul.mubr.msk.bf16.gmra.mrb[20].mxu1 %vm794_vm1, %v5456_v7  ;;  %v5769_v7 = vld [vmem:[#allocation2 + $0x226] ss:$2 sm:$0xff] }
 0x699   :  { %18115 = vmatprep.mubr.msk.bf16.mxu1 %vm794_vm1, %v5457_v55  ;;  %v5770_v55 = vld [vmem:[#allocation2 + $0x236] ss:$2 sm:$0xff] }
 0x69a   :  { %v5789_v46 = vpack.c.bf16 %v5770_v55, %v5769_v7  ;;  %v6434_v7 = vld [vmem:[#allocation2 + $0x58] ss:$2 sm:$0xff]  ;;  %v6436_v55 = vld [vmem:[#allocation2 + $0x68] ss:$2 sm:$0xff] }
 0x6a0   :  { %18116 = vmatmul.mubr.msk.bf16.gmra.mrb[24].mxu1 %vm794_vm1, %v5458_v25  ;;  %v6068_v25 = vld [vmem:[#allocation2 + $0x37] ss:$2 sm:$0xff] }
 0x6a1   :  { %18119 = vmatprep.mubr.msk.bf16.mxu1 %vm794_vm1, %v5459_v30  ;;  %v5790_v30 = vpack.c.bf16 %v5772_v63, %v5772_v63  ;;  %v6135_v18 = vpack.c.bf16 %v6068_v25, %v6066_v9  ;;  %v23243_v63 = vld [vmem:[%s25167_s2 + $0x80] sm:$0xff]   ;;  %v6440_v25 = vld [vmem:[#allocation2 + $0x88] ss:$2 sm:$0xff] }
 0x6a8   :  { %18120 = vmatmul.mubr.msk.bf16.gmra.mrb[28].mxu1 %vm794_vm1, %v5460_v52  ;;  %v6076_v52 = vld [vmem:[#allocation2 + $0x77] ss:$2 sm:$0xff] }
 0x6a9   :  { %18123 = vmatprep.mubr.msk.bf16.mxu1 %vm794_vm1, %v5461_v38  ;;  %v6136_v38 = vpack.c.bf16 %v6072_v27, %v6070_v19  ;;  %v6137_v3 = vpack.c.bf16 %v6076_v52, %v6074_v45  ;;  %v6446_v19 = vld [vmem:[#allocation2 + $0xb8] ss:$2 sm:$0xff]  ;;  %v6448_v52 = vld [vmem:[#allocation2 + $0xc8] ss:$2 sm:$0xff] }
 0x6b0   :  { %18124 = vmatmul.mubr.msk.bf16.gmra.mrb[32].mxu1 %vm794_vm1, %v5462_v16  ;;  %v6080_v16 = vld [vmem:[#allocation2 + $0x97] ss:$2 sm:$0xff] }
 0x6b1   :  { %18129 = vmatprep.mubr.msk.bf16.mxu1 %vm794_vm1, %v5773_v23  ;;  %v6082_v23 = vld [vmem:[#allocation2 + $0xa7] ss:$2 sm:$0xff]  ;;  %v6138_v34 = vpack.c.bf16 %v6080_v16, %v6078_v10  ;;  %v6454_v10 = vld [vmem:[#allocation2 + $0xf8] ss:$2 sm:$0xff] }
 0x6b2   :  { %v6139_v37 = vpack.c.bf16 %v6084_v21, %v6082_v23  ;;  %v6456_v23 = vld [vmem:[#allocation2 + $0x108] ss:$2 sm:$0xff]  ;;  %v6458_v21 = vld [vmem:[#allocation2 + $0x118] ss:$2 sm:$0xff] }
 0x6b8   :  { %18130 = vmatmul.mubr.msk.bf16.vlgmr.msra.gmra.mrb[0].mxu1 %vm794_vm1, %v5774_v29  ;;  %v6088_v29 = vld [vmem:[#allocation2 + $0xd7] ss:$2 sm:$0xff] }
 0x6b9   :  { %18166 = vmatpush3.bf16.msra.mxu1 %v23168_v20  ;;  %18133 = vmatprep.mubr.msk.bf16.mxu1 %vm794_vm1, %v5775_v51  ;;  %v5779_v20 = vpack.c.bf16 %v5750_v57, %v5749_v33  ;;  %v6090_v51 = vld [vmem:[#allocation2 + $0xe7] ss:$2 sm:$0xff]  ;;  %v6140_v56 = vpack.c.bf16 %v6088_v29, %v6086_v48  ;;  %v6104_v57 = vld [vmem:[#allocation2 + $0x157] ss:$2 sm:$0xff]  ;;  %v6504_v48 = vpack.c.bf16 %v6458_v21, %v6456_v23 }
 0x6ba   :  { %18203 = vmatprep.subr.bf16.mxu1 %v23193_v24  ;;  %v6102_v33 = vld [vmem:[#allocation2 + $0x147] ss:$2 sm:$0xff] }
 0x6bb   :  { %v6144_v11 = vpack.c.bf16 %v6104_v57, %v6102_v33 }
 0x6c0   :  { %18134 = vmatmul.mubr.msk.bf16.gmra.mrb[4].mxu1 %vm794_vm1, %v5776_v28  ;;  %v6098_v28 = vld [vmem:[#allocation2 + $0x127] ss:$2 sm:$0xff] }
 0x6c1   :  { %18137 = vmatprep.mubr.msk.bf16.mxu1 %vm794_vm1, %v5777_v5  ;;  %v6100_v5 = vld [vmem:[#allocation2 + $0x137] ss:$2 sm:$0xff] }
 0x6c2   :  { %v6143_v61 = vpack.c.bf16 %v6100_v5, %v6098_v28  ;;  %v6472_v28 = vld [vmem:[#allocation2 + $0x188] ss:$2 sm:$0xff]  ;;  %v6474_v5 = vld [vmem:[#allocation2 + $0x198] ss:$2 sm:$0xff] }
 0x6c3   :  { %v6508_v33 = vpack.c.bf16 %v6474_v5, %v6472_v28 }
 0x6c8   :  { %18138 = vmatmul.mubr.msk.bf16.gmra.mrb[8].mxu1 %vm794_vm1, %v5778_v15  ;;  %v6106_v15 = vld [vmem:[#allocation2 + $0x167] ss:$2 sm:$0xff] }
 0x6c9   :  { %18141 = vmatprep.mubr.msk.bf16.mxu1 %vm794_vm1, %v5779_v20  ;;  %v6108_v20 = vld [vmem:[#allocation2 + $0x177] ss:$2 sm:$0xff] }
 0x6ca   :  { %v6145_v50 = vpack.c.bf16 %v6108_v20, %v6106_v15  ;;  %v6480_v15 = vld [vmem:[#allocation2 + $0x1c8] ss:$2 sm:$0xff]  ;;  %v6482_v20 = vld [vmem:[#allocation2 + $0x1d8] ss:$2 sm:$0xff] }
 0x6cb   :  { %v6510_v0 = vpack.c.bf16 %v6482_v20, %v6480_v15 }
 0x6d0   :  { %18142 = vmatmul.mubr.msk.bf16.gmra.mrb[12].mxu1 %vm794_vm1, %v5780_v36  ;;  %v6114_v36 = vld [vmem:[#allocation2 + $0x1a7] ss:$2 sm:$0xff] }
 0x6d1   :  { %18145 = vmatprep.mubr.msk.bf16.mxu1 %vm794_vm1, %v5781_v40  ;;  %v6116_v40 = vld [vmem:[#allocation2 + $0x1b7] ss:$2 sm:$0xff] }
 0x6d2   :  { %v6147_v53 = vpack.c.bf16 %v6116_v40, %v6114_v36  ;;  %v6488_v36 = vld [vmem:[#allocation2 + $0x208] ss:$2 sm:$0xff]  ;;  %v6490_v40 = vld [vmem:[#allocation2 + $0x218] ss:$2 sm:$0xff] }
 0x6d3   :  { %v6512_v58 = vpack.c.bf16 %v6490_v40, %v6488_v36  ;;  %v7119_v40 = vld [vmem:[#allocation2 + $0x57] ss:$2 sm:$0xff] }
 0x6d8   :  { %18146 = vmatmul.mubr.msk.bf16.gmra.mrb[16].mxu1 %vm794_vm1, %v5782_v49  ;;  %v6122_v49 = vld [vmem:[#allocation2 + $0x1e7] ss:$2 sm:$0xff] }
 0x6d9   :  { %18149 = vmatprep.mubr.msk.bf16.mxu1 %vm794_vm1, %v5783_v62  ;;  %v6124_v62 = vld [vmem:[#allocation2 + $0x1f7] ss:$2 sm:$0xff] }
 0x6da   :  { %v6149_v13 = vpack.c.bf16 %v6124_v62, %v6122_v49  ;;  %v6496_v49 = vld [vmem:[#allocation2 + $0x248] ss:$2 sm:$0x1f]  ;;  %v6789_v62 = vld [vmem:[#allocation2 + $0x36] ss:$2 sm:$0xff] }
 0x6e0   :  { %18150 = vmatmul.mubr.msk.bf16.gmra.mrb[20].mxu1 %vm794_vm1, %v5784_v26  ;;  %v6130_v26 = vld [vmem:[#allocation2 + $0x227] ss:$2 sm:$0xff] }
 0x6e1   :  { %18153 = vmatprep.mubr.msk.bf16.mxu1 %vm794_vm1, %v5785_v31  ;;  %v6132_v31 = vld [vmem:[#allocation2 + $0x237] ss:$2 sm:$0xff] }
 0x6e2   :  { %v6151_v22 = vpack.c.bf16 %v6132_v31, %v6130_v26  ;;  %v6792_v26 = vld [vmem:[#allocation2 + $0x66] ss:$2 sm:$0xff]  ;;  %v6793_v31 = vld [vmem:[#allocation2 + $0x76] ss:$2 sm:$0xff] }
 0x6e8   :  { %18154 = vmatmul.mubr.msk.bf16.gmra.mrb[24].mxu1 %vm794_vm1, %v5786_v54  ;;  %v6430_v54 = vld [vmem:[#allocation2 + $0x38] ss:$2 sm:$0xff] }
 0x6e9   :  { %18157 = vmatprep.mubr.msk.bf16.mxu1 %vm794_vm1, %v5787_v59  ;;  %v6152_v59 = vpack.c.bf16 %v6134_v42, %v6134_v42  ;;  %v6497_v2 = vpack.c.bf16 %v6430_v54, %v6428_v47  ;;  %v23268_v42 = vld [vmem:[%s25167_s2 + $0x88] sm:$0xff]   ;;  %v6795_v54 = vld [vmem:[#allocation2 + $0x96] ss:$2 sm:$0xff] }
 0x6f0   :  { %18158 = vmatmul.mubr.msk.bf16.gmra.mrb[28].mxu1 %vm794_vm1, %v5788_v14  ;;  %v6438_v14 = vld [vmem:[#allocation2 + $0x78] ss:$2 sm:$0xff] }
 0x6f1   :  { %18161 = vmatprep.mubr.msk.bf16.mxu1 %vm794_vm1, %v5789_v46  ;;  %v6498_v46 = vpack.c.bf16 %v6434_v7, %v6432_v6  ;;  %v6499_v9 = vpack.c.bf16 %v6438_v14, %v6436_v55  ;;  %v6798_v6 = vld [vmem:[#allocation2 + $0xc6] ss:$2 sm:$0xff]  ;;  %v6799_v14 = vld [vmem:[#allocation2 + $0xd6] ss:$2 sm:$0xff] }
 0x6f8   :  { %18162 = vmatmul.mubr.msk.bf16.gmra.mrb[32].mxu1 %vm794_vm1, %v5790_v30  ;;  %v6442_v30 = vld [vmem:[#allocation2 + $0x98] ss:$2 sm:$0xff] }
 0x6f9   :  { %18167 = vmatprep.mubr.msk.bf16.mxu1 %vm794_vm1, %v6135_v18  ;;  %v6444_v18 = vld [vmem:[#allocation2 + $0xa8] ss:$2 sm:$0xff]  ;;  %v6500_v27 = vpack.c.bf16 %v6442_v30, %v6440_v25 }
 0x6fa   :  { %v6501_v45 = vpack.c.bf16 %v6446_v19, %v6444_v18  ;;  %v6802_v25 = vld [vmem:[#allocation2 + $0x106] ss:$2 sm:$0xff]  ;;  %v6803_v18 = vld [vmem:[#allocation2 + $0x116] ss:$2 sm:$0xff] }
 0x6fb   :  { %v6804_v19 = vld [vmem:[#allocation2 + $0x126] ss:$2 sm:$0xff] }
 0x700   :  { %18168 = vmatmul.mubr.msk.bf16.vlgmr.msra.gmra.mrb[0].mxu1 %vm794_vm1, %v6136_v38  ;;  %v6450_v38 = vld [vmem:[#allocation2 + $0xd8] ss:$2 sm:$0xff] }
 0x701   :  { %18204 = vmatpush3.bf16.msra.mxu1 %v23193_v24  ;;  %18171 = vmatprep.mubr.msk.bf16.mxu1 %vm794_vm1, %v6137_v3  ;;  %v6141_v24 = vpack.c.bf16 %v6092_v32, %v6090_v51  ;;  %v6452_v3 = vld [vmem:[#allocation2 + $0xe8] ss:$2 sm:$0xff]  ;;  %v6502_v16 = vpack.c.bf16 %v6450_v38, %v6448_v52  ;;  %v6466_v32 = vld [vmem:[#allocation2 + $0x158] ss:$2 sm:$0xff]  ;;  %v6832_v52 = vpack.c.bf16 %v6804_v19, %v6803_v18 }
 0x702   :  { %18241 = vmatprep.subr.bf16.mxu1 %v23218_v60  ;;  %v6464_v51 = vld [vmem:[#allocation2 + $0x148] ss:$2 sm:$0xff] }
 0x703   :  { %v6506_v1 = vpack.c.bf16 %v6466_v32, %v6464_v51 }
 0x708   :  { %18172 = vmatmul.mubr.msk.bf16.gmra.mrb[4].mxu1 %vm794_vm1, %v6138_v34  ;;  %v6460_v34 = vld [vmem:[#allocation2 + $0x128] ss:$2 sm:$0xff] }
 0x709   :  { %18175 = vmatprep.mubr.msk.bf16.mxu1 %vm794_vm1, %v6139_v37  ;;  %v6462_v37 = vld [vmem:[#allocation2 + $0x138] ss:$2 sm:$0xff] }
 0x70a   :  { %v6505_v29 = vpack.c.bf16 %v6462_v37, %v6460_v34  ;;  %v6811_v34 = vld [vmem:[#allocation2 + $0x196] ss:$2 sm:$0xff]  ;;  %v6812_v37 = vld [vmem:[#allocation2 + $0x1a6] ss:$2 sm:$0xff] }
 0x70b   :  { %v6836_v51 = vpack.c.bf16 %v6812_v37, %v6811_v34 }
 0x710   :  { %18176 = vmatmul.mubr.msk.bf16.gmra.mrb[8].mxu1 %vm794_vm1, %v6140_v56  ;;  %v6468_v56 = vld [vmem:[#allocation2 + $0x168] ss:$2 sm:$0xff] }
 0x711   :  { %18179 = vmatprep.mubr.msk.bf16.mxu1 %vm794_vm1, %v6141_v24  ;;  %v6470_v24 = vld [vmem:[#allocation2 + $0x178] ss:$2 sm:$0xff] }
 0x712   :  { %v6507_v12 = vpack.c.bf16 %v6470_v24, %v6468_v56  ;;  %v6815_v56 = vld [vmem:[#allocation2 + $0x1d6] ss:$2 sm:$0xff]  ;;  %v6816_v24 = vld [vmem:[#allocation2 + $0x1e6] ss:$2 sm:$0xff] }
 0x713   :  { %v6838_v28 = vpack.c.bf16 %v6816_v24, %v6815_v56 }
 0x718   :  { %18180 = vmatmul.mubr.msk.bf16.gmra.mrb[12].mxu1 %vm794_vm1, %v6142_v43  ;;  %v6476_v43 = vld [vmem:[#allocation2 + $0x1a8] ss:$2 sm:$0xff] }
 0x719   :  { %18183 = vmatprep.mubr.msk.bf16.mxu1 %vm794_vm1, %v6143_v61  ;;  %v6478_v61 = vld [vmem:[#allocation2 + $0x1b8] ss:$2 sm:$0xff] }
 0x71a   :  { %v6509_v57 = vpack.c.bf16 %v6478_v61, %v6476_v43  ;;  %v6819_v43 = vld [vmem:[#allocation2 + $0x216] ss:$2 sm:$0xff]  ;;  %v6820_v61 = vld [vmem:[#allocation2 + $0x226] ss:$2 sm:$0xff] }
 0x71b   :  { %v6840_v15 = vpack.c.bf16 %v6820_v61, %v6819_v43  ;;  %v7447_v61 = vld [vmem:[#allocation2 + $0x58] ss:$2 sm:$0xff] }
 0x720   :  { %18184 = vmatmul.mubr.msk.bf16.gmra.mrb[16].mxu1 %vm794_vm1, %v6144_v11  ;;  %v6484_v11 = vld [vmem:[#allocation2 + $0x1e8] ss:$2 sm:$0xff] }
 0x721   :  { %18187 = vmatprep.mubr.msk.bf16.mxu1 %vm794_vm1, %v6145_v50  ;;  %v6486_v50 = vld [vmem:[#allocation2 + $0x1f8] ss:$2 sm:$0xff] }
 0x722   :  { %v6511_v41 = vpack.c.bf16 %v6486_v50, %v6484_v11  ;;  %v6824_v11 = vld [vmem:[#allocation2 + $0x256] ss:$2 sm:$0x1f]  ;;  %v7117_v50 = vld [vmem:[#allocation2 + $0x37] ss:$2 sm:$0xff] }
 0x728   :  { %18188 = vmatmul.mubr.msk.bf16.gmra.mrb[20].mxu1 %vm794_vm1, %v6146_v44  ;;  %v6492_v44 = vld [vmem:[#allocation2 + $0x228] ss:$2 sm:$0xff] }
 0x729   :  { %18191 = vmatprep.mubr.msk.bf16.mxu1 %vm794_vm1, %v6147_v53  ;;  %v6494_v53 = vld [vmem:[#allocation2 + $0x238] ss:$2 sm:$0xff] }
 0x72a   :  { %v6513_v39 = vpack.c.bf16 %v6494_v53, %v6492_v44  ;;  %v7120_v44 = vld [vmem:[#allocation2 + $0x67] ss:$2 sm:$0xff]  ;;  %v7121_v53 = vld [vmem:[#allocation2 + $0x77] ss:$2 sm:$0xff] }
 0x730   :  { %18192 = vmatmul.mubr.msk.bf16.gmra.mrb[24].mxu1 %vm794_vm1, %v6148_v8  ;;  %v6790_v8 = vld [vmem:[#allocation2 + $0x46] ss:$2 sm:$0xff] }
 0x731   :  { %18195 = vmatprep.mubr.msk.bf16.mxu1 %vm794_vm1, %v6149_v13  ;;  %v6514_v13 = vpack.c.bf16 %v6496_v49, %v6496_v49  ;;  %v6825_v17 = vpack.c.bf16 %v6790_v8, %v6789_v62  ;;  %v23293_v49 = vld [vmem:[%s25167_s2 + $0x90] sm:$0xff]  }
 0x732   :  { %v7123_v8 = vld [vmem:[#allocation2 + $0x97] ss:$2 sm:$0xff] }
 0x738   :  { %18196 = vmatmul.mubr.msk.bf16.gmra.mrb[28].mxu1 %vm794_vm1, %v6150_v35  ;;  %v6794_v35 = vld [vmem:[#allocation2 + $0x86] ss:$2 sm:$0xff] }
 0x739   :  { %18199 = vmatprep.mubr.msk.bf16.mxu1 %vm794_vm1, %v6151_v22  ;;  %v6826_v22 = vpack.c.bf16 %v6792_v26, %v6791_v4  ;;  %v6827_v47 = vpack.c.bf16 %v6794_v35, %v6793_v31  ;;  %v7126_v4 = vld [vmem:[#allocation2 + $0xc7] ss:$2 sm:$0xff]  ;;  %v7127_v35 = vld [vmem:[#allocation2 + $0xd7] ss:$2 sm:$0xff] }
 0x740   :  { %18200 = vmatmul.mubr.msk.bf16.gmra.mrb[32].mxu1 %vm794_vm1, %v6152_v59  ;;  %v6796_v59 = vld [vmem:[#allocation2 + $0xa6] ss:$2 sm:$0xff] }
 0x741   :  { %18205 = vmatprep.mubr.msk.bf16.mxu1 %vm794_vm1, %v6497_v2  ;;  %v6797_v2 = vld [vmem:[#allocation2 + $0xb6] ss:$2 sm:$0xff]  ;;  %v6828_v7 = vpack.c.bf16 %v6796_v59, %v6795_v54  ;;  %v7130_v54 = vld [vmem:[#allocation2 + $0x107] ss:$2 sm:$0xff] }
 0x742   :  { %v6829_v55 = vpack.c.bf16 %v6798_v6, %v6797_v2  ;;  %v7131_v2 = vld [vmem:[#allocation2 + $0x117] ss:$2 sm:$0xff]  ;;  %v7132_v6 = vld [vmem:[#allocation2 + $0x127] ss:$2 sm:$0xff] }
 0x748   :  { %18206 = vmatmul.mubr.msk.bf16.vlgmr.msra.gmra.mrb[0].mxu1 %vm794_vm1, %v6498_v46  ;;  %v6800_v46 = vld [vmem:[#allocation2 + $0xe6] ss:$2 sm:$0xff] }
 0x749   :  { %18242 = vmatpush3.bf16.msra.mxu1 %v23218_v60  ;;  %18209 = vmatprep.mubr.msk.bf16.mxu1 %vm794_vm1, %v6499_v9  ;;  %v6503_v60 = vpack.c.bf16 %v6454_v10, %v6452_v3  ;;  %v6801_v9 = vld [vmem:[#allocation2 + $0xf6] ss:$2 sm:$0xff]  ;;  %v6830_v30 = vpack.c.bf16 %v6800_v46, %v6799_v14  ;;  %v6808_v10 = vld [vmem:[#allocation2 + $0x166] ss:$2 sm:$0xff]  ;;  %v7160_v14 = vpack.c.bf16 %v7132_v6, %v7131_v2 }
 0x74a   :  { %18279 = vmatprep.subr.bf16.mxu1 %v23243_v63  ;;  %v6807_v3 = vld [vmem:[#allocation2 + $0x156] ss:$2 sm:$0xff] }
 0x74b   :  { %v6834_v23 = vpack.c.bf16 %v6808_v10, %v6807_v3 }
 0x750   :  { %18210 = vmatmul.mubr.msk.bf16.gmra.mrb[4].mxu1 %vm794_vm1, %v6500_v27  ;;  %v6805_v27 = vld [vmem:[#allocation2 + $0x136] ss:$2 sm:$0xff] }
 0x751   :  { %18213 = vmatprep.mubr.msk.bf16.mxu1 %vm794_vm1, %v6501_v45  ;;  %v6806_v45 = vld [vmem:[#allocation2 + $0x146] ss:$2 sm:$0xff] }
 0x752   :  { %v6833_v38 = vpack.c.bf16 %v6806_v45, %v6805_v27  ;;  %v7139_v27 = vld [vmem:[#allocation2 + $0x197] ss:$2 sm:$0xff]  ;;  %v7140_v45 = vld [vmem:[#allocation2 + $0x1a7] ss:$2 sm:$0xff] }
 0x753   :  { %v7164_v3 = vpack.c.bf16 %v7140_v45, %v7139_v27 }
 0x758   :  { %18214 = vmatmul.mubr.msk.bf16.gmra.mrb[8].mxu1 %vm794_vm1, %v6502_v16  ;;  %v6809_v16 = vld [vmem:[#allocation2 + $0x176] ss:$2 sm:$0xff] }
 0x759   :  { %18217 = vmatprep.mubr.msk.bf16.mxu1 %vm794_vm1, %v6503_v60  ;;  %v6810_v60 = vld [vmem:[#allocation2 + $0x186] ss:$2 sm:$0xff] }
 0x75a   :  { %v6835_v21 = vpack.c.bf16 %v6810_v60, %v6809_v16  ;;  %v7143_v16 = vld [vmem:[#allocation2 + $0x1d7] ss:$2 sm:$0xff]  ;;  %v7144_v60 = vld [vmem:[#allocation2 + $0x1e7] ss:$2 sm:$0xff] }
 0x75b   :  { %v7166_v34 = vpack.c.bf16 %v7144_v60, %v7143_v16 }
 0x760   :  { %18218 = vmatmul.mubr.msk.bf16.gmra.mrb[12].mxu1 %vm794_vm1, %v6504_v48  ;;  %v6813_v48 = vld [vmem:[#allocation2 + $0x1b6] ss:$2 sm:$0xff] }
 0x761   :  { %18221 = vmatprep.mubr.msk.bf16.mxu1 %vm794_vm1, %v6505_v29  ;;  %v6814_v29 = vld [vmem:[#allocation2 + $0x1c6] ss:$2 sm:$0xff] }
 0x762   :  { %v6837_v32 = vpack.c.bf16 %v6814_v29, %v6813_v48  ;;  %v7147_v48 = vld [vmem:[#allocation2 + $0x217] ss:$2 sm:$0xff]  ;;  %v7148_v29 = vld [vmem:[#allocation2 + $0x227] ss:$2 sm:$0xff] }
 0x763   :  { %v7168_v56 = vpack.c.bf16 %v7148_v29, %v7147_v48  ;;  %v7778_v29 = vld [vmem:[#allocation2 + $0x59] ss:$2 sm:$0xff] }
 0x768   :  { %18222 = vmatmul.mubr.msk.bf16.gmra.mrb[16].mxu1 %vm794_vm1, %v6506_v1  ;;  %v6817_v1 = vld [vmem:[#allocation2 + $0x1f6] ss:$2 sm:$0xff] }
 0x769   :  { %18225 = vmatprep.mubr.msk.bf16.mxu1 %vm794_vm1, %v6507_v12  ;;  %v6818_v12 = vld [vmem:[#allocation2 + $0x206] ss:$2 sm:$0xff] }
 0x76a   :  { %v6839_v5 = vpack.c.bf16 %v6818_v12, %v6817_v1  ;;  %v7152_v1 = vld [vmem:[#allocation2 + $0x257] ss:$2 sm:$0x1f]  ;;  %v7445_v12 = vld [vmem:[#allocation2 + $0x38] ss:$2 sm:$0xff] }
 0x770   :  { %18226 = vmatmul.mubr.msk.bf16.gmra.mrb[20].mxu1 %vm794_vm1, %v6508_v33  ;;  %v6821_v33 = vld [vmem:[#allocation2 + $0x236] ss:$2 sm:$0xff] }
 0x771   :  { %18229 = vmatprep.mubr.msk.bf16.mxu1 %vm794_vm1, %v6509_v57  ;;  %v6822_v57 = vld [vmem:[#allocation2 + $0x246] ss:$2 sm:$0xff] }
 0x772   :  { %v6841_v20 = vpack.c.bf16 %v6822_v57, %v6821_v33  ;;  %v7448_v33 = vld [vmem:[#allocation2 + $0x68] ss:$2 sm:$0xff]  ;;  %v7449_v57 = vld [vmem:[#allocation2 + $0x78] ss:$2 sm:$0xff] }
 0x778   :  { %18230 = vmatmul.mubr.msk.bf16.gmra.mrb[24].mxu1 %vm794_vm1, %v6510_v0  ;;  %v7118_v0 = vld [vmem:[#allocation2 + $0x47] ss:$2 sm:$0xff] }
 0x779   :  { %18233 = vmatprep.mubr.msk.bf16.mxu1 %vm794_vm1, %v6511_v41  ;;  %v6842_v41 = vpack.c.bf16 %v6824_v11, %v6824_v11  ;;  %v7153_v36 = vpack.c.bf16 %v7118_v0, %v7117_v50  ;;  %v23318_v11 = vld [vmem:[%s25167_s2 + $0x98] sm:$0xff]  }
 0x77a   :  { %v7451_v0 = vld [vmem:[#allocation2 + $0x98] ss:$2 sm:$0xff] }
 0x780   :  { %18234 = vmatmul.mubr.msk.bf16.gmra.mrb[28].mxu1 %vm794_vm1, %v6512_v58  ;;  %v7122_v58 = vld [vmem:[#allocation2 + $0x87] ss:$2 sm:$0xff] }
 0x781   :  { %18237 = vmatprep.mubr.msk.bf16.mxu1 %vm794_vm1, %v6513_v39  ;;  %v7154_v39 = vpack.c.bf16 %v7120_v44, %v7119_v40  ;;  %v7155_v62 = vpack.c.bf16 %v7122_v58, %v7121_v53  ;;  %v7454_v40 = vld [vmem:[#allocation2 + $0xc8] ss:$2 sm:$0xff]  ;;  %v7455_v58 = vld [vmem:[#allocation2 + $0xd8] ss:$2 sm:$0xff] }
 0x788   :  { %18238 = vmatmul.mubr.msk.bf16.gmra.mrb[32].mxu1 %vm794_vm1, %v6514_v13  ;;  %v7124_v13 = vld [vmem:[#allocation2 + $0xa7] ss:$2 sm:$0xff] }
 0x789   :  { %18243 = vmatprep.mubr.msk.bf16.mxu1 %vm794_vm1, %v6825_v17  ;;  %v7125_v17 = vld [vmem:[#allocation2 + $0xb7] ss:$2 sm:$0xff]  ;;  %v7156_v26 = vpack.c.bf16 %v7124_v13, %v7123_v8  ;;  %v7458_v8 = vld [vmem:[#allocation2 + $0x108] ss:$2 sm:$0xff] }
 0x78a   :  { %v7157_v31 = vpack.c.bf16 %v7126_v4, %v7125_v17  ;;  %v7459_v17 = vld [vmem:[#allocation2 + $0x118] ss:$2 sm:$0xff]  ;;  %v7460_v4 = vld [vmem:[#allocation2 + $0x128] ss:$2 sm:$0xff] }
 0x790   :  { %18244 = vmatmul.mubr.msk.bf16.vlgmr.msra.gmra.mrb[0].mxu1 %vm794_vm1, %v6826_v22  ;;  %v7128_v22 = vld [vmem:[#allocation2 + $0xe7] ss:$2 sm:$0xff] }
 0x791   :  { %18280 = vmatpush3.bf16.msra.mxu1 %v23243_v63  ;;  %18247 = vmatprep.mubr.msk.bf16.mxu1 %vm794_vm1, %v6827_v47  ;;  %v6831_v63 = vpack.c.bf16 %v6802_v25, %v6801_v9  ;;  %v7129_v47 = vld [vmem:[#allocation2 + $0xf7] ss:$2 sm:$0xff]  ;;  %v7158_v59 = vpack.c.bf16 %v7128_v22, %v7127_v35  ;;  %v7136_v25 = vld [vmem:[#allocation2 + $0x167] ss:$2 sm:$0xff]  ;;  %v7488_v35 = vpack.c.bf16 %v7460_v4, %v7459_v17 }
 0x792   :  { %18317 = vmatprep.subr.bf16.mxu1 %v23268_v42  ;;  %v7135_v9 = vld [vmem:[#allocation2 + $0x157] ss:$2 sm:$0xff] }
 0x793   :  { %v7162_v18 = vpack.c.bf16 %v7136_v25, %v7135_v9 }
 0x798   :  { %18248 = vmatmul.mubr.msk.bf16.gmra.mrb[4].mxu1 %vm794_vm1, %v6828_v7  ;;  %v7133_v7 = vld [vmem:[#allocation2 + $0x137] ss:$2 sm:$0xff] }
 0x799   :  { %18251 = vmatprep.mubr.msk.bf16.mxu1 %vm794_vm1, %v6829_v55  ;;  %v7134_v55 = vld [vmem:[#allocation2 + $0x147] ss:$2 sm:$0xff] }
 0x79a   :  { %v7161_v46 = vpack.c.bf16 %v7134_v55, %v7133_v7  ;;  %v7467_v7 = vld [vmem:[#allocation2 + $0x198] ss:$2 sm:$0xff]  ;;  %v7468_v55 = vld [vmem:[#allocation2 + $0x1a8] ss:$2 sm:$0xff] }
 0x79b   :  { %v7492_v9 = vpack.c.bf16 %v7468_v55, %v7467_v7 }
 0x7a0   :  { %18252 = vmatmul.mubr.msk.bf16.gmra.mrb[8].mxu1 %vm794_vm1, %v6830_v30  ;;  %v7137_v30 = vld [vmem:[#allocation2 + $0x177] ss:$2 sm:$0xff] }
 0x7a1   :  { %18255 = vmatprep.mubr.msk.bf16.mxu1 %vm794_vm1, %v6831_v63  ;;  %v7138_v63 = vld [vmem:[#allocation2 + $0x187] ss:$2 sm:$0xff] }
 0x7a2   :  { %v7163_v19 = vpack.c.bf16 %v7138_v63, %v7137_v30  ;;  %v7471_v30 = vld [vmem:[#allocation2 + $0x1d8] ss:$2 sm:$0xff]  ;;  %v7472_v63 = vld [vmem:[#allocation2 + $0x1e8] ss:$2 sm:$0xff] }
 0x7a3   :  { %v7494_v27 = vpack.c.bf16 %v7472_v63, %v7471_v30 }
 0x7a8   :  { %18256 = vmatmul.mubr.msk.bf16.gmra.mrb[12].mxu1 %vm794_vm1, %v6832_v52  ;;  %v7141_v52 = vld [vmem:[#allocation2 + $0x1b7] ss:$2 sm:$0xff] }
 0x7a9   :  { %18259 = vmatprep.mubr.msk.bf16.mxu1 %vm794_vm1, %v6833_v38  ;;  %v7142_v38 = vld [vmem:[#allocation2 + $0x1c7] ss:$2 sm:$0xff] }
 0x7aa   :  { %v7165_v10 = vpack.c.bf16 %v7142_v38, %v7141_v52  ;;  %v7475_v52 = vld [vmem:[#allocation2 + $0x218] ss:$2 sm:$0xff]  ;;  %v7476_v38 = vld [vmem:[#allocation2 + $0x228] ss:$2 sm:$0xff] }
 0x7ab   :  { %v7496_v16 = vpack.c.bf16 %v7476_v38, %v7475_v52  ;;  %v8140_v38 = vld [vmem:[#allocation2 + $0x5a] ss:$2 sm:$0xff] }
 0x7b0   :  { %18260 = vmatmul.mubr.msk.bf16.gmra.mrb[16].mxu1 %vm794_vm1, %v6834_v23  ;;  %v7145_v23 = vld [vmem:[#allocation2 + $0x1f7] ss:$2 sm:$0xff] }
 0x7b1   :  { %18263 = vmatprep.mubr.msk.bf16.mxu1 %vm794_vm1, %v6835_v21  ;;  %v7146_v21 = vld [vmem:[#allocation2 + $0x207] ss:$2 sm:$0xff] }
 0x7b2   :  { %v7167_v37 = vpack.c.bf16 %v7146_v21, %v7145_v23  ;;  %v7480_v23 = vld [vmem:[#allocation2 + $0x258] ss:$2 sm:$0x1f]  ;;  %v7774_v21 = vld [vmem:[#allocation2 + $0x39] ss:$2 sm:$0xff] }
 0x7b8   :  { %18264 = vmatmul.mubr.msk.bf16.gmra.mrb[20].mxu1 %vm794_vm1, %v6836_v51  ;;  %v7149_v51 = vld [vmem:[#allocation2 + $0x237] ss:$2 sm:$0xff] }
 0x7b9   :  { %18267 = vmatprep.mubr.msk.bf16.mxu1 %vm794_vm1, %v6837_v32  ;;  %v7150_v32 = vld [vmem:[#allocation2 + $0x247] ss:$2 sm:$0xff] }
 0x7ba   :  { %v7169_v24 = vpack.c.bf16 %v7150_v32, %v7149_v51  ;;  %v7780_v51 = vld [vmem:[#allocation2 + $0x69] ss:$2 sm:$0xff]  ;;  %v7782_v32 = vld [vmem:[#allocation2 + $0x79] ss:$2 sm:$0xff] }
 0x7c0   :  { %18268 = vmatmul.mubr.msk.bf16.gmra.mrb[24].mxu1 %vm794_vm1, %v6838_v28  ;;  %v7446_v28 = vld [vmem:[#allocation2 + $0x48] ss:$2 sm:$0xff] }
 0x7c1   :  { %18271 = vmatprep.mubr.msk.bf16.mxu1 %vm794_vm1, %v6839_v5  ;;  %v7170_v5 = vpack.c.bf16 %v7152_v1, %v7152_v1  ;;  %v7481_v43 = vpack.c.bf16 %v7446_v28, %v7445_v12  ;;  %v23343_v1 = vld [vmem:[%s25167_s2 + $0xa0] sm:$0xff]  }
 0x7c2   :  { %v7786_v28 = vld [vmem:[#allocation2 + $0x99] ss:$2 sm:$0xff] }
 0x7c8   :  { %18272 = vmatmul.mubr.msk.bf16.gmra.mrb[28].mxu1 %vm794_vm1, %v6840_v15  ;;  %v7450_v15 = vld [vmem:[#allocation2 + $0x88] ss:$2 sm:$0xff] }
 0x7c9   :  { %18275 = vmatprep.mubr.msk.bf16.mxu1 %vm794_vm1, %v6841_v20  ;;  %v7482_v20 = vpack.c.bf16 %v7448_v33, %v7447_v61  ;;  %v7483_v50 = vpack.c.bf16 %v7450_v15, %v7449_v57  ;;  %v7792_v61 = vld [vmem:[#allocation2 + $0xc9] ss:$2 sm:$0xff]  ;;  %v7794_v15 = vld [vmem:[#allocation2 + $0xd9] ss:$2 sm:$0xff] }
 0x7d0   :  { %18276 = vmatmul.mubr.msk.bf16.gmra.mrb[32].mxu1 %vm794_vm1, %v6842_v41  ;;  %v7452_v41 = vld [vmem:[#allocation2 + $0xa8] ss:$2 sm:$0xff] }
 0x7d1   :  { %18281 = vmatprep.mubr.msk.bf16.mxu1 %vm794_vm1, %v7153_v36  ;;  %v7453_v36 = vld [vmem:[#allocation2 + $0xb8] ss:$2 sm:$0xff]  ;;  %v7484_v44 = vpack.c.bf16 %v7452_v41, %v7451_v0  ;;  %v7800_v0 = vld [vmem:[#allocation2 + $0x109] ss:$2 sm:$0xff] }
 0x7d2   :  { %v7485_v53 = vpack.c.bf16 %v7454_v40, %v7453_v36  ;;  %v7802_v36 = vld [vmem:[#allocation2 + $0x119] ss:$2 sm:$0xff]  ;;  %v7804_v40 = vld [vmem:[#allocation2 + $0x129] ss:$2 sm:$0xff] }
 0x7d8   :  { %18282 = vmatmul.mubr.msk.bf16.vlgmr.msra.gmra.mrb[0].mxu1 %vm794_vm1, %v7154_v39  ;;  %v7456_v39 = vld [vmem:[#allocation2 + $0xe8] ss:$2 sm:$0xff] }
 0x7d9   :  { %18318 = vmatpush3.bf16.msra.mxu1 %v23268_v42  ;;  %18285 = vmatprep.mubr.msk.bf16.mxu1 %vm794_vm1, %v7155_v62  ;;  %v7159_v42 = vpack.c.bf16 %v7130_v54, %v7129_v47  ;;  %v7457_v62 = vld [vmem:[#allocation2 + $0xf8] ss:$2 sm:$0xff]  ;;  %v7486_v13 = vpack.c.bf16 %v7456_v39, %v7455_v58  ;;  %v7464_v54 = vld [vmem:[#allocation2 + $0x168] ss:$2 sm:$0xff]  ;;  %v7850_v58 = vpack.c.bf16 %v7804_v40, %v7802_v36 }
 0x7da   :  { %18355 = vmatprep.subr.bf16.mxu1 %v23293_v49  ;;  %v7463_v47 = vld [vmem:[#allocation2 + $0x158] ss:$2 sm:$0xff] }
 0x7db   :  { %v7490_v2 = vpack.c.bf16 %v7464_v54, %v7463_v47 }
 0x7e0   :  { %18286 = vmatmul.mubr.msk.bf16.gmra.mrb[4].mxu1 %vm794_vm1, %v7156_v26  ;;  %v7461_v26 = vld [vmem:[#allocation2 + $0x138] ss:$2 sm:$0xff] }
 0x7e1   :  { %18289 = vmatprep.mubr.msk.bf16.mxu1 %vm794_vm1, %v7157_v31  ;;  %v7462_v31 = vld [vmem:[#allocation2 + $0x148] ss:$2 sm:$0xff] }
 0x7e2   :  { %v7489_v22 = vpack.c.bf16 %v7462_v31, %v7461_v26  ;;  %v7818_v26 = vld [vmem:[#allocation2 + $0x199] ss:$2 sm:$0xff]  ;;  %v7820_v31 = vld [vmem:[#allocation2 + $0x1a9] ss:$2 sm:$0xff] }
 0x7e3   :  { %v7854_v47 = vpack.c.bf16 %v7820_v31, %v7818_v26 }
 0x7e8   :  { %18290 = vmatmul.mubr.msk.bf16.gmra.mrb[8].mxu1 %vm794_vm1, %v7158_v59  ;;  %v7465_v59 = vld [vmem:[#allocation2 + $0x178] ss:$2 sm:$0xff] }
 0x7e9   :  { %18293 = vmatprep.mubr.msk.bf16.mxu1 %vm794_vm1, %v7159_v42  ;;  %v7466_v42 = vld [vmem:[#allocation2 + $0x188] ss:$2 sm:$0xff] }
 0x7ea   :  { %v7491_v6 = vpack.c.bf16 %v7466_v42, %v7465_v59  ;;  %v7826_v59 = vld [vmem:[#allocation2 + $0x1d9] ss:$2 sm:$0xff]  ;;  %v7828_v42 = vld [vmem:[#allocation2 + $0x1e9] ss:$2 sm:$0xff] }
 0x7eb   :  { %v7856_v7 = vpack.c.bf16 %v7828_v42, %v7826_v59 }
 0x7f0   :  { %18294 = vmatmul.mubr.msk.bf16.gmra.mrb[12].mxu1 %vm794_vm1, %v7160_v14  ;;  %v7469_v14 = vld [vmem:[#allocation2 + $0x1b8] ss:$2 sm:$0xff] }
 0x7f1   :  { %18297 = vmatprep.mubr.msk.bf16.mxu1 %vm794_vm1, %v7161_v46  ;;  %v7470_v46 = vld [vmem:[#allocation2 + $0x1c8] ss:$2 sm:$0xff] }
 0x7f2   :  { %v7493_v25 = vpack.c.bf16 %v7470_v46, %v7469_v14  ;;  %v7834_v14 = vld [vmem:[#allocation2 + $0x219] ss:$2 sm:$0xff]  ;;  %v7836_v46 = vld [vmem:[#allocation2 + $0x229] ss:$2 sm:$0xff] }
 0x7f3   :  { %v7858_v30 = vpack.c.bf16 %v7836_v46, %v7834_v14  ;;  %v8499_v46 = vld [vmem:[#allocation2 + $0x68] ss:$2 sm:$0xff] }
 0x7f8   :  { %18298 = vmatmul.mubr.msk.bf16.gmra.mrb[16].mxu1 %vm794_vm1, %v7162_v18  ;;  %v7473_v18 = vld [vmem:[#allocation2 + $0x1f8] ss:$2 sm:$0xff] }
 0x7f9   :  { %18301 = vmatprep.mubr.msk.bf16.mxu1 %vm794_vm1, %v7163_v19  ;;  %v7474_v19 = vld [vmem:[#allocation2 + $0x208] ss:$2 sm:$0xff] }
 0x7fa   :  { %v7495_v45 = vpack.c.bf16 %v7474_v19, %v7473_v18  ;;  %v7842_v18 = vld [vmem:[#allocation2 + $0x259] ss:$2 sm:$0x1f]  ;;  %v8136_v19 = vld [vmem:[#allocation2 + $0x3a] ss:$2 sm:$0xff] }
 0x800   :  { %18302 = vmatmul.mubr.msk.bf16.gmra.mrb[20].mxu1 %vm794_vm1, %v7164_v3  ;;  %v7477_v3 = vld [vmem:[#allocation2 + $0x238] ss:$2 sm:$0xff] }
 0x801   :  { %18305 = vmatprep.mubr.msk.bf16.mxu1 %vm794_vm1, %v7165_v10  ;;  %v7478_v10 = vld [vmem:[#allocation2 + $0x248] ss:$2 sm:$0xff] }
 0x802   :  { %v7497_v60 = vpack.c.bf16 %v7478_v10, %v7477_v3  ;;  %v8142_v3 = vld [vmem:[#allocation2 + $0x6a] ss:$2 sm:$0xff]  ;;  %v8144_v10 = vld [vmem:[#allocation2 + $0x7a] ss:$2 sm:$0xff] }
 0x808   :  { %18306 = vmatmul.mubr.msk.bf16.gmra.mrb[24].mxu1 %vm794_vm1, %v7166_v34  ;;  %v7776_v34 = vld [vmem:[#allocation2 + $0x49] ss:$2 sm:$0xff] }
 0x809   :  { %18309 = vmatprep.mubr.msk.bf16.mxu1 %vm794_vm1, %v7167_v37  ;;  %v7498_v37 = vpack.c.bf16 %v7480_v23, %v7480_v23  ;;  %v7843_v48 = vpack.c.bf16 %v7776_v34, %v7774_v21  ;;  %v23368_v23 = vld [vmem:[%s25167_s2 + $0xa8] sm:$0xff]  }
 0x80a   :  { %v8148_v34 = vld [vmem:[#allocation2 + $0x9a] ss:$2 sm:$0xff] }
 0x810   :  { %18310 = vmatmul.mubr.msk.bf16.gmra.mrb[28].mxu1 %vm794_vm1, %v7168_v56  ;;  %v7784_v56 = vld [vmem:[#allocation2 + $0x89] ss:$2 sm:$0xff] }
 0x811   :  { %18313 = vmatprep.mubr.msk.bf16.mxu1 %vm794_vm1, %v7169_v24  ;;  %v7844_v24 = vpack.c.bf16 %v7780_v51, %v7778_v29  ;;  %v7845_v12 = vpack.c.bf16 %v7784_v56, %v7782_v32  ;;  %v8154_v29 = vld [vmem:[#allocation2 + $0xca] ss:$2 sm:$0xff]  ;;  %v8156_v56 = vld [vmem:[#allocation2 + $0xda] ss:$2 sm:$0xff] }
 0x818   :  { %18314 = vmatmul.mubr.msk.bf16.gmra.mrb[32].mxu1 %vm794_vm1, %v7170_v5  ;;  %v7788_v5 = vld [vmem:[#allocation2 + $0xa9] ss:$2 sm:$0xff] }
 0x819   :  { %18319 = vmatprep.mubr.msk.bf16.mxu1 %vm794_vm1, %v7481_v43  ;;  %v7790_v43 = vld [vmem:[#allocation2 + $0xb9] ss:$2 sm:$0xff]  ;;  %v7846_v33 = vpack.c.bf16 %v7788_v5, %v7786_v28  ;;  %v8162_v28 = vld [vmem:[#allocation2 + $0x10a] ss:$2 sm:$0xff] }
 0x81a   :  { %v7847_v57 = vpack.c.bf16 %v7792_v61, %v7790_v43  ;;  %v8164_v43 = vld [vmem:[#allocation2 + $0x11a] ss:$2 sm:$0xff]  ;;  %v8166_v61 = vld [vmem:[#allocation2 + $0x12a] ss:$2 sm:$0xff] }
 0x820   :  { %18320 = vmatmul.mubr.msk.bf16.vlgmr.msra.gmra.mrb[0].mxu1 %vm794_vm1, %v7482_v20  ;;  %v7796_v20 = vld [vmem:[#allocation2 + $0xe9] ss:$2 sm:$0xff] }
 0x821   :  { %18356 = vmatpush3.bf16.msra.mxu1 %v23293_v49  ;;  %18323 = vmatprep.mubr.msk.bf16.mxu1 %vm794_vm1, %v7483_v50  ;;  %v7487_v49 = vpack.c.bf16 %v7458_v8, %v7457_v62  ;;  %v7798_v50 = vld [vmem:[#allocation2 + $0xf9] ss:$2 sm:$0xff]  ;;  %v7848_v41 = vpack.c.bf16 %v7796_v20, %v7794_v15  ;;  %v7812_v8 = vld [vmem:[#allocation2 + $0x169] ss:$2 sm:$0xff]  ;;  %v8212_v15 = vpack.c.bf16 %v8166_v61, %v8164_v43 }
 0x822   :  { %18393 = vmatprep.subr.bf16.mxu1 %v23318_v11  ;;  %v7810_v62 = vld [vmem:[#allocation2 + $0x159] ss:$2 sm:$0xff] }
 0x823   :  { %v7852_v17 = vpack.c.bf16 %v7812_v8, %v7810_v62 }
 0x828   :  { %18324 = vmatmul.mubr.msk.bf16.gmra.mrb[4].mxu1 %vm794_vm1, %v7484_v44  ;;  %v7806_v44 = vld [vmem:[#allocation2 + $0x139] ss:$2 sm:$0xff] }
 0x829   :  { %18327 = vmatprep.mubr.msk.bf16.mxu1 %vm794_vm1, %v7485_v53  ;;  %v7808_v53 = vld [vmem:[#allocation2 + $0x149] ss:$2 sm:$0xff] }
 0x82a   :  { %v7851_v39 = vpack.c.bf16 %v7808_v53, %v7806_v44  ;;  %v8180_v44 = vld [vmem:[#allocation2 + $0x19a] ss:$2 sm:$0xff]  ;;  %v8182_v53 = vld [vmem:[#allocation2 + $0x1aa] ss:$2 sm:$0xff] }
 0x82b   :  { %v8216_v62 = vpack.c.bf16 %v8182_v53, %v8180_v44 }
 0x830   :  { %18328 = vmatmul.mubr.msk.bf16.gmra.mrb[8].mxu1 %vm794_vm1, %v7486_v13  ;;  %v7814_v13 = vld [vmem:[#allocation2 + $0x179] ss:$2 sm:$0xff] }
 0x831   :  { %18331 = vmatprep.mubr.msk.bf16.mxu1 %vm794_vm1, %v7487_v49  ;;  %v7816_v49 = vld [vmem:[#allocation2 + $0x189] ss:$2 sm:$0xff] }
 0x832   :  { %v7853_v4 = vpack.c.bf16 %v7816_v49, %v7814_v13  ;;  %v8188_v13 = vld [vmem:[#allocation2 + $0x1da] ss:$2 sm:$0xff]  ;;  %v8190_v49 = vld [vmem:[#allocation2 + $0x1ea] ss:$2 sm:$0xff] }
 0x833   :  { %v8218_v26 = vpack.c.bf16 %v8190_v49, %v8188_v13 }
 0x838   :  { %18332 = vmatmul.mubr.msk.bf16.gmra.mrb[12].mxu1 %vm794_vm1, %v7488_v35  ;;  %v7822_v35 = vld [vmem:[#allocation2 + $0x1b9] ss:$2 sm:$0xff] }
 0x839   :  { %18335 = vmatprep.mubr.msk.bf16.mxu1 %vm794_vm1, %v7489_v22  ;;  %v7824_v22 = vld [vmem:[#allocation2 + $0x1c9] ss:$2 sm:$0xff] }
 0x83a   :  { %v7855_v54 = vpack.c.bf16 %v7824_v22, %v7822_v35  ;;  %v8196_v35 = vld [vmem:[#allocation2 + $0x21a] ss:$2 sm:$0xff]  ;;  %v8198_v22 = vld [vmem:[#allocation2 + $0x22a] ss:$2 sm:$0xff] }
 0x83b   :  { %v8220_v59 = vpack.c.bf16 %v8198_v22, %v8196_v35  ;;  %v8827_v22 = vld [vmem:[#allocation2 + $0x69] ss:$2 sm:$0xff] }
 0x840   :  { %18336 = vmatmul.mubr.msk.bf16.gmra.mrb[16].mxu1 %vm794_vm1, %v7490_v2  ;;  %v7830_v2 = vld [vmem:[#allocation2 + $0x1f9] ss:$2 sm:$0xff] }
 0x841   :  { %18339 = vmatprep.mubr.msk.bf16.mxu1 %vm794_vm1, %v7491_v6  ;;  %v7832_v6 = vld [vmem:[#allocation2 + $0x209] ss:$2 sm:$0xff] }
 0x842   :  { %v7857_v55 = vpack.c.bf16 %v7832_v6, %v7830_v2  ;;  %v8204_v2 = vld [vmem:[#allocation2 + $0x25a] ss:$2 sm:$0x1f]  ;;  %v8497_v6 = vld [vmem:[#allocation2 + $0x48] ss:$2 sm:$0xff] }
 0x848   :  { %18340 = vmatmul.mubr.msk.bf16.gmra.mrb[20].mxu1 %vm794_vm1, %v7492_v9  ;;  %v7838_v9 = vld [vmem:[#allocation2 + $0x239] ss:$2 sm:$0xff] }
 0x849   :  { %18343 = vmatprep.mubr.msk.bf16.mxu1 %vm794_vm1, %v7493_v25  ;;  %v7840_v25 = vld [vmem:[#allocation2 + $0x249] ss:$2 sm:$0xff] }
 0x84a   :  { %v7859_v63 = vpack.c.bf16 %v7840_v25, %v7838_v9  ;;  %v8500_v9 = vld [vmem:[#allocation2 + $0x78] ss:$2 sm:$0xff]  ;;  %v8501_v25 = vld [vmem:[#allocation2 + $0x88] ss:$2 sm:$0xff] }
 0x850   :  { %18344 = vmatmul.mubr.msk.bf16.gmra.mrb[24].mxu1 %vm794_vm1, %v7494_v27  ;;  %v8138_v27 = vld [vmem:[#allocation2 + $0x4a] ss:$2 sm:$0xff] }
 0x851   :  { %18347 = vmatprep.mubr.msk.bf16.mxu1 %vm794_vm1, %v7495_v45  ;;  %v7860_v45 = vpack.c.bf16 %v7842_v18, %v7842_v18  ;;  %v8205_v52 = vpack.c.bf16 %v8138_v27, %v8136_v19  ;;  %v23393_v18 = vld [vmem:[%s25167_s2 + $0xb0] sm:$0xff]  }
 0x852   :  { %v8503_v27 = vld [vmem:[#allocation2 + $0xa8] ss:$2 sm:$0xff] }
 0x858   :  { %18348 = vmatmul.mubr.msk.bf16.gmra.mrb[28].mxu1 %vm794_vm1, %v7496_v16  ;;  %v8146_v16 = vld [vmem:[#allocation2 + $0x8a] ss:$2 sm:$0xff] }
 0x859   :  { %18351 = vmatprep.mubr.msk.bf16.mxu1 %vm794_vm1, %v7497_v60  ;;  %v8206_v60 = vpack.c.bf16 %v8142_v3, %v8140_v38  ;;  %v8207_v21 = vpack.c.bf16 %v8146_v16, %v8144_v10  ;;  %v8506_v38 = vld [vmem:[#allocation2 + $0xd8] ss:$2 sm:$0xff]  ;;  %v8507_v16 = vld [vmem:[#allocation2 + $0xe8] ss:$2 sm:$0xff] }
 0x860   :  { %18352 = vmatmul.mubr.msk.bf16.gmra.mrb[32].mxu1 %vm794_vm1, %v7498_v37  ;;  %v8150_v37 = vld [vmem:[#allocation2 + $0xaa] ss:$2 sm:$0xff] }
 0x861   :  { %18357 = vmatprep.mubr.msk.bf16.mxu1 %vm794_vm1, %v7843_v48  ;;  %v8152_v48 = vld [vmem:[#allocation2 + $0xba] ss:$2 sm:$0xff]  ;;  %v8208_v51 = vpack.c.bf16 %v8150_v37, %v8148_v34 }
 0x862   :  { %v8209_v32 = vpack.c.bf16 %v8154_v29, %v8152_v48  ;;  %v8510_v34 = vld [vmem:[#allocation2 + $0x118] ss:$2 sm:$0xff]  ;;  %v8511_v48 = vld [vmem:[#allocation2 + $0x128] ss:$2 sm:$0xff] }
 0x863   :  { %v8512_v29 = vld [vmem:[#allocation2 + $0x138] ss:$2 sm:$0xff] }
 0x868   :  { %18358 = vmatmul.mubr.msk.bf16.vlgmr.msra.gmra.mrb[0].mxu1 %vm794_vm1, %v7844_v24  ;;  %v8158_v24 = vld [vmem:[#allocation2 + $0xea] ss:$2 sm:$0xff] }
 0x869   :  { %18394 = vmatpush3.bf16.msra.mxu1 %v23318_v11  ;;  %18361 = vmatprep.mubr.msk.bf16.mxu1 %vm794_vm1, %v7845_v12  ;;  %v7849_v11 = vpack.c.bf16 %v7800_v0, %v7798_v50  ;;  %v8160_v12 = vld [vmem:[#allocation2 + $0xfa] ss:$2 sm:$0xff]  ;;  %v8210_v5 = vpack.c.bf16 %v8158_v24, %v8156_v56  ;;  %v8174_v0 = vld [vmem:[#allocation2 + $0x16a] ss:$2 sm:$0xff]  ;;  %v8540_v56 = vpack.c.bf16 %v8512_v29, %v8511_v48 }
 0x86a   :  { %18431 = vmatprep.subr.bf16.mxu1 %v23343_v1  ;;  %v8172_v50 = vld [vmem:[#allocation2 + $0x15a] ss:$2 sm:$0xff] }
 0x86b   :  { %v8214_v36 = vpack.c.bf16 %v8174_v0, %v8172_v50 }
 0x870   :  { %18362 = vmatmul.mubr.msk.bf16.gmra.mrb[4].mxu1 %vm794_vm1, %v7846_v33  ;;  %v8168_v33 = vld [vmem:[#allocation2 + $0x13a] ss:$2 sm:$0xff] }
 0x871   :  { %18365 = vmatprep.mubr.msk.bf16.mxu1 %vm794_vm1, %v7847_v57  ;;  %v8170_v57 = vld [vmem:[#allocation2 + $0x14a] ss:$2 sm:$0xff] }
 0x872   :  { %v8213_v20 = vpack.c.bf16 %v8170_v57, %v8168_v33  ;;  %v8519_v33 = vld [vmem:[#allocation2 + $0x1a8] ss:$2 sm:$0xff]  ;;  %v8520_v57 = vld [vmem:[#allocation2 + $0x1b8] ss:$2 sm:$0xff] }
 0x873   :  { %v8544_v50 = vpack.c.bf16 %v8520_v57, %v8519_v33 }
 0x878   :  { %18366 = vmatmul.mubr.msk.bf16.gmra.mrb[8].mxu1 %vm794_vm1, %v7848_v41  ;;  %v8176_v41 = vld [vmem:[#allocation2 + $0x17a] ss:$2 sm:$0xff] }
 0x879   :  { %18369 = vmatprep.mubr.msk.bf16.mxu1 %vm794_vm1, %v7849_v11  ;;  %v8178_v11 = vld [vmem:[#allocation2 + $0x18a] ss:$2 sm:$0xff] }
 0x87a   :  { %v8215_v40 = vpack.c.bf16 %v8178_v11, %v8176_v41  ;;  %v8523_v41 = vld [vmem:[#allocation2 + $0x1e8] ss:$2 sm:$0xff]  ;;  %v8524_v11 = vld [vmem:[#allocation2 + $0x1f8] ss:$2 sm:$0xff] }
 0x87b   :  { %v8546_v44 = vpack.c.bf16 %v8524_v11, %v8523_v41 }
 0x880   :  { %18370 = vmatmul.mubr.msk.bf16.gmra.mrb[12].mxu1 %vm794_vm1, %v7850_v58  ;;  %v8184_v58 = vld [vmem:[#allocation2 + $0x1ba] ss:$2 sm:$0xff] }
 0x881   :  { %18373 = vmatprep.mubr.msk.bf16.mxu1 %vm794_vm1, %v7851_v39  ;;  %v8186_v39 = vld [vmem:[#allocation2 + $0x1ca] ss:$2 sm:$0xff] }
 0x882   :  { %v8217_v8 = vpack.c.bf16 %v8186_v39, %v8184_v58  ;;  %v8527_v58 = vld [vmem:[#allocation2 + $0x228] ss:$2 sm:$0xff]  ;;  %v8528_v39 = vld [vmem:[#allocation2 + $0x238] ss:$2 sm:$0xff] }
 0x883   :  { %v8548_v13 = vpack.c.bf16 %v8528_v39, %v8527_v58  ;;  %v9155_v39 = vld [vmem:[#allocation2 + $0x6a] ss:$2 sm:$0xff] }
 0x888   :  { %18374 = vmatmul.mubr.msk.bf16.gmra.mrb[16].mxu1 %vm794_vm1, %v7852_v17  ;;  %v8192_v17 = vld [vmem:[#allocation2 + $0x1fa] ss:$2 sm:$0xff] }
 0x889   :  { %18377 = vmatprep.mubr.msk.bf16.mxu1 %vm794_vm1, %v7853_v4  ;;  %v8194_v4 = vld [vmem:[#allocation2 + $0x20a] ss:$2 sm:$0xff] }
 0x88a   :  { %v8219_v31 = vpack.c.bf16 %v8194_v4, %v8192_v17  ;;  %v8532_v17 = vld [vmem:[#allocation2 + $0x268] ss:$2 sm:$0x1f]  ;;  %v8825_v4 = vld [vmem:[#allocation2 + $0x49] ss:$2 sm:$0xff] }
 0x890   :  { %18378 = vmatmul.mubr.msk.bf16.gmra.mrb[20].mxu1 %vm794_vm1, %v7854_v47  ;;  %v8200_v47 = vld [vmem:[#allocation2 + $0x23a] ss:$2 sm:$0xff] }
 0x891   :  { %18381 = vmatprep.mubr.msk.bf16.mxu1 %vm794_vm1, %v7855_v54  ;;  %v8202_v54 = vld [vmem:[#allocation2 + $0x24a] ss:$2 sm:$0xff] }
 0x892   :  { %v8221_v42 = vpack.c.bf16 %v8202_v54, %v8200_v47  ;;  %v8828_v47 = vld [vmem:[#allocation2 + $0x79] ss:$2 sm:$0xff]  ;;  %v8829_v54 = vld [vmem:[#allocation2 + $0x89] ss:$2 sm:$0xff] }
 0x898   :  { %18382 = vmatmul.mubr.msk.bf16.gmra.mrb[24].mxu1 %vm794_vm1, %v7856_v7  ;;  %v8498_v7 = vld [vmem:[#allocation2 + $0x58] ss:$2 sm:$0xff] }
 0x899   :  { %18385 = vmatprep.mubr.msk.bf16.mxu1 %vm794_vm1, %v7857_v55  ;;  %v8222_v55 = vpack.c.bf16 %v8204_v2, %v8204_v2  ;;  %v8533_v14 = vpack.c.bf16 %v8498_v7, %v8497_v6  ;;  %v23418_v2 = vld [vmem:[%s25167_s2 + $0xb8] sm:$0xff]   ;;  %v8831_v7 = vld [vmem:[#allocation2 + $0xa9] ss:$2 sm:$0xff] }
 0x8a0   :  { %18386 = vmatmul.mubr.msk.bf16.gmra.mrb[28].mxu1 %vm794_vm1, %v7858_v30  ;;  %v8502_v30 = vld [vmem:[#allocation2 + $0x98] ss:$2 sm:$0xff] }
 0x8a1   :  { %18389 = vmatprep.mubr.msk.bf16.mxu1 %vm794_vm1, %v7859_v63  ;;  %v8534_v63 = vpack.c.bf16 %v8500_v9, %v8499_v46  ;;  %v8535_v19 = vpack.c.bf16 %v8502_v30, %v8501_v25  ;;  %v8834_v46 = vld [vmem:[#allocation2 + $0xd9] ss:$2 sm:$0xff]  ;;  %v8835_v30 = vld [vmem:[#allocation2 + $0xe9] ss:$2 sm:$0xff] }
 0x8a8   :  { %18390 = vmatmul.mubr.msk.bf16.gmra.mrb[32].mxu1 %vm794_vm1, %v7860_v45  ;;  %v8504_v45 = vld [vmem:[#allocation2 + $0xb8] ss:$2 sm:$0xff] }
 0x8a9   :  { %18395 = vmatprep.mubr.msk.bf16.mxu1 %vm794_vm1, %v8205_v52  ;;  %v8505_v52 = vld [vmem:[#allocation2 + $0xc8] ss:$2 sm:$0xff]  ;;  %v8536_v3 = vpack.c.bf16 %v8504_v45, %v8503_v27  ;;  %v8838_v27 = vld [vmem:[#allocation2 + $0x119] ss:$2 sm:$0xff] }
 0x8aa   :  { %v8537_v10 = vpack.c.bf16 %v8506_v38, %v8505_v52  ;;  %v8839_v52 = vld [vmem:[#allocation2 + $0x129] ss:$2 sm:$0xff]  ;;  %v8840_v38 = vld [vmem:[#allocation2 + $0x139] ss:$2 sm:$0xff] }
 0x8b0   :  { %18396 = vmatmul.mubr.msk.bf16.vlgmr.msra.gmra.mrb[0].mxu1 %vm794_vm1, %v8206_v60  ;;  %v8508_v60 = vld [vmem:[#allocation2 + $0xf8] ss:$2 sm:$0xff] }
 0x8b1   :  { %18432 = vmatpush3.bf16.msra.mxu1 %v23343_v1  ;;  %18399 = vmatprep.mubr.msk.bf16.mxu1 %vm794_vm1, %v8207_v21  ;;  %v8211_v1 = vpack.c.bf16 %v8162_v28, %v8160_v12  ;;  %v8509_v21 = vld [vmem:[#allocation2 + $0x108] ss:$2 sm:$0xff]  ;;  %v8538_v37 = vpack.c.bf16 %v8508_v60, %v8507_v16  ;;  %v8516_v28 = vld [vmem:[#allocation2 + $0x178] ss:$2 sm:$0xff]  ;;  %v8868_v16 = vpack.c.bf16 %v8840_v38, %v8839_v52 }
 0x8b2   :  { %18469 = vmatprep.subr.bf16.mxu1 %v23368_v23  ;;  %v8515_v12 = vld [vmem:[#allocation2 + $0x168] ss:$2 sm:$0xff]  ;;  %v10214_v52 = vld [vmem:[%s25175_s10 + $0x38] sm:$0xff]  ;;  %v10215_v38 = vld [vmem:[%s25175_s10 + $0x40] sm:$0xff] }
 0x8b3   :  { %v8542_v43 = vpack.c.bf16 %v8516_v28, %v8515_v12 }
 0x8b8   :  { %18400 = vmatmul.mubr.msk.bf16.gmra.mrb[4].mxu1 %vm794_vm1, %v8208_v51  ;;  %v8513_v51 = vld [vmem:[#allocation2 + $0x148] ss:$2 sm:$0xff] }
 0x8b9   :  { %18403 = vmatprep.mubr.msk.bf16.mxu1 %vm794_vm1, %v8209_v32  ;;  %v8514_v32 = vld [vmem:[#allocation2 + $0x158] ss:$2 sm:$0xff] }
 0x8ba   :  { %v8541_v24 = vpack.c.bf16 %v8514_v32, %v8513_v51  ;;  %v8847_v51 = vld [vmem:[#allocation2 + $0x1a9] ss:$2 sm:$0xff]  ;;  %v8848_v32 = vld [vmem:[#allocation2 + $0x1b9] ss:$2 sm:$0xff] }
 0x8bb   :  { %v8872_v12 = vpack.c.bf16 %v8848_v32, %v8847_v51  ;;  %v9173_v51 = vld [vmem:[#allocation2 + $0x18a] ss:$2 sm:$0xff]  ;;  %v9174_v32 = vld [vmem:[#allocation2 + $0x19a] ss:$2 sm:$0xff] }
 0x8c0   :  { %18404 = vmatmul.mubr.msk.bf16.gmra.mrb[8].mxu1 %vm794_vm1, %v8210_v5  ;;  %v8517_v5 = vld [vmem:[#allocation2 + $0x188] ss:$2 sm:$0xff] }
 0x8c1   :  { %18407 = vmatprep.mubr.msk.bf16.mxu1 %vm794_vm1, %v8211_v1  ;;  %v8518_v1 = vld [vmem:[#allocation2 + $0x198] ss:$2 sm:$0xff] }
 0x8c2   :  { %v8543_v61 = vpack.c.bf16 %v8518_v1, %v8517_v5  ;;  %v8851_v5 = vld [vmem:[#allocation2 + $0x1e9] ss:$2 sm:$0xff]  ;;  %v8852_v1 = vld [vmem:[#allocation2 + $0x1f9] ss:$2 sm:$0xff] }
 0x8c3   :  { %v8874_v33 = vpack.c.bf16 %v8852_v1, %v8851_v5  ;;  %v9175_v5 = vld [vmem:[#allocation2 + $0x1aa] ss:$2 sm:$0xff]  ;;  %v9176_v1 = vld [vmem:[#allocation2 + $0x1ba] ss:$2 sm:$0xff] }
 0x8c8   :  { %18408 = vmatmul.mubr.msk.bf16.gmra.mrb[12].mxu1 %vm794_vm1, %v8212_v15  ;;  %v8521_v15 = vld [vmem:[#allocation2 + $0x1c8] ss:$2 sm:$0xff] }
 0x8c9   :  { %18411 = vmatprep.mubr.msk.bf16.mxu1 %vm794_vm1, %v8213_v20  ;;  %v8522_v20 = vld [vmem:[#allocation2 + $0x1d8] ss:$2 sm:$0xff] }
 0x8ca   :  { %v8545_v0 = vpack.c.bf16 %v8522_v20, %v8521_v15  ;;  %v8855_v15 = vld [vmem:[#allocation2 + $0x229] ss:$2 sm:$0xff]  ;;  %v8856_v20 = vld [vmem:[#allocation2 + $0x239] ss:$2 sm:$0xff] }
 0x8cb   :  { %v8876_v41 = vpack.c.bf16 %v8856_v20, %v8855_v15  ;;  %v9200_v15 = vpack.c.bf16 %v9176_v1, %v9175_v5  ;;  %v21101_v5 = vld [vmem:[%s25168_s3 + $0x10] sm:$0xff]  }
 0x8cc   :  { %v9506_v1 = vld [vmem:[#allocation2 + $0x10b] ss:$2 sm:$0xff]  ;;  %18622 = vmatpush3.bf16.msra.mxu0 %v21101_v5 }
 0x8d0   :  { %18412 = vmatmul.mubr.msk.bf16.gmra.mrb[16].mxu1 %vm794_vm1, %v8214_v36  ;;  %v8525_v36 = vld [vmem:[#allocation2 + $0x208] ss:$2 sm:$0xff] }
 0x8d1   :  { %18415 = vmatprep.mubr.msk.bf16.mxu1 %vm794_vm1, %v8215_v40  ;;  %v8526_v40 = vld [vmem:[#allocation2 + $0x218] ss:$2 sm:$0xff] }
 0x8d2   :  { %v8547_v53 = vpack.c.bf16 %v8526_v40, %v8525_v36  ;;  %v8860_v36 = vld [vmem:[#allocation2 + $0x269] ss:$2 sm:$0x1f]  ;;  %v9153_v40 = vld [vmem:[#allocation2 + $0x4a] ss:$2 sm:$0xff] }
 0x8d8   :  { %18416 = vmatmul.mubr.msk.bf16.gmra.mrb[20].mxu1 %vm794_vm1, %v8216_v62  ;;  %v8529_v62 = vld [vmem:[#allocation2 + $0x248] ss:$2 sm:$0xff] }
 0x8d9   :  { %18419 = vmatprep.mubr.msk.bf16.mxu1 %vm794_vm1, %v8217_v8  ;;  %v8530_v8 = vld [vmem:[#allocation2 + $0x258] ss:$2 sm:$0xff] }
 0x8da   :  { %v8549_v49 = vpack.c.bf16 %v8530_v8, %v8529_v62  ;;  %v9156_v62 = vld [vmem:[#allocation2 + $0x7a] ss:$2 sm:$0xff]  ;;  %v9157_v8 = vld [vmem:[#allocation2 + $0x8a] ss:$2 sm:$0xff] }
 0x8e0   :  { %18420 = vmatmul.mubr.msk.bf16.gmra.mrb[24].mxu1 %vm794_vm1, %v8218_v26  ;;  %v8826_v26 = vld [vmem:[#allocation2 + $0x59] ss:$2 sm:$0xff] }
 0x8e1   :  { %18423 = vmatprep.mubr.msk.bf16.mxu1 %vm794_vm1, %v8219_v31  ;;  %v8550_v31 = vpack.c.bf16 %v8532_v17, %v8532_v17  ;;  %v8861_v35 = vpack.c.bf16 %v8826_v26, %v8825_v4  ;;  %v23443_v17 = vld [vmem:[%s25167_s2 + $0xc0] sm:$0xff]  }
 0x8e2   :  { %v10207_v26 = vld [vmem:[%s25175_s10] sm:$0xff] }
 0x8e8   :  { %18424 = vmatmul.mubr.msk.bf16.gmra.mrb[28].mxu1 %vm794_vm1, %v8220_v59  ;;  %v8830_v59 = vld [vmem:[#allocation2 + $0x99] ss:$2 sm:$0xff] }
 0x8e9   :  { %18427 = vmatprep.mubr.msk.bf16.mxu1 %vm794_vm1, %v8221_v42  ;;  %v8862_v42 = vpack.c.bf16 %v8828_v47, %v8827_v22  ;;  %v8863_v6 = vpack.c.bf16 %v8830_v59, %v8829_v54  ;;  %v9160_v22 = vld [vmem:[#allocation2 + $0xba] ss:$2 sm:$0xff]  ;;  %v9161_v47 = vld [vmem:[#allocation2 + $0xca] ss:$2 sm:$0xff] }
 0x8ea   :  { %v9162_v54 = vld [vmem:[#allocation2 + $0xda] ss:$2 sm:$0xff] }
 0x8f0   :  { %18428 = vmatmul.mubr.msk.bf16.gmra.mrb[32].mxu1 %vm794_vm1, %v8222_v55  ;;  %v8832_v55 = vld [vmem:[#allocation2 + $0xb9] ss:$2 sm:$0xff] }
 0x8f1   :  { %18433 = vmatprep.mubr.msk.bf16.mxu1 %vm794_vm1, %v8533_v14  ;;  %v8833_v14 = vld [vmem:[#allocation2 + $0xc9] ss:$2 sm:$0xff]  ;;  %v8864_v9 = vpack.c.bf16 %v8832_v55, %v8831_v7  ;;  %v9163_v7 = vld [vmem:[#allocation2 + $0xea] ss:$2 sm:$0xff]  ;;  %v9164_v55 = vld [vmem:[#allocation2 + $0xfa] ss:$2 sm:$0xff] }
 0x8f2   :  { %v8865_v25 = vpack.c.bf16 %v8834_v46, %v8833_v14  ;;  %v10210_v14 = vld [vmem:[%s25175_s10 + $0x18] sm:$0xff]  ;;  %v10211_v46 = vld [vmem:[%s25175_s10 + $0x20] sm:$0xff] }
 0x8f8   :  { %18434 = vmatmul.mubr.msk.bf16.vlgmr.msra.gmra.mrb[0].mxu1 %vm794_vm1, %v8534_v63  ;;  %v8836_v63 = vld [vmem:[#allocation2 + $0xf9] ss:$2 sm:$0xff] }
 0x8f9   :  { %18470 = vmatpush3.bf16.msra.mxu1 %v23368_v23  ;;  %18437 = vmatprep.mubr.msk.bf16.mxu1 %vm794_vm1, %v8535_v19  ;;  %v8539_v23 = vpack.c.bf16 %v8510_v34, %v8509_v21  ;;  %v8837_v19 = vld [vmem:[#allocation2 + $0x109] ss:$2 sm:$0xff]  ;;  %v8866_v45 = vpack.c.bf16 %v8836_v63, %v8835_v30  ;;  %v8844_v34 = vld [vmem:[#allocation2 + $0x179] ss:$2 sm:$0xff]  ;;  %v9194_v30 = vpack.c.bf16 %v9164_v55, %v9163_v7 }
 0x8fa   :  { %18507 = vmatprep.subr.bf16.mxu1 %v23393_v18  ;;  %v8843_v21 = vld [vmem:[#allocation2 + $0x169] ss:$2 sm:$0xff] }
 0x8fb   :  { %v8870_v48 = vpack.c.bf16 %v8844_v34, %v8843_v21  ;;  %v10216_v21 = vld [vmem:[%s25175_s10 + $0x48] sm:$0xff]  ;;  %v10217_v34 = vld [vmem:[%s25175_s10 + $0x50] sm:$0xff] }
 0x8fc   :  { %v9482_v7 = vld [vmem:[#allocation2 + $0x4b] ss:$2 sm:$0xff]  ;;  %v9484_v55 = vld [vmem:[#allocation2 + $0x5b] ss:$2 sm:$0xff] }
 0x900   :  { %18438 = vmatmul.mubr.msk.bf16.gmra.mrb[4].mxu1 %vm794_vm1, %v8536_v3  ;;  %v8841_v3 = vld [vmem:[#allocation2 + $0x149] ss:$2 sm:$0xff] }
 0x901   :  { %18441 = vmatprep.mubr.msk.bf16.mxu1 %vm794_vm1, %v8537_v10  ;;  %v8842_v10 = vld [vmem:[#allocation2 + $0x159] ss:$2 sm:$0xff] }
 0x902   :  { %v8869_v60 = vpack.c.bf16 %v8842_v10, %v8841_v3  ;;  %v9169_v3 = vld [vmem:[#allocation2 + $0x14a] ss:$2 sm:$0xff]  ;;  %v9170_v10 = vld [vmem:[#allocation2 + $0x15a] ss:$2 sm:$0xff] }
 0x908   :  { %18442 = vmatmul.mubr.msk.bf16.gmra.mrb[8].mxu1 %vm794_vm1, %v8538_v37  ;;  %v8845_v37 = vld [vmem:[#allocation2 + $0x189] ss:$2 sm:$0xff] }
 0x909   :  { %18445 = vmatprep.mubr.msk.bf16.mxu1 %vm794_vm1, %v8539_v23  ;;  %v8846_v23 = vld [vmem:[#allocation2 + $0x199] ss:$2 sm:$0xff] }
 0x90a   :  { %v8871_v29 = vpack.c.bf16 %v8846_v23, %v8845_v37  ;;  %v9171_v37 = vld [vmem:[#allocation2 + $0x16a] ss:$2 sm:$0xff]  ;;  %v9172_v23 = vld [vmem:[#allocation2 + $0x17a] ss:$2 sm:$0xff] }
 0x910   :  { %18446 = vmatmul.mubr.msk.bf16.gmra.mrb[12].mxu1 %vm794_vm1, %v8540_v56  ;;  %v8849_v56 = vld [vmem:[#allocation2 + $0x1c9] ss:$2 sm:$0xff] }
 0x911   :  { %18449 = vmatprep.mubr.msk.bf16.mxu1 %vm794_vm1, %v8541_v24  ;;  %v8850_v24 = vld [vmem:[#allocation2 + $0x1d9] ss:$2 sm:$0xff] }
 0x912   :  { %v8873_v28 = vpack.c.bf16 %v8850_v24, %v8849_v56  ;;  %v9198_v56 = vpack.c.bf16 %v9172_v23, %v9171_v37  ;;  %v9199_v24 = vpack.c.bf16 %v9174_v32, %v9173_v51  ;;  %v9498_v37 = vld [vmem:[#allocation2 + $0xcb] ss:$2 sm:$0xff]  ;;  %v9500_v23 = vld [vmem:[#allocation2 + $0xdb] ss:$2 sm:$0xff] }
 0x913   :  { %v15000_v51 = vld [vmem:[%s25176_s11 + $0x10] sm:$0xff]  ;;  %v15001_v32 = vld [vmem:[%s25176_s11 + $0x18] sm:$0xff] }
 0x918   :  { %18450 = vmatmul.mubr.msk.bf16.gmra.mrb[16].mxu1 %vm794_vm1, %v8542_v43  ;;  %v8853_v43 = vld [vmem:[#allocation2 + $0x209] ss:$2 sm:$0xff] }
 0x919   :  { %18453 = vmatprep.mubr.msk.bf16.mxu1 %vm794_vm1, %v8543_v61  ;;  %v8854_v61 = vld [vmem:[#allocation2 + $0x219] ss:$2 sm:$0xff] }
 0x91a   :  { %v8875_v57 = vpack.c.bf16 %v8854_v61, %v8853_v43  ;;  %v10222_v43 = vld [vmem:[%s25175_s10 + $0x78] sm:$0xff]  ;;  %v10223_v61 = vld [vmem:[%s25175_s10 + $0x80] sm:$0xff] }
 0x920   :  { %18454 = vmatmul.mubr.msk.bf16.gmra.mrb[20].mxu1 %vm794_vm1, %v8544_v50  ;;  %v8857_v50 = vld [vmem:[#allocation2 + $0x249] ss:$2 sm:$0xff] }
 0x921   :  { %18457 = vmatprep.mubr.msk.bf16.mxu1 %vm794_vm1, %v8545_v0  ;;  %v8858_v0 = vld [vmem:[#allocation2 + $0x259] ss:$2 sm:$0xff] }
 0x922   :  { %v8877_v11 = vpack.c.bf16 %v8858_v0, %v8857_v50  ;;  %v10224_v50 = vld [vmem:[%s25175_s10 + $0x88] sm:$0xff]  ;;  %v10225_v0 = vld [vmem:[%s25175_s10 + $0x90] sm:$0xff] }
 0x928   :  { %18458 = vmatmul.mubr.msk.bf16.gmra.mrb[24].mxu1 %vm794_vm1, %v8546_v44  ;;  %v9154_v44 = vld [vmem:[#allocation2 + $0x5a] ss:$2 sm:$0xff] }
 0x929   :  { %18461 = vmatprep.mubr.msk.bf16.mxu1 %vm794_vm1, %v8547_v53  ;;  %v8878_v53 = vpack.c.bf16 %v8860_v36, %v8860_v36  ;;  %v9189_v58 = vpack.c.bf16 %v9154_v44, %v9153_v40  ;;  %v10226_v36 = vld [vmem:[%s25175_s10 + $0x98] sm:$0xff]  ;;  %v10227_v40 = vld [vmem:[%s25175_s10 + $0xa0] sm:$0xff] }
 0x92a   :  { %v9181_v44 = vld [vmem:[#allocation2 + $0x20a] ss:$2 sm:$0xff] }
 0x930   :  { %18462 = vmatmul.mubr.msk.bf16.gmra.mrb[28].mxu1 %vm794_vm1, %v8548_v13  ;;  %v9158_v13 = vld [vmem:[#allocation2 + $0x9a] ss:$2 sm:$0xff] }
 0x931   :  { %18465 = vmatprep.mubr.msk.bf16.mxu1 %vm794_vm1, %v8549_v49  ;;  %v9190_v49 = vpack.c.bf16 %v9156_v62, %v9155_v39  ;;  %v9191_v4 = vpack.c.bf16 %v9158_v13, %v9157_v8  ;;  %v10228_v62 = vld [vmem:[%s25175_s10 + $0xa8] sm:$0xff]  ;;  %v10229_v8 = vld [vmem:[%s25175_s10 + $0xb0] sm:$0xff] }
 0x932   :  { %v9183_v13 = vld [vmem:[#allocation2 + $0x22a] ss:$2 sm:$0xff] }
 0x938   :  { %18466 = vmatmul.mubr.msk.bf16.gmra.mrb[32].mxu1 %vm794_vm1, %v8550_v31  ;;  %v21199_v31 = vmov 0  }
 0x939   :  { %18471 = vmatprep.mubr.msk.bf16.mxu1 %vm794_vm1, %v8861_v35  ;;  %21025 = vset.pattern.permute.xlu0 %v21199_v31  ;;  %v9159_v35 = vld [vmem:[#allocation2 + $0xaa] ss:$2 sm:$0xff] }
 0x93a   :  { %10244 = vperm.xlu0 %21025, %v10207_v26   ;;  %21026 = vset.pattern.permute.xlu1 %v21199_v31  ;;  %v9192_v59 = vpack.c.bf16 %v9160_v22, %v9159_v35  ;;  %v10231_v26 = vld [vmem:[%s25175_s10 + $0xc0] sm:$0xff]  ;;  %v9185_v31 = vld [vmem:[#allocation2 + $0x24a] ss:$2 sm:$0xff] }
 0x93b   :  { %v9186_v35 = vld [vmem:[#allocation2 + $0x25a] ss:$2 sm:$0xff] }
 0x940   :  { %18472 = vmatmul.mubr.msk.bf16.vlgmr.msra.gmra.mrb[0].mxu1 %vm794_vm1, %v8862_v42  ;;  %v9193_v42 = vpack.c.bf16 %v9162_v54, %v9161_v47  ;;  %v9205_v47 = vpack.c.bf16 %v9186_v35, %v9185_v31  ;;  %v10232_v54 = vld [vmem:[%s25175_s10 + $0xc8] sm:$0xff] }
 0x941   :  { %18508 = vmatpush3.bf16.msra.mxu1 %v23393_v18  ;;  %18475 = vmatprep.mubr.msk.bf16.mxu1 %vm794_vm1, %v8863_v6  ;;  %v8867_v18 = vpack.c.bf16 %v8838_v27, %v8837_v19  ;;  %v10208_v6 = vld [vmem:[%s25175_s10 + $0x8] sm:$0xff]  ;;  %v10213_v27 = vld [vmem:[%s25175_s10 + $0x30] sm:$0xff] }
 0x942   :  { %18545 = vmatprep.subr.bf16.mxu1 %v23418_v2  ;;  %10249 = vperm.xlu0 %21025, %v10208_v6   ;;  %v10212_v19 = vld [vmem:[%s25175_s10 + $0x28] sm:$0xff]  ;;  %v10235_v6 = vld [vmem:[%s25175_s10 + $0xe0] sm:$0xff] }
 0x943   :  { %v9526_v31 = vld [vmem:[#allocation2 + $0x1ab] ss:$2 sm:$0xff]  ;;  %v9528_v35 = vld [vmem:[#allocation2 + $0x1bb] ss:$2 sm:$0xff] }
 0x946   :  { %10264 = vperm.xlu0 %21025, %v10211_v46   ;;  %v9551_v46 = vpack.c.bf16 %v9484_v55, %v9482_v7  ;;  %v9540_v7 = vld [vmem:[#allocation2 + $0x21b] ss:$2 sm:$0xff] }
 0x948   :  { %18476 = vmatmul.mubr.msk.bf16.gmra.mrb[4].mxu1 %vm794_vm1, %v8864_v9  ;;  %v9165_v9 = vld [vmem:[#allocation2 + $0x10a] ss:$2 sm:$0xff] }
 0x949   :  { %18479 = vmatprep.mubr.msk.bf16.mxu1 %vm794_vm1, %v8865_v25  ;;  %v9166_v25 = vld [vmem:[#allocation2 + $0x11a] ss:$2 sm:$0xff] }
 0x94a   :  { %v9195_v63 = vpack.c.bf16 %v9166_v25, %v9165_v9  ;;  %10274 = vperm.xlu0 %21025, %v10213_v27   ;;  %v10236_v9 = vld [vmem:[%s25175_s10 + $0xe8] sm:$0xff]  ;;  %v10237_v25 = vld [vmem:[%s25175_s10 + $0xf0] sm:$0xff]  ;;  %v10239_v27 = vld [vmem:[%s25175_s10 + $0x100] sm:$0xff] }
 0x94e   :  { %10284 = vperm.xlu0 %21025, %v10215_v38  }
 0x950   :  { %18480 = vmatmul.mubr.msk.bf16.gmra.mrb[8].mxu1 %vm794_vm1, %v8866_v45  ;;  %v9167_v45 = vld [vmem:[#allocation2 + $0x12a] ss:$2 sm:$0xff] }
 0x951   :  { %18483 = vmatprep.mubr.msk.bf16.mxu1 %vm794_vm1, %v8867_v18  ;;  %v9168_v18 = vld [vmem:[#allocation2 + $0x13a] ss:$2 sm:$0xff] }
 0x952   :  { %10294 = vperm.xlu0 %21025, %v10217_v34   ;;  %v25498_v34 = vmov 0.0  }
 0x953   :  { %18623 = vmatprep.subr.bf16.mxu0 %v25498_v34 }
 0x958   :  { %18484 = vmatmul.mubr.msk.bf16.gmra.mrb[12].mxu1 %vm794_vm1, %v8868_v16  ;;  %v9196_v16 = vpack.c.bf16 %v9168_v18, %v9167_v45  ;;  %v9490_v45 = vld [vmem:[#allocation2 + $0x8b] ss:$2 sm:$0xff]  ;;  %v9492_v18 = vld [vmem:[#allocation2 + $0x9b] ss:$2 sm:$0xff] }
 0x959   :  { %18487 = vmatprep.mubr.msk.bf16.mxu1 %vm794_vm1, %v8869_v60  ;;  %v9197_v60 = vpack.c.bf16 %v9170_v10, %v9169_v3  ;;  %v9553_v38 = vpack.c.bf16 %v9492_v18, %v9490_v45  ;;  %v10240_v3 = vld [vmem:[%s25175_s10 + $0x108] sm:$0xff]  ;;  %v10241_v10 = vld [vmem:[%s25175_s10 + $0x110] sm:$0x1f] }
 0x95a   :  { %v9844_v45 = vld [vmem:[#allocation2 + $0x4c] ss:$2 sm:$0xff]  ;;  %v9846_v18 = vld [vmem:[#allocation2 + $0x5c] ss:$2 sm:$0xff] }
 0x960   :  { %18488 = vmatmul.mubr.msk.bf16.gmra.mrb[16].mxu1 %vm794_vm1, %v8870_v48  ;;  %v10218_v48 = vld [vmem:[%s25175_s10 + $0x58] sm:$0xff] }
 0x961   :  { %18491 = vmatprep.mubr.msk.bf16.mxu1 %vm794_vm1, %v8871_v29  ;;  %v10219_v29 = vld [vmem:[%s25175_s10 + $0x60] sm:$0xff] }
 0x962   :  { %10304 = vperm.xlu0 %21025, %v10219_v29   ;;  %v9555_v29 = vpack.c.bf16 %v9500_v23, %v9498_v37  ;;  %v9856_v37 = vld [vmem:[#allocation2 + $0xac] ss:$2 sm:$0xff]  ;;  %v9858_v23 = vld [vmem:[#allocation2 + $0xbc] ss:$2 sm:$0xff] }
 0x968   :  { %18492 = vmatmul.mubr.msk.bf16.gmra.mrb[20].mxu1 %vm794_vm1, %v8872_v12  ;;  %v10220_v12 = vld [vmem:[%s25175_s10 + $0x68] sm:$0xff] }
 0x969   :  { %18495 = vmatprep.mubr.msk.bf16.mxu1 %vm794_vm1, %v8873_v28  ;;  %v10221_v28 = vld [vmem:[%s25175_s10 + $0x70] sm:$0xff] }
 0x96a   :  { %10314 = vperm.xlu0 %21025, %v10221_v28   ;;  %v15003_v28 = vld [vmem:[%s25176_s11 + $0x28] sm:$0xff] }
 0x96e   :  { %10324 = vperm.xlu0 %21025, %v10223_v61  }
 0x970   :  { %18496 = vmatmul.mubr.msk.bf16.gmra.mrb[24].mxu1 %vm794_vm1, %v8874_v33  ;;  %v9177_v33 = vld [vmem:[#allocation2 + $0x1ca] ss:$2 sm:$0xff] }
 0x971   :  { %18499 = vmatprep.mubr.msk.bf16.mxu1 %vm794_vm1, %v8875_v57  ;;  %v9178_v57 = vld [vmem:[#allocation2 + $0x1da] ss:$2 sm:$0xff] }
 0x972   :  { %v9201_v20 = vpack.c.bf16 %v9178_v57, %v9177_v33  ;;  %10334 = vperm.xlu0 %21025, %v10225_v0   ;;  %v15004_v57 = vld [vmem:[%s25176_s11 + $0x30] sm:$0xff]  ;;  %v15006_v0 = vld [vmem:[%s25176_s11 + $0x40] sm:$0xff] }
 0x976   :  { %10344 = vperm.xlu0 %21025, %v10227_v40  }
 0x978   :  { %18500 = vmatmul.mubr.msk.bf16.gmra.mrb[28].mxu1 %vm794_vm1, %v8876_v41  ;;  %v9179_v41 = vld [vmem:[#allocation2 + $0x1ea] ss:$2 sm:$0xff] }
 0x979   :  { %18503 = vmatprep.mubr.msk.bf16.mxu1 %vm794_vm1, %v8877_v11  ;;  %v9180_v11 = vld [vmem:[#allocation2 + $0x1fa] ss:$2 sm:$0xff] }
 0x97a   :  { %10354 = vperm.xlu0 %21025, %v10229_v8   ;;  %v15010_v8 = vld [vmem:[%s25176_s11 + $0x60] sm:$0x1f] }
 0x97e   :  { %10364 = vperm.xlu0 %21025, %v10231_v26  }
 0x980   :  { %18504 = vmatmul.mubr.msk.bf16.gmra.mrb[32].mxu1 %vm794_vm1, %v8878_v53  ;;  %v9182_v53 = vld [vmem:[#allocation2 + $0x21a] ss:$2 sm:$0xff] }
 0x981   :  { %18509 = vmatprep.mubr.msk.bf16.mxu1 %vm794_vm1, %v9189_v58  ;;  %v9202_v58 = vpack.c.bf16 %v9180_v11, %v9179_v41  ;;  %v9203_v39 = vpack.c.bf16 %v9182_v53, %v9181_v44  ;;  %v15007_v41 = vld [vmem:[%s25176_s11 + $0x48] sm:$0xff]  ;;  %v15008_v53 = vld [vmem:[%s25176_s11 + $0x50] sm:$0xff] }
 0x982   :  { %v9514_v11 = vld [vmem:[#allocation2 + $0x14b] ss:$2 sm:$0xff] }
 0x988   :  { %18510 = vmatmul.mubr.msk.bf16.vlgmr.msra.gmra.mrb[0].mxu1 %vm794_vm1, %v9190_v49  ;;  %v9184_v49 = vld [vmem:[#allocation2 + $0x23a] ss:$2 sm:$0xff] }
 0x989   :  { %18546 = vmatpush3.bf16.msra.mxu1 %v23418_v2  ;;  %18513 = vmatprep.mubr.msk.bf16.mxu1 %vm794_vm1, %v9191_v4  ;;  %v10209_v2 = vld [vmem:[%s25175_s10 + $0x10] sm:$0xff]  ;;  %v10230_v4 = vld [vmem:[%s25175_s10 + $0xb8] sm:$0xff]  ;;  %v9204_v22 = vpack.c.bf16 %v9184_v49, %v9183_v13 }
 0x98a   :  { %18583 = vmatprep.subr.bf16.mxu1 %v23443_v17  ;;  %10254 = vperm.xlu1 %21026, %v10209_v2   ;;  %v10234_v2 = vld [vmem:[%s25175_s10 + $0xd8] sm:$0xff] }
 0x98b   :  { %v9522_v13 = vld [vmem:[#allocation2 + $0x18b] ss:$2 sm:$0xff]  ;;  %v9524_v49 = vld [vmem:[#allocation2 + $0x19b] ss:$2 sm:$0xff] }
 0x98c   :  { %v9561_v26 = vpack.c.bf16 %v9524_v49, %v9522_v13  ;;  %v9896_v13 = vld [vmem:[#allocation2 + $0x1ec] ss:$2 sm:$0xff]  ;;  %v9898_v49 = vld [vmem:[#allocation2 + $0x1fc] ss:$2 sm:$0xff] }
 0x98e   :  { %10259 = vperm.xlu1 %21026, %v10210_v14  }
 0x990   :  { %18514 = vmatmul.mubr.msk.bf16.gmra.mrb[4].mxu1 %vm794_vm1, %v9192_v59  ;;  %v10233_v59 = vld [vmem:[%s25175_s10 + $0xd0] sm:$0xff] }
 0x991   :  { %18517 = vmatprep.mubr.msk.bf16.mxu1 %vm794_vm1, %v9193_v42  ;;  %10374 = vperm.xlu0 %21025, %v10233_v59   ;;  %v9188_v42 = vld [vmem:[#allocation2 + $0x26a] ss:$2 sm:$0x1f] }
 0x992   :  { %10269 = vperm.xlu1 %21026, %v10212_v19   ;;  %v9206_v14 = vpack.c.bf16 %v9188_v42, %v9188_v42  ;;  %v10238_v19 = vld [vmem:[%s25175_s10 + $0xf8] sm:$0xff] }
 0x993   :  { %v9534_v42 = vld [vmem:[#allocation2 + $0x1eb] ss:$2 sm:$0xff] }
 0x995   :  { %10384 = vperm.xlu0 %21025, %v10235_v6   ;;  %v9538_v6 = vld [vmem:[#allocation2 + $0x20b] ss:$2 sm:$0xff] }
 0x996   :  { %10279 = vperm.xlu1 %21026, %v10214_v52  }
 0x998   :  { %18518 = vmatmul.mubr.msk.bf16.gmra.mrb[8].mxu1 %vm794_vm1, %v9194_v30  ;;  %v9486_v30 = vld [vmem:[#allocation2 + $0x6b] ss:$2 sm:$0xff] }
 0x999   :  { %18521 = vmatprep.mubr.msk.bf16.mxu1 %vm794_vm1, %v9195_v63  ;;  %10394 = vperm.xlu0 %21025, %v10237_v25   ;;  %v9488_v63 = vld [vmem:[#allocation2 + $0x7b] ss:$2 sm:$0xff]  ;;  %v9546_v25 = vld [vmem:[#allocation2 + $0x24b] ss:$2 sm:$0xff] }
 0x99a   :  { %10289 = vperm.xlu1 %21026, %v10216_v21   ;;  %v9552_v52 = vpack.c.bf16 %v9488_v63, %v9486_v30  ;;  %v14998_v21 = vld [vmem:[%s25176_s11] sm:$0xff] }
 0x99b   :  { %v9548_v30 = vld [vmem:[#allocation2 + $0x25b] ss:$2 sm:$0xff] }
 0x99d   :  { %10404 = vperm.xlu0 %21025, %v10239_v27   ;;  %v9550_v27 = vld [vmem:[#allocation2 + $0x26b] ss:$2 sm:$0x1f] }
 0x99e   :  { %10299 = vperm.xlu1 %21026, %v10218_v48  }
 0x9a0   :  { %18522 = vmatmul.mubr.msk.bf16.gmra.mrb[12].mxu1 %vm794_vm1, %v9196_v16  ;;  %v9494_v16 = vld [vmem:[#allocation2 + $0xab] ss:$2 sm:$0xff] }
 0x9a1   :  { %18525 = vmatprep.mubr.msk.bf16.mxu1 %vm794_vm1, %v9197_v60  ;;  %10414 = vperm.xlu0 %21025, %v10241_v10   ;;  %v9496_v60 = vld [vmem:[#allocation2 + $0xbb] ss:$2 sm:$0xff]  ;;  %v9850_v10 = vld [vmem:[#allocation2 + $0x7c] ss:$2 sm:$0xff] }
 0x9a2   :  { %10309 = vperm.xlu1 %21026, %v10220_v12   ;;  %v9554_v48 = vpack.c.bf16 %v9496_v60, %v9494_v16  ;;  %v15002_v12 = vld [vmem:[%s25176_s11 + $0x20] sm:$0xff]  ;;  %v9852_v16 = vld [vmem:[#allocation2 + $0x8c] ss:$2 sm:$0xff] }
 0x9a3   :  { %v9854_v60 = vld [vmem:[#allocation2 + $0x9c] ss:$2 sm:$0xff] }
 0x9a6   :  { %10319 = vperm.xlu1 %21026, %v10222_v43   ;;  %v9508_v43 = vld [vmem:[#allocation2 + $0x11b] ss:$2 sm:$0xff] }
 0x9a7   :  { %v9557_v33 = vpack.c.bf16 %v9508_v43, %v9506_v1  ;;  %v9872_v43 = vld [vmem:[#allocation2 + $0x12c] ss:$2 sm:$0xff] }
 0x9a8   :  { %18526 = vmatmul.mubr.msk.bf16.gmra.mrb[16].mxu1 %vm794_vm1, %v9198_v56  ;;  %v9502_v56 = vld [vmem:[#allocation2 + $0xeb] ss:$2 sm:$0xff] }
 0x9a9   :  { %18529 = vmatprep.mubr.msk.bf16.mxu1 %vm794_vm1, %v9199_v24  ;;  %v9504_v24 = vld [vmem:[#allocation2 + $0xfb] ss:$2 sm:$0xff] }
 0x9aa   :  { %10329 = vperm.xlu1 %21026, %v10224_v50   ;;  %v9556_v61 = vpack.c.bf16 %v9504_v24, %v9502_v56  ;;  %v9512_v50 = vld [vmem:[#allocation2 + $0x13b] ss:$2 sm:$0xff]  ;;  %v9864_v56 = vld [vmem:[#allocation2 + $0xec] ss:$2 sm:$0xff]  ;;  %v9866_v24 = vld [vmem:[#allocation2 + $0xfc] ss:$2 sm:$0xff] }
 0x9ab   :  { %v9918_v5 = vpack.c.bf16 %v9866_v24, %v9864_v56 }
 0x9ae   :  { %10339 = vperm.xlu1 %21026, %v10226_v36   ;;  %v9516_v36 = vld [vmem:[#allocation2 + $0x15b] ss:$2 sm:$0xff] }
 0x9af   :  { %v9559_v44 = vpack.c.bf16 %v9516_v36, %v9514_v11  ;;  %v9886_v11 = vld [vmem:[#allocation2 + $0x19c] ss:$2 sm:$0xff] }
 0x9b0   :  { %18530 = vmatmul.mubr.msk.bf16.gmra.mrb[20].mxu1 %vm794_vm1, %v9200_v15  ;;  %v15005_v15 = vld [vmem:[%s25176_s11 + $0x38] sm:$0xff] }
 0x9b1   :  { %18533 = vmatprep.mubr.msk.bf16.mxu1 %vm794_vm1, %v9201_v20  ;;  %v9510_v20 = vld [vmem:[#allocation2 + $0x12b] ss:$2 sm:$0xff] }
 0x9b2   :  { %10349 = vperm.xlu1 %21026, %v10228_v62   ;;  %v9558_v40 = vpack.c.bf16 %v9512_v50, %v9510_v20  ;;  %v9520_v62 = vld [vmem:[#allocation2 + $0x17b] ss:$2 sm:$0xff]  ;;  %v9880_v50 = vld [vmem:[#allocation2 + $0x16c] ss:$2 sm:$0xff] }
 0x9b6   :  { %10359 = vperm.xlu1 %21026, %v10230_v4  }
 0x9b8   :  { %18534 = vmatmul.mubr.msk.bf16.gmra.mrb[24].mxu1 %vm794_vm1, %v9202_v58  ;;  %v15009_v58 = vld [vmem:[%s25176_s11 + $0x58] sm:$0xff] }
 0x9b9   :  { %18537 = vmatprep.mubr.msk.bf16.mxu1 %vm794_vm1, %v9203_v39  ;;  %v9518_v39 = vld [vmem:[#allocation2 + $0x16b] ss:$2 sm:$0xff] }
 0x9ba   :  { %10369 = vperm.xlu1 %21026, %v10232_v54   ;;  %v9560_v4 = vpack.c.bf16 %v9520_v62, %v9518_v39  ;;  %v9562_v54 = vpack.c.bf16 %v9528_v35, %v9526_v31  ;;  %v9894_v39 = vld [vmem:[#allocation2 + $0x1dc] ss:$2 sm:$0xff]  ;;  %v9926_v31 = vpack.c.bf16 %v9898_v49, %v9896_v13 }
 0x9be   :  { %10379 = vperm.xlu1 %21026, %v10234_v2   ;;  %v9536_v2 = vld [vmem:[#allocation2 + $0x1fb] ss:$2 sm:$0xff] }
 0x9bf   :  { %v9564_v55 = vpack.c.bf16 %v9536_v2, %v9534_v42 }
 0x9c0   :  { %18538 = vmatmul.mubr.msk.bf16.gmra.mrb[28].mxu1 %vm794_vm1, %v9204_v22  ;;  %v9530_v22 = vld [vmem:[#allocation2 + $0x1cb] ss:$2 sm:$0xff] }
 0x9c1   :  { %18541 = vmatprep.mubr.msk.bf16.mxu1 %vm794_vm1, %v9205_v47  ;;  %v9532_v47 = vld [vmem:[#allocation2 + $0x1db] ss:$2 sm:$0xff] }
 0x9c2   :  { %10389 = vperm.xlu1 %21026, %v10236_v9   ;;  %v9563_v59 = vpack.c.bf16 %v9532_v47, %v9530_v22  ;;  %v9544_v9 = vld [vmem:[#allocation2 + $0x23b] ss:$2 sm:$0xff]  ;;  %v9904_v22 = vld [vmem:[#allocation2 + $0x22c] ss:$2 sm:$0xff]  ;;  %v9906_v47 = vld [vmem:[#allocation2 + $0x23c] ss:$2 sm:$0xff] }
 0x9c3   :  { %v9928_v42 = vpack.c.bf16 %v9906_v47, %v9904_v22 }
 0x9c6   :  { %10399 = vperm.xlu1 %21026, %v10238_v19   ;;  %v9567_v19 = vpack.c.bf16 %v9548_v30, %v9546_v25 }
 0x9c8   :  { %18542 = vmatmul.mubr.msk.bf16.gmra.mrb[32].mxu1 %vm794_vm1, %v9206_v14  ;;  %v9565_v14 = vpack.c.bf16 %v9540_v7, %v9538_v6  ;;  %v9912_v6 = vld [vmem:[#allocation2 + $0x26c] ss:$2 sm:$0x1f] }
 0x9c9   :  { %18547 = vmatprep.mubr.msk.bf16.mxu1 %vm794_vm1, %v9551_v46  ;;  %v9542_v46 = vld [vmem:[#allocation2 + $0x22b] ss:$2 sm:$0xff]  ;;  %v9930_v7 = vpack.c.bf16 %v9912_v6, %v9912_v6 }
 0x9ca   :  { %10409 = vperm.xlu1 %21026, %v10240_v3   ;;  %v9566_v63 = vpack.c.bf16 %v9544_v9, %v9542_v46  ;;  %v9848_v3 = vld [vmem:[#allocation2 + $0x6c] ss:$2 sm:$0xff] }
 0x9ce   :  { %15013 = vperm.xlu1 %21026, %v14998_v21   ;;  %v9914_v21 = vpack.c.bf16 %v9850_v10, %v9848_v3 }
 0x9d0   :  { %18548 = vmatmul.mubr.msk.bf16.vlgmr.msra.gmra.mrb[0].mxu1 %vm794_vm1, %v9552_v52  ;;  %v9568_v52 = vpack.c.bf16 %v9550_v27, %v9550_v27 }
 0x9d1   :  { %18584 = vmatpush3.bf16.msra.mxu1 %v23443_v17  ;;  %18551 = vmatprep.mubr.msk.bf16.mxu1 %vm794_vm1, %v9553_v38  ;;  %v14999_v17 = vld [vmem:[%s25176_s11 + $0x8] sm:$0xff]  ;;  %v9913_v38 = vpack.c.bf16 %v9846_v18, %v9844_v45 }
 0x9d2   :  { %19469 = vmatprep.subr.bf16.mxu1 %v25498_v34  ;;  %15018 = vperm.xlu0 %21025, %v14999_v17   ;;  %v9915_v17 = vpack.c.bf16 %v9854_v60, %v9852_v16 }
 0x9d3   :  { %15023 = vperm.xlu1 %21026, %v15000_v51   ;;  %v9916_v51 = vpack.c.bf16 %v9858_v23, %v9856_v37 }
 0x9d6   :  { %15028 = vperm.xlu0 %21025, %v15001_v32  }
 0x9d7   :  { %15033 = vperm.xlu1 %21026, %v15002_v12   ;;  %v9868_v12 = vld [vmem:[#allocation2 + $0x10c] ss:$2 sm:$0xff] }
 0x9d8   :  { %18552 = vmatmul.mubr.msk.bf16.gmra.mrb[4].mxu1 %vm794_vm1, %v9554_v48  ;;  %v9860_v48 = vld [vmem:[#allocation2 + $0xcc] ss:$2 sm:$0xff] }
 0x9d9   :  { %18555 = vmatprep.mubr.msk.bf16.mxu1 %vm794_vm1, %v9555_v29  ;;  %v9862_v29 = vld [vmem:[#allocation2 + $0xdc] ss:$2 sm:$0xff] }
 0x9da   :  { %15038 = vperm.xlu0 %21025, %v15003_v28   ;;  %v9917_v32 = vpack.c.bf16 %v9862_v29, %v9860_v48  ;;  %v9870_v28 = vld [vmem:[#allocation2 + $0x11c] ss:$2 sm:$0xff] }
 0x9db   :  { %15043 = vperm.xlu1 %21026, %v15004_v57   ;;  %v9919_v1 = vpack.c.bf16 %v9870_v28, %v9868_v12  ;;  %v9878_v57 = vld [vmem:[#allocation2 + $0x15c] ss:$2 sm:$0xff] }
 0x9de   :  { %15048 = vperm.xlu0 %21025, %v15005_v15  }
 0x9df   :  { %15053 = vperm.xlu1 %21026, %v15006_v0   ;;  %v9882_v0 = vld [vmem:[#allocation2 + $0x17c] ss:$2 sm:$0xff] }
 0x9e0   :  { %18556 = vmatmul.mubr.msk.bf16.gmra.mrb[8].mxu1 %vm794_vm1, %v9556_v61  ;;  %v9874_v61 = vld [vmem:[#allocation2 + $0x13c] ss:$2 sm:$0xff]  ;;  %v9922_v36 = vpack.c.bf16 %v9882_v0, %v9880_v50 }
 0x9e1   :  { %18559 = vmatprep.mubr.msk.bf16.mxu1 %vm794_vm1, %v9557_v33  ;;  %v9876_v33 = vld [vmem:[#allocation2 + $0x14c] ss:$2 sm:$0xff]  ;;  %v9920_v15 = vpack.c.bf16 %v9874_v61, %v9872_v43 }
 0x9e2   :  { %15058 = vperm.xlu0 %21025, %v15007_v41   ;;  %v9921_v20 = vpack.c.bf16 %v9878_v57, %v9876_v33  ;;  %v9884_v41 = vld [vmem:[#allocation2 + $0x18c] ss:$2 sm:$0xff] }
 0x9e3   :  { %15063 = vperm.xlu1 %21026, %v15008_v53   ;;  %v9890_v53 = vld [vmem:[#allocation2 + $0x1bc] ss:$2 sm:$0xff] }
 0x9e6   :  { %15068 = vperm.xlu0 %21025, %v15009_v58   ;;  %v9892_v58 = vld [vmem:[#allocation2 + $0x1cc] ss:$2 sm:$0xff] }
 0x9e7   :  { %15073 = vperm.xlu1 %21026, %v15010_v8   ;;  %v9925_v8 = vpack.c.bf16 %v9894_v39, %v9892_v58 }
 0x9e8   :  { %18560 = vmatmul.mubr.msk.bf16.gmra.mrb[12].mxu1 %vm794_vm1, %v9558_v40  ;;  %v9923_v40 = vpack.c.bf16 %v9886_v11, %v9884_v41 }
 0x9e9   :  { %18563 = vmatprep.mubr.msk.bf16.mxu1 %vm794_vm1, %v9559_v44  ;;  %v9888_v44 = vld [vmem:[#allocation2 + $0x1ac] ss:$2 sm:$0xff] }
 0x9ea   :  { %v9924_v62 = vpack.c.bf16 %v9890_v53, %v9888_v44 }
 0x9f0   :  { %18564 = vmatmul.mubr.msk.bf16.gmra.mrb[16].mxu1 %vm794_vm1, %v9560_v4  ;;  %v9900_v4 = vld [vmem:[#allocation2 + $0x20c] ss:$2 sm:$0xff] }
 0x9f1   :  { %18567 = vmatprep.mubr.msk.bf16.mxu1 %vm794_vm1, %v9561_v26  ;;  %v9902_v26 = vld [vmem:[#allocation2 + $0x21c] ss:$2 sm:$0xff] }
 0x9f2   :  { %v9927_v35 = vpack.c.bf16 %v9902_v26, %v9900_v4 }
 0x9f8   :  { %18568 = vmatmul.mubr.msk.bf16.gmra.mrb[20].mxu1 %vm794_vm1, %v9562_v54  ;;  %v9908_v54 = vld [vmem:[#allocation2 + $0x24c] ss:$2 sm:$0xff] }
 0x9f9   :  { %18571 = vmatprep.mubr.msk.bf16.mxu1 %vm794_vm1, %v9563_v59  ;;  %v9910_v59 = vld [vmem:[#allocation2 + $0x25c] ss:$2 sm:$0xff] }
 0x9fa   :  { %v9929_v2 = vpack.c.bf16 %v9910_v59, %v9908_v54 }
 0xa00   :  { %18572 = vmatmul.mubr.msk.bf16.gmra.mrb[24].mxu1 %vm794_vm1, %v9564_v55  ;;  %v21102_v55 = vld [vmem:[%s25168_s3 + $0x18] sm:$0xff]  }
 0xa01   :  { %18575 = vmatprep.mubr.msk.bf16.mxu1 %vm794_vm1, %v9565_v14  ;;  %18624 = vmatpush3.bf16.msra.mxu0 %v21102_v55  ;;  %v23656_v14 = vpop.permute.xlu0 %10244 }
 0xa02   :  { %18653 = vmatprep.subr.bf16.mxu0 %v25498_v34 }
 0xa05   :  { %v23660_v9 = vpop.permute.xlu0 %10249 }
 0xa08   :  { %18576 = vmatmul.mubr.msk.bf16.gmra.mrb[28].mxu1 %vm794_vm1, %v9566_v63 }
 0xa09   :  { %18579 = vmatprep.mubr.msk.bf16.mxu1 %vm794_vm1, %v9567_v19  ;;  %v23658_v46 = vpop.permute.xlu1 %10254  ;;  %v23664_v30 = vpop.permute.xlu0 %10264 }
 0xa0d   :  { %v23662_v25 = vpop.permute.xlu1 %10259  ;;  %v23668_v19 = vpop.permute.xlu0 %10274 }
 0xa10   :  { %18580 = vmatmul.mubr.msk.bf16.gmra.mrb[32].mxu1 %vm794_vm1, %v9568_v52 }
 0xa11   :  { %18585 = vmatprep.mubr.msk.bf16.mxu1 %vm794_vm1, %v9913_v38  ;;  %v23666_v63 = vpop.permute.xlu1 %10269  ;;  %v23672_v45 = vpop.permute.xlu0 %10284 }
 0xa15   :  { %v23670_v27 = vpop.permute.xlu1 %10279  ;;  %v23676_v52 = vpop.permute.xlu0 %10294 }
 0xa18   :  { %18586 = vmatmul.mubr.msk.bf16.vlgmr.msra.gmra.mrb[0].mxu1 %vm794_vm1, %v9914_v21 }
 0xa19   :  { %18589 = vmatprep.mubr.msk.bf16.mxu1 %vm794_vm1, %v9915_v17  ;;  %v23674_v18 = vpop.permute.xlu1 %10289  ;;  %v23682_v10 = vpop.permute.xlu0 %10304 }
 0xa1d   :  { %v23678_v38 = vpop.permute.xlu1 %10299  ;;  %v23702_v56 = vpop.permute.xlu0 %10314 }
 0xa20   :  { %18590 = vmatmul.mubr.msk.bf16.gmra.mrb[4].mxu1 %vm794_vm1, %v9916_v51 }
 0xa21   :  { %18593 = vmatprep.mubr.msk.bf16.mxu1 %vm794_vm1, %v9917_v32  ;;  %v23696_v48 = vpop.permute.xlu1 %10309  ;;  %v23723_v11 = vpop.permute.xlu0 %10324 }
 0xa28   :  { %18594 = vmatmul.mubr.msk.bf16.gmra.mrb[8].mxu1 %vm794_vm1, %v9918_v5 }
 0xa29   :  { %18597 = vmatprep.mubr.msk.bf16.mxu1 %vm794_vm1, %v9919_v1 }
 0xa30   :  { %18598 = vmatmul.mubr.msk.bf16.gmra.mrb[12].mxu1 %vm794_vm1, %v9920_v15 }
 0xa31   :  { %18601 = vmatprep.mubr.msk.bf16.mxu1 %vm794_vm1, %v9921_v20  ;;  %v23716_v20 = vpop.permute.xlu1 %10319 }
 0xa35   :  { %v23733_v13 = vpop.permute.xlu1 %10329 }
 0xa38   :  { %18602 = vmatmul.mubr.msk.bf16.gmra.mrb[16].mxu1 %vm794_vm1, %v9922_v36 }
 0xa39   :  { %18605 = vmatprep.mubr.msk.bf16.mxu1 %vm794_vm1, %v9923_v40  ;;  %v23752_v55 = vpop.permute.xlu1 %10339 }
 0xa40   :  { %18606 = vmatmul.mubr.msk.bf16.gmra.mrb[20].mxu1 %vm794_vm1, %v9924_v62 }
 0xa41   :  { %18609 = vmatprep.mubr.msk.bf16.mxu1 %vm794_vm1, %v9925_v8 }
 0xa48   :  { %18610 = vmatmul.mubr.msk.bf16.gmra.mrb[24].mxu1 %vm794_vm1, %v9926_v31  ;;  %v23740_v31 = vpop.permute.xlu0 %10334 }
 0xa49   :  { %18613 = vmatprep.mubr.msk.bf16.mxu1 %vm794_vm1, %v9927_v35 }
 0xa50   :  { %18614 = vmatmul.mubr.msk.bf16.gmra.mrb[28].mxu1 %vm794_vm1, %v9928_v42 }
 0xa51   :  { %18617 = vmatprep.mubr.msk.bf16.mxu1 %vm794_vm1, %v9929_v2 }
 0xa58   :  { %18618 = vmatmul.mubr.msk.bf16.gmra.mrb[32].mxu1 %vm794_vm1, %v9930_v7 }
 0xa59   :  { %19473 = vmatprep.mubr.msk.bf16.mxu1 %vm21198_vm0, %v25498_v34 }
 0xaeb   :  { %v23680_v3 = vpop.f32.mrb[0].mxu1 }
 0xaec   :  { %v23684_v16 = vpop.f32.mrb[1].mxu1  ;;  %v10419_v37 = vmul.f32 %v23680_v3, %v23658_v46 }
 0xaed   :  { %v10417_v60 = vmul.f32 %v23656_v14, %v23684_v16  ;;  %v23688_v21 = vpop.f32.mrb[2].mxu1 }
 0xaee   :  { %v23690_v17 = vpop.f32.mrb[3].mxu1  ;;  %v10420_v51 = vmul.f32 %v23688_v21, %v23662_v25  ;;  %v10456_v12 = vsel %vm10452_vm2, %v10419_v37, 0.0 }
 0xaef   :  { %v10418_v23 = vmul.f32 %v23660_v9, %v23690_v17  ;;  %v10453_v29 = vsel %vm10452_vm2, %v10417_v60, 0.0 }
 0xaf0   :  { %v10458_v43 = vsel %vm10452_vm2, %v10420_v51, 0.0 }
 0xaf1   :  { %v10454_v32 = vsel %vm10452_vm2, %v10418_v23, 0.0  ;;  %v23757_v23 = vpop.permute.xlu0 %10344 }
 0xaf2   :  { %v10455_v24 = vadd.f32 %v10454_v32, %v10453_v29  ;;  %25500 = vst [vmem:[#allocation19_spill] sm:$0xff] %v23757_v23 }
 0xaf3   :  { %v23705_v28 = vpop.f32.mrb[4].mxu1 }
 0xaf4   :  { %v10457_v5 = vadd.f32 %v10456_v12, %v10455_v24  ;;  %v23707_v1 = vpop.f32.mrb[5].mxu1  ;;  %v10423_v50 = vmul.f32 %v23705_v28, %v23668_v19 }
 0xaf5   :  { %v10421_v61 = vmul.f32 %v23664_v30, %v23707_v1  ;;  %v23712_v33 = vpop.f32.mrb[6].mxu1 }
 0xaf6   :  { %v10459_v57 = vadd.f32 %v10458_v43, %v10457_v5  ;;  %v23714_v15 = vpop.f32.mrb[7].mxu1  ;;  %v10424_v40 = vmul.f32 %v23712_v33, %v23670_v27  ;;  %v10464_v58 = vsel %vm10452_vm2, %v10423_v50, 0.0 }
 0xaf7   :  { %25499 = vst [vmem:[#allocation18_spill] sm:$0xff] %v23714_v15  ;;  %v10460_v0 = vsel %vm10452_vm2, %v10421_v61, 0.0  ;;  %v10422_v41 = vmul.f32 %v23666_v63, %v23714_v15 }
 0xaf8   :  { %v10461_v36 = vadd.f32 %v10460_v0, %v10459_v57  ;;  %v10466_v49 = vsel %vm10452_vm2, %v10424_v40, 0.0 }
 0xaf9   :  { %v10462_v44 = vsel %vm10452_vm2, %v10422_v41, 0.0  ;;  %v23773_v41 = vpop.permute.xlu1 %10349 }
 0xafa   :  { %v10463_v53 = vadd.f32 %v10462_v44, %v10461_v36  ;;  %25501 = vst [vmem:[#allocation20_spill] sm:$0xff] %v23773_v41  ;;  %v23778_v44 = vpop.permute.xlu0 %10354 }
 0xafb   :  { %v23729_v39 = vpop.f32.mrb[8].mxu1  ;;  %25502 = vst [vmem:[#allocation21_spill] sm:$0xff] %v23778_v44 }
 0xafc   :  { %v10465_v62 = vadd.f32 %v10464_v58, %v10463_v53  ;;  %v23731_v8 = vpop.f32.mrb[9].mxu1  ;;  %v10427_v47 = vmul.f32 %v23729_v39, %v23676_v52 }
 0xafd   :  { %v10425_v4 = vmul.f32 %v23672_v45, %v23731_v8  ;;  %v23738_v26 = vpop.f32.mrb[10].mxu1 }
 0xafe   :  { %v10467_v35 = vadd.f32 %v10466_v49, %v10465_v62  ;;  %v23742_v22 = vpop.f32.mrb[11].mxu1  ;;  %v10428_v2 = vmul.f32 %v23738_v26, %v23678_v38  ;;  %v10472_v60 = vsel %vm10452_vm2, %v10427_v47, 0.0 }
 0xaff   :  { %v10468_v54 = vsel %vm10452_vm2, %v10425_v4, 0.0  ;;  %v10426_v59 = vmul.f32 %v23674_v18, %v23742_v22 }
 0xb00   :  { %v10469_v42 = vadd.f32 %v10468_v54, %v10467_v35  ;;  %v10474_v32 = vsel %vm10452_vm2, %v10428_v2, 0.0  ;;  %v23792_v2 = vpop.permute.xlu1 %10359 }
 0xb01   :  { %v10470_v6 = vsel %vm10452_vm2, %v10426_v59, 0.0  ;;  %25503 = vst [vmem:[#allocation22_spill] sm:$0xff] %v23792_v2 }
 0xb02   :  { %v10471_v7 = vadd.f32 %v10470_v6, %v10469_v42 }
 0xb03   :  { %v23755_v37 = vpop.f32.mrb[12].mxu1 }
 0xb04   :  { %v10473_v29 = vadd.f32 %v10472_v60, %v10471_v7  ;;  %v23759_v51 = vpop.f32.mrb[13].mxu1  ;;  %v10431_v61 = vmul.f32 %v23755_v37, %v23702_v56 }
 0xb05   :  { %v10429_v24 = vmul.f32 %v23682_v10, %v23759_v51  ;;  %v23764_v12 = vpop.f32.mrb[14].mxu1 }
 0xb06   :  { %v10475_v5 = vadd.f32 %v10474_v32, %v10473_v29  ;;  %v23766_v43 = vpop.f32.mrb[15].mxu1  ;;  %v10432_v36 = vmul.f32 %v23764_v12, %v23716_v20  ;;  %v10480_v58 = vsel %vm10452_vm2, %v10431_v61, 0.0  ;;  %v23799_v29 = vpop.permute.xlu0 %10364 }
 0xb07   :  { %v10476_v57 = vsel %vm10452_vm2, %v10429_v24, 0.0  ;;  %v10430_v50 = vmul.f32 %v23696_v48, %v23766_v43  ;;  %25504 = vst [vmem:[#allocation23_spill] sm:$0xff] %v23799_v29 }
 0xb08   :  { %v10477_v0 = vadd.f32 %v10476_v57, %v10475_v5  ;;  %v10482_v35 = vsel %vm10452_vm2, %v10432_v36, 0.0 }
 0xb09   :  { %v10478_v40 = vsel %vm10452_vm2, %v10430_v50, 0.0 }
 0xb0a   :  { %v10479_v53 = vadd.f32 %v10478_v40, %v10477_v0  ;;  %v23809_v40 = vpop.permute.xlu1 %10369 }
 0xb0b   :  { %v23781_v62 = vpop.f32.mrb[16].mxu1  ;;  %25505 = vst [vmem:[#allocation24_spill] sm:$0xff] %v23809_v40 }
 0xb0c   :  { %v10481_v49 = vadd.f32 %v10480_v58, %v10479_v53  ;;  %v23783_v4 = vpop.f32.mrb[17].mxu1  ;;  %v10435_v6 = vmul.f32 %v23781_v62, %v23740_v31 }
 0xb0d   :  { %v10433_v47 = vmul.f32 %v23723_v11, %v23783_v4  ;;  %v23788_v54 = vpop.f32.mrb[18].mxu1 }
 0xb0e   :  { %v10483_v59 = vadd.f32 %v10482_v35, %v10481_v49  ;;  %v23790_v42 = vpop.f32.mrb[19].mxu1  ;;  %v10436_v24 = vmul.f32 %v23788_v54, %v23752_v55  ;;  %v10488_v57 = vsel %vm10452_vm2, %v10435_v6, 0.0  ;;  %v23816_v35 = vpop.permute.xlu0 %10374 }
 0xb0f   :  { %v10484_v7 = vsel %vm10452_vm2, %v10433_v47, 0.0  ;;  %v10434_v60 = vmul.f32 %v23733_v13, %v23790_v42  ;;  %25506 = vst [vmem:[#allocation25_spill] sm:$0xff] %v23816_v35 }
 0xb10   :  { %v10485_v32 = vadd.f32 %v10484_v7, %v10483_v59  ;;  %v10490_v53 = vsel %vm10452_vm2, %v10436_v24, 0.0 }
 0xb11   :  { %v10486_v5 = vsel %vm10452_vm2, %v10434_v60, 0.0 }
 0xb12   :  { %v10487_v61 = vadd.f32 %v10486_v5, %v10485_v32  ;;  %v23833_v34 = vpop.permute.xlu0 %10384 }
 0xb13   :  { %v23805_v50 = vpop.f32.mrb[20].mxu1  ;;  %25509 = vst [vmem:[#allocation28_spill] sm:$0xff] %v23833_v34 }
 0xb14   :  { %v10489_v0 = vadd.f32 %v10488_v57, %v10487_v61  ;;  %v23807_v36 = vpop.f32.mrb[21].mxu1  ;;  %v10439_v6 = vmul.f32 %v23805_v50, %v23778_v44  ;;  %v23828_v57 = vpop.permute.xlu1 %10379 }
 0xb15   :  { %v10437_v58 = vmul.f32 %v23757_v23, %v23807_v36  ;;  %v23814_v49 = vpop.f32.mrb[22].mxu1  ;;  %25507 = vst [vmem:[#allocation26_spill] sm:$0xff] %v23828_v57 }
 0xb16   :  { %v10491_v47 = vadd.f32 %v10490_v53, %v10489_v0  ;;  %v23818_v59 = vpop.f32.mrb[23].mxu1  ;;  %v10440_v24 = vmul.f32 %v23814_v49, %v23792_v2  ;;  %v10496_v0 = vsel %vm10452_vm2, %v10439_v6, 0.0  ;;  %v23854_v23 = vpop.permute.xlu0 %10394 }
 0xb17   :  { %v10492_v7 = vsel %vm10452_vm2, %v10437_v58, 0.0  ;;  %v10438_v60 = vmul.f32 %v23773_v41, %v23818_v59  ;;  %25514 = vst [vmem:[#allocation33_spill] sm:$0xff] %v23854_v23 }
 0xb18   :  { %v10493_v32 = vadd.f32 %v10492_v7, %v10491_v47  ;;  %v10498_v41 = vsel %vm10452_vm2, %v10440_v24, 0.0  ;;  %v23849_v2 = vpop.permute.xlu1 %10389 }
 0xb19   :  { %v10494_v5 = vsel %vm10452_vm2, %v10438_v60, 0.0  ;;  %25513 = vst [vmem:[#allocation32_spill] sm:$0xff] %v23849_v2 }
 0xb1a   :  { %v10495_v61 = vadd.f32 %v10494_v5, %v10493_v32 }
 0xb1b   :  { %v23831_v53 = vpop.f32.mrb[24].mxu1 }
 0xb1c   :  { %25508 = vst [vmem:[#allocation27_spill] sm:$0xff] %v23831_v53  ;;  %v10497_v44 = vadd.f32 %v10496_v0, %v10495_v61  ;;  %v23835_v58 = vpop.f32.mrb[25].mxu1  ;;  %v10443_v6 = vmul.f32 %v23831_v53, %v23816_v35 }
 0xb1d   :  { %25510 = vst [vmem:[#allocation29_spill] sm:$0xff] %v23835_v58  ;;  %v10441_v47 = vmul.f32 %v23799_v29, %v23835_v58  ;;  %v23840_v7 = vpop.f32.mrb[26].mxu1 }
 0xb1e   :  { %25511 = vst [vmem:[#allocation30_spill] sm:$0xff] %v23840_v7  ;;  %v10499_v60 = vadd.f32 %v10498_v41, %v10497_v44  ;;  %v23842_v32 = vpop.f32.mrb[27].mxu1  ;;  %v10444_v24 = vmul.f32 %v23840_v7, %v23828_v57  ;;  %v10504_v44 = vsel %vm10452_vm2, %v10443_v6, 0.0 }
 0xb1f   :  { %25512 = vst [vmem:[#allocation31_spill] sm:$0xff] %v23842_v32  ;;  %v10500_v5 = vsel %vm10452_vm2, %v10441_v47, 0.0  ;;  %v10442_v61 = vmul.f32 %v23809_v40, %v23842_v32 }
 0xb20   :  { %v10501_v0 = vadd.f32 %v10500_v5, %v10499_v60  ;;  %v10506_v40 = vsel %vm10452_vm2, %v10444_v24, 0.0 }
 0xb21   :  { %v10502_v29 = vsel %vm10452_vm2, %v10442_v61, 0.0  ;;  %v23868_v61 = vpop.permute.xlu1 %10399 }
 0xb22   :  { %v10503_v41 = vadd.f32 %v10502_v29, %v10501_v0  ;;  %25519 = vst [vmem:[#allocation38_spill] sm:$0xff] %v23868_v61 }
 0xb23   :  { %v23857_v58 = vpop.f32.mrb[28].mxu1 }
 0xb24   :  { %25515 = vst [vmem:[#allocation34_spill] sm:$0xff] %v23857_v58  ;;  %v10505_v35 = vadd.f32 %v10504_v44, %v10503_v41  ;;  %v23859_v47 = vpop.f32.mrb[29].mxu1  ;;  %v10447_v29 = vmul.f32 %v23857_v58, %v23854_v23  ;;  %v23875_v41 = vpop.permute.xlu0 %10404 }
 0xb25   :  { %25516 = vst [vmem:[#allocation35_spill] sm:$0xff] %v23859_v47  ;;  %v10445_v60 = vmul.f32 %v23833_v34, %v23859_v47  ;;  %v23864_v5 = vpop.f32.mrb[30].mxu1  ;;  %25520 = vst [vmem:[#allocation39_spill] sm:$0xff] %v23875_v41 }
 0xb26   :  { %25517 = vst [vmem:[#allocation36_spill] sm:$0xff] %v23864_v5  ;;  %v10507_v57 = vadd.f32 %v10506_v40, %v10505_v35  ;;  %v23866_v7 = vpop.f32.mrb[31].mxu1  ;;  %v10448_v44 = vmul.f32 %v23864_v5, %v23868_v61  ;;  %v10512_v34 = vsel %vm10452_vm2, %v10447_v29, 0.0 }
 0xb27   :  { %25518 = vst [vmem:[#allocation37_spill] sm:$0xff] %v23866_v7  ;;  %v10508_v6 = vsel %vm10452_vm2, %v10445_v60, 0.0  ;;  %v10446_v0 = vmul.f32 %v23849_v2, %v23866_v7  ;;  %v23885_v60 = vpop.permute.xlu1 %10409 }
 0xb28   :  { %v10509_v24 = vadd.f32 %v10508_v6, %v10507_v57  ;;  %v10514_v2 = vsel %vm10452_vm2, %v10448_v44, 0.0  ;;  %v23890_v58 = vpop.permute.xlu0 %10414 }
 0xb29   :  { %v10510_v40 = vsel %vm10452_vm2, %v10446_v0, 0.0  ;;  %25522 = vst [vmem:[#allocation41_spill] sm:$0xff] %v23890_v58 }
 0xb2a   :  { %v10511_v35 = vadd.f32 %v10510_v40, %v10509_v24 }
 0xb2b   :  { %v23881_v47 = vpop.f32.mrb[32].mxu1 }
 0xb2c   :  { %v10513_v53 = vadd.f32 %v10512_v34, %v10511_v35  ;;  %v23883_v23 = vpop.f32.mrb[33].mxu1  ;;  %v10451_v29 = vmul.f32 %v23881_v47, %v23890_v58 }
 0xb2d   :  { %25521 = vst [vmem:[#allocation40_spill] sm:$0xff] %v23883_v23  ;;  %v10449_v57 = vmul.f32 %v23875_v41, %v23883_v23  ;;  %v18620_v6 = vpop.f32.mrb[34].mxu1 }
 0xb2e   :  { %v10515_v61 = vadd.f32 %v10514_v2, %v10513_v53  ;;  %v23892_v0 = vpop.f32.mrb[35].mxu1  ;;  %v10521_v6 = vsel %vm10520_vm3, %v10451_v29, 0.0 }
 0xb2f   :  { %v10516_v34 = vsel %vm10452_vm2, %v10449_v57, 0.0  ;;  %v10450_v24 = vmul.f32 %v23885_v60, %v23892_v0 }
 0xb30   :  { %v10517_v40 = vadd.f32 %v10516_v34, %v10515_v61 }
 0xb31   :  { %v10518_v44 = vsel %vm10452_vm2, %v10450_v24, 0.0 }
 0xb32   :  { %v10519_v35 = vadd.f32 %v10518_v44, %v10517_v40 }
 0xb34   :  { %v10522_v41 = vadd.f32 %v10521_v6, %v10519_v35 }
 0xb36   :  { %v10523_v23 = vrot.slane %v10522_v41, 4 }
 0xb38   :  { %v10524_v2 = vadd.f32 %v10523_v23, %v10522_v41 }
 0xb3a   :  { %v10525_v53 = vrot.slane %v10524_v2, 2 }
 0xb3c   :  { %v10526_v5 = vadd.f32 %v10525_v53, %v10524_v2 }
 0xb3e   :  { %v10527_v7 = vrot.slane %v10526_v5, 1 }
 0xb40   :  { %v10528_v32 = vadd.f32 %v10527_v7, %v10526_v5 }
 0xb42   :  { %v23901_v58 = vmul.f32 0.010204081, %v10528_v32 }
 0xb44   :  { %v10530_v57 = vsub.f32 %v23684_v16, %v23901_v58  ;;  %v10531_v61 = vsub.f32 %v23690_v17, %v23901_v58  ;;  %v10532_v34 = vsub.f32 %v23680_v3, %v23901_v58  ;;  %v10533_v29 = vsub.f32 %v23688_v21, %v23901_v58 }
 0xb45   :  { %v10534_v41 = vsub.f32 %v23707_v1, %v23901_v58  ;;  %v10535_v32 = vsub.f32 %v23714_v15, %v23901_v58  ;;  %v10536_v35 = vsub.f32 %v23705_v28, %v23901_v58  ;;  %v10537_v53 = vsub.f32 %v23712_v33, %v23901_v58 }
 0xb46   :  { %v10565_v24 = vmul.f32 %v10530_v57, %v10530_v57  ;;  %v10566_v23 = vmul.f32 %v10531_v61, %v10531_v61  ;;  %v10567_v7 = vmul.f32 %v10532_v34, %v10532_v34  ;;  %v10568_v5 = vmul.f32 %v10533_v29, %v10533_v29 }
 0xb47   :  { %v10569_v6 = vmul.f32 %v10534_v41, %v10534_v41  ;;  %v10570_v57 = vmul.f32 %v10535_v32, %v10535_v32  ;;  %v10539_v41 = vsub.f32 %v23742_v22, %v23901_v58 }
 0xb48   :  { %v10600_v40 = vmul.f32 %v10565_v24, %v23656_v14  ;;  %v10601_v44 = vmul.f32 %v10566_v23, %v23660_v9  ;;  %v10602_v2 = vmul.f32 %v10567_v7, %v23658_v46  ;;  %v10603_v61 = vmul.f32 %v10568_v5, %v23662_v25 }
 0xb49   :  { %v10538_v14 = vsub.f32 %v23731_v8, %v23901_v58  ;;  %v10571_v9 = vmul.f32 %v10536_v35, %v10536_v35  ;;  %v10604_v24 = vmul.f32 %v10569_v6, %v23664_v30  ;;  %v10572_v7 = vmul.f32 %v10537_v53, %v10537_v53 }
 0xb4a   :  { %v10635_v34 = vsel %vm10452_vm2, %v10600_v40, 0.0  ;;  %v10636_v29 = vsel %vm10452_vm2, %v10601_v44, 0.0  ;;  %v10638_v23 = vsel %vm10452_vm2, %v10602_v2, 0.0  ;;  %v10605_v25 = vmul.f32 %v10570_v57, %v23666_v63 }
 0xb4b   :  { %v10637_v15 = vadd.f32 %v10636_v29, %v10635_v34  ;;  %v10640_v32 = vsel %vm10452_vm2, %v10603_v61, 0.0  ;;  %v10540_v40 = vsub.f32 %v23729_v39, %v23901_v58  ;;  %v10573_v44 = vmul.f32 %v10538_v14, %v10538_v14 }
 0xb4c   :  { %v10606_v35 = vmul.f32 %v10571_v9, %v23668_v19  ;;  %v10642_v30 = vsel %vm10452_vm2, %v10604_v24, 0.0  ;;  %v10574_v2 = vmul.f32 %v10539_v41, %v10539_v41  ;;  %v10607_v53 = vmul.f32 %v10572_v7, %v23670_v27 }
 0xb4d   :  { %v10639_v46 = vadd.f32 %v10638_v23, %v10637_v15  ;;  %v10541_v15 = vsub.f32 %v23738_v26, %v23901_v58  ;;  %v10644_v63 = vsel %vm10452_vm2, %v10605_v25, 0.0  ;;  %v10542_v61 = vsub.f32 %v23759_v51, %v23901_v58 }
 0xb4e   :  { %v10575_v34 = vmul.f32 %v10540_v40, %v10540_v40  ;;  %v10608_v29 = vmul.f32 %v10573_v44, %v23672_v45  ;;  %v10646_v19 = vsel %vm10452_vm2, %v10606_v35, 0.0  ;;  %v10543_v9 = vsub.f32 %v23766_v43, %v23901_v58 }
 0xb4f   :  { %v10641_v5 = vadd.f32 %v10640_v32, %v10639_v46  ;;  %v10576_v24 = vmul.f32 %v10541_v15, %v10541_v15  ;;  %v10609_v23 = vmul.f32 %v10574_v2, %v23674_v18  ;;  %v10648_v27 = vsel %vm10452_vm2, %v10607_v53, 0.0 }
 0xb50   :  { %v10544_v41 = vsub.f32 %v23755_v37, %v23901_v58  ;;  %v10577_v7 = vmul.f32 %v10542_v61, %v10542_v61  ;;  %v10610_v25 = vmul.f32 %v10575_v34, %v23676_v52  ;;  %v10650_v45 = vsel %vm10452_vm2, %v10608_v29, 0.0 }
 0xb51   :  { %v10643_v6 = vadd.f32 %v10642_v30, %v10641_v5  ;;  %v10545_v5 = vsub.f32 %v23764_v12, %v23901_v58  ;;  %v10578_v40 = vmul.f32 %v10543_v9, %v10543_v9  ;;  %v10611_v44 = vmul.f32 %v10576_v24, %v23678_v38 }
 0xb52   :  { %v10652_v18 = vsel %vm10452_vm2, %v10609_v23, 0.0  ;;  %v10546_v30 = vsub.f32 %v23783_v4, %v23901_v58  ;;  %v10612_v15 = vmul.f32 %v10577_v7, %v23682_v10  ;;  %v10654_v52 = vsel %vm10452_vm2, %v10610_v25, 0.0 }
 0xb53   :  { %v10645_v57 = vadd.f32 %v10644_v63, %v10643_v6  ;;  %v10579_v6 = vmul.f32 %v10544_v41, %v10544_v41  ;;  %v10547_v53 = vsub.f32 %v23790_v42, %v23901_v58  ;;  %v10580_v63 = vmul.f32 %v10545_v5, %v10545_v5 }
 0xb54   :  { %v10656_v38 = vsel %vm10452_vm2, %v10611_v44, 0.0  ;;  %v10548_v34 = vsub.f32 %v23781_v62, %v23901_v58  ;;  %v10581_v29 = vmul.f32 %v10546_v30, %v10546_v30  ;;  %v10658_v10 = vsel %vm10452_vm2, %v10612_v15, 0.0 }
 0xb55   :  { %v10647_v14 = vadd.f32 %v10646_v19, %v10645_v57  ;;  %v10613_v57 = vmul.f32 %v10578_v40, %v23696_v48  ;;  %v10614_v19 = vmul.f32 %v10579_v6, %v23702_v56  ;;  %v10549_v9 = vsub.f32 %v23788_v54, %v23901_v58 }
 0xb56   :  { %v10582_v24 = vmul.f32 %v10547_v53, %v10547_v53  ;;  %v10615_v23 = vmul.f32 %v10580_v63, %v23716_v20  ;;  %v10583_v41 = vmul.f32 %v10548_v34, %v10548_v34  ;;  %v10616_v7 = vmul.f32 %v10581_v29, %v23723_v11  ;;  %v25523_v53 = vld [vmem:[#allocation29_spill] sm:$0xff]  ;;  %v25525_v29 = vld [vmem:[#allocation31_spill] sm:$0xff] }
 0xb57   :  { %v10649_v46 = vadd.f32 %v10648_v27, %v10647_v14  ;;  %v10660_v48 = vsel %vm10452_vm2, %v10613_v57, 0.0  ;;  %v10662_v56 = vsel %vm10452_vm2, %v10614_v19, 0.0  ;;  %v10552_v44 = vsub.f32 %v23805_v50, %v23901_v58 }
 0xb58   :  { %v10617_v5 = vmul.f32 %v10582_v24, %v23733_v13  ;;  %v10664_v20 = vsel %vm10452_vm2, %v10615_v23, 0.0  ;;  %v10666_v11 = vsel %vm10452_vm2, %v10616_v7, 0.0  ;;  %v10553_v6 = vsub.f32 %v23814_v49, %v23901_v58  ;;  %v25527_v23 = vld [vmem:[#allocation27_spill] sm:$0xff] }
 0xb59   :  { %v10651_v32 = vadd.f32 %v10650_v45, %v10649_v46  ;;  %v10550_v46 = vsub.f32 %v23807_v36, %v23901_v58  ;;  %v10551_v45 = vsub.f32 %v23818_v59, %v23901_v58  ;;  %v10554_v63 = vsub.f32 %v25523_v53, %v23901_v58 }
 0xb5a   :  { %v10668_v13 = vsel %vm10452_vm2, %v10617_v5, 0.0  ;;  %v10587_v57 = vmul.f32 %v10552_v44, %v10552_v44  ;;  %v10555_v19 = vsub.f32 %v25525_v29, %v23901_v58  ;;  %v25530_v5 = vld [vmem:[#allocation22_spill] sm:$0xff] }
 0xb5b   :  { %v10653_v35 = vadd.f32 %v10652_v18, %v10651_v32  ;;  %v10584_v32 = vmul.f32 %v10549_v9, %v10549_v9  ;;  %v10585_v18 = vmul.f32 %v10550_v46, %v10550_v46  ;;  %v10586_v15 = vmul.f32 %v10551_v45, %v10551_v45  ;;  %v25528_v46 = vld [vmem:[#allocation21_spill] sm:$0xff] }
 0xb5d   :  { %v10655_v2 = vadd.f32 %v10654_v52, %v10653_v35  ;;  %v10618_v35 = vmul.f32 %v10583_v41, %v23740_v31  ;;  %v10619_v52 = vmul.f32 %v10584_v32, %v23752_v55  ;;  %v10622_v41 = vmul.f32 %v10587_v57, %v25528_v46  ;;  %v25534_v57 = vld [vmem:[#allocation24_spill] sm:$0xff] }
 0xb5e   :  { %v10590_v32 = vmul.f32 %v10555_v19, %v10555_v19 }
 0xb5f   :  { %v10657_v61 = vadd.f32 %v10656_v38, %v10655_v2  ;;  %v25524_v38 = vld [vmem:[#allocation19_spill] sm:$0xff]  ;;  %v10670_v31 = vsel %vm10452_vm2, %v10618_v35, 0.0  ;;  %v10672_v55 = vsel %vm10452_vm2, %v10619_v52, 0.0 }
 0xb61   :  { %v10659_v14 = vadd.f32 %v10658_v10, %v10657_v61  ;;  %v10620_v61 = vmul.f32 %v10585_v18, %v25524_v38  ;;  %v10588_v10 = vmul.f32 %v10553_v6, %v10553_v6  ;;  %v25531_v18 = vld [vmem:[#allocation35_spill] sm:$0xff]  ;;  %v10625_v38 = vmul.f32 %v10590_v32, %v25534_v57  ;;  %v25539_v32 = vld [vmem:[#allocation40_spill] sm:$0xff] }
 0xb62   :  { %v10558_v35 = vsub.f32 %v25531_v18, %v23901_v58  ;;  %v10564_v57 = vsub.f32 %v23881_v47, %v23901_v58 }
 0xb63   :  { %v10661_v27 = vadd.f32 %v10660_v48, %v10659_v14  ;;  %v25526_v14 = vld [vmem:[#allocation20_spill] sm:$0xff]  ;;  %v10556_v48 = vsub.f32 %v25527_v23, %v23901_v58  ;;  %v10674_v7 = vsel %vm10452_vm2, %v10620_v61, 0.0 }
 0xb64   :  { %v10621_v9 = vmul.f32 %v10586_v15, %v25526_v14  ;;  %v10678_v15 = vsel %vm10452_vm2, %v10622_v41, 0.0  ;;  %v25536_v14 = vld [vmem:[#allocation25_spill] sm:$0xff]  ;;  %v25538_v41 = vld [vmem:[#allocation26_spill] sm:$0xff] }
 0xb65   :  { %v10663_v25 = vadd.f32 %v10662_v56, %v10661_v27  ;;  %v10589_v27 = vmul.f32 %v10554_v63, %v10554_v63 }
 0xb67   :  { %v10665_v40 = vadd.f32 %v10664_v20, %v10663_v25  ;;  %v25529_v25 = vld [vmem:[#allocation30_spill] sm:$0xff]  ;;  %v10623_v20 = vmul.f32 %v10588_v10, %v25530_v5  ;;  %v10593_v10 = vmul.f32 %v10558_v35, %v10558_v35  ;;  %v10562_v5 = vsub.f32 %v25539_v32, %v23901_v58 }
 0xb68   :  { %v10557_v45 = vsub.f32 %v25529_v25, %v23901_v58 }
 0xb69   :  { %v10667_v30 = vadd.f32 %v10666_v11, %v10665_v40  ;;  %v10676_v40 = vsel %vm10452_vm2, %v10621_v9, 0.0  ;;  %v10591_v11 = vmul.f32 %v10556_v48, %v10556_v48  ;;  %v10680_v61 = vsel %vm10452_vm2, %v10623_v20, 0.0  ;;  %v25537_v48 = vld [vmem:[#allocation36_spill] sm:$0xff] }
 0xb6a   :  { %v10592_v63 = vmul.f32 %v10557_v45, %v10557_v45 }
 0xb6b   :  { %v10669_v2 = vadd.f32 %v10668_v13, %v10667_v30  ;;  %v25532_v30 = vld [vmem:[#allocation23_spill] sm:$0xff]  ;;  %v25533_v13 = vld [vmem:[#allocation37_spill] sm:$0xff]  ;;  %v10626_v9 = vmul.f32 %v10591_v11, %v25536_v14 }
 0xb6c   :  { %v10624_v6 = vmul.f32 %v10589_v27, %v25532_v30  ;;  %v10561_v27 = vsub.f32 %v25537_v48, %v23901_v58  ;;  %v10563_v30 = vsub.f32 %v23892_v0, %v23901_v58 }
 0xb6d   :  { %v10671_v34 = vadd.f32 %v10670_v31, %v10669_v2  ;;  %v10559_v2 = vsub.f32 %v25533_v13, %v23901_v58  ;;  %v10686_v35 = vsel %vm10452_vm2, %v10626_v9, 0.0  ;;  %v25543_v9 = vld [vmem:[#allocation38_spill] sm:$0xff] }
 0xb6e   :  { %v10598_v14 = vmul.f32 %v10563_v30, %v10563_v30 }
 0xb6f   :  { %v10673_v24 = vadd.f32 %v10672_v55, %v10671_v34  ;;  %v25535_v34 = vld [vmem:[#allocation34_spill] sm:$0xff]  ;;  %v10682_v55 = vsel %vm10452_vm2, %v10624_v6, 0.0  ;;  %v10594_v46 = vmul.f32 %v10559_v2, %v10559_v2  ;;  %v10596_v6 = vmul.f32 %v10561_v27, %v10561_v27 }
 0xb70   :  { %v10560_v19 = vsub.f32 %v25535_v34, %v23901_v58 }
 0xb71   :  { %v10675_v56 = vadd.f32 %v10674_v7, %v10673_v24  ;;  %v10627_v7 = vmul.f32 %v10592_v63, %v25538_v41  ;;  %v10599_v41 = vmul.f32 %v10564_v57, %v10564_v57 }
 0xb72   :  { %v10595_v20 = vmul.f32 %v10560_v19, %v10560_v19 }
 0xb73   :  { %v10677_v44 = vadd.f32 %v10676_v40, %v10675_v56  ;;  %v10684_v56 = vsel %vm10452_vm2, %v10625_v38, 0.0  ;;  %v25540_v40 = vld [vmem:[#allocation28_spill] sm:$0xff]  ;;  %v10688_v2 = vsel %vm10452_vm2, %v10627_v7, 0.0  ;;  %v10597_v38 = vmul.f32 %v10562_v5, %v10562_v5 }
 0xb75   :  { %v10679_v52 = vadd.f32 %v10678_v15, %v10677_v44  ;;  %v10628_v44 = vmul.f32 %v10593_v10, %v25540_v40  ;;  %v25541_v15 = vld [vmem:[#allocation32_spill] sm:$0xff]  ;;  %v10633_v40 = vmul.f32 %v10598_v14, %v23885_v60  ;;  %v10205_v14 = vld [vmem:[%s25173_s8] sm:$0x1] }
 0xb77   :  { %v10681_v31 = vadd.f32 %v10680_v61, %v10679_v52  ;;  %v10629_v52 = vmul.f32 %v10594_v46, %v25541_v15  ;;  %v25542_v61 = vld [vmem:[#allocation33_spill] sm:$0xff]  ;;  %v10690_v19 = vsel %vm10452_vm2, %v10628_v44, 0.0  ;;  %v25544_v46 = vld [vmem:[#allocation39_spill] sm:$0xff] }
 0xb79   :  { %v10683_v24 = vadd.f32 %v10682_v55, %v10681_v31  ;;  %v10630_v31 = vmul.f32 %v10595_v20, %v25542_v61  ;;  %v10631_v55 = vmul.f32 %v10596_v6, %v25543_v9  ;;  %v10700_v6 = vsel %vm10452_vm2, %v10633_v40, 0.0 }
 0xb7b   :  { %v10685_v45 = vadd.f32 %v10684_v56, %v10683_v24  ;;  %v10692_v24 = vsel %vm10452_vm2, %v10629_v52, 0.0  ;;  %v10632_v56 = vmul.f32 %v10597_v38, %v25544_v46  ;;  %v10694_v7 = vsel %vm10452_vm2, %v10630_v31, 0.0 }
 0xb7c   :  { %v10696_v5 = vsel %vm10452_vm2, %v10631_v55, 0.0 }
 0xb7d   :  { %v10687_v11 = vadd.f32 %v10686_v35, %v10685_v45  ;;  %v25545_v35 = vld [vmem:[#allocation41_spill] sm:$0xff] }
 0xb7e   :  { %v10634_v44 = vmul.f32 %v10599_v41, %v25545_v35  ;;  %v25546_v41 = vld [vmem:[#allocation44_spill] sm:$0xff] }
 0xb7f   :  { %v10689_v63 = vadd.f32 %v10688_v2, %v10687_v11  ;;  %v10698_v11 = vsel %vm10452_vm2, %v10632_v56, 0.0 }
 0xb80   :  { %v10702_v52 = vsel %vm10520_vm3, %v10634_v44, 0.0  ;;  %v25547_v44 = vld [vmem:[#allocation18_spill] sm:$0xff] }
 0xb81   :  { %v10691_v10 = vadd.f32 %v10690_v19, %v10689_v63 }
 0xb83   :  { %v10693_v27 = vadd.f32 %v10692_v24, %v10691_v10  ;;  %v10206_v24 = vld [vmem:[%s25174_s9] sm:$0x1] }
 0xb85   :  { %v10695_v45 = vadd.f32 %v10694_v7, %v10693_v27 }
 0xb87   :  { %v10697_v20 = vadd.f32 %v10696_v5, %v10695_v45 }
 0xb89   :  { %v10699_v30 = vadd.f32 %v10698_v11, %v10697_v20 }
 0xb8b   :  { %v10701_v15 = vadd.f32 %v10700_v6, %v10699_v30 }
 0xb8d   :  { %v10703_v2 = vadd.f32 %v10702_v52, %v10701_v15 }
 0xb8f   :  { %v10704_v63 = vrot.slane %v10703_v2, 4 }
 0xb91   :  { %v10705_v57 = vadd.f32 %v10704_v63, %v10703_v2 }
 0xb93   :  { %v10706_v38 = vrot.slane %v10705_v57, 2 }
 0xb95   :  { %v10707_v61 = vadd.f32 %v10706_v38, %v10705_v57 }
 0xb97   :  { %v10708_v31 = vrot.slane %v10707_v61, 1 }
 0xb99   :  { %v10709_v60 = vadd.f32 %v10708_v31, %v10707_v61 }
 0xb9b   :  { %v10710_v19 = vmul.f32 0.010204081, %v10709_v60 }
 0xb9d   :  { %v10711_v10 = vadd.f32 1e-05, %v10710_v19 }
 0xb9f   :  { %21169 = vrsqrt.f32 %v10711_v10 }
 0xba9   :  { %v21170_v9 = vpop.eup %21169 }
 0xbaa   :  { %v10713_v55 = vmul.f32 %v21170_v9, %v10205_v14 }
 0xbac   :  { %v10714_v27 = vmul.f32 %v10713_v55, %v23901_v58  ;;  %v10720_v46 = vrot.slane %v10713_v55, %v25546_v41 }
 0xbae   :  { %v10715_v56 = vsub.f32 %v10206_v24, %v10714_v27  ;;  %v10755_v7 = vmul.f32 %v10720_v46, %v23892_v0  ;;  %v10722_v45 = vmul.f32 %v10720_v46, %v23684_v16  ;;  %v10723_v40 = vmul.f32 %v10720_v46, %v23690_v17 }
 0xbaf   :  { %v10724_v5 = vmul.f32 %v23680_v3, %v10720_v46  ;;  %v10725_v20 = vmul.f32 %v23688_v21, %v10720_v46  ;;  %v10726_v35 = vmul.f32 %v10720_v46, %v23707_v1  ;;  %v10727_v11 = vmul.f32 %v10720_v46, %v25547_v44 }
 0xbb0   :  { %v24059_v30 = vrot.slane %v10715_v56, %v25546_v41  ;;  %v10728_v58 = vmul.f32 %v23705_v28, %v10720_v46  ;;  %v10729_v6 = vmul.f32 %v23712_v33, %v10720_v46  ;;  %v10730_v0 = vmul.f32 %v10720_v46, %v23731_v8 }
 0xbb1   :  { %v10731_v16 = vmul.f32 %v10720_v46, %v23742_v22  ;;  %v10732_v17 = vmul.f32 %v23729_v39, %v10720_v46  ;;  %v10733_v3 = vmul.f32 %v23738_v26, %v10720_v46  ;;  %v10734_v21 = vmul.f32 %v10720_v46, %v23759_v51 }
 0xbb2   :  { %v10796_v1 = vadd.f32 %v24059_v30, %v10755_v7  ;;  %v10735_v15 = vmul.f32 %v10720_v46, %v23766_v43  ;;  %v10736_v52 = vmul.f32 %v23755_v37, %v10720_v46  ;;  %v10737_v28 = vmul.f32 %v23764_v12, %v10720_v46 }
 0xbb3   :  { %v10738_v33 = vmul.f32 %v10720_v46, %v23783_v4  ;;  %v10739_v8 = vmul.f32 %v10720_v46, %v23790_v42  ;;  %v10740_v22 = vmul.f32 %v23781_v62, %v10720_v46  ;;  %v10741_v39 = vmul.f32 %v23788_v54, %v10720_v46 }
 0xbb4   :  { %v10831_v2 = vmax.f32 %v10796_v1, 0.0  ;;  %v10742_v26 = vmul.f32 %v10720_v46, %v23807_v36  ;;  %v10743_v51 = vmul.f32 %v10720_v46, %v23818_v59  ;;  %v10744_v63 = vmul.f32 %v23805_v50, %v10720_v46 }
 0xbb5   :  { %v10745_v43 = vmul.f32 %v23814_v49, %v10720_v46  ;;  %v10746_v37 = vmul.f32 %v10720_v46, %v25523_v53  ;;  %v10747_v12 = vmul.f32 %v10720_v46, %v25525_v29  ;;  %v10748_v4 = vmul.f32 %v25527_v23, %v10720_v46 }
 0xbb6   :  { %10866 = vst.msk [vmem:[#allocation3 + $0x108] sm:$0xff] %vm10452_vm2, %v10831_v2  ;;  %v10749_v62 = vmul.f32 %v25529_v25, %v10720_v46  ;;  %v10750_v54 = vmul.f32 %v10720_v46, %v25531_v18  ;;  %v10751_v42 = vmul.f32 %v10720_v46, %v25533_v13  ;;  %v10752_v36 = vmul.f32 %v25535_v34, %v10720_v46 }
 0xbb7   :  { %v10753_v50 = vmul.f32 %v25537_v48, %v10720_v46  ;;  %v10754_v49 = vmul.f32 %v10720_v46, %v25539_v32  ;;  %v10756_v59 = vmul.f32 %v23881_v47, %v10720_v46  ;;  %v10763_v53 = vadd.f32 %v24059_v30, %v10722_v45 }
 0xbb8   :  { %v10764_v29 = vadd.f32 %v24059_v30, %v10723_v40  ;;  %v10765_v23 = vadd.f32 %v24059_v30, %v10724_v5  ;;  %v10766_v25 = vadd.f32 %v24059_v30, %v10725_v20  ;;  %v10767_v18 = vadd.f32 %v24059_v30, %v10726_v35 }
 0xbb9   :  { %v10768_v13 = vadd.f32 %v24059_v30, %v10727_v11  ;;  %v10769_v34 = vadd.f32 %v24059_v30, %v10728_v58  ;;  %v10770_v48 = vadd.f32 %v24059_v30, %v10729_v6  ;;  %v10771_v32 = vadd.f32 %v24059_v30, %v10730_v0 }
 0xbba   :  { %v10772_v47 = vadd.f32 %v24059_v30, %v10731_v16  ;;  %v10773_v57 = vadd.f32 %v24059_v30, %v10732_v17  ;;  %v10774_v38 = vadd.f32 %v24059_v30, %v10733_v3  ;;  %v10775_v61 = vadd.f32 %v24059_v30, %v10734_v21 }
 0xbbb   :  { %v10776_v31 = vadd.f32 %v24059_v30, %v10735_v15  ;;  %v10777_v60 = vadd.f32 %v24059_v30, %v10736_v52  ;;  %v10778_v19 = vadd.f32 %v24059_v30, %v10737_v28  ;;  %v10779_v10 = vadd.f32 %v24059_v30, %v10738_v33 }
 0xbbc   :  { %v10780_v14 = vadd.f32 %v24059_v30, %v10739_v8  ;;  %v10781_v9 = vadd.f32 %v24059_v30, %v10740_v22  ;;  %v24111_v55 = vadd.f32 %v24059_v30, %v10741_v39  ;;  %v24114_v24 = vadd.f32 %v24059_v30, %v10742_v26 }
 0xbbd   :  { %v24117_v27 = vadd.f32 %v24059_v30, %v10743_v51  ;;  %v24120_v46 = vadd.f32 %v24059_v30, %v10744_v63  ;;  %v24123_v56 = vadd.f32 %v24059_v30, %v10745_v43  ;;  %v24126_v7 = vadd.f32 %v24059_v30, %v10746_v37 }
 0xbbe   :  { %v24129_v45 = vadd.f32 %v24059_v30, %v10747_v12  ;;  %v24132_v40 = vadd.f32 %v24059_v30, %v10748_v4  ;;  %v24135_v5 = vadd.f32 %v24059_v30, %v10749_v62  ;;  %v24138_v20 = vadd.f32 %v24059_v30, %v10750_v54 }
 0xbbf   :  { %v24141_v35 = vadd.f32 %v24059_v30, %v10751_v42  ;;  %v24144_v44 = vadd.f32 %v24059_v30, %v10752_v36  ;;  %v24147_v11 = vadd.f32 %v24059_v30, %v10753_v50  ;;  %v24150_v58 = vadd.f32 %v24059_v30, %v10754_v49 }
 0xbc0   :  { %v24153_v6 = vadd.f32 %v24059_v30, %v10756_v59  ;;  %v10798_v0 = vmax.f32 %v10763_v53, 0.0  ;;  %v10799_v16 = vmax.f32 %v10764_v29, 0.0  ;;  %v10800_v17 = vmax.f32 %v10765_v23, 0.0 }
 0xbc1   :  { %v10801_v3 = vmax.f32 %v10766_v25, 0.0  ;;  %v10802_v21 = vmax.f32 %v10767_v18, 0.0  ;;  %v10803_v1 = vmax.f32 %v10768_v13, 0.0  ;;  %v10804_v15 = vmax.f32 %v10769_v34, 0.0 }
 0xbc2   :  { %v10805_v52 = vmax.f32 %v10770_v48, 0.0  ;;  %v10806_v28 = vmax.f32 %v10771_v32, 0.0  ;;  %v10807_v33 = vmax.f32 %v10772_v47, 0.0  ;;  %v10808_v8 = vmax.f32 %v10773_v57, 0.0  ;;  %10833 = vst.msk [vmem:[#allocation3] sm:$0xff] %vm10452_vm2, %v10798_v0  ;;  %10834 = vst.msk [vmem:[#allocation3 + $0x8] sm:$0xff] %vm10452_vm2, %v10799_v16 }
 0xbc3   :  { %10835 = vst.msk [vmem:[#allocation3 + $0x10] sm:$0xff] %vm10452_vm2, %v10800_v17  ;;  %v10809_v22 = vmax.f32 %v10774_v38, 0.0  ;;  %v10810_v30 = vmax.f32 %v10775_v61, 0.0  ;;  %v10811_v39 = vmax.f32 %v10776_v31, 0.0  ;;  %v10812_v2 = vmax.f32 %v10777_v60, 0.0  ;;  %10836 = vst.msk [vmem:[#allocation3 + $0x18] sm:$0xff] %vm10452_vm2, %v10801_v3 }
 0xbc4   :  { %10837 = vst.msk [vmem:[#allocation3 + $0x20] sm:$0xff] %vm10452_vm2, %v10802_v21  ;;  %10838 = vst.msk [vmem:[#allocation3 + $0x28] sm:$0xff] %vm10452_vm2, %v10803_v1  ;;  %v10813_v26 = vmax.f32 %v10778_v19, 0.0  ;;  %v10814_v51 = vmax.f32 %v10779_v10, 0.0  ;;  %v10815_v63 = vmax.f32 %v10780_v14, 0.0  ;;  %v10816_v43 = vmax.f32 %v10781_v9, 0.0 }
 0xbc5   :  { %10839 = vst.msk [vmem:[#allocation3 + $0x30] sm:$0xff] %vm10452_vm2, %v10804_v15  ;;  %10840 = vst.msk [vmem:[#allocation3 + $0x38] sm:$0xff] %vm10452_vm2, %v10805_v52  ;;  %v10817_v37 = vmax.f32 %v24111_v55, 0.0  ;;  %v10818_v12 = vmax.f32 %v24114_v24, 0.0  ;;  %v10819_v4 = vmax.f32 %v24117_v27, 0.0  ;;  %v10820_v62 = vmax.f32 %v24120_v46, 0.0 }
 0xbc6   :  { %10841 = vst.msk [vmem:[#allocation3 + $0x40] sm:$0xff] %vm10452_vm2, %v10806_v28  ;;  %10842 = vst.msk [vmem:[#allocation3 + $0x48] sm:$0xff] %vm10452_vm2, %v10807_v33  ;;  %v10821_v54 = vmax.f32 %v24123_v56, 0.0  ;;  %v10822_v42 = vmax.f32 %v24126_v7, 0.0  ;;  %v10823_v36 = vmax.f32 %v24129_v45, 0.0  ;;  %v10824_v50 = vmax.f32 %v24132_v40, 0.0 }
 0xbc7   :  { %10843 = vst.msk [vmem:[#allocation3 + $0x50] sm:$0xff] %vm10452_vm2, %v10808_v8  ;;  %10844 = vst.msk [vmem:[#allocation3 + $0x58] sm:$0xff] %vm10452_vm2, %v10809_v22  ;;  %v10825_v49 = vmax.f32 %v24135_v5, 0.0  ;;  %v10826_v59 = vmax.f32 %v24138_v20, 0.0  ;;  %v10827_v53 = vmax.f32 %v24141_v35, 0.0  ;;  %v10828_v29 = vmax.f32 %v24144_v44, 0.0 }
 0xbc8   :  { %10845 = vst.msk [vmem:[#allocation3 + $0x60] sm:$0xff] %vm10452_vm2, %v10810_v30  ;;  %10846 = vst.msk [vmem:[#allocation3 + $0x68] sm:$0xff] %vm10452_vm2, %v10811_v39  ;;  %v10829_v23 = vmax.f32 %v24147_v11, 0.0  ;;  %v10830_v25 = vmax.f32 %v24150_v58, 0.0  ;;  %v10832_v18 = vmax.f32 %v24153_v6, 0.0  ;;  %v21103_v48 = vld [vmem:[%s25168_s3] sm:$0xff]  }
 0xbc9   :  { %10847 = vst.msk [vmem:[#allocation3 + $0x70] sm:$0xff] %vm10452_vm2, %v10812_v2  ;;  %10848 = vst.msk [vmem:[#allocation3 + $0x78] sm:$0xff] %vm10452_vm2, %v10813_v26  ;;  %v10905_v13 = vld [vmem:[#allocation3 + $0x1] ss:$2 sm:$0xff]  ;;  %v25548_v47 = vmov 0.0   ;;  %v21105_v44 = vld [vmem:[%s25168_s3 + $0x20] sm:$0xff]  }
 0xbca   :  { %10849 = vst.msk [vmem:[#allocation3 + $0x80] sm:$0xff] %vm10452_vm2, %v10814_v51  ;;  %10850 = vst.msk [vmem:[#allocation3 + $0x88] sm:$0xff] %vm10452_vm2, %v10815_v63  ;;  %v10907_v34 = vld [vmem:[#allocation3 + $0x11] ss:$2 sm:$0xff]  ;;  %v21104_v57 = vld [vmem:[%s25168_s3 + $0x8] sm:$0xff]  }
 0xbcb   :  { %10851 = vst.msk [vmem:[#allocation3 + $0x90] sm:$0xff] %vm10452_vm2, %v10816_v43  ;;  %10852 = vst.msk [vmem:[#allocation3 + $0x98] sm:$0xff] %vm10452_vm2, %v10817_v37  ;;  %v10930_v32 = vpack.c.bf16 %v10907_v34, %v10905_v13  ;;  %v10909_v38 = vld [vmem:[#allocation3 + $0x21] ss:$2 sm:$0xff]  ;;  %v10868_v20 = vld [vmem:[#allocation3] ss:$2 sm:$0xff] }
 0xbcc   :  { %10853 = vst.msk [vmem:[#allocation3 + $0xa0] sm:$0xff] %vm10452_vm2, %v10818_v12  ;;  %10854 = vst.msk [vmem:[#allocation3 + $0xa8] sm:$0xff] %vm10452_vm2, %v10819_v4  ;;  %v10911_v61 = vld [vmem:[#allocation3 + $0x31] ss:$2 sm:$0xff]  ;;  %v10870_v35 = vld [vmem:[#allocation3 + $0x10] ss:$2 sm:$0xff] }
 0xbcd   :  { %10855 = vst.msk [vmem:[#allocation3 + $0xb0] sm:$0xff] %vm10452_vm2, %v10820_v62  ;;  %10856 = vst.msk [vmem:[#allocation3 + $0xb8] sm:$0xff] %vm10452_vm2, %v10821_v54  ;;  %18626 = vmatmul.mubr.msk.bf16.vlgmr.msra.gmra.mrb[164].mxu0 %vm10452_vm2, %v10930_v32  ;;  %v10931_v31 = vpack.c.bf16 %v10911_v61, %v10909_v38  ;;  %v10913_v60 = vld [vmem:[#allocation3 + $0x41] ss:$2 sm:$0xff]  ;;  %v10893_v11 = vpack.c.bf16 %v10870_v35, %v10868_v20  ;;  %v10872_v6 = vld [vmem:[#allocation3 + $0x20] ss:$2 sm:$0xff] }
 0xbce   :  { %10857 = vst.msk [vmem:[#allocation3 + $0xc0] sm:$0xff] %vm10452_vm2, %v10822_v42  ;;  %10858 = vst.msk [vmem:[#allocation3 + $0xc8] sm:$0xff] %vm10452_vm2, %v10823_v36  ;;  %18654 = vmatpush3.bf16.msra.mxu0 %v21103_v48  ;;  %18629 = vmatprep.mubr.msk.bf16.mxu0 %vm21198_vm0, %v25548_v47  ;;  %v10915_v19 = vld [vmem:[#allocation3 + $0x51] ss:$2 sm:$0xff]  ;;  %v21106_v58 = vld [vmem:[%s25168_s3 + $0x28] sm:$0xff]  }
 0xbcf   :  { %10859 = vst.msk [vmem:[#allocation3 + $0xd0] sm:$0xff] %vm10452_vm2, %v10824_v50  ;;  %10860 = vst.msk [vmem:[#allocation3 + $0xd8] sm:$0xff] %vm10452_vm2, %v10825_v49  ;;  %18655 = vmatprep.subr.bf16.mxu0 %v25548_v47  ;;  %v10932_v10 = vpack.c.bf16 %v10915_v19, %v10913_v60  ;;  %v10917_v14 = vld [vmem:[#allocation3 + $0x61] ss:$2 sm:$0xff]  ;;  %v10874_v0 = vld [vmem:[#allocation3 + $0x30] ss:$2 sm:$0xff] }
 0xbd0   :  { %10861 = vst.msk [vmem:[#allocation3 + $0xe0] sm:$0xff] %vm10452_vm2, %v10826_v59  ;;  %10862 = vst.msk [vmem:[#allocation3 + $0xe8] sm:$0xff] %vm10452_vm2, %v10827_v53  ;;  %v10919_v9 = vld [vmem:[#allocation3 + $0x71] ss:$2 sm:$0xff]  ;;  %v10894_v16 = vpack.c.bf16 %v10874_v0, %v10872_v6  ;;  %v10876_v17 = vld [vmem:[#allocation3 + $0x40] ss:$2 sm:$0xff] }
 0xbd1   :  { %10863 = vst.msk [vmem:[#allocation3 + $0xf0] sm:$0xff] %vm10452_vm2, %v10828_v29  ;;  %10864 = vst.msk [vmem:[#allocation3 + $0xf8] sm:$0xff] %vm10452_vm2, %v10829_v23  ;;  %v10933_v55 = vpack.c.bf16 %v10919_v9, %v10917_v14  ;;  %v10921_v24 = vld [vmem:[#allocation3 + $0x81] ss:$2 sm:$0xff]  ;;  %v10878_v3 = vld [vmem:[#allocation3 + $0x50] ss:$2 sm:$0xff] }
 0xbd2   :  { %10865 = vst.msk [vmem:[#allocation3 + $0x100] sm:$0xff] %vm10452_vm2, %v10830_v25  ;;  %18656 = vmatpush3.bf16.msra.mxu0 %v21104_v57  ;;  %v10923_v27 = vld [vmem:[#allocation3 + $0x91] ss:$2 sm:$0xff]  ;;  %v10895_v21 = vpack.c.bf16 %v10878_v3, %v10876_v17  ;;  %v10880_v1 = vld [vmem:[#allocation3 + $0x60] ss:$2 sm:$0xff] }
 0xbd3   :  { %10867 = vst.msk [vmem:[#allocation3 + $0x110] sm:$0x1f] %vm10520_vm3, %v10832_v18  ;;  %18685 = vmatprep.subr.bf16.mxu0 %v25548_v47  ;;  %v10934_v46 = vpack.c.bf16 %v10923_v27, %v10921_v24  ;;  %v10925_v56 = vld [vmem:[#allocation3 + $0xa1] ss:$2 sm:$0xff]  ;;  %v10882_v15 = vld [vmem:[#allocation3 + $0x70] ss:$2 sm:$0xff] }
 0xbd4   :  { %v10927_v7 = vld [vmem:[#allocation3 + $0xb1] ss:$2 sm:$0xff]  ;;  %v10896_v52 = vpack.c.bf16 %v10882_v15, %v10880_v1  ;;  %v10884_v28 = vld [vmem:[#allocation3 + $0x80] ss:$2 sm:$0xff]  ;;  %v10886_v33 = vld [vmem:[#allocation3 + $0x90] ss:$2 sm:$0xff] }
 0xbd5   :  { %18630 = vmatmul.mubr.msk.bf16.gmra.mrb[168].mxu0 %vm10452_vm2, %v10931_v31  ;;  %v10935_v45 = vpack.c.bf16 %v10927_v7, %v10925_v56  ;;  %v10929_v40 = vld [vmem:[#allocation3 + $0xc1] ss:$2 sm:$0x1f]  ;;  %v10897_v8 = vpack.c.bf16 %v10886_v33, %v10884_v28  ;;  %v10888_v22 = vld [vmem:[#allocation3 + $0xa0] ss:$2 sm:$0xff]  ;;  %v21108_v12 = vld [vmem:[%s25168_s3 + $0x38] sm:$0xff]  }
 0xbd6   :  { %18633 = vmatprep.mubr.msk.bf16.mxu0 %vm21198_vm0, %v25548_v47  ;;  %v10936_v5 = vpack.c.bf16 %v10929_v40, %v10929_v40  ;;  %v10890_v30 = vld [vmem:[#allocation3 + $0xb0] ss:$2 sm:$0xff]  ;;  %v10892_v2 = vld [vmem:[#allocation3 + $0xc0] ss:$2 sm:$0x1f] }
 0xbd7   :  { %v10898_v39 = vpack.c.bf16 %v10890_v30, %v10888_v22  ;;  %v10899_v26 = vpack.c.bf16 %v10892_v2, %v10892_v2  ;;  %v11185_v51 = vld [vmem:[#allocation3 + $0x2] ss:$2 sm:$0xff]  ;;  %v11187_v63 = vld [vmem:[#allocation3 + $0x12] ss:$2 sm:$0xff]  ;;  %v11357_v57 = vld [vmem:[#allocation3 + $0x3] ss:$2 sm:$0xff] }
 0xbd8   :  { %v21107_v43 = vld [vmem:[%s25168_s3 + $0x30] sm:$0xff]   ;;  %v11210_v37 = vpack.c.bf16 %v11187_v63, %v11185_v51  ;;  %v11191_v62 = vld [vmem:[#allocation3 + $0x32] ss:$2 sm:$0xff]  ;;  %v11359_v38 = vld [vmem:[#allocation3 + $0x13] ss:$2 sm:$0xff] }
 0xbd9   :  { %v11189_v4 = vld [vmem:[#allocation3 + $0x22] ss:$2 sm:$0xff]  ;;  %v11195_v36 = vld [vmem:[#allocation3 + $0x52] ss:$2 sm:$0xff]  ;;  %v11382_v31 = vpack.c.bf16 %v11359_v38, %v11357_v57  ;;  %v11361_v19 = vld [vmem:[#allocation3 + $0x23] ss:$2 sm:$0xff] }
 0xbda   :  { %v11211_v54 = vpack.c.bf16 %v11191_v62, %v11189_v4  ;;  %v11193_v42 = vld [vmem:[#allocation3 + $0x42] ss:$2 sm:$0xff]  ;;  %v11199_v59 = vld [vmem:[#allocation3 + $0x72] ss:$2 sm:$0xff]  ;;  %v11365_v9 = vld [vmem:[#allocation3 + $0x43] ss:$2 sm:$0xff] }
 0xbdb   :  { %v11212_v50 = vpack.c.bf16 %v11195_v36, %v11193_v42  ;;  %v11197_v49 = vld [vmem:[#allocation3 + $0x62] ss:$2 sm:$0xff]  ;;  %v11203_v23 = vld [vmem:[#allocation3 + $0x92] ss:$2 sm:$0xff]  ;;  %v11369_v27 = vld [vmem:[#allocation3 + $0x63] ss:$2 sm:$0xff] }
 0xbdc   :  { %v11213_v53 = vpack.c.bf16 %v11199_v59, %v11197_v49  ;;  %v11201_v29 = vld [vmem:[#allocation3 + $0x82] ss:$2 sm:$0xff]  ;;  %v11207_v13 = vld [vmem:[#allocation3 + $0xb2] ss:$2 sm:$0xff]  ;;  %v11373_v7 = vld [vmem:[#allocation3 + $0x83] ss:$2 sm:$0xff] }
 0xbdd   :  { %18634 = vmatmul.mubr.msk.bf16.gmra.mrb[172].mxu0 %vm10452_vm2, %v10932_v10  ;;  %v11214_v25 = vpack.c.bf16 %v11203_v23, %v11201_v29  ;;  %v11205_v18 = vld [vmem:[#allocation3 + $0xa2] ss:$2 sm:$0xff]  ;;  %v21109_v61 = vld [vmem:[%s25168_s3 + $0x40] sm:$0xff]  }
 0xbde   :  { %18637 = vmatprep.mubr.msk.bf16.mxu0 %vm21198_vm0, %v25548_v47  ;;  %v11215_v34 = vpack.c.bf16 %v11207_v13, %v11205_v18  ;;  %v11209_v48 = vld [vmem:[#allocation3 + $0xc2] ss:$2 sm:$0x1f]  ;;  %v11363_v10 = vld [vmem:[#allocation3 + $0x33] ss:$2 sm:$0xff] }
 0xbdf   :  { %v11216_v32 = vpack.c.bf16 %v11209_v48, %v11209_v48  ;;  %v21110_v60 = vld [vmem:[%s25168_s3 + $0x48] sm:$0xff]   ;;  %v11383_v14 = vpack.c.bf16 %v11363_v10, %v11361_v19  ;;  %v21111_v0 = vld [vmem:[%s25168_s3 + $0x50] sm:$0xff]   ;;  %v21112_v17 = vld [vmem:[%s25168_s3 + $0x58] sm:$0xff]  }
 0xbe0   :  { %v11379_v20 = vld [vmem:[#allocation3 + $0xb3] ss:$2 sm:$0xff]  ;;  %v11531_v6 = vld [vmem:[#allocation3 + $0x14] ss:$2 sm:$0xff]  ;;  %v11533_v3 = vld [vmem:[#allocation3 + $0x24] ss:$2 sm:$0xff] }
 0xbe1   :  { %v11537_v15 = vld [vmem:[#allocation3 + $0x44] ss:$2 sm:$0xff]  ;;  %v11551_v51 = vld [vmem:[#allocation3 + $0xb4] ss:$2 sm:$0xff]  ;;  %v11861_v19 = vld [vmem:[#allocation3 + $0x23] ss:$2 sm:$0xff] }
 0xbe2   :  { %v11541_v33 = vld [vmem:[#allocation3 + $0x64] ss:$2 sm:$0xff]  ;;  %v21113_v62 = vld [vmem:[%s25168_s3 + $0x60] sm:$0xff]  }
 0xbe3   :  { %v11545_v30 = vld [vmem:[#allocation3 + $0x84] ss:$2 sm:$0xff] }
 0xbe4   :  { %v11701_v4 = vld [vmem:[#allocation3 + $0x22] ss:$2 sm:$0xff]  ;;  %v11702_v36 = vld [vmem:[#allocation3 + $0x32] ss:$2 sm:$0xff] }
 0xbe5   :  { %18638 = vmatmul.mubr.msk.bf16.gmra.mrb[176].mxu0 %vm10452_vm2, %v10933_v55  ;;  %v11367_v55 = vld [vmem:[#allocation3 + $0x53] ss:$2 sm:$0xff]  ;;  %v11704_v59 = vld [vmem:[#allocation3 + $0x52] ss:$2 sm:$0xff]  ;;  %v11711_v57 = vld [vmem:[#allocation3 + $0xc2] ss:$2 sm:$0xff] }
 0xbe6   :  { %18641 = vmatprep.mubr.msk.bf16.mxu0 %vm21198_vm0, %v25548_v47  ;;  %v11384_v24 = vpack.c.bf16 %v11367_v55, %v11365_v9  ;;  %v21114_v42 = vld [vmem:[%s25168_s3 + $0x68] sm:$0xff]   ;;  %v21115_v10 = vld [vmem:[%s25168_s3 + $0x70] sm:$0xff]   ;;  %v21116_v9 = vld [vmem:[%s25168_s3 + $0x78] sm:$0xff]  }
 0xbe7   :  { %v11706_v23 = vld [vmem:[#allocation3 + $0x72] ss:$2 sm:$0xff]  ;;  %v11862_v55 = vld [vmem:[#allocation3 + $0x33] ss:$2 sm:$0xff] }
 0xbe8   :  { %v11708_v13 = vld [vmem:[#allocation3 + $0x92] ss:$2 sm:$0xff] }
 0xbed   :  { %18642 = vmatmul.mubr.msk.bf16.gmra.mrb[180].mxu0 %vm10452_vm2, %v10934_v46  ;;  %v11371_v46 = vld [vmem:[#allocation3 + $0x73] ss:$2 sm:$0xff] }
 0xbee   :  { %18645 = vmatprep.mubr.msk.bf16.mxu0 %vm21198_vm0, %v25548_v47  ;;  %v11385_v56 = vpack.c.bf16 %v11371_v46, %v11369_v27  ;;  %v11864_v46 = vld [vmem:[#allocation3 + $0x53] ss:$2 sm:$0xff] }
 0xbf5   :  { %18646 = vmatmul.mubr.msk.bf16.gmra.mrb[184].mxu0 %vm10452_vm2, %v10935_v45  ;;  %v11375_v45 = vld [vmem:[#allocation3 + $0x93] ss:$2 sm:$0xff] }
 0xbf6   :  { %18649 = vmatprep.mubr.msk.bf16.mxu0 %vm21198_vm0, %v25548_v47  ;;  %v11386_v40 = vpack.c.bf16 %v11375_v45, %v11373_v7  ;;  %v11866_v45 = vld [vmem:[#allocation3 + $0x73] ss:$2 sm:$0xff] }
 0xbfd   :  { %18650 = vmatmul.mubr.msk.bf16.gmra.mrb[188].mxu0 %vm10452_vm2, %v10936_v5  ;;  %v11377_v5 = vld [vmem:[#allocation3 + $0xa3] ss:$2 sm:$0xff] }
 0xbfe   :  { %18657 = vmatprep.mubr.msk.bf16.mxu0 %vm21198_vm0, %v25548_v47  ;;  %v11387_v35 = vpack.c.bf16 %v11379_v20, %v11377_v5  ;;  %v11868_v20 = vld [vmem:[#allocation3 + $0x93] ss:$2 sm:$0xff] }
 0xc05   :  { %18658 = vmatmul.mubr.msk.bf16.vlgmr.msra.gmra.mrb[164].mxu0 %vm10452_vm2, %v10893_v11 }
 0xc06   :  { %18686 = vmatpush3.bf16.msra.mxu0 %v21105_v44  ;;  %18661 = vmatprep.mubr.msk.bf16.mxu0 %vm21198_vm0, %v25548_v47  ;;  %v11381_v44 = vld [vmem:[#allocation3 + $0xc3] ss:$2 sm:$0x1f] }
 0xc07   :  { %18687 = vmatprep.subr.bf16.mxu0 %v25548_v47  ;;  %v11388_v11 = vpack.c.bf16 %v11381_v44, %v11381_v44 }
 0xc0a   :  { %18688 = vmatpush3.bf16.msra.mxu0 %v21106_v58  ;;  %v11529_v58 = vld [vmem:[#allocation3 + $0x4] ss:$2 sm:$0xff] }
 0xc0b   :  { %18717 = vmatprep.subr.bf16.mxu0 %v25548_v47 }
 0xc0d   :  { %18662 = vmatmul.mubr.msk.bf16.gmra.mrb[168].mxu0 %vm10452_vm2, %v10894_v16  ;;  %v11554_v16 = vpack.c.bf16 %v11531_v6, %v11529_v58  ;;  %v11871_v58 = vld [vmem:[#allocation3 + $0xc3] ss:$2 sm:$0xff] }
 0xc0e   :  { %18665 = vmatprep.mubr.msk.bf16.mxu0 %vm21198_vm0, %v25548_v47 }
 0xc15   :  { %18666 = vmatmul.mubr.msk.bf16.gmra.mrb[172].mxu0 %vm10452_vm2, %v10895_v21  ;;  %v11535_v21 = vld [vmem:[#allocation3 + $0x34] ss:$2 sm:$0xff] }
 0xc16   :  { %18669 = vmatprep.mubr.msk.bf16.mxu0 %vm21198_vm0, %v25548_v47  ;;  %v11555_v1 = vpack.c.bf16 %v11535_v21, %v11533_v3  ;;  %v12021_v3 = vld [vmem:[#allocation3 + $0x24] ss:$2 sm:$0xff]  ;;  %v21117_v21 = vld [vmem:[%s25168_s3 + $0x80] sm:$0xff]  }
 0xc1d   :  { %18670 = vmatmul.mubr.msk.bf16.gmra.mrb[176].mxu0 %vm10452_vm2, %v10896_v52  ;;  %v11539_v52 = vld [vmem:[#allocation3 + $0x54] ss:$2 sm:$0xff] }
 0xc1e   :  { %18673 = vmatprep.mubr.msk.bf16.mxu0 %vm21198_vm0, %v25548_v47  ;;  %v11556_v28 = vpack.c.bf16 %v11539_v52, %v11537_v15  ;;  %v21118_v15 = vld [vmem:[%s25168_s3 + $0x88] sm:$0xff]  }
 0xc1f   :  { %v12022_v52 = vld [vmem:[#allocation3 + $0x34] ss:$2 sm:$0xff] }
 0xc25   :  { %18674 = vmatmul.mubr.msk.bf16.gmra.mrb[180].mxu0 %vm10452_vm2, %v10897_v8  ;;  %v11543_v8 = vld [vmem:[#allocation3 + $0x74] ss:$2 sm:$0xff] }
 0xc26   :  { %18677 = vmatprep.mubr.msk.bf16.mxu0 %vm21198_vm0, %v25548_v47  ;;  %v11557_v22 = vpack.c.bf16 %v11543_v8, %v11541_v33  ;;  %v12024_v8 = vld [vmem:[#allocation3 + $0x54] ss:$2 sm:$0xff] }
 0xc2d   :  { %18678 = vmatmul.mubr.msk.bf16.gmra.mrb[184].mxu0 %vm10452_vm2, %v10898_v39  ;;  %v11547_v39 = vld [vmem:[#allocation3 + $0x94] ss:$2 sm:$0xff] }
 0xc2e   :  { %18681 = vmatprep.mubr.msk.bf16.mxu0 %vm21198_vm0, %v25548_v47  ;;  %v11558_v2 = vpack.c.bf16 %v11547_v39, %v11545_v30  ;;  %v12026_v39 = vld [vmem:[#allocation3 + $0x74] ss:$2 sm:$0xff] }
 0xc35   :  { %18682 = vmatmul.mubr.msk.bf16.gmra.mrb[188].mxu0 %vm10452_vm2, %v10899_v26  ;;  %v11549_v26 = vld [vmem:[#allocation3 + $0xa4] ss:$2 sm:$0xff] }
 0xc36   :  { %18689 = vmatprep.mubr.msk.bf16.mxu0 %vm21198_vm0, %v25548_v47  ;;  %v11559_v63 = vpack.c.bf16 %v11551_v51, %v11549_v26  ;;  %v12028_v51 = vld [vmem:[#allocation3 + $0x94] ss:$2 sm:$0xff] }
 0xc3d   :  { %18690 = vmatmul.mubr.msk.bf16.vlgmr.msra.gmra.mrb[164].mxu0 %vm10452_vm2, %v11210_v37 }
 0xc3e   :  { %18718 = vmatpush3.bf16.msra.mxu0 %v21107_v43  ;;  %18693 = vmatprep.mubr.msk.bf16.mxu0 %vm21198_vm0, %v25548_v47  ;;  %v11553_v43 = vld [vmem:[#allocation3 + $0xc4] ss:$2 sm:$0x1f] }
 0xc3f   :  { %18719 = vmatprep.subr.bf16.mxu0 %v25548_v47  ;;  %v11560_v37 = vpack.c.bf16 %v11553_v43, %v11553_v43 }
 0xc42   :  { %18720 = vmatpush3.bf16.msra.mxu0 %v21108_v12  ;;  %v11700_v12 = vld [vmem:[#allocation3 + $0x12] ss:$2 sm:$0xff] }
 0xc43   :  { %18749 = vmatprep.subr.bf16.mxu0 %v25548_v47 }
 0xc45   :  { %18694 = vmatmul.mubr.msk.bf16.gmra.mrb[168].mxu0 %vm10452_vm2, %v11211_v54  ;;  %v11714_v54 = vpack.c.bf16 %v11701_v4, %v11700_v12  ;;  %v12031_v12 = vld [vmem:[#allocation3 + $0xc4] ss:$2 sm:$0xff] }
 0xc46   :  { %18697 = vmatprep.mubr.msk.bf16.mxu0 %vm21198_vm0, %v25548_v47 }
 0xc4d   :  { %18698 = vmatmul.mubr.msk.bf16.gmra.mrb[172].mxu0 %vm10452_vm2, %v11212_v50  ;;  %v11703_v50 = vld [vmem:[#allocation3 + $0x42] ss:$2 sm:$0xff] }
 0xc4e   :  { %18701 = vmatprep.mubr.msk.bf16.mxu0 %vm21198_vm0, %v25548_v47  ;;  %v11715_v49 = vpack.c.bf16 %v11703_v50, %v11702_v36  ;;  %v12183_v36 = vld [vmem:[#allocation3 + $0x25] ss:$2 sm:$0xff] }
 0xc4f   :  { %v21119_v50 = vld [vmem:[%s25168_s3 + $0x90] sm:$0xff]  }
 0xc55   :  { %18702 = vmatmul.mubr.msk.bf16.gmra.mrb[176].mxu0 %vm10452_vm2, %v11213_v53  ;;  %v11705_v53 = vld [vmem:[#allocation3 + $0x62] ss:$2 sm:$0xff] }
 0xc56   :  { %18705 = vmatprep.mubr.msk.bf16.mxu0 %vm21198_vm0, %v25548_v47  ;;  %v11716_v29 = vpack.c.bf16 %v11705_v53, %v11704_v59  ;;  %v21120_v59 = vld [vmem:[%s25168_s3 + $0x98] sm:$0xff]  }
 0xc57   :  { %v12185_v53 = vld [vmem:[#allocation3 + $0x35] ss:$2 sm:$0xff] }
 0xc5d   :  { %18706 = vmatmul.mubr.msk.bf16.gmra.mrb[180].mxu0 %vm10452_vm2, %v11214_v25  ;;  %v11707_v25 = vld [vmem:[#allocation3 + $0x82] ss:$2 sm:$0xff] }
 0xc5e   :  { %18709 = vmatprep.mubr.msk.bf16.mxu0 %vm21198_vm0, %v25548_v47  ;;  %v11717_v18 = vpack.c.bf16 %v11707_v25, %v11706_v23  ;;  %v12189_v25 = vld [vmem:[#allocation3 + $0x55] ss:$2 sm:$0xff] }
 0xc65   :  { %18710 = vmatmul.mubr.msk.bf16.gmra.mrb[184].mxu0 %vm10452_vm2, %v11215_v34  ;;  %v11709_v34 = vld [vmem:[#allocation3 + $0xa2] ss:$2 sm:$0xff] }
 0xc66   :  { %18713 = vmatprep.mubr.msk.bf16.mxu0 %vm21198_vm0, %v25548_v47  ;;  %v11718_v48 = vpack.c.bf16 %v11709_v34, %v11708_v13  ;;  %v12193_v34 = vld [vmem:[#allocation3 + $0x75] ss:$2 sm:$0xff] }
 0xc6d   :  { %18714 = vmatmul.mubr.msk.bf16.gmra.mrb[188].mxu0 %vm10452_vm2, %v11216_v32  ;;  %v11710_v32 = vld [vmem:[#allocation3 + $0xb2] ss:$2 sm:$0xff] }
 0xc6e   :  { %18721 = vmatprep.mubr.msk.bf16.mxu0 %vm21198_vm0, %v25548_v47  ;;  %v11719_v38 = vpack.c.bf16 %v11711_v57, %v11710_v32  ;;  %v12197_v57 = vld [vmem:[#allocation3 + $0x95] ss:$2 sm:$0xff] }
 0xc75   :  { %18722 = vmatmul.mubr.msk.bf16.vlgmr.msra.gmra.mrb[164].mxu0 %vm10452_vm2, %v11382_v31 }
 0xc76   :  { %18750 = vmatpush3.bf16.msra.mxu0 %v21109_v61  ;;  %18725 = vmatprep.mubr.msk.bf16.mxu0 %vm21198_vm0, %v25548_v47  ;;  %v11713_v61 = vld [vmem:[#allocation3 + $0xd2] ss:$2 sm:$0x1f] }
 0xc77   :  { %18751 = vmatprep.subr.bf16.mxu0 %v25548_v47  ;;  %v11720_v31 = vpack.c.bf16 %v11713_v61, %v11713_v61 }
 0xc7a   :  { %18752 = vmatpush3.bf16.msra.mxu0 %v21110_v60  ;;  %v11860_v60 = vld [vmem:[#allocation3 + $0x13] ss:$2 sm:$0xff] }
 0xc7b   :  { %18781 = vmatprep.subr.bf16.mxu0 %v25548_v47 }
 0xc7d   :  { %18726 = vmatmul.mubr.msk.bf16.gmra.mrb[168].mxu0 %vm10452_vm2, %v11383_v14  ;;  %v11874_v14 = vpack.c.bf16 %v11861_v19, %v11860_v60  ;;  %v12203_v60 = vld [vmem:[#allocation3 + $0xc5] ss:$2 sm:$0xff] }
 0xc7e   :  { %18729 = vmatprep.mubr.msk.bf16.mxu0 %vm21198_vm0, %v25548_v47 }
 0xc85   :  { %18730 = vmatmul.mubr.msk.bf16.gmra.mrb[172].mxu0 %vm10452_vm2, %v11384_v24  ;;  %v11863_v24 = vld [vmem:[#allocation3 + $0x43] ss:$2 sm:$0xff] }
 0xc86   :  { %18733 = vmatprep.mubr.msk.bf16.mxu0 %vm21198_vm0, %v25548_v47  ;;  %v11875_v27 = vpack.c.bf16 %v11863_v24, %v11862_v55  ;;  %v12355_v55 = vld [vmem:[#allocation3 + $0x26] ss:$2 sm:$0xff]  ;;  %v21121_v24 = vld [vmem:[%s25168_s3 + $0xa0] sm:$0xff]  }
 0xc8d   :  { %18734 = vmatmul.mubr.msk.bf16.gmra.mrb[176].mxu0 %vm10452_vm2, %v11385_v56  ;;  %v11865_v56 = vld [vmem:[#allocation3 + $0x63] ss:$2 sm:$0xff] }
 0xc8e   :  { %18737 = vmatprep.mubr.msk.bf16.mxu0 %vm21198_vm0, %v25548_v47  ;;  %v11876_v7 = vpack.c.bf16 %v11865_v56, %v11864_v46  ;;  %v21122_v46 = vld [vmem:[%s25168_s3 + $0xa8] sm:$0xff]  }
 0xc8f   :  { %v12357_v56 = vld [vmem:[#allocation3 + $0x36] ss:$2 sm:$0xff] }
 0xc95   :  { %18738 = vmatmul.mubr.msk.bf16.gmra.mrb[180].mxu0 %vm10452_vm2, %v11386_v40  ;;  %v11867_v40 = vld [vmem:[#allocation3 + $0x83] ss:$2 sm:$0xff] }
 0xc96   :  { %18741 = vmatprep.mubr.msk.bf16.mxu0 %vm21198_vm0, %v25548_v47  ;;  %v11877_v5 = vpack.c.bf16 %v11867_v40, %v11866_v45  ;;  %v12361_v40 = vld [vmem:[#allocation3 + $0x56] ss:$2 sm:$0xff] }
 0xc9d   :  { %18742 = vmatmul.mubr.msk.bf16.gmra.mrb[184].mxu0 %vm10452_vm2, %v11387_v35  ;;  %v11869_v35 = vld [vmem:[#allocation3 + $0xa3] ss:$2 sm:$0xff] }
 0xc9e   :  { %18745 = vmatprep.mubr.msk.bf16.mxu0 %vm21198_vm0, %v25548_v47  ;;  %v11878_v44 = vpack.c.bf16 %v11869_v35, %v11868_v20  ;;  %v12365_v35 = vld [vmem:[#allocation3 + $0x76] ss:$2 sm:$0xff] }
 0xca5   :  { %18746 = vmatmul.mubr.msk.bf16.gmra.mrb[188].mxu0 %vm10452_vm2, %v11388_v11  ;;  %v11870_v11 = vld [vmem:[#allocation3 + $0xb3] ss:$2 sm:$0xff] }
 0xca6   :  { %18753 = vmatprep.mubr.msk.bf16.mxu0 %vm21198_vm0, %v25548_v47  ;;  %v11879_v6 = vpack.c.bf16 %v11871_v58, %v11870_v11  ;;  %v12369_v58 = vld [vmem:[#allocation3 + $0x96] ss:$2 sm:$0xff] }
 0xcad   :  { %18754 = vmatmul.mubr.msk.bf16.vlgmr.msra.gmra.mrb[164].mxu0 %vm10452_vm2, %v11554_v16 }
 0xcae   :  { %18782 = vmatpush3.bf16.msra.mxu0 %v21111_v0  ;;  %18757 = vmatprep.mubr.msk.bf16.mxu0 %vm21198_vm0, %v25548_v47  ;;  %v11873_v0 = vld [vmem:[#allocation3 + $0xd3] ss:$2 sm:$0x1f] }
 0xcaf   :  { %18783 = vmatprep.subr.bf16.mxu0 %v25548_v47  ;;  %v11880_v16 = vpack.c.bf16 %v11873_v0, %v11873_v0 }
 0xcb2   :  { %18784 = vmatpush3.bf16.msra.mxu0 %v21112_v17  ;;  %v12020_v17 = vld [vmem:[#allocation3 + $0x14] ss:$2 sm:$0xff] }
 0xcb3   :  { %18813 = vmatprep.subr.bf16.mxu0 %v25548_v47 }
 0xcb5   :  { %18758 = vmatmul.mubr.msk.bf16.gmra.mrb[168].mxu0 %vm10452_vm2, %v11555_v1  ;;  %v12034_v1 = vpack.c.bf16 %v12021_v3, %v12020_v17  ;;  %v12375_v17 = vld [vmem:[#allocation3 + $0xc6] ss:$2 sm:$0xff] }
 0xcb6   :  { %18761 = vmatprep.mubr.msk.bf16.mxu0 %vm21198_vm0, %v25548_v47 }
 0xcbd   :  { %18762 = vmatmul.mubr.msk.bf16.gmra.mrb[172].mxu0 %vm10452_vm2, %v11556_v28  ;;  %v12023_v28 = vld [vmem:[#allocation3 + $0x44] ss:$2 sm:$0xff] }
 0xcbe   :  { %18765 = vmatprep.mubr.msk.bf16.mxu0 %vm21198_vm0, %v25548_v47  ;;  %v12035_v33 = vpack.c.bf16 %v12023_v28, %v12022_v52  ;;  %v12525_v52 = vld [vmem:[#allocation3 + $0x34] ss:$2 sm:$0xff]  ;;  %v21123_v28 = vld [vmem:[%s25168_s3 + $0xb0] sm:$0xff]  }
 0xcc5   :  { %18766 = vmatmul.mubr.msk.bf16.gmra.mrb[176].mxu0 %vm10452_vm2, %v11557_v22  ;;  %v12025_v22 = vld [vmem:[#allocation3 + $0x64] ss:$2 sm:$0xff] }
 0xcc6   :  { %18769 = vmatprep.mubr.msk.bf16.mxu0 %vm21198_vm0, %v25548_v47  ;;  %v12036_v30 = vpack.c.bf16 %v12025_v22, %v12024_v8  ;;  %v21124_v8 = vld [vmem:[%s25168_s3 + $0xb8] sm:$0xff]  }
 0xcc7   :  { %v12526_v22 = vld [vmem:[#allocation3 + $0x44] ss:$2 sm:$0xff] }
 0xccd   :  { %18770 = vmatmul.mubr.msk.bf16.gmra.mrb[180].mxu0 %vm10452_vm2, %v11558_v2  ;;  %v12027_v2 = vld [vmem:[#allocation3 + $0x84] ss:$2 sm:$0xff] }
 0xcce   :  { %18773 = vmatprep.mubr.msk.bf16.mxu0 %vm21198_vm0, %v25548_v47  ;;  %v12037_v26 = vpack.c.bf16 %v12027_v2, %v12026_v39  ;;  %v12528_v2 = vld [vmem:[#allocation3 + $0x64] ss:$2 sm:$0xff] }
 0xcd5   :  { %18774 = vmatmul.mubr.msk.bf16.gmra.mrb[184].mxu0 %vm10452_vm2, %v11559_v63  ;;  %v12029_v63 = vld [vmem:[#allocation3 + $0xa4] ss:$2 sm:$0xff] }
 0xcd6   :  { %18777 = vmatprep.mubr.msk.bf16.mxu0 %vm21198_vm0, %v25548_v47  ;;  %v12038_v43 = vpack.c.bf16 %v12029_v63, %v12028_v51  ;;  %v12530_v63 = vld [vmem:[#allocation3 + $0x84] ss:$2 sm:$0xff] }
 0xcdd   :  { %18778 = vmatmul.mubr.msk.bf16.gmra.mrb[188].mxu0 %vm10452_vm2, %v11560_v37  ;;  %v12030_v37 = vld [vmem:[#allocation3 + $0xb4] ss:$2 sm:$0xff] }
 0xcde   :  { %18785 = vmatprep.mubr.msk.bf16.mxu0 %vm21198_vm0, %v25548_v47  ;;  %v12039_v4 = vpack.c.bf16 %v12031_v12, %v12030_v37  ;;  %v12532_v12 = vld [vmem:[#allocation3 + $0xa4] ss:$2 sm:$0xff] }
 0xce5   :  { %18786 = vmatmul.mubr.msk.bf16.vlgmr.msra.gmra.mrb[164].mxu0 %vm10452_vm2, %v11714_v54 }
 0xce6   :  { %18814 = vmatpush3.bf16.msra.mxu0 %v21113_v62  ;;  %18789 = vmatprep.mubr.msk.bf16.mxu0 %vm21198_vm0, %v25548_v47  ;;  %v12033_v62 = vld [vmem:[#allocation3 + $0xd4] ss:$2 sm:$0x1f] }
 0xce7   :  { %18815 = vmatprep.subr.bf16.mxu0 %v25548_v47  ;;  %v12040_v54 = vpack.c.bf16 %v12033_v62, %v12033_v62 }
 0xcea   :  { %18816 = vmatpush3.bf16.msra.mxu0 %v21114_v42  ;;  %v12181_v42 = vld [vmem:[#allocation3 + $0x15] ss:$2 sm:$0xff] }
 0xceb   :  { %18845 = vmatprep.subr.bf16.mxu0 %v25548_v47 }
 0xced   :  { %18790 = vmatmul.mubr.msk.bf16.gmra.mrb[168].mxu0 %vm10452_vm2, %v11715_v49  ;;  %v12206_v49 = vpack.c.bf16 %v12183_v36, %v12181_v42  ;;  %v12535_v42 = vld [vmem:[#allocation3 + $0xd4] ss:$2 sm:$0xff] }
 0xcee   :  { %18793 = vmatprep.mubr.msk.bf16.mxu0 %vm21198_vm0, %v25548_v47 }
 0xcf5   :  { %18794 = vmatmul.mubr.msk.bf16.gmra.mrb[172].mxu0 %vm10452_vm2, %v11716_v29  ;;  %v12187_v29 = vld [vmem:[#allocation3 + $0x45] ss:$2 sm:$0xff] }
 0xcf6   :  { %18797 = vmatprep.mubr.msk.bf16.mxu0 %vm21198_vm0, %v25548_v47  ;;  %v12207_v23 = vpack.c.bf16 %v12187_v29, %v12185_v53  ;;  %v12685_v53 = vld [vmem:[#allocation3 + $0x35] ss:$2 sm:$0xff] }
 0xcf7   :  { %v21125_v29 = vld [vmem:[%s25168_s3 + $0xc0] sm:$0xff]  }
 0xcfd   :  { %18798 = vmatmul.mubr.msk.bf16.gmra.mrb[176].mxu0 %vm10452_vm2, %v11717_v18  ;;  %v12191_v18 = vld [vmem:[#allocation3 + $0x65] ss:$2 sm:$0xff] }
 0xcfe   :  { %18801 = vmatprep.mubr.msk.bf16.mxu0 %vm21198_vm0, %v25548_v47  ;;  %v12208_v13 = vpack.c.bf16 %v12191_v18, %v12189_v25  ;;  %v21126_v25 = vld [vmem:[%s25168_s3 + $0xc8] sm:$0xff]  }
 0xcff   :  { %v12686_v18 = vld [vmem:[#allocation3 + $0x45] ss:$2 sm:$0xff] }
 0xd05   :  { %18802 = vmatmul.mubr.msk.bf16.gmra.mrb[180].mxu0 %vm10452_vm2, %v11718_v48  ;;  %v12195_v48 = vld [vmem:[#allocation3 + $0x85] ss:$2 sm:$0xff] }
 0xd06   :  { %18805 = vmatprep.mubr.msk.bf16.mxu0 %vm21198_vm0, %v25548_v47  ;;  %v12209_v32 = vpack.c.bf16 %v12195_v48, %v12193_v34  ;;  %v12688_v48 = vld [vmem:[#allocation3 + $0x65] ss:$2 sm:$0xff] }
 0xd0d   :  { %18806 = vmatmul.mubr.msk.bf16.gmra.mrb[184].mxu0 %vm10452_vm2, %v11719_v38  ;;  %v12199_v38 = vld [vmem:[#allocation3 + $0xa5] ss:$2 sm:$0xff] }
 0xd0e   :  { %18809 = vmatprep.mubr.msk.bf16.mxu0 %vm21198_vm0, %v25548_v47  ;;  %v12210_v61 = vpack.c.bf16 %v12199_v38, %v12197_v57  ;;  %v12690_v38 = vld [vmem:[#allocation3 + $0x85] ss:$2 sm:$0xff] }
 0xd15   :  { %18810 = vmatmul.mubr.msk.bf16.gmra.mrb[188].mxu0 %vm10452_vm2, %v11720_v31  ;;  %v12201_v31 = vld [vmem:[#allocation3 + $0xb5] ss:$2 sm:$0xff] }
 0xd16   :  { %18817 = vmatprep.mubr.msk.bf16.mxu0 %vm21198_vm0, %v25548_v47  ;;  %v12211_v19 = vpack.c.bf16 %v12203_v60, %v12201_v31  ;;  %v12692_v60 = vld [vmem:[#allocation3 + $0xa5] ss:$2 sm:$0xff] }
 0xd1d   :  { %18818 = vmatmul.mubr.msk.bf16.vlgmr.msra.gmra.mrb[164].mxu0 %vm10452_vm2, %v11874_v14 }
 0xd1e   :  { %18846 = vmatpush3.bf16.msra.mxu0 %v21115_v10  ;;  %18821 = vmatprep.mubr.msk.bf16.mxu0 %vm21198_vm0, %v25548_v47  ;;  %v12205_v10 = vld [vmem:[#allocation3 + $0xd5] ss:$2 sm:$0x1f] }
 0xd1f   :  { %18847 = vmatprep.subr.bf16.mxu0 %v25548_v47  ;;  %v12212_v14 = vpack.c.bf16 %v12205_v10, %v12205_v10 }
 0xd22   :  { %18848 = vmatpush3.bf16.msra.mxu0 %v21116_v9  ;;  %v12353_v9 = vld [vmem:[#allocation3 + $0x16] ss:$2 sm:$0xff] }
 0xd23   :  { %18877 = vmatprep.subr.bf16.mxu0 %v25548_v47 }
 0xd25   :  { %18822 = vmatmul.mubr.msk.bf16.gmra.mrb[168].mxu0 %vm10452_vm2, %v11875_v27  ;;  %v12378_v27 = vpack.c.bf16 %v12355_v55, %v12353_v9  ;;  %v12695_v9 = vld [vmem:[#allocation3 + $0xd5] ss:$2 sm:$0xff] }
 0xd26   :  { %18825 = vmatprep.mubr.msk.bf16.mxu0 %vm21198_vm0, %v25548_v47 }
 0xd2d   :  { %18826 = vmatmul.mubr.msk.bf16.gmra.mrb[172].mxu0 %vm10452_vm2, %v11876_v7  ;;  %v12359_v7 = vld [vmem:[#allocation3 + $0x46] ss:$2 sm:$0xff] }
 0xd2e   :  { %18829 = vmatprep.mubr.msk.bf16.mxu0 %vm21198_vm0, %v25548_v47  ;;  %v12379_v45 = vpack.c.bf16 %v12359_v7, %v12357_v56  ;;  %v12845_v56 = vld [vmem:[#allocation3 + $0x36] ss:$2 sm:$0xff]  ;;  %v21127_v7 = vld [vmem:[%s25168_s3 + $0xd0] sm:$0xff]  }
 0xd35   :  { %18830 = vmatmul.mubr.msk.bf16.gmra.mrb[176].mxu0 %vm10452_vm2, %v11877_v5  ;;  %v12363_v5 = vld [vmem:[#allocation3 + $0x66] ss:$2 sm:$0xff] }
 0xd36   :  { %18833 = vmatprep.mubr.msk.bf16.mxu0 %vm21198_vm0, %v25548_v47  ;;  %v12380_v20 = vpack.c.bf16 %v12363_v5, %v12361_v40  ;;  %v21128_v40 = vld [vmem:[%s25168_s3 + $0xd8] sm:$0xff]  }
 0xd37   :  { %v12846_v5 = vld [vmem:[#allocation3 + $0x46] ss:$2 sm:$0xff] }
 0xd3d   :  { %18834 = vmatmul.mubr.msk.bf16.gmra.mrb[180].mxu0 %vm10452_vm2, %v11878_v44  ;;  %v12367_v44 = vld [vmem:[#allocation3 + $0x86] ss:$2 sm:$0xff] }
 0xd3e   :  { %18837 = vmatprep.mubr.msk.bf16.mxu0 %vm21198_vm0, %v25548_v47  ;;  %v12381_v11 = vpack.c.bf16 %v12367_v44, %v12365_v35  ;;  %v12848_v44 = vld [vmem:[#allocation3 + $0x66] ss:$2 sm:$0xff] }
 0xd45   :  { %18838 = vmatmul.mubr.msk.bf16.gmra.mrb[184].mxu0 %vm10452_vm2, %v11879_v6  ;;  %v12371_v6 = vld [vmem:[#allocation3 + $0xa6] ss:$2 sm:$0xff] }
 0xd46   :  { %18841 = vmatprep.mubr.msk.bf16.mxu0 %vm21198_vm0, %v25548_v47  ;;  %v12382_v0 = vpack.c.bf16 %v12371_v6, %v12369_v58  ;;  %v12850_v6 = vld [vmem:[#allocation3 + $0x86] ss:$2 sm:$0xff] }
 0xd4d   :  { %18842 = vmatmul.mubr.msk.bf16.gmra.mrb[188].mxu0 %vm10452_vm2, %v11880_v16  ;;  %v12373_v16 = vld [vmem:[#allocation3 + $0xb6] ss:$2 sm:$0xff] }
 0xd4e   :  { %18849 = vmatprep.mubr.msk.bf16.mxu0 %vm21198_vm0, %v25548_v47  ;;  %v12383_v3 = vpack.c.bf16 %v12375_v17, %v12373_v16  ;;  %v12852_v17 = vld [vmem:[#allocation3 + $0xa6] ss:$2 sm:$0xff] }
 0xd55   :  { %18850 = vmatmul.mubr.msk.bf16.vlgmr.msra.gmra.mrb[164].mxu0 %vm10452_vm2, %v12034_v1 }
 0xd56   :  { %18878 = vmatpush3.bf16.msra.mxu0 %v21117_v21  ;;  %18853 = vmatprep.mubr.msk.bf16.mxu0 %vm21198_vm0, %v25548_v47  ;;  %v12377_v21 = vld [vmem:[#allocation3 + $0xd6] ss:$2 sm:$0x1f] }
 0xd57   :  { %18879 = vmatprep.subr.bf16.mxu0 %v25548_v47  ;;  %v12384_v1 = vpack.c.bf16 %v12377_v21, %v12377_v21 }
 0xd5a   :  { %18880 = vmatpush3.bf16.msra.mxu0 %v21118_v15  ;;  %v12524_v15 = vld [vmem:[#allocation3 + $0x24] ss:$2 sm:$0xff] }
 0xd5b   :  { %18909 = vmatprep.subr.bf16.mxu0 %v25548_v47 }
 0xd5d   :  { %18854 = vmatmul.mubr.msk.bf16.gmra.mrb[168].mxu0 %vm10452_vm2, %v12035_v33  ;;  %v12538_v33 = vpack.c.bf16 %v12525_v52, %v12524_v15  ;;  %v12855_v15 = vld [vmem:[#allocation3 + $0xd6] ss:$2 sm:$0xff] }
 0xd5e   :  { %18857 = vmatprep.mubr.msk.bf16.mxu0 %vm21198_vm0, %v25548_v47 }
 0xd65   :  { %18858 = vmatmul.mubr.msk.bf16.gmra.mrb[172].mxu0 %vm10452_vm2, %v12036_v30  ;;  %v12527_v30 = vld [vmem:[#allocation3 + $0x54] ss:$2 sm:$0xff] }
 0xd66   :  { %18861 = vmatprep.mubr.msk.bf16.mxu0 %vm21198_vm0, %v25548_v47  ;;  %v12539_v39 = vpack.c.bf16 %v12527_v30, %v12526_v22  ;;  %v13007_v22 = vld [vmem:[#allocation3 + $0x37] ss:$2 sm:$0xff] }
 0xd67   :  { %v21129_v30 = vld [vmem:[%s25168_s3 + $0xe0] sm:$0xff]  }
 0xd6d   :  { %18862 = vmatmul.mubr.msk.bf16.gmra.mrb[176].mxu0 %vm10452_vm2, %v12037_v26  ;;  %v12529_v26 = vld [vmem:[#allocation3 + $0x74] ss:$2 sm:$0xff] }
 0xd6e   :  { %18865 = vmatprep.mubr.msk.bf16.mxu0 %vm21198_vm0, %v25548_v47  ;;  %v12540_v51 = vpack.c.bf16 %v12529_v26, %v12528_v2  ;;  %v21130_v2 = vld [vmem:[%s25168_s3 + $0xe8] sm:$0xff]  }
 0xd6f   :  { %v13009_v26 = vld [vmem:[#allocation3 + $0x47] ss:$2 sm:$0xff] }
 0xd75   :  { %18866 = vmatmul.mubr.msk.bf16.gmra.mrb[180].mxu0 %vm10452_vm2, %v12038_v43  ;;  %v12531_v43 = vld [vmem:[#allocation3 + $0x94] ss:$2 sm:$0xff] }
 0xd76   :  { %18869 = vmatprep.mubr.msk.bf16.mxu0 %vm21198_vm0, %v25548_v47  ;;  %v12541_v37 = vpack.c.bf16 %v12531_v43, %v12530_v63  ;;  %v13013_v43 = vld [vmem:[#allocation3 + $0x67] ss:$2 sm:$0xff] }
 0xd7d   :  { %18870 = vmatmul.mubr.msk.bf16.gmra.mrb[184].mxu0 %vm10452_vm2, %v12039_v4  ;;  %v12533_v4 = vld [vmem:[#allocation3 + $0xb4] ss:$2 sm:$0xff] }
 0xd7e   :  { %18873 = vmatprep.mubr.msk.bf16.mxu0 %vm21198_vm0, %v25548_v47  ;;  %v12542_v62 = vpack.c.bf16 %v12533_v4, %v12532_v12  ;;  %v13017_v4 = vld [vmem:[#allocation3 + $0x87] ss:$2 sm:$0xff] }
 0xd85   :  { %18874 = vmatmul.mubr.msk.bf16.gmra.mrb[188].mxu0 %vm10452_vm2, %v12040_v54  ;;  %v12534_v54 = vld [vmem:[#allocation3 + $0xc4] ss:$2 sm:$0xff] }
 0xd86   :  { %18881 = vmatprep.mubr.msk.bf16.mxu0 %vm21198_vm0, %v25548_v47  ;;  %v12543_v36 = vpack.c.bf16 %v12535_v42, %v12534_v54  ;;  %v13021_v42 = vld [vmem:[#allocation3 + $0xa7] ss:$2 sm:$0xff] }
 0xd8d   :  { %18882 = vmatmul.mubr.msk.bf16.vlgmr.msra.gmra.mrb[164].mxu0 %vm10452_vm2, %v12206_v49 }
 0xd8e   :  { %18910 = vmatpush3.bf16.msra.mxu0 %v21119_v50  ;;  %18885 = vmatprep.mubr.msk.bf16.mxu0 %vm21198_vm0, %v25548_v47  ;;  %v12537_v50 = vld [vmem:[#allocation3 + $0xe4] ss:$2 sm:$0x1f] }
 0xd8f   :  { %18911 = vmatprep.subr.bf16.mxu0 %v25548_v47  ;;  %v12544_v49 = vpack.c.bf16 %v12537_v50, %v12537_v50 }
 0xd92   :  { %18912 = vmatpush3.bf16.msra.mxu0 %v21120_v59  ;;  %v12684_v59 = vld [vmem:[#allocation3 + $0x25] ss:$2 sm:$0xff] }
 0xd93   :  { %18941 = vmatprep.subr.bf16.mxu0 %v25548_v47 }
 0xd95   :  { %18886 = vmatmul.mubr.msk.bf16.gmra.mrb[168].mxu0 %vm10452_vm2, %v12207_v23  ;;  %v12698_v23 = vpack.c.bf16 %v12685_v53, %v12684_v59  ;;  %v13027_v59 = vld [vmem:[#allocation3 + $0xd7] ss:$2 sm:$0xff] }
 0xd96   :  { %18889 = vmatprep.mubr.msk.bf16.mxu0 %vm21198_vm0, %v25548_v47 }
 0xd9d   :  { %18890 = vmatmul.mubr.msk.bf16.gmra.mrb[172].mxu0 %vm10452_vm2, %v12208_v13  ;;  %v12687_v13 = vld [vmem:[#allocation3 + $0x55] ss:$2 sm:$0xff] }
 0xd9e   :  { %18893 = vmatprep.mubr.msk.bf16.mxu0 %vm21198_vm0, %v25548_v47  ;;  %v12699_v34 = vpack.c.bf16 %v12687_v13, %v12686_v18  ;;  %v13179_v18 = vld [vmem:[#allocation3 + $0x38] ss:$2 sm:$0xff]  ;;  %v21131_v13 = vld [vmem:[%s25168_s3 + $0xf0] sm:$0xff]  }
 0xda5   :  { %18894 = vmatmul.mubr.msk.bf16.gmra.mrb[176].mxu0 %vm10452_vm2, %v12209_v32  ;;  %v12689_v32 = vld [vmem:[#allocation3 + $0x75] ss:$2 sm:$0xff] }
 0xda6   :  { %18897 = vmatprep.mubr.msk.bf16.mxu0 %vm21198_vm0, %v25548_v47  ;;  %v12700_v57 = vpack.c.bf16 %v12689_v32, %v12688_v48  ;;  %v21132_v48 = vld [vmem:[%s25168_s3 + $0xf8] sm:$0xff]  }
 0xda7   :  { %v13181_v32 = vld [vmem:[#allocation3 + $0x48] ss:$2 sm:$0xff] }
 0xdad   :  { %18898 = vmatmul.mubr.msk.bf16.gmra.mrb[180].mxu0 %vm10452_vm2, %v12210_v61  ;;  %v12691_v61 = vld [vmem:[#allocation3 + $0x95] ss:$2 sm:$0xff] }
 0xdae   :  { %18901 = vmatprep.mubr.msk.bf16.mxu0 %vm21198_vm0, %v25548_v47  ;;  %v12701_v31 = vpack.c.bf16 %v12691_v61, %v12690_v38  ;;  %v13185_v61 = vld [vmem:[#allocation3 + $0x68] ss:$2 sm:$0xff] }
 0xdb5   :  { %18902 = vmatmul.mubr.msk.bf16.gmra.mrb[184].mxu0 %vm10452_vm2, %v12211_v19  ;;  %v12693_v19 = vld [vmem:[#allocation3 + $0xb5] ss:$2 sm:$0xff] }
 0xdb6   :  { %18905 = vmatprep.mubr.msk.bf16.mxu0 %vm21198_vm0, %v25548_v47  ;;  %v12702_v10 = vpack.c.bf16 %v12693_v19, %v12692_v60  ;;  %v13189_v19 = vld [vmem:[#allocation3 + $0x88] ss:$2 sm:$0xff] }
 0xdbd   :  { %18906 = vmatmul.mubr.msk.bf16.gmra.mrb[188].mxu0 %vm10452_vm2, %v12212_v14  ;;  %v12694_v14 = vld [vmem:[#allocation3 + $0xc5] ss:$2 sm:$0xff] }
 0xdbe   :  { %18913 = vmatprep.mubr.msk.bf16.mxu0 %vm21198_vm0, %v25548_v47  ;;  %v12703_v55 = vpack.c.bf16 %v12695_v9, %v12694_v14  ;;  %v13193_v9 = vld [vmem:[#allocation3 + $0xa8] ss:$2 sm:$0xff] }
 0xdc5   :  { %18914 = vmatmul.mubr.msk.bf16.vlgmr.msra.gmra.mrb[164].mxu0 %vm10452_vm2, %v12378_v27 }
 0xdc6   :  { %18942 = vmatpush3.bf16.msra.mxu0 %v21121_v24  ;;  %18917 = vmatprep.mubr.msk.bf16.mxu0 %vm21198_vm0, %v25548_v47  ;;  %v12697_v24 = vld [vmem:[#allocation3 + $0xe5] ss:$2 sm:$0x1f] }
 0xdc7   :  { %18943 = vmatprep.subr.bf16.mxu0 %v25548_v47  ;;  %v12704_v27 = vpack.c.bf16 %v12697_v24, %v12697_v24 }
 0xdca   :  { %18944 = vmatpush3.bf16.msra.mxu0 %v21122_v46  ;;  %v12844_v46 = vld [vmem:[#allocation3 + $0x26] ss:$2 sm:$0xff] }
 0xdcb   :  { %18973 = vmatprep.subr.bf16.mxu0 %v25548_v47 }
 0xdcd   :  { %18918 = vmatmul.mubr.msk.bf16.gmra.mrb[168].mxu0 %vm10452_vm2, %v12379_v45  ;;  %v12858_v45 = vpack.c.bf16 %v12845_v56, %v12844_v46  ;;  %v13199_v46 = vld [vmem:[#allocation3 + $0xd8] ss:$2 sm:$0xff] }
 0xdce   :  { %18921 = vmatprep.mubr.msk.bf16.mxu0 %vm21198_vm0, %v25548_v47 }
 0xdd5   :  { %18922 = vmatmul.mubr.msk.bf16.gmra.mrb[172].mxu0 %vm10452_vm2, %v12380_v20  ;;  %v12847_v20 = vld [vmem:[#allocation3 + $0x56] ss:$2 sm:$0xff] }
 0xdd6   :  { %18925 = vmatprep.mubr.msk.bf16.mxu0 %vm21198_vm0, %v25548_v47  ;;  %v12859_v35 = vpack.c.bf16 %v12847_v20, %v12846_v5  ;;  %v13349_v5 = vld [vmem:[#allocation3 + $0x46] ss:$2 sm:$0xff]  ;;  %v21133_v20 = vld [vmem:[%s25168_s3 + $0x100] sm:$0xff]  }
 0xddd   :  { %18926 = vmatmul.mubr.msk.bf16.gmra.mrb[176].mxu0 %vm10452_vm2, %v12381_v11  ;;  %v12849_v11 = vld [vmem:[#allocation3 + $0x76] ss:$2 sm:$0xff] }
 0xdde   :  { %18929 = vmatprep.mubr.msk.bf16.mxu0 %vm21198_vm0, %v25548_v47  ;;  %v12860_v58 = vpack.c.bf16 %v12849_v11, %v12848_v44  ;;  %v21134_v44 = vld [vmem:[%s25168_s3 + $0x108] sm:$0xff]  }
 0xddf   :  { %v13350_v11 = vld [vmem:[#allocation3 + $0x56] ss:$2 sm:$0xff] }
 0xde5   :  { %18930 = vmatmul.mubr.msk.bf16.gmra.mrb[180].mxu0 %vm10452_vm2, %v12382_v0  ;;  %v12851_v0 = vld [vmem:[#allocation3 + $0x96] ss:$2 sm:$0xff] }
 0xde6   :  { %18933 = vmatprep.mubr.msk.bf16.mxu0 %vm21198_vm0, %v25548_v47  ;;  %v12861_v16 = vpack.c.bf16 %v12851_v0, %v12850_v6  ;;  %v13352_v0 = vld [vmem:[#allocation3 + $0x76] ss:$2 sm:$0xff] }
 0xded   :  { %18934 = vmatmul.mubr.msk.bf16.gmra.mrb[184].mxu0 %vm10452_vm2, %v12383_v3  ;;  %v12853_v3 = vld [vmem:[#allocation3 + $0xb6] ss:$2 sm:$0xff] }
 0xdee   :  { %18937 = vmatprep.mubr.msk.bf16.mxu0 %vm21198_vm0, %v25548_v47  ;;  %v12862_v21 = vpack.c.bf16 %v12853_v3, %v12852_v17  ;;  %v13354_v3 = vld [vmem:[#allocation3 + $0x96] ss:$2 sm:$0xff] }
 0xdf5   :  { %18938 = vmatmul.mubr.msk.bf16.gmra.mrb[188].mxu0 %vm10452_vm2, %v12384_v1  ;;  %v12854_v1 = vld [vmem:[#allocation3 + $0xc6] ss:$2 sm:$0xff] }
 0xdf6   :  { %18945 = vmatprep.mubr.msk.bf16.mxu0 %vm21198_vm0, %v25548_v47  ;;  %v12863_v52 = vpack.c.bf16 %v12855_v15, %v12854_v1  ;;  %v13356_v15 = vld [vmem:[#allocation3 + $0xb6] ss:$2 sm:$0xff] }
 0xdfd   :  { %18946 = vmatmul.mubr.msk.bf16.vlgmr.msra.gmra.mrb[164].mxu0 %vm10452_vm2, %v12538_v33 }
 0xdfe   :  { %18974 = vmatpush3.bf16.msra.mxu0 %v21123_v28  ;;  %18949 = vmatprep.mubr.msk.bf16.mxu0 %vm21198_vm0, %v25548_v47  ;;  %v12857_v28 = vld [vmem:[#allocation3 + $0xe6] ss:$2 sm:$0x1f] }
 0xdff   :  { %18975 = vmatprep.subr.bf16.mxu0 %v25548_v47  ;;  %v12864_v33 = vpack.c.bf16 %v12857_v28, %v12857_v28 }
 0xe02   :  { %18976 = vmatpush3.bf16.msra.mxu0 %v21124_v8  ;;  %v13005_v8 = vld [vmem:[#allocation3 + $0x27] ss:$2 sm:$0xff] }
 0xe03   :  { %19005 = vmatprep.subr.bf16.mxu0 %v25548_v47 }
 0xe05   :  { %18950 = vmatmul.mubr.msk.bf16.gmra.mrb[168].mxu0 %vm10452_vm2, %v12539_v39  ;;  %v13030_v39 = vpack.c.bf16 %v13007_v22, %v13005_v8  ;;  %v13359_v8 = vld [vmem:[#allocation3 + $0xe6] ss:$2 sm:$0xff] }
 0xe06   :  { %18953 = vmatprep.mubr.msk.bf16.mxu0 %vm21198_vm0, %v25548_v47 }
 0xe0d   :  { %18954 = vmatmul.mubr.msk.bf16.gmra.mrb[172].mxu0 %vm10452_vm2, %v12540_v51  ;;  %v13011_v51 = vld [vmem:[#allocation3 + $0x57] ss:$2 sm:$0xff] }
 0xe0e   :  { %18957 = vmatprep.mubr.msk.bf16.mxu0 %vm21198_vm0, %v25548_v47  ;;  %v13031_v63 = vpack.c.bf16 %v13011_v51, %v13009_v26  ;;  %v13509_v26 = vld [vmem:[#allocation3 + $0x47] ss:$2 sm:$0xff] }
 0xe0f   :  { %v21135_v51 = vld [vmem:[%s25168_s3 + $0x110] sm:$0xff]  }
 0xe15   :  { %18958 = vmatmul.mubr.msk.bf16.gmra.mrb[176].mxu0 %vm10452_vm2, %v12541_v37  ;;  %v13015_v37 = vld [vmem:[#allocation3 + $0x77] ss:$2 sm:$0xff] }
 0xe16   :  { %18961 = vmatprep.mubr.msk.bf16.mxu0 %vm21198_vm0, %v25548_v47  ;;  %v13032_v12 = vpack.c.bf16 %v13015_v37, %v13013_v43  ;;  %v21136_v43 = vld [vmem:[%s25168_s3 + $0x118] sm:$0xff]  }
 0xe17   :  { %v13510_v37 = vld [vmem:[#allocation3 + $0x57] ss:$2 sm:$0xff] }
 0xe1d   :  { %18962 = vmatmul.mubr.msk.bf16.gmra.mrb[180].mxu0 %vm10452_vm2, %v12542_v62  ;;  %v13019_v62 = vld [vmem:[#allocation3 + $0x97] ss:$2 sm:$0xff] }
 0xe1e   :  { %18965 = vmatprep.mubr.msk.bf16.mxu0 %vm21198_vm0, %v25548_v47  ;;  %v13033_v54 = vpack.c.bf16 %v13019_v62, %v13017_v4  ;;  %v13512_v62 = vld [vmem:[#allocation3 + $0x77] ss:$2 sm:$0xff] }
 0xe25   :  { %18966 = vmatmul.mubr.msk.bf16.gmra.mrb[184].mxu0 %vm10452_vm2, %v12543_v36  ;;  %v13023_v36 = vld [vmem:[#allocation3 + $0xb7] ss:$2 sm:$0xff] }
 0xe26   :  { %18969 = vmatprep.mubr.msk.bf16.mxu0 %vm21198_vm0, %v25548_v47  ;;  %v13034_v50 = vpack.c.bf16 %v13023_v36, %v13021_v42  ;;  %v13514_v36 = vld [vmem:[#allocation3 + $0x97] ss:$2 sm:$0xff] }
 0xe2d   :  { %18970 = vmatmul.mubr.msk.bf16.gmra.mrb[188].mxu0 %vm10452_vm2, %v12544_v49  ;;  %v13025_v49 = vld [vmem:[#allocation3 + $0xc7] ss:$2 sm:$0xff] }
 0xe2e   :  { %18977 = vmatprep.mubr.msk.bf16.mxu0 %vm21198_vm0, %v25548_v47  ;;  %v13035_v53 = vpack.c.bf16 %v13027_v59, %v13025_v49  ;;  %v13516_v59 = vld [vmem:[#allocation3 + $0xb7] ss:$2 sm:$0xff] }
 0xe35   :  { %18978 = vmatmul.mubr.msk.bf16.vlgmr.msra.gmra.mrb[164].mxu0 %vm10452_vm2, %v12698_v23 }
 0xe36   :  { %19006 = vmatpush3.bf16.msra.mxu0 %v21125_v29  ;;  %18981 = vmatprep.mubr.msk.bf16.mxu0 %vm21198_vm0, %v25548_v47  ;;  %v13029_v29 = vld [vmem:[#allocation3 + $0xe7] ss:$2 sm:$0x1f] }
 0xe37   :  { %19007 = vmatprep.subr.bf16.mxu0 %v25548_v47  ;;  %v13036_v23 = vpack.c.bf16 %v13029_v29, %v13029_v29 }
 0xe3a   :  { %19008 = vmatpush3.bf16.msra.mxu0 %v21126_v25  ;;  %v13177_v25 = vld [vmem:[#allocation3 + $0x28] ss:$2 sm:$0xff] }
 0xe3b   :  { %19037 = vmatprep.subr.bf16.mxu0 %v25548_v47 }
 0xe3d   :  { %18982 = vmatmul.mubr.msk.bf16.gmra.mrb[168].mxu0 %vm10452_vm2, %v12699_v34  ;;  %v13202_v34 = vpack.c.bf16 %v13179_v18, %v13177_v25  ;;  %v13519_v25 = vld [vmem:[#allocation3 + $0xe7] ss:$2 sm:$0xff] }
 0xe3e   :  { %18985 = vmatprep.mubr.msk.bf16.mxu0 %vm21198_vm0, %v25548_v47 }
 0xe45   :  { %18986 = vmatmul.mubr.msk.bf16.gmra.mrb[172].mxu0 %vm10452_vm2, %v12700_v57  ;;  %v13183_v57 = vld [vmem:[#allocation3 + $0x58] ss:$2 sm:$0xff] }
 0xe46   :  { %18989 = vmatprep.mubr.msk.bf16.mxu0 %vm21198_vm0, %v25548_v47  ;;  %v13203_v38 = vpack.c.bf16 %v13183_v57, %v13181_v32  ;;  %v13669_v32 = vld [vmem:[#allocation3 + $0x48] ss:$2 sm:$0xff]  ;;  %v21137_v57 = vld [vmem:[%s25168_s3 + $0x120] sm:$0xff]  }
 0xe4d   :  { %18990 = vmatmul.mubr.msk.bf16.gmra.mrb[176].mxu0 %vm10452_vm2, %v12701_v31  ;;  %v13187_v31 = vld [vmem:[#allocation3 + $0x78] ss:$2 sm:$0xff] }
 0xe4e   :  { %18993 = vmatprep.mubr.msk.bf16.mxu0 %vm21198_vm0, %v25548_v47  ;;  %v13204_v60 = vpack.c.bf16 %v13187_v31, %v13185_v61  ;;  %v21138_v61 = vld [vmem:[%s25168_s3 + $0x128] sm:$0xff]  }
 0xe4f   :  { %v13670_v31 = vld [vmem:[#allocation3 + $0x58] ss:$2 sm:$0xff] }
 0xe55   :  { %18994 = vmatmul.mubr.msk.bf16.gmra.mrb[180].mxu0 %vm10452_vm2, %v12702_v10  ;;  %v13191_v10 = vld [vmem:[#allocation3 + $0x98] ss:$2 sm:$0xff] }
 0xe56   :  { %18997 = vmatprep.mubr.msk.bf16.mxu0 %vm21198_vm0, %v25548_v47  ;;  %v13205_v14 = vpack.c.bf16 %v13191_v10, %v13189_v19  ;;  %v13672_v10 = vld [vmem:[#allocation3 + $0x78] ss:$2 sm:$0xff] }
 0xe5d   :  { %18998 = vmatmul.mubr.msk.bf16.gmra.mrb[184].mxu0 %vm10452_vm2, %v12703_v55  ;;  %v13195_v55 = vld [vmem:[#allocation3 + $0xb8] ss:$2 sm:$0xff] }
 0xe5e   :  { %19001 = vmatprep.mubr.msk.bf16.mxu0 %vm21198_vm0, %v25548_v47  ;;  %v13206_v24 = vpack.c.bf16 %v13195_v55, %v13193_v9  ;;  %v13674_v55 = vld [vmem:[#allocation3 + $0x98] ss:$2 sm:$0xff] }
 0xe65   :  { %19002 = vmatmul.mubr.msk.bf16.gmra.mrb[188].mxu0 %vm10452_vm2, %v12704_v27  ;;  %v13197_v27 = vld [vmem:[#allocation3 + $0xc8] ss:$2 sm:$0xff] }
 0xe66   :  { %19009 = vmatprep.mubr.msk.bf16.mxu0 %vm21198_vm0, %v25548_v47  ;;  %v13207_v56 = vpack.c.bf16 %v13199_v46, %v13197_v27  ;;  %v13676_v46 = vld [vmem:[#allocation3 + $0xb8] ss:$2 sm:$0xff] }
 0xe6d   :  { %19010 = vmatmul.mubr.msk.bf16.vlgmr.msra.gmra.mrb[164].mxu0 %vm10452_vm2, %v12858_v45 }
 0xe6e   :  { %19038 = vmatpush3.bf16.msra.mxu0 %v21127_v7  ;;  %19013 = vmatprep.mubr.msk.bf16.mxu0 %vm21198_vm0, %v25548_v47  ;;  %v13201_v7 = vld [vmem:[#allocation3 + $0xe8] ss:$2 sm:$0x1f] }
 0xe6f   :  { %19039 = vmatprep.subr.bf16.mxu0 %v25548_v47  ;;  %v13208_v45 = vpack.c.bf16 %v13201_v7, %v13201_v7 }
 0xe72   :  { %19040 = vmatpush3.bf16.msra.mxu0 %v21128_v40  ;;  %v13348_v40 = vld [vmem:[#allocation3 + $0x36] ss:$2 sm:$0xff] }
 0xe73   :  { %19069 = vmatprep.subr.bf16.mxu0 %v25548_v47 }
 0xe75   :  { %19014 = vmatmul.mubr.msk.bf16.gmra.mrb[168].mxu0 %vm10452_vm2, %v12859_v35  ;;  %v13362_v35 = vpack.c.bf16 %v13349_v5, %v13348_v40  ;;  %v13679_v40 = vld [vmem:[#allocation3 + $0xe8] ss:$2 sm:$0xff] }
 0xe76   :  { %19017 = vmatprep.mubr.msk.bf16.mxu0 %vm21198_vm0, %v25548_v47 }
 0xe7d   :  { %19018 = vmatmul.mubr.msk.bf16.gmra.mrb[172].mxu0 %vm10452_vm2, %v12860_v58  ;;  %v13351_v58 = vld [vmem:[#allocation3 + $0x66] ss:$2 sm:$0xff] }
 0xe7e   :  { %19021 = vmatprep.mubr.msk.bf16.mxu0 %vm21198_vm0, %v25548_v47  ;;  %v13363_v6 = vpack.c.bf16 %v13351_v58, %v13350_v11  ;;  %v13831_v11 = vld [vmem:[#allocation3 + $0x49] ss:$2 sm:$0xff] }
 0xe7f   :  { %v21139_v58 = vld [vmem:[%s25168_s3 + $0x130] sm:$0xff]  }
 0xe85   :  { %19022 = vmatmul.mubr.msk.bf16.gmra.mrb[176].mxu0 %vm10452_vm2, %v12861_v16  ;;  %v13353_v16 = vld [vmem:[#allocation3 + $0x86] ss:$2 sm:$0xff] }
 0xe86   :  { %19025 = vmatprep.mubr.msk.bf16.mxu0 %vm21198_vm0, %v25548_v47  ;;  %v13364_v17 = vpack.c.bf16 %v13353_v16, %v13352_v0  ;;  %v21140_v0 = vld [vmem:[%s25168_s3 + $0x138] sm:$0xff]   ;;  %v13833_v16 = vld [vmem:[#allocation3 + $0x59] ss:$2 sm:$0xff] }
 0xe8d   :  { %19026 = vmatmul.mubr.msk.bf16.gmra.mrb[180].mxu0 %vm10452_vm2, %v12862_v21  ;;  %v13355_v21 = vld [vmem:[#allocation3 + $0xa6] ss:$2 sm:$0xff] }
 0xe8e   :  { %19029 = vmatprep.mubr.msk.bf16.mxu0 %vm21198_vm0, %v25548_v47  ;;  %v13365_v1 = vpack.c.bf16 %v13355_v21, %v13354_v3  ;;  %v13837_v21 = vld [vmem:[#allocation3 + $0x79] ss:$2 sm:$0xff] }
 0xe95   :  { %19030 = vmatmul.mubr.msk.bf16.gmra.mrb[184].mxu0 %vm10452_vm2, %v12863_v52  ;;  %v13357_v52 = vld [vmem:[#allocation3 + $0xc6] ss:$2 sm:$0xff] }
 0xe96   :  { %19033 = vmatprep.mubr.msk.bf16.mxu0 %vm21198_vm0, %v25548_v47  ;;  %v13366_v28 = vpack.c.bf16 %v13357_v52, %v13356_v15  ;;  %v13841_v52 = vld [vmem:[#allocation3 + $0x99] ss:$2 sm:$0xff] }
 0xe9d   :  { %19034 = vmatmul.mubr.msk.bf16.gmra.mrb[188].mxu0 %vm10452_vm2, %v12864_v33  ;;  %v13358_v33 = vld [vmem:[#allocation3 + $0xd6] ss:$2 sm:$0xff] }
 0xe9e   :  { %19041 = vmatprep.mubr.msk.bf16.mxu0 %vm21198_vm0, %v25548_v47  ;;  %v13367_v22 = vpack.c.bf16 %v13359_v8, %v13358_v33  ;;  %v13845_v8 = vld [vmem:[#allocation3 + $0xb9] ss:$2 sm:$0xff] }
 0xea5   :  { %19042 = vmatmul.mubr.msk.bf16.vlgmr.msra.gmra.mrb[164].mxu0 %vm10452_vm2, %v13030_v39 }
 0xea6   :  { %19070 = vmatpush3.bf16.msra.mxu0 %v21129_v30  ;;  %19045 = vmatprep.mubr.msk.bf16.mxu0 %vm21198_vm0, %v25548_v47  ;;  %v13361_v30 = vld [vmem:[#allocation3 + $0xf6] ss:$2 sm:$0x1f] }
 0xea7   :  { %19071 = vmatprep.subr.bf16.mxu0 %v25548_v47  ;;  %v13368_v39 = vpack.c.bf16 %v13361_v30, %v13361_v30 }
 0xeaa   :  { %19072 = vmatpush3.bf16.msra.mxu0 %v21130_v2  ;;  %v13508_v2 = vld [vmem:[#allocation3 + $0x37] ss:$2 sm:$0xff] }
 0xeab   :  { %19101 = vmatprep.subr.bf16.mxu0 %v25548_v47 }
 0xead   :  { %19046 = vmatmul.mubr.msk.bf16.gmra.mrb[168].mxu0 %vm10452_vm2, %v13031_v63  ;;  %v13522_v63 = vpack.c.bf16 %v13509_v26, %v13508_v2  ;;  %v13851_v2 = vld [vmem:[#allocation3 + $0xe9] ss:$2 sm:$0xff] }
 0xeae   :  { %19049 = vmatprep.mubr.msk.bf16.mxu0 %vm21198_vm0, %v25548_v47 }
 0xeb5   :  { %19050 = vmatmul.mubr.msk.bf16.gmra.mrb[172].mxu0 %vm10452_vm2, %v13032_v12  ;;  %v13511_v12 = vld [vmem:[#allocation3 + $0x67] ss:$2 sm:$0xff] }
 0xeb6   :  { %19053 = vmatprep.mubr.msk.bf16.mxu0 %vm21198_vm0, %v25548_v47  ;;  %v13523_v4 = vpack.c.bf16 %v13511_v12, %v13510_v37  ;;  %v14003_v37 = vld [vmem:[#allocation3 + $0x4a] ss:$2 sm:$0xff] }
 0xeb7   :  { %v21141_v12 = vld [vmem:[%s25168_s3 + $0x140] sm:$0xff]  }
 0xebd   :  { %19054 = vmatmul.mubr.msk.bf16.gmra.mrb[176].mxu0 %vm10452_vm2, %v13033_v54  ;;  %v13513_v54 = vld [vmem:[#allocation3 + $0x87] ss:$2 sm:$0xff] }
 0xebe   :  { %19057 = vmatprep.mubr.msk.bf16.mxu0 %vm21198_vm0, %v25548_v47  ;;  %v13524_v42 = vpack.c.bf16 %v13513_v54, %v13512_v62  ;;  %v21142_v62 = vld [vmem:[%s25168_s3 + $0x148] sm:$0xff]  }
 0xebf   :  { %v14005_v54 = vld [vmem:[#allocation3 + $0x5a] ss:$2 sm:$0xff] }
 0xec5   :  { %19058 = vmatmul.mubr.msk.bf16.gmra.mrb[180].mxu0 %vm10452_vm2, %v13034_v50  ;;  %v13515_v50 = vld [vmem:[#allocation3 + $0xa7] ss:$2 sm:$0xff] }
 0xec6   :  { %19061 = vmatprep.mubr.msk.bf16.mxu0 %vm21198_vm0, %v25548_v47  ;;  %v13525_v49 = vpack.c.bf16 %v13515_v50, %v13514_v36  ;;  %v14009_v50 = vld [vmem:[#allocation3 + $0x7a] ss:$2 sm:$0xff] }
 0xecd   :  { %19062 = vmatmul.mubr.msk.bf16.gmra.mrb[184].mxu0 %vm10452_vm2, %v13035_v53  ;;  %v13517_v53 = vld [vmem:[#allocation3 + $0xc7] ss:$2 sm:$0xff] }
 0xece   :  { %19065 = vmatprep.mubr.msk.bf16.mxu0 %vm21198_vm0, %v25548_v47  ;;  %v13526_v29 = vpack.c.bf16 %v13517_v53, %v13516_v59  ;;  %v14013_v53 = vld [vmem:[#allocation3 + $0x9a] ss:$2 sm:$0xff] }
 0xed5   :  { %19066 = vmatmul.mubr.msk.bf16.gmra.mrb[188].mxu0 %vm10452_vm2, %v13036_v23  ;;  %v13518_v23 = vld [vmem:[#allocation3 + $0xd7] ss:$2 sm:$0xff] }
 0xed6   :  { %19073 = vmatprep.mubr.msk.bf16.mxu0 %vm21198_vm0, %v25548_v47  ;;  %v13527_v18 = vpack.c.bf16 %v13519_v25, %v13518_v23  ;;  %v14017_v25 = vld [vmem:[#allocation3 + $0xba] ss:$2 sm:$0xff] }
 0xedd   :  { %19074 = vmatmul.mubr.msk.bf16.vlgmr.msra.gmra.mrb[164].mxu0 %vm10452_vm2, %v13202_v34 }
 0xede   :  { %19102 = vmatpush3.bf16.msra.mxu0 %v21131_v13  ;;  %19077 = vmatprep.mubr.msk.bf16.mxu0 %vm21198_vm0, %v25548_v47  ;;  %v13521_v13 = vld [vmem:[#allocation3 + $0xf7] ss:$2 sm:$0x1f] }
 0xedf   :  { %19103 = vmatprep.subr.bf16.mxu0 %v25548_v47  ;;  %v13528_v34 = vpack.c.bf16 %v13521_v13, %v13521_v13 }
 0xee2   :  { %19104 = vmatpush3.bf16.msra.mxu0 %v21132_v48  ;;  %v13668_v48 = vld [vmem:[#allocation3 + $0x38] ss:$2 sm:$0xff] }
 0xee3   :  { %19133 = vmatprep.subr.bf16.mxu0 %v25548_v47 }
 0xee5   :  { %19078 = vmatmul.mubr.msk.bf16.gmra.mrb[168].mxu0 %vm10452_vm2, %v13203_v38  ;;  %v13682_v38 = vpack.c.bf16 %v13669_v32, %v13668_v48  ;;  %v14023_v48 = vld [vmem:[#allocation3 + $0xea] ss:$2 sm:$0xff] }
 0xee6   :  { %19081 = vmatprep.mubr.msk.bf16.mxu0 %vm21198_vm0, %v25548_v47 }
 0xeed   :  { %19082 = vmatmul.mubr.msk.bf16.gmra.mrb[172].mxu0 %vm10452_vm2, %v13204_v60  ;;  %v13671_v60 = vld [vmem:[#allocation3 + $0x68] ss:$2 sm:$0xff] }
 0xeee   :  { %19085 = vmatprep.mubr.msk.bf16.mxu0 %vm21198_vm0, %v25548_v47  ;;  %v13683_v19 = vpack.c.bf16 %v13671_v60, %v13670_v31  ;;  %v14173_v31 = vld [vmem:[#allocation3 + $0x58] ss:$2 sm:$0xff]  ;;  %v21143_v60 = vld [vmem:[%s25168_s3 + $0x150] sm:$0xff]  }
 0xef5   :  { %19086 = vmatmul.mubr.msk.bf16.gmra.mrb[176].mxu0 %vm10452_vm2, %v13205_v14  ;;  %v13673_v14 = vld [vmem:[#allocation3 + $0x88] ss:$2 sm:$0xff] }
 0xef6   :  { %19089 = vmatprep.mubr.msk.bf16.mxu0 %vm21198_vm0, %v25548_v47  ;;  %v13684_v9 = vpack.c.bf16 %v13673_v14, %v13672_v10  ;;  %v21144_v10 = vld [vmem:[%s25168_s3 + $0x158] sm:$0xff]  }
 0xef7   :  { %v14174_v14 = vld [vmem:[#allocation3 + $0x68] ss:$2 sm:$0xff] }
 0xefd   :  { %19090 = vmatmul.mubr.msk.bf16.gmra.mrb[180].mxu0 %vm10452_vm2, %v13206_v24  ;;  %v13675_v24 = vld [vmem:[#allocation3 + $0xa8] ss:$2 sm:$0xff] }
 0xefe   :  { %19093 = vmatprep.mubr.msk.bf16.mxu0 %vm21198_vm0, %v25548_v47  ;;  %v13685_v27 = vpack.c.bf16 %v13675_v24, %v13674_v55  ;;  %v14176_v24 = vld [vmem:[#allocation3 + $0x88] ss:$2 sm:$0xff] }
 0xf05   :  { %19094 = vmatmul.mubr.msk.bf16.gmra.mrb[184].mxu0 %vm10452_vm2, %v13207_v56  ;;  %v13677_v56 = vld [vmem:[#allocation3 + $0xc8] ss:$2 sm:$0xff] }
 0xf06   :  { %19097 = vmatprep.mubr.msk.bf16.mxu0 %vm21198_vm0, %v25548_v47  ;;  %v13686_v7 = vpack.c.bf16 %v13677_v56, %v13676_v46  ;;  %v14178_v56 = vld [vmem:[#allocation3 + $0xa8] ss:$2 sm:$0xff] }
 0xf0d   :  { %19098 = vmatmul.mubr.msk.bf16.gmra.mrb[188].mxu0 %vm10452_vm2, %v13208_v45  ;;  %v13678_v45 = vld [vmem:[#allocation3 + $0xd8] ss:$2 sm:$0xff] }
 0xf0e   :  { %19105 = vmatprep.mubr.msk.bf16.mxu0 %vm21198_vm0, %v25548_v47  ;;  %v13687_v5 = vpack.c.bf16 %v13679_v40, %v13678_v45  ;;  %v14180_v40 = vld [vmem:[#allocation3 + $0xc8] ss:$2 sm:$0xff] }
 0xf15   :  { %19106 = vmatmul.mubr.msk.bf16.vlgmr.msra.gmra.mrb[164].mxu0 %vm10452_vm2, %v13362_v35 }
 0xf16   :  { %19134 = vmatpush3.bf16.msra.mxu0 %v21133_v20  ;;  %19109 = vmatprep.mubr.msk.bf16.mxu0 %vm21198_vm0, %v25548_v47  ;;  %v13681_v20 = vld [vmem:[#allocation3 + $0xf8] ss:$2 sm:$0x1f] }
 0xf17   :  { %19135 = vmatprep.subr.bf16.mxu0 %v25548_v47  ;;  %v13688_v35 = vpack.c.bf16 %v13681_v20, %v13681_v20 }
 0xf1a   :  { %19136 = vmatpush3.bf16.msra.mxu0 %v21134_v44  ;;  %v13829_v44 = vld [vmem:[#allocation3 + $0x39] ss:$2 sm:$0xff] }
 0xf1b   :  { %19165 = vmatprep.subr.bf16.mxu0 %v25548_v47 }
 0xf1d   :  { %19110 = vmatmul.mubr.msk.bf16.gmra.mrb[168].mxu0 %vm10452_vm2, %v13363_v6  ;;  %v13854_v6 = vpack.c.bf16 %v13831_v11, %v13829_v44  ;;  %v14183_v44 = vld [vmem:[#allocation3 + $0xf8] ss:$2 sm:$0xff] }
 0xf1e   :  { %19113 = vmatprep.mubr.msk.bf16.mxu0 %vm21198_vm0, %v25548_v47 }
 0xf25   :  { %19114 = vmatmul.mubr.msk.bf16.gmra.mrb[172].mxu0 %vm10452_vm2, %v13364_v17  ;;  %v13835_v17 = vld [vmem:[#allocation3 + $0x69] ss:$2 sm:$0xff] }
 0xf26   :  { %19117 = vmatprep.mubr.msk.bf16.mxu0 %vm21198_vm0, %v25548_v47  ;;  %v13855_v3 = vpack.c.bf16 %v13835_v17, %v13833_v16  ;;  %v14333_v16 = vld [vmem:[#allocation3 + $0x59] ss:$2 sm:$0xff] }
 0xf27   :  { %v21145_v17 = vld [vmem:[%s25168_s3 + $0x160] sm:$0xff]  }
 0xf2d   :  { %19118 = vmatmul.mubr.msk.bf16.gmra.mrb[176].mxu0 %vm10452_vm2, %v13365_v1  ;;  %v13839_v1 = vld [vmem:[#allocation3 + $0x89] ss:$2 sm:$0xff] }
 0xf2e   :  { %19121 = vmatprep.mubr.msk.bf16.mxu0 %vm21198_vm0, %v25548_v47  ;;  %v13856_v15 = vpack.c.bf16 %v13839_v1, %v13837_v21  ;;  %v21146_v21 = vld [vmem:[%s25168_s3 + $0x168] sm:$0xff]   ;;  %v14334_v1 = vld [vmem:[#allocation3 + $0x69] ss:$2 sm:$0xff] }
 0xf35   :  { %19122 = vmatmul.mubr.msk.bf16.gmra.mrb[180].mxu0 %vm10452_vm2, %v13366_v28  ;;  %v13843_v28 = vld [vmem:[#allocation3 + $0xa9] ss:$2 sm:$0xff] }
 0xf36   :  { %19125 = vmatprep.mubr.msk.bf16.mxu0 %vm21198_vm0, %v25548_v47  ;;  %v13857_v33 = vpack.c.bf16 %v13843_v28, %v13841_v52  ;;  %v14336_v28 = vld [vmem:[#allocation3 + $0x89] ss:$2 sm:$0xff] }
 0xf3d   :  { %19126 = vmatmul.mubr.msk.bf16.gmra.mrb[184].mxu0 %vm10452_vm2, %v13367_v22  ;;  %v13847_v22 = vld [vmem:[#allocation3 + $0xc9] ss:$2 sm:$0xff] }
 0xf3e   :  { %19129 = vmatprep.mubr.msk.bf16.mxu0 %vm21198_vm0, %v25548_v47  ;;  %v13858_v30 = vpack.c.bf16 %v13847_v22, %v13845_v8  ;;  %v14338_v22 = vld [vmem:[#allocation3 + $0xa9] ss:$2 sm:$0xff] }
 0xf45   :  { %19130 = vmatmul.mubr.msk.bf16.gmra.mrb[188].mxu0 %vm10452_vm2, %v13368_v39  ;;  %v13849_v39 = vld [vmem:[#allocation3 + $0xd9] ss:$2 sm:$0xff] }
 0xf46   :  { %19137 = vmatprep.mubr.msk.bf16.mxu0 %vm21198_vm0, %v25548_v47  ;;  %v13859_v26 = vpack.c.bf16 %v13851_v2, %v13849_v39  ;;  %v14340_v2 = vld [vmem:[#allocation3 + $0xc9] ss:$2 sm:$0xff] }
 0xf4d   :  { %19138 = vmatmul.mubr.msk.bf16.vlgmr.msra.gmra.mrb[164].mxu0 %vm10452_vm2, %v13522_v63 }
 0xf4e   :  { %19166 = vmatpush3.bf16.msra.mxu0 %v21135_v51  ;;  %19141 = vmatprep.mubr.msk.bf16.mxu0 %vm21198_vm0, %v25548_v47  ;;  %v13853_v51 = vld [vmem:[#allocation3 + $0xf9] ss:$2 sm:$0x1f] }
 0xf4f   :  { %19167 = vmatprep.subr.bf16.mxu0 %v25548_v47  ;;  %v13860_v63 = vpack.c.bf16 %v13853_v51, %v13853_v51 }
 0xf52   :  { %19168 = vmatpush3.bf16.msra.mxu0 %v21136_v43  ;;  %v14001_v43 = vld [vmem:[#allocation3 + $0x3a] ss:$2 sm:$0xff] }
 0xf53   :  { %19197 = vmatprep.subr.bf16.mxu0 %v25548_v47 }
 0xf55   :  { %19142 = vmatmul.mubr.msk.bf16.gmra.mrb[168].mxu0 %vm10452_vm2, %v13523_v4  ;;  %v14026_v4 = vpack.c.bf16 %v14003_v37, %v14001_v43  ;;  %v14343_v43 = vld [vmem:[#allocation3 + $0xf9] ss:$2 sm:$0xff] }
 0xf56   :  { %19145 = vmatprep.mubr.msk.bf16.mxu0 %vm21198_vm0, %v25548_v47 }
 0xf5d   :  { %19146 = vmatmul.mubr.msk.bf16.gmra.mrb[172].mxu0 %vm10452_vm2, %v13524_v42  ;;  %v14007_v42 = vld [vmem:[#allocation3 + $0x6a] ss:$2 sm:$0xff] }
 0xf5e   :  { %19149 = vmatprep.mubr.msk.bf16.mxu0 %vm21198_vm0, %v25548_v47  ;;  %v14027_v36 = vpack.c.bf16 %v14007_v42, %v14005_v54  ;;  %v14493_v54 = vld [vmem:[#allocation3 + $0x5a] ss:$2 sm:$0xff] }
 0xf5f   :  { %v21147_v42 = vld [vmem:[%s25168_s3 + $0x170] sm:$0xff]  }
 0xf65   :  { %19150 = vmatmul.mubr.msk.bf16.gmra.mrb[176].mxu0 %vm10452_vm2, %v13525_v49  ;;  %v14011_v49 = vld [vmem:[#allocation3 + $0x8a] ss:$2 sm:$0xff] }
 0xf66   :  { %19153 = vmatprep.mubr.msk.bf16.mxu0 %vm21198_vm0, %v25548_v47  ;;  %v14028_v59 = vpack.c.bf16 %v14011_v49, %v14009_v50  ;;  %v21148_v50 = vld [vmem:[%s25168_s3 + $0x178] sm:$0xff]  }
 0xf67   :  { %v14494_v49 = vld [vmem:[#allocation3 + $0x6a] ss:$2 sm:$0xff] }
 0xf6d   :  { %19154 = vmatmul.mubr.msk.bf16.gmra.mrb[180].mxu0 %vm10452_vm2, %v13526_v29  ;;  %v14015_v29 = vld [vmem:[#allocation3 + $0xaa] ss:$2 sm:$0xff] }
 0xf6e   :  { %19157 = vmatprep.mubr.msk.bf16.mxu0 %vm21198_vm0, %v25548_v47  ;;  %v14029_v23 = vpack.c.bf16 %v14015_v29, %v14013_v53  ;;  %v14496_v29 = vld [vmem:[#allocation3 + $0x8a] ss:$2 sm:$0xff] }
 0xf75   :  { %19158 = vmatmul.mubr.msk.bf16.gmra.mrb[184].mxu0 %vm10452_vm2, %v13527_v18  ;;  %v14019_v18 = vld [vmem:[#allocation3 + $0xca] ss:$2 sm:$0xff] }
 0xf76   :  { %19161 = vmatprep.mubr.msk.bf16.mxu0 %vm21198_vm0, %v25548_v47  ;;  %v14030_v13 = vpack.c.bf16 %v14019_v18, %v14017_v25  ;;  %v14498_v18 = vld [vmem:[#allocation3 + $0xaa] ss:$2 sm:$0xff] }
 0xf7d   :  { %19162 = vmatmul.mubr.msk.bf16.gmra.mrb[188].mxu0 %vm10452_vm2, %v13528_v34  ;;  %v14021_v34 = vld [vmem:[#allocation3 + $0xda] ss:$2 sm:$0xff] }
 0xf7e   :  { %19169 = vmatprep.mubr.msk.bf16.mxu0 %vm21198_vm0, %v25548_v47  ;;  %v14031_v32 = vpack.c.bf16 %v14023_v48, %v14021_v34  ;;  %v14500_v48 = vld [vmem:[#allocation3 + $0xca] ss:$2 sm:$0xff] }
 0xf85   :  { %19170 = vmatmul.mubr.msk.bf16.vlgmr.msra.gmra.mrb[164].mxu0 %vm10452_vm2, %v13682_v38 }
 0xf86   :  { %19198 = vmatpush3.bf16.msra.mxu0 %v21137_v57  ;;  %19173 = vmatprep.mubr.msk.bf16.mxu0 %vm21198_vm0, %v25548_v47  ;;  %v14025_v57 = vld [vmem:[#allocation3 + $0xfa] ss:$2 sm:$0x1f] }
 0xf87   :  { %19199 = vmatprep.subr.bf16.mxu0 %v25548_v47  ;;  %v14032_v38 = vpack.c.bf16 %v14025_v57, %v14025_v57 }
 0xf8a   :  { %19200 = vmatpush3.bf16.msra.mxu0 %v21138_v61  ;;  %v14172_v61 = vld [vmem:[#allocation3 + $0x48] ss:$2 sm:$0xff] }
 0xf8b   :  { %19229 = vmatprep.subr.bf16.mxu0 %v25548_v47 }
 0xf8d   :  { %19174 = vmatmul.mubr.msk.bf16.gmra.mrb[168].mxu0 %vm10452_vm2, %v13683_v19  ;;  %v14186_v19 = vpack.c.bf16 %v14173_v31, %v14172_v61  ;;  %v14503_v61 = vld [vmem:[#allocation3 + $0xfa] ss:$2 sm:$0xff] }
 0xf8e   :  { %19177 = vmatprep.mubr.msk.bf16.mxu0 %vm21198_vm0, %v25548_v47 }
 0xf95   :  { %19178 = vmatmul.mubr.msk.bf16.gmra.mrb[172].mxu0 %vm10452_vm2, %v13684_v9  ;;  %v14175_v9 = vld [vmem:[#allocation3 + $0x78] ss:$2 sm:$0xff] }
 0xf96   :  { %19181 = vmatprep.mubr.msk.bf16.mxu0 %vm21198_vm0, %v25548_v47  ;;  %v14187_v55 = vpack.c.bf16 %v14175_v9, %v14174_v14  ;;  %v14655_v14 = vld [vmem:[#allocation3 + $0x5b] ss:$2 sm:$0xff] }
 0xf97   :  { %v21149_v9 = vld [vmem:[%s25168_s3 + $0x180] sm:$0xff]  }
 0xf9d   :  { %19182 = vmatmul.mubr.msk.bf16.gmra.mrb[176].mxu0 %vm10452_vm2, %v13685_v27  ;;  %v14177_v27 = vld [vmem:[#allocation3 + $0x98] ss:$2 sm:$0xff] }
 0xf9e   :  { %19185 = vmatprep.mubr.msk.bf16.mxu0 %vm21198_vm0, %v25548_v47  ;;  %v14188_v46 = vpack.c.bf16 %v14177_v27, %v14176_v24  ;;  %v21150_v24 = vld [vmem:[%s25168_s3 + $0x188] sm:$0xff]   ;;  %v14657_v27 = vld [vmem:[#allocation3 + $0x6b] ss:$2 sm:$0xff] }
 0xfa5   :  { %19186 = vmatmul.mubr.msk.bf16.gmra.mrb[180].mxu0 %vm10452_vm2, %v13686_v7  ;;  %v14179_v7 = vld [vmem:[#allocation3 + $0xb8] ss:$2 sm:$0xff] }
 0xfa6   :  { %19189 = vmatprep.mubr.msk.bf16.mxu0 %vm21198_vm0, %v25548_v47  ;;  %v14189_v45 = vpack.c.bf16 %v14179_v7, %v14178_v56  ;;  %v14661_v7 = vld [vmem:[#allocation3 + $0x8b] ss:$2 sm:$0xff] }
 0xfad   :  { %19190 = vmatmul.mubr.msk.bf16.gmra.mrb[184].mxu0 %vm10452_vm2, %v13687_v5  ;;  %v14181_v5 = vld [vmem:[#allocation3 + $0xd8] ss:$2 sm:$0xff] }
 0xfae   :  { %19193 = vmatprep.mubr.msk.bf16.mxu0 %vm21198_vm0, %v25548_v47  ;;  %v14190_v20 = vpack.c.bf16 %v14181_v5, %v14180_v40  ;;  %v14665_v5 = vld [vmem:[#allocation3 + $0xab] ss:$2 sm:$0xff] }
 0xfb5   :  { %19194 = vmatmul.mubr.msk.bf16.gmra.mrb[188].mxu0 %vm10452_vm2, %v13688_v35  ;;  %v14182_v35 = vld [vmem:[#allocation3 + $0xe8] ss:$2 sm:$0xff] }
 0xfb6   :  { %19201 = vmatprep.mubr.msk.bf16.mxu0 %vm21198_vm0, %v25548_v47  ;;  %v14191_v11 = vpack.c.bf16 %v14183_v44, %v14182_v35  ;;  %v14669_v44 = vld [vmem:[#allocation3 + $0xcb] ss:$2 sm:$0xff] }
 0xfbd   :  { %19202 = vmatmul.mubr.msk.bf16.vlgmr.msra.gmra.mrb[164].mxu0 %vm10452_vm2, %v13854_v6 }
 0xfbe   :  { %19230 = vmatpush3.bf16.msra.mxu0 %v21139_v58  ;;  %19205 = vmatprep.mubr.msk.bf16.mxu0 %vm21198_vm0, %v25548_v47  ;;  %v14185_v58 = vld [vmem:[#allocation3 + $0x108] ss:$2 sm:$0x1f] }
 0xfbf   :  { %19231 = vmatprep.subr.bf16.mxu0 %v25548_v47  ;;  %v14192_v6 = vpack.c.bf16 %v14185_v58, %v14185_v58 }
 0xfc2   :  { %19232 = vmatpush3.bf16.msra.mxu0 %v21140_v0  ;;  %v14332_v0 = vld [vmem:[#allocation3 + $0x49] ss:$2 sm:$0xff] }
 0xfc3   :  { %19261 = vmatprep.subr.bf16.mxu0 %v25548_v47 }
 0xfc5   :  { %19206 = vmatmul.mubr.msk.bf16.gmra.mrb[168].mxu0 %vm10452_vm2, %v13855_v3  ;;  %v14346_v3 = vpack.c.bf16 %v14333_v16, %v14332_v0  ;;  %v14675_v0 = vld [vmem:[#allocation3 + $0xfb] ss:$2 sm:$0xff] }
 0xfc6   :  { %19209 = vmatprep.mubr.msk.bf16.mxu0 %vm21198_vm0, %v25548_v47 }
 0xfcd   :  { %19210 = vmatmul.mubr.msk.bf16.gmra.mrb[172].mxu0 %vm10452_vm2, %v13856_v15  ;;  %v14335_v15 = vld [vmem:[#allocation3 + $0x79] ss:$2 sm:$0xff] }
 0xfce   :  { %19213 = vmatprep.mubr.msk.bf16.mxu0 %vm21198_vm0, %v25548_v47  ;;  %v14347_v52 = vpack.c.bf16 %v14335_v15, %v14334_v1  ;;  %v14827_v1 = vld [vmem:[#allocation3 + $0x5c] ss:$2 sm:$0xff] }
 0xfd5   :  { %19214 = vmatmul.mubr.msk.bf16.gmra.mrb[176].mxu0 %vm10452_vm2, %v13857_v33  ;;  %v14337_v33 = vld [vmem:[#allocation3 + $0x99] ss:$2 sm:$0xff] }
 0xfd6   :  { %19217 = vmatprep.mubr.msk.bf16.mxu0 %vm21198_vm0, %v25548_v47  ;;  %v14348_v8 = vpack.c.bf16 %v14337_v33, %v14336_v28  ;;  %v14831_v28 = vld [vmem:[#allocation3 + $0x7c] ss:$2 sm:$0xff] }
 0xfdd   :  { %19218 = vmatmul.mubr.msk.bf16.gmra.mrb[180].mxu0 %vm10452_vm2, %v13858_v30  ;;  %v14339_v30 = vld [vmem:[#allocation3 + $0xb9] ss:$2 sm:$0xff] }
 0xfde   :  { %19221 = vmatprep.mubr.msk.bf16.mxu0 %vm21198_vm0, %v25548_v47  ;;  %v14349_v39 = vpack.c.bf16 %v14339_v30, %v14338_v22  ;;  %v14835_v22 = vld [vmem:[#allocation3 + $0x9c] ss:$2 sm:$0xff] }
 0xfe5   :  { %19222 = vmatmul.mubr.msk.bf16.gmra.mrb[184].mxu0 %vm10452_vm2, %v13859_v26  ;;  %v14341_v26 = vld [vmem:[#allocation3 + $0xd9] ss:$2 sm:$0xff] }
 0xfe6   :  { %19225 = vmatprep.mubr.msk.bf16.mxu0 %vm21198_vm0, %v25548_v47  ;;  %v14350_v51 = vpack.c.bf16 %v14341_v26, %v14340_v2  ;;  %v14839_v2 = vld [vmem:[#allocation3 + $0xbc] ss:$2 sm:$0xff] }
 0xfed   :  { %19226 = vmatmul.mubr.msk.bf16.gmra.mrb[188].mxu0 %vm10452_vm2, %v13860_v63  ;;  %v14342_v63 = vld [vmem:[#allocation3 + $0xe9] ss:$2 sm:$0xff] }
 0xfee   :  { %19233 = vmatprep.mubr.msk.bf16.mxu0 %vm21198_vm0, %v25548_v47  ;;  %v14351_v37 = vpack.c.bf16 %v14343_v43, %v14342_v63  ;;  %v14843_v63 = vld [vmem:[#allocation3 + $0xdc] ss:$2 sm:$0xff] }
 0xff5   :  { %19234 = vmatmul.mubr.msk.bf16.vlgmr.msra.gmra.mrb[164].mxu0 %vm10452_vm2, %v14026_v4 }
 0xff6   :  { %19262 = vmatpush3.bf16.msra.mxu0 %v21141_v12  ;;  %19237 = vmatprep.mubr.msk.bf16.mxu0 %vm21198_vm0, %v25548_v47  ;;  %v14345_v12 = vld [vmem:[#allocation3 + $0x109] ss:$2 sm:$0x1f] }
 0xff7   :  { %19263 = vmatprep.subr.bf16.mxu0 %v25548_v47  ;;  %v14352_v4 = vpack.c.bf16 %v14345_v12, %v14345_v12  ;;  %v14847_v12 = vld [vmem:[#allocation3 + $0xfc] ss:$2 sm:$0xff] }
 0xffa   :  { %19264 = vmatpush3.bf16.msra.mxu0 %v21142_v62  ;;  %v14492_v62 = vld [vmem:[#allocation3 + $0x4a] ss:$2 sm:$0xff] }
 0xffb   :  { %19293 = vmatprep.subr.bf16.mxu0 %v25548_v47 }
 0xffd   :  { %19238 = vmatmul.mubr.msk.bf16.gmra.mrb[168].mxu0 %vm10452_vm2, %v14027_v36  ;;  %v14506_v36 = vpack.c.bf16 %v14493_v54, %v14492_v62  ;;  %v14849_v62 = vld [vmem:[#allocation3 + $0x10c] ss:$2 sm:$0x1f] }
 0xffe   :  { %19241 = vmatprep.mubr.msk.bf16.mxu0 %vm21198_vm0, %v25548_v47  ;;  %v14856_v54 = vpack.c.bf16 %v14849_v62, %v14849_v62 }
0x1005   :  { %19242 = vmatmul.mubr.msk.bf16.gmra.mrb[172].mxu0 %vm10452_vm2, %v14028_v59  ;;  %v14495_v59 = vld [vmem:[#allocation3 + $0x7a] ss:$2 sm:$0xff] }
0x1006   :  { %19245 = vmatprep.mubr.msk.bf16.mxu0 %vm21198_vm0, %v25548_v47  ;;  %v14507_v53 = vpack.c.bf16 %v14495_v59, %v14494_v49  ;;  %v24927_v59 = vpop.permute.xlu0 %15018 }
0x100d   :  { %19246 = vmatmul.mubr.msk.bf16.gmra.mrb[176].mxu0 %vm10452_vm2, %v14029_v23  ;;  %v14497_v23 = vld [vmem:[#allocation3 + $0x9a] ss:$2 sm:$0xff] }
0x100e   :  { %19249 = vmatprep.mubr.msk.bf16.mxu0 %vm21198_vm0, %v25548_v47  ;;  %v14508_v25 = vpack.c.bf16 %v14497_v23, %v14496_v29 }
0x1015   :  { %19250 = vmatmul.mubr.msk.bf16.gmra.mrb[180].mxu0 %vm10452_vm2, %v14030_v13  ;;  %v14499_v13 = vld [vmem:[#allocation3 + $0xba] ss:$2 sm:$0xff] }
0x1016   :  { %19253 = vmatprep.mubr.msk.bf16.mxu0 %vm21198_vm0, %v25548_v47  ;;  %v14509_v34 = vpack.c.bf16 %v14499_v13, %v14498_v18 }
0x101d   :  { %19254 = vmatmul.mubr.msk.bf16.gmra.mrb[184].mxu0 %vm10452_vm2, %v14031_v32  ;;  %v14501_v32 = vld [vmem:[#allocation3 + $0xda] ss:$2 sm:$0xff] }
0x101e   :  { %19257 = vmatprep.mubr.msk.bf16.mxu0 %vm21198_vm0, %v25548_v47  ;;  %v14510_v57 = vpack.c.bf16 %v14501_v32, %v14500_v48 }
0x1025   :  { %19258 = vmatmul.mubr.msk.bf16.gmra.mrb[188].mxu0 %vm10452_vm2, %v14032_v38  ;;  %v14502_v38 = vld [vmem:[#allocation3 + $0xea] ss:$2 sm:$0xff] }
0x1026   :  { %19265 = vmatprep.mubr.msk.bf16.mxu0 %vm21198_vm0, %v25548_v47  ;;  %v14511_v31 = vpack.c.bf16 %v14503_v61, %v14502_v38  ;;  %v24941_v38 = vpop.permute.xlu0 %15028 }
0x102d   :  { %19266 = vmatmul.mubr.msk.bf16.vlgmr.msra.gmra.mrb[164].mxu0 %vm10452_vm2, %v14186_v19 }
0x102e   :  { %19294 = vmatpush3.bf16.msra.mxu0 %v21143_v60  ;;  %19269 = vmatprep.mubr.msk.bf16.mxu0 %vm21198_vm0, %v25548_v47  ;;  %v14505_v60 = vld [vmem:[#allocation3 + $0x10a] ss:$2 sm:$0x1f] }
0x102f   :  { %19295 = vmatprep.subr.bf16.mxu0 %v25548_v47  ;;  %v14512_v19 = vpack.c.bf16 %v14505_v60, %v14505_v60 }
0x1032   :  { %19296 = vmatpush3.bf16.msra.mxu0 %v21144_v10  ;;  %v14653_v10 = vld [vmem:[#allocation3 + $0x4b] ss:$2 sm:$0xff] }
0x1033   :  { %19325 = vmatprep.subr.bf16.mxu0 %v25548_v47 }
0x1035   :  { %19270 = vmatmul.mubr.msk.bf16.gmra.mrb[168].mxu0 %vm10452_vm2, %v14187_v55  ;;  %v14678_v55 = vpack.c.bf16 %v14655_v14, %v14653_v10 }
0x1036   :  { %19273 = vmatprep.mubr.msk.bf16.mxu0 %vm21198_vm0, %v25548_v47 }
0x103d   :  { %19274 = vmatmul.mubr.msk.bf16.gmra.mrb[172].mxu0 %vm10452_vm2, %v14188_v46  ;;  %v14659_v46 = vld [vmem:[#allocation3 + $0x7b] ss:$2 sm:$0xff] }
0x103e   :  { %19277 = vmatprep.mubr.msk.bf16.mxu0 %vm21198_vm0, %v25548_v47  ;;  %v14679_v56 = vpack.c.bf16 %v14659_v46, %v14657_v27  ;;  %v21151_v27 = vld [vmem:[%s25169_s4 + $0x10] sm:$0xff]   ;;  %v21153_v46 = vld [vmem:[%s25169_s4 + $0x20] sm:$0xff]  }
0x103f   :  { %19470 = vmatpush3.bf16.msra.mxu1 %v21153_v46 }
0x1040   :  { %19471 = vmatprep.subr.bf16.mxu1 %v25548_v47 }
0x1045   :  { %19278 = vmatmul.mubr.msk.bf16.gmra.mrb[176].mxu0 %vm10452_vm2, %v14189_v45  ;;  %v14663_v45 = vld [vmem:[#allocation3 + $0x9b] ss:$2 sm:$0xff] }
0x1046   :  { %19281 = vmatprep.mubr.msk.bf16.mxu0 %vm21198_vm0, %v25548_v47  ;;  %v14680_v40 = vpack.c.bf16 %v14663_v45, %v14661_v7  ;;  %v24961_v45 = vpop.permute.xlu0 %15038 }
0x104d   :  { %19282 = vmatmul.mubr.msk.bf16.gmra.mrb[180].mxu0 %vm10452_vm2, %v14190_v20  ;;  %v14667_v20 = vld [vmem:[#allocation3 + $0xbb] ss:$2 sm:$0xff] }
0x104e   :  { %19285 = vmatprep.mubr.msk.bf16.mxu0 %vm21198_vm0, %v25548_v47  ;;  %v14681_v35 = vpack.c.bf16 %v14667_v20, %v14665_v5  ;;  %v21152_v5 = vld [vmem:[%s25169_s4 + $0x18] sm:$0xff]   ;;  %v21154_v20 = vld [vmem:[%s25169_s4 + $0x28] sm:$0xff]  }
0x104f   :  { %19472 = vmatpush3.bf16.msra.mxu1 %v21154_v20 }
0x1055   :  { %19286 = vmatmul.mubr.msk.bf16.gmra.mrb[184].mxu0 %vm10452_vm2, %v14191_v11  ;;  %v14671_v11 = vld [vmem:[#allocation3 + $0xdb] ss:$2 sm:$0xff] }
0x1056   :  { %19289 = vmatprep.mubr.msk.bf16.mxu0 %vm21198_vm0, %v25548_v47  ;;  %v14682_v58 = vpack.c.bf16 %v14671_v11, %v14669_v44 }
0x105d   :  { %19290 = vmatmul.mubr.msk.bf16.gmra.mrb[188].mxu0 %vm10452_vm2, %v14192_v6  ;;  %v14673_v6 = vld [vmem:[#allocation3 + $0xeb] ss:$2 sm:$0xff] }
0x105e   :  { %19297 = vmatprep.mubr.msk.bf16.mxu0 %vm21198_vm0, %v25548_v47  ;;  %v14683_v16 = vpack.c.bf16 %v14675_v0, %v14673_v6 }
0x1065   :  { %19298 = vmatmul.mubr.msk.bf16.vlgmr.msra.gmra.mrb[164].mxu0 %vm10452_vm2, %v14346_v3 }
0x1066   :  { %19326 = vmatpush3.bf16.msra.mxu0 %v21145_v17  ;;  %19301 = vmatprep.mubr.msk.bf16.mxu0 %vm21198_vm0, %v25548_v47  ;;  %v14677_v17 = vld [vmem:[#allocation3 + $0x10b] ss:$2 sm:$0x1f] }
0x1067   :  { %19327 = vmatprep.subr.bf16.mxu0 %v25548_v47  ;;  %v14684_v3 = vpack.c.bf16 %v14677_v17, %v14677_v17 }
0x106a   :  { %19328 = vmatpush3.bf16.msra.mxu0 %v21146_v21  ;;  %v14825_v21 = vld [vmem:[#allocation3 + $0x4c] ss:$2 sm:$0xff] }
0x106b   :  { %19357 = vmatprep.subr.bf16.mxu0 %v25548_v47  ;;  %v14850_v15 = vpack.c.bf16 %v14827_v1, %v14825_v21  ;;  %v24981_v1 = vpop.permute.xlu0 %15048 }
0x106d   :  { %19302 = vmatmul.mubr.msk.bf16.gmra.mrb[168].mxu0 %vm10452_vm2, %v14347_v52  ;;  %v14829_v52 = vld [vmem:[#allocation3 + $0x6c] ss:$2 sm:$0xff] }
0x106e   :  { %19305 = vmatprep.mubr.msk.bf16.mxu0 %vm21198_vm0, %v25548_v47  ;;  %v14851_v33 = vpack.c.bf16 %v14831_v28, %v14829_v52 }
0x1075   :  { %19306 = vmatmul.mubr.msk.bf16.gmra.mrb[172].mxu0 %vm10452_vm2, %v14348_v8  ;;  %v14833_v8 = vld [vmem:[#allocation3 + $0x8c] ss:$2 sm:$0xff] }
0x1076   :  { %19309 = vmatprep.mubr.msk.bf16.mxu0 %vm21198_vm0, %v25548_v47  ;;  %v14852_v30 = vpack.c.bf16 %v14835_v22, %v14833_v8 }
0x107d   :  { %19310 = vmatmul.mubr.msk.bf16.gmra.mrb[176].mxu0 %vm10452_vm2, %v14349_v39  ;;  %v14837_v39 = vld [vmem:[#allocation3 + $0xac] ss:$2 sm:$0xff] }
0x107e   :  { %19313 = vmatprep.mubr.msk.bf16.mxu0 %vm21198_vm0, %v25548_v47  ;;  %v14853_v26 = vpack.c.bf16 %v14839_v2, %v14837_v39 }
0x1085   :  { %19314 = vmatmul.mubr.msk.bf16.gmra.mrb[180].mxu0 %vm10452_vm2, %v14350_v51  ;;  %v14841_v51 = vld [vmem:[#allocation3 + $0xcc] ss:$2 sm:$0xff] }
0x1086   :  { %19317 = vmatprep.mubr.msk.bf16.mxu0 %vm21198_vm0, %v25548_v47  ;;  %v14854_v43 = vpack.c.bf16 %v14843_v63, %v14841_v51  ;;  %v24989_v63 = vpop.permute.xlu0 %15058 }
0x108d   :  { %19318 = vmatmul.mubr.msk.bf16.gmra.mrb[184].mxu0 %vm10452_vm2, %v14351_v37  ;;  %v14845_v37 = vld [vmem:[#allocation3 + $0xec] ss:$2 sm:$0xff] }
0x108e   :  { %19321 = vmatprep.mubr.msk.bf16.mxu0 %vm21198_vm0, %v25548_v47 }
0x1095   :  { %19322 = vmatmul.mubr.msk.bf16.gmra.mrb[188].mxu0 %vm10452_vm2, %v14352_v4  ;;  %v14855_v4 = vpack.c.bf16 %v14847_v12, %v14845_v37 }
0x1096   :  { %19329 = vmatprep.mubr.msk.bf16.mxu0 %vm21198_vm0, %v25548_v47 }
0x109d   :  { %19330 = vmatmul.mubr.msk.bf16.vlgmr.msra.gmra.mrb[164].mxu0 %vm10452_vm2, %v14506_v36 }
0x109e   :  { %19358 = vmatpush3.bf16.msra.mxu0 %v21147_v42  ;;  %19333 = vmatprep.mubr.msk.bf16.mxu0 %vm21198_vm0, %v25548_v47  ;;  %v24921_v42 = vpop.permute.xlu1 %15013 }
0x109f   :  { %19359 = vmatprep.subr.bf16.mxu0 %v25548_v47 }
0x10a2   :  { %19360 = vmatpush3.bf16.msra.mxu0 %v21148_v50 }
0x10a3   :  { %19389 = vmatprep.subr.bf16.mxu0 %v25548_v47 }
0x10a5   :  { %19334 = vmatmul.mubr.msk.bf16.gmra.mrb[168].mxu0 %vm10452_vm2, %v14507_v53 }
0x10a6   :  { %19337 = vmatprep.mubr.msk.bf16.mxu0 %vm21198_vm0, %v25548_v47 }
0x10ad   :  { %19338 = vmatmul.mubr.msk.bf16.gmra.mrb[172].mxu0 %vm10452_vm2, %v14508_v25 }
0x10ae   :  { %19341 = vmatprep.mubr.msk.bf16.mxu0 %vm21198_vm0, %v25548_v47 }
0x10b5   :  { %19342 = vmatmul.mubr.msk.bf16.gmra.mrb[176].mxu0 %vm10452_vm2, %v14509_v34  ;;  %v24935_v34 = vpop.permute.xlu1 %15023 }
0x10b6   :  { %19345 = vmatprep.mubr.msk.bf16.mxu0 %vm21198_vm0, %v25548_v47 }
0x10bd   :  { %19346 = vmatmul.mubr.msk.bf16.gmra.mrb[180].mxu0 %vm10452_vm2, %v14510_v57 }
0x10be   :  { %19349 = vmatprep.mubr.msk.bf16.mxu0 %vm21198_vm0, %v25548_v47 }
0x10c5   :  { %19350 = vmatmul.mubr.msk.bf16.gmra.mrb[184].mxu0 %vm10452_vm2, %v14511_v31 }
0x10c6   :  { %19353 = vmatprep.mubr.msk.bf16.mxu0 %vm21198_vm0, %v25548_v47 }
0x10cd   :  { %19354 = vmatmul.mubr.msk.bf16.gmra.mrb[188].mxu0 %vm10452_vm2, %v14512_v19 }
0x10ce   :  { %19361 = vmatprep.mubr.msk.bf16.mxu0 %vm21198_vm0, %v25548_v47 }
0x10d5   :  { %19362 = vmatmul.mubr.msk.bf16.vlgmr.msra.gmra.mrb[164].mxu0 %vm10452_vm2, %v14678_v55  ;;  %v24949_v55 = vpop.permute.xlu1 %15033 }
0x10d6   :  { %19390 = vmatpush3.bf16.msra.mxu0 %v21149_v9  ;;  %19365 = vmatprep.mubr.msk.bf16.mxu0 %vm21198_vm0, %v25548_v47 }
0x10d7   :  { %19391 = vmatprep.subr.bf16.mxu0 %v25548_v47 }
0x10da   :  { %19392 = vmatpush3.bf16.msra.mxu0 %v21150_v24 }
0x10db   :  { %19421 = vmatprep.subr.bf16.mxu0 %v25548_v47 }
0x10dd   :  { %19366 = vmatmul.mubr.msk.bf16.gmra.mrb[168].mxu0 %vm10452_vm2, %v14679_v56 }
0x10de   :  { %19369 = vmatprep.mubr.msk.bf16.mxu0 %vm21198_vm0, %v25548_v47 }
0x10e5   :  { %19370 = vmatmul.mubr.msk.bf16.gmra.mrb[172].mxu0 %vm10452_vm2, %v14680_v40 }
0x10e6   :  { %19373 = vmatprep.mubr.msk.bf16.mxu0 %vm21198_vm0, %v25548_v47 }
0x10ed   :  { %19374 = vmatmul.mubr.msk.bf16.gmra.mrb[176].mxu0 %vm10452_vm2, %v14681_v35 }
0x10ee   :  { %19377 = vmatprep.mubr.msk.bf16.mxu0 %vm21198_vm0, %v25548_v47 }
0x10f5   :  { %19378 = vmatmul.mubr.msk.bf16.gmra.mrb[180].mxu0 %vm10452_vm2, %v14682_v58 }
0x10f6   :  { %19381 = vmatprep.mubr.msk.bf16.mxu0 %vm21198_vm0, %v25548_v47 }
0x10fd   :  { %19382 = vmatmul.mubr.msk.bf16.gmra.mrb[184].mxu0 %vm10452_vm2, %v14683_v16  ;;  %v24978_v16 = vpop.permute.xlu1 %15043 }
0x10fe   :  { %19385 = vmatprep.mubr.msk.bf16.mxu0 %vm21198_vm0, %v25548_v47 }
0x1101   :  { %v24986_v39 = vpop.permute.xlu1 %15053 }
0x1105   :  { %19386 = vmatmul.mubr.msk.bf16.gmra.mrb[188].mxu0 %vm10452_vm2, %v14684_v3 }
0x1106   :  { %19393 = vmatprep.mubr.msk.bf16.mxu0 %vm21198_vm0, %v25548_v47 }
0x110d   :  { %19394 = vmatmul.mubr.msk.bf16.vlgmr.msra.gmra.mrb[164].mxu0 %vm10452_vm2, %v14850_v15 }
0x110e   :  { %19397 = vmatprep.mubr.msk.bf16.mxu0 %vm21198_vm0, %v25548_v47  ;;  %19422 = vmatpush3.bf16.msra.mxu0 %v21151_v27 }
0x110f   :  { %19423 = vmatprep.subr.bf16.mxu0 %v25548_v47 }
0x1112   :  { %19424 = vmatpush3.bf16.msra.mxu0 %v21152_v5 }
0x1113   :  { %19429 = vmatprep.subr.bf16.mxu0 %v25548_v47 }
0x1115   :  { %19398 = vmatmul.mubr.msk.bf16.gmra.mrb[168].mxu0 %vm10452_vm2, %v14851_v33 }
0x1116   :  { %19401 = vmatprep.mubr.msk.bf16.mxu0 %vm21198_vm0, %v25548_v47 }
0x111d   :  { %19402 = vmatmul.mubr.msk.bf16.gmra.mrb[172].mxu0 %vm10452_vm2, %v14852_v30 }
0x111e   :  { %19405 = vmatprep.mubr.msk.bf16.mxu0 %vm21198_vm0, %v25548_v47 }
0x1125   :  { %19406 = vmatmul.mubr.msk.bf16.gmra.mrb[176].mxu0 %vm10452_vm2, %v14853_v26 }
0x1126   :  { %19409 = vmatprep.mubr.msk.bf16.mxu0 %vm21198_vm0, %v25548_v47 }
0x112d   :  { %19410 = vmatmul.mubr.msk.bf16.gmra.mrb[180].mxu0 %vm10452_vm2, %v14854_v43 }
0x112e   :  { %19413 = vmatprep.mubr.msk.bf16.mxu0 %vm21198_vm0, %v25548_v47 }
0x1135   :  { %19414 = vmatmul.mubr.msk.bf16.gmra.mrb[184].mxu0 %vm10452_vm2, %v14855_v4 }
0x1136   :  { %19417 = vmatprep.mubr.msk.bf16.mxu0 %vm21198_vm0, %v25548_v47 }
0x113d   :  { %19418 = vmatmul.mubr.msk.bf16.gmra.mrb[188].mxu0 %vm10452_vm2, %v14856_v54 }
0x113e   :  { %19425 = vmatprep.mubr.msk.bf16.mxu0 %vm21198_vm0, %v25548_v47 }
0x11e0   :  { %v24923_v36 = vpop.f32.mrb[164].mxu0 }
0x11e1   :  { %v15076_v50 = vmul.f32 %v24921_v42, %v24923_v36  ;;  %v19395_v49 = vpop.f32.mrb[165].mxu0 }
0x11e2   :  { %v24929_v53 = vpop.f32.mrb[166].mxu0  ;;  %v24994_v49 = vpop.permute.xlu1 %15063 }
0x11e3   :  { %v15077_v29 = vmul.f32 %v24927_v59, %v24929_v53  ;;  %v19396_v23 = vpop.f32.mrb[167].mxu0  ;;  %v15089_v25 = vsel %vm10452_vm2, %v15076_v50, 0.0 }
0x11e5   :  { %v15090_v18 = vsel %vm10452_vm2, %v15077_v29, 0.0 }
0x11e6   :  { %v15091_v13 = vadd.f32 %v15090_v18, %v15089_v25  ;;  %v25000_v18 = vpop.permute.xlu0 %15068 }
0x11e8   :  { %v24937_v48 = vpop.f32.mrb[168].mxu0 }
0x11e9   :  { %v15078_v32 = vmul.f32 %v24935_v34, %v24937_v48  ;;  %v19399_v57 = vpop.f32.mrb[169].mxu0 }
0x11ea   :  { %v24943_v61 = vpop.f32.mrb[170].mxu0 }
0x11eb   :  { %v15092_v31 = vsel %vm10452_vm2, %v15078_v32, 0.0  ;;  %v15079_v60 = vmul.f32 %v24941_v38, %v24943_v61  ;;  %v19400_v19 = vpop.f32.mrb[171].mxu0 }
0x11ec   :  { %v15093_v10 = vadd.f32 %v15092_v31, %v15091_v13 }
0x11ed   :  { %v15094_v14 = vsel %vm10452_vm2, %v15079_v60, 0.0 }
0x11ee   :  { %v15095_v9 = vadd.f32 %v15094_v14, %v15093_v10  ;;  %v25005_v14 = vpop.permute.xlu1 %15073 }
0x11f0   :  { %v24951_v24 = vpop.f32.mrb[172].mxu0 }
0x11f1   :  { %v15080_v56 = vmul.f32 %v24949_v55, %v24951_v24  ;;  %v19403_v7 = vpop.f32.mrb[173].mxu0 }
0x11f2   :  { %v24963_v40 = vpop.f32.mrb[174].mxu0 }
0x11f3   :  { %v15096_v35 = vsel %vm10452_vm2, %v15080_v56, 0.0  ;;  %v15081_v44 = vmul.f32 %v24961_v45, %v24963_v40  ;;  %v19404_v11 = vpop.f32.mrb[175].mxu0 }
0x11f4   :  { %v15097_v58 = vadd.f32 %v15096_v35, %v15095_v9 }
0x11f5   :  { %v15098_v6 = vsel %vm10452_vm2, %v15081_v44, 0.0 }
0x11f6   :  { %v15099_v0 = vadd.f32 %v15098_v6, %v15097_v58 }
0x11f8   :  { %v14953_v17 = vpop.f32.mrb[176].mxu0 }
0x11f9   :  { %v15082_v3 = vmul.f32 %v24978_v16, %v14953_v17  ;;  %v19407_v21 = vpop.f32.mrb[177].mxu0 }
0x11fa   :  { %v14956_v15 = vpop.f32.mrb[178].mxu0 }
0x11fb   :  { %v15100_v52 = vsel %vm10452_vm2, %v15082_v3, 0.0  ;;  %v15083_v28 = vmul.f32 %v24981_v1, %v14956_v15  ;;  %v19408_v33 = vpop.f32.mrb[179].mxu0 }
0x11fc   :  { %v15101_v8 = vadd.f32 %v15100_v52, %v15099_v0 }
0x11fd   :  { %v15102_v22 = vsel %vm10452_vm2, %v15083_v28, 0.0 }
0x11fe   :  { %v15103_v30 = vadd.f32 %v15102_v22, %v15101_v8 }
0x1200   :  { %v14961_v2 = vpop.f32.mrb[180].mxu0 }
0x1201   :  { %v15084_v26 = vmul.f32 %v24986_v39, %v14961_v2  ;;  %v19411_v51 = vpop.f32.mrb[181].mxu0 }
0x1202   :  { %v14964_v43 = vpop.f32.mrb[182].mxu0 }
0x1203   :  { %v15104_v37 = vsel %vm10452_vm2, %v15084_v26, 0.0  ;;  %v15085_v12 = vmul.f32 %v24989_v63, %v14964_v43  ;;  %v19412_v4 = vpop.f32.mrb[183].mxu0 }
0x1204   :  { %v15105_v62 = vadd.f32 %v15104_v37, %v15103_v30 }
0x1205   :  { %v15106_v54 = vsel %vm10452_vm2, %v15085_v12, 0.0 }
0x1206   :  { %v15107_v50 = vadd.f32 %v15106_v54, %v15105_v62 }
0x1208   :  { %v24996_v29 = vpop.f32.mrb[184].mxu0 }
0x1209   :  { %v15086_v23 = vmul.f32 %v24994_v49, %v24996_v29  ;;  %v19415_v25 = vpop.f32.mrb[185].mxu0 }
0x120a   :  { %v14972_v13 = vpop.f32.mrb[186].mxu0 }
0x120b   :  { %v15108_v32 = vsel %vm10452_vm2, %v15086_v23, 0.0  ;;  %v15087_v57 = vmul.f32 %v25000_v18, %v14972_v13  ;;  %v19416_v31 = vpop.f32.mrb[187].mxu0 }
0x120c   :  { %v15109_v60 = vadd.f32 %v15108_v32, %v15107_v50 }
0x120d   :  { %v15110_v19 = vsel %vm10452_vm2, %v15087_v57, 0.0 }
0x120e   :  { %v15111_v10 = vadd.f32 %v15110_v19, %v15109_v60 }
0x1210   :  { %v25007_v9 = vpop.f32.mrb[188].mxu0 }
0x1211   :  { %v15088_v27 = vmul.f32 %v25005_v14, %v25007_v9  ;;  %v19419_v46 = vpop.f32.mrb[189].mxu0 }
0x1212   :  { %v14980_v56 = vpop.f32.mrb[190].mxu0 }
0x1213   :  { %v15112_v7 = vsel %vm10520_vm3, %v15088_v27, 0.0  ;;  %v19420_v5 = vpop.f32.mrb[191].mxu0 }
0x1214   :  { %v15113_v20 = vadd.f32 %v15112_v7, %v15111_v10 }
0x1216   :  { %v15114_v35 = vrot.slane %v15113_v20, 4 }
0x1218   :  { %v15115_v44 = vadd.f32 %v15114_v35, %v15113_v20 }
0x121a   :  { %v15116_v11 = vrot.slane %v15115_v44, 2 }
0x121c   :  { %v15117_v58 = vadd.f32 %v15116_v11, %v15115_v44 }
0x121e   :  { %v15118_v6 = vrot.slane %v15117_v58, 1 }
0x1220   :  { %v15119_v0 = vadd.f32 %v15118_v6, %v15117_v58 }
0x1222   :  { %v25012_v3 = vmul.f32 0.125, %v15119_v0 }
0x1224   :  { %v15121_v21 = vsub.f32 %v24923_v36, %v25012_v3  ;;  %v15122_v52 = vsub.f32 %v24929_v53, %v25012_v3  ;;  %v15123_v28 = vsub.f32 %v24937_v48, %v25012_v3  ;;  %v15124_v33 = vsub.f32 %v24943_v61, %v25012_v3 }
0x1225   :  { %v15125_v8 = vsub.f32 %v24951_v24, %v25012_v3  ;;  %v15126_v22 = vsub.f32 %v24963_v40, %v25012_v3  ;;  %v15127_v30 = vsub.f32 %v14953_v17, %v25012_v3  ;;  %v15128_v26 = vsub.f32 %v14956_v15, %v25012_v3 }
0x1226   :  { %v15129_v51 = vsub.f32 %v14961_v2, %v25012_v3  ;;  %v15130_v53 = vsub.f32 %v14964_v43, %v25012_v3  ;;  %v15131_v37 = vsub.f32 %v24996_v29, %v25012_v3  ;;  %v15132_v12 = vsub.f32 %v14972_v13, %v25012_v3 }
0x1227   :  { %v15133_v61 = vsub.f32 %v25007_v9, %v25012_v3  ;;  %v15134_v24 = vmul.f32 %v15121_v21, %v15121_v21  ;;  %v15135_v4 = vmul.f32 %v15122_v52, %v15122_v52  ;;  %v15136_v62 = vmul.f32 %v15123_v28, %v15123_v28 }
0x1228   :  { %v15137_v40 = vmul.f32 %v15124_v33, %v15124_v33  ;;  %v15138_v54 = vmul.f32 %v15125_v8, %v15125_v8  ;;  %v15139_v50 = vmul.f32 %v15126_v22, %v15126_v22  ;;  %v15140_v32 = vmul.f32 %v15127_v30, %v15127_v30 }
0x1229   :  { %v15147_v17 = vmul.f32 %v15134_v24, %v24921_v42  ;;  %v15148_v15 = vmul.f32 %v15135_v4, %v24927_v59  ;;  %v15149_v2 = vmul.f32 %v15136_v62, %v24935_v34  ;;  %v15141_v42 = vmul.f32 %v15128_v26, %v15128_v26 }
0x122a   :  { %v15150_v23 = vmul.f32 %v15137_v40, %v24941_v38  ;;  %v15151_v57 = vmul.f32 %v15138_v54, %v24949_v55  ;;  %v15152_v59 = vmul.f32 %v15139_v50, %v24961_v45  ;;  %v15142_v10 = vmul.f32 %v15129_v51, %v15129_v51 }
0x122b   :  { %v15160_v43 = vsel %vm10452_vm2, %v15147_v17, 0.0  ;;  %v15161_v25 = vsel %vm10452_vm2, %v15148_v15, 0.0  ;;  %v15163_v31 = vsel %vm10452_vm2, %v15149_v2, 0.0  ;;  %v15153_v27 = vmul.f32 %v15140_v32, %v24978_v16  ;;  %v14997_v15 = vld [vmem:[%s25174_s9] sm:$0x1] }
0x122c   :  { %v15162_v13 = vadd.f32 %v15161_v25, %v15160_v43  ;;  %v15165_v19 = vsel %vm10452_vm2, %v15150_v23, 0.0  ;;  %v15167_v38 = vsel %vm10452_vm2, %v15151_v57, 0.0  ;;  %v15143_v56 = vmul.f32 %v15130_v53, %v15130_v53 }
0x122d   :  { %v15154_v7 = vmul.f32 %v15141_v42, %v24981_v1  ;;  %v15169_v55 = vsel %vm10452_vm2, %v15152_v59, 0.0  ;;  %v15144_v20 = vmul.f32 %v15131_v37, %v15131_v37  ;;  %v15155_v35 = vmul.f32 %v15142_v10, %v24986_v39  ;;  %v21156_v10 = vld [vmem:[%s25169_s4 + $0x8] sm:$0xff]  }
0x122e   :  { %v15164_v60 = vadd.f32 %v15163_v31, %v15162_v13  ;;  %v15171_v45 = vsel %vm10452_vm2, %v15153_v27, 0.0  ;;  %v15145_v11 = vmul.f32 %v15132_v12, %v15132_v12  ;;  %v15156_v58 = vmul.f32 %v15143_v56, %v24989_v63  ;;  %v21158_v56 = vld [vmem:[%s25169_s4 + $0x28] sm:$0xff]  }
0x122f   :  { %v15173_v16 = vsel %vm10452_vm2, %v15154_v7, 0.0  ;;  %v15146_v0 = vmul.f32 %v15133_v61, %v15133_v61  ;;  %v15157_v21 = vmul.f32 %v15144_v20, %v24994_v49  ;;  %v15175_v1 = vsel %vm10452_vm2, %v15155_v35, 0.0  ;;  %v21160_v20 = vld [vmem:[%s25169_s4 + $0x38] sm:$0xff]  }
0x1230   :  { %v15166_v34 = vadd.f32 %v15165_v19, %v15164_v60  ;;  %v15158_v28 = vmul.f32 %v15145_v11, %v25000_v18  ;;  %v15177_v33 = vsel %vm10452_vm2, %v15156_v58, 0.0  ;;  %v21162_v11 = vld [vmem:[%s25169_s4 + $0x18] sm:$0xff]  }
0x1231   :  { %v15159_v8 = vmul.f32 %v15146_v0, %v25005_v14  ;;  %v15179_v22 = vsel %vm10452_vm2, %v15157_v21, 0.0  ;;  %v14996_v14 = vld [vmem:[%s25173_s8] sm:$0x1]  ;;  %v21164_v0 = vld [vmem:[%s25169_s4 + $0x8] sm:$0xff]   ;;  %s15769_s8 = sshll.u32 %s21200_s25, 4  ;;  %s15770_s8 = int_to_ptr.vmem [resolvable:$true] %s15769_s8 }
0x1232   :  { %v15168_v46 = vadd.f32 %v15167_v38, %v15166_v34  ;;  %v15181_v63 = vsel %vm10452_vm2, %v15158_v28, 0.0  ;;  %v21157_v38 = vld [vmem:[%s25169_s4 + $0x20] sm:$0xff]   ;;  %v21166_v28 = vld [vmem:[%s25169_s4 + $0x38] sm:$0xff]   ;;  %s21173_s9 = scalar_lea.vmem %s15770_s8, 32  ;;  %p21178_p1 = scmp.lt.s32.totalorder %s15770_s8, %s15770_s8 }
0x1233   :  { %v15183_v51 = vsel %vm10520_vm3, %v15159_v8, 0.0  ;;  %p21174_p0 = scmp.ne.s32.totalorder %s15770_s8, %s21173_s9  ;;  %p21179_p2 = scmp.lt.s32.totalorder %s21173_s9, %s21173_s9 }
0x1234   :  { %v15170_v5 = vadd.f32 %v15169_v55, %v15168_v46  ;;  %v21159_v55 = vld [vmem:[%s25169_s4 + $0x30] sm:$0xff]  }
0x1235   :  { %p21180_p3 = por %p21179_p2, %p21178_p1 }
0x1236   :  { %v15172_v44 = vadd.f32 %v15171_v45, %v15170_v5  ;;  %v21161_v45 = vld [vmem:[%s25169_s4 + $0x10] sm:$0xff]  }
0x1237   :  { %p21181_p4 = pnand %p21180_p3, %p21174_p0 }
0x1238   :  { %v15174_v6 = vadd.f32 %v15173_v16, %v15172_v44  ;;  %v21163_v16 = vld [vmem:[%s25169_s4] sm:$0xff]  }
0x123a   :  { %v15176_v52 = vadd.f32 %v15175_v1, %v15174_v6  ;;  %v21165_v1 = vld [vmem:[%s25169_s4 + $0x30] sm:$0xff]  }
0x123c   :  { %v15178_v39 = vadd.f32 %v15177_v33, %v15176_v52 }
0x123e   :  { %v15180_v30 = vadd.f32 %v15179_v22, %v15178_v39 }
0x1240   :  { %v15182_v26 = vadd.f32 %v15181_v63, %v15180_v30 }
0x1242   :  { %v15184_v53 = vadd.f32 %v15183_v51, %v15182_v26 }
0x1244   :  { %v15185_v49 = vrot.slane %v15184_v53, 4 }
0x1246   :  { %v15186_v37 = vadd.f32 %v15185_v49, %v15184_v53 }
0x1248   :  { %v15187_v12 = vrot.slane %v15186_v37, 2 }
0x124a   :  { %v15188_v61 = vadd.f32 %v15187_v12, %v15186_v37 }
0x124c   :  { %v15189_v24 = vrot.slane %v15188_v61, 1 }
0x124e   :  { %v15190_v18 = vadd.f32 %v15189_v24, %v15188_v61 }
0x1250   :  { %v15191_v4 = vmul.f32 0.125, %v15190_v18 }
0x1252   :  { %v15192_v62 = vadd.f32 1e-05, %v15191_v4 }
0x1254   :  { %21171 = vrsqrt.f32 %v15192_v62 }
0x125e   :  { %v21172_v40 = vpop.eup %21171 }
0x125f   :  { %v15194_v17 = vmul.f32 %v21172_v40, %v14996_v14 }
0x1261   :  { %v15195_v54 = vmul.f32 %v15194_v17, %v25012_v3  ;;  %v15201_v2 = vrot.slane %v15194_v17, %v25546_v41 }
0x1263   :  { %v15196_v43 = vsub.f32 %v14997_v15, %v15195_v54  ;;  %v15215_v50 = vmul.f32 %v15201_v2, %v25007_v9  ;;  %v15203_v25 = vmul.f32 %v15201_v2, %v24923_v36  ;;  %v15205_v13 = vmul.f32 %v15201_v2, %v24937_v48  ;;  %v15510_v15 = vld [vmem:[%s25170_s5] sm:$0x1] }
0x1264   :  { %v15213_v32 = vmul.f32 %v15201_v2, %v24996_v29  ;;  %v21155_v29 = vld [vmem:[%s25169_s4] sm:$0xff]  }
0x1265   :  { %v15220_v23 = vrot.slane %v15196_v43, %v25546_v41 }
0x1267   :  { %v15234_v57 = vadd.f32 %v15220_v23, %v15215_v50  ;;  %v15222_v60 = vadd.f32 %v15220_v23, %v15203_v25  ;;  %v15224_v42 = vadd.f32 %v15220_v23, %v15205_v13  ;;  %v15232_v59 = vadd.f32 %v15220_v23, %v15213_v32 }
0x1269   :  { %v15247_v31 = vmax.f32 %v15234_v57, 0.0  ;;  %v15235_v3 = vmax.f32 %v15222_v60, 0.0  ;;  %v15237_v19 = vmax.f32 %v15224_v42, 0.0  ;;  %v15245_v34 = vmax.f32 %v15232_v59, 0.0 }
0x126b   :  { %15260 = vst.msk [vmem:[#allocation4 + $0x60] sm:$0x1f] %vm10520_vm3, %v15247_v31 }
0x126c   :  { %15248 = vst.msk [vmem:[#allocation4] sm:$0xff] %vm10452_vm2, %v15235_v3  ;;  %15250 = vst.msk [vmem:[#allocation4 + $0x10] sm:$0xff] %vm10452_vm2, %v15237_v19 }
0x126d   :  { %15258 = vst.msk [vmem:[#allocation4 + $0x50] sm:$0xff] %vm10452_vm2, %v15245_v34 }
0x1272   :  { %v15636_v41 = vld [vmem:[#allocation4 + $0x63] sm:$0x1]  ;;  %v15698_v33 = vld [vmem:[#allocation4 + $0x64] sm:$0x1] }
0x1273   :  { %v15637_v36 = vpack.c.bf16 %v15636_v41, %v15636_v41  ;;  %v15267_v48 = vld [vmem:[#allocation4 + $0x1] sm:$0x1]  ;;  %v15261_v27 = vld [vmem:[#allocation4] sm:$0x1]  ;;  %v15384_v7 = vld [vmem:[#allocation4 + $0x12] sm:$0x1]  ;;  %v15699_v39 = vpack.c.bf16 %v15698_v33, %v15698_v33 }
0x1274   :  { %v15268_v9 = vpack.c.bf16 %v15267_v48, %v15267_v48  ;;  %v15262_v46 = vpack.c.bf16 %v15261_v27, %v15261_v27  ;;  %v15385_v5 = vpack.c.bf16 %v15384_v7, %v15384_v7  ;;  %v15447_v35 = vld [vmem:[#allocation4 + $0x13] sm:$0x1]  ;;  %v15520_v58 = vld [vmem:[#allocation4 + $0x52] sm:$0x1]  ;;  %v15514_v21 = vld [vmem:[#allocation4 + $0x51] sm:$0x1] }
0x1275   :  { %19474 = vmatmul.mubr.msk.bf16.vlgmr.msra.gmra.mrb[36].mxu1 %vm10452_vm2, %v15637_v36  ;;  %v15448_v44 = vpack.c.bf16 %v15447_v35, %v15447_v35  ;;  %v15521_v6 = vpack.c.bf16 %v15520_v58, %v15520_v58  ;;  %v15515_v52 = vpack.c.bf16 %v15514_v21, %v15514_v21  ;;  %v15760_v41 = vld [vmem:[%s25170_s5] sm:$0x1] }
0x1276   :  { %19426 = vmatmul.mubr.msk.bf16.vlgmr.msra.gmra.mrb[192].mxu0 %vm10452_vm2, %v15268_v9 }
0x1277   :  { %19430 = vmatpush3.bf16.msra.mxu0 %v21155_v29  ;;  %19433 = vmatprep.mubr.msk.bf16.mxu0 %vm21198_vm0, %v25548_v47 }
0x1278   :  { %19431 = vmatprep.subr.bf16.mxu0 %v25548_v47 }
0x127b   :  { %19432 = vmatpush3.bf16.msra.mxu0 %v21156_v10 }
0x127c   :  { %19437 = vmatprep.subr.bf16.mxu0 %v25548_v47 }
0x127e   :  { %19434 = vmatmul.mubr.msk.bf16.vlgmr.msra.gmra.mrb[196].mxu0 %vm10452_vm2, %v15262_v46 }
0x127f   :  { %19438 = vmatpush3.bf16.msra.mxu0 %v21157_v38  ;;  %19441 = vmatprep.mubr.msk.bf16.mxu0 %vm21198_vm0, %v25548_v47 }
0x1280   :  { %19439 = vmatprep.subr.bf16.mxu0 %v25548_v47 }
0x1283   :  { %19440 = vmatpush3.bf16.msra.mxu0 %v21158_v56 }
0x1284   :  { %19445 = vmatprep.subr.bf16.mxu0 %v25548_v47 }
0x1286   :  { %19442 = vmatmul.mubr.msk.bf16.vlgmr.msra.gmra.mrb[200].mxu0 %vm10452_vm2, %v15385_v5 }
0x1287   :  { %19446 = vmatpush3.bf16.msra.mxu0 %v21159_v55  ;;  %19449 = vmatprep.mubr.msk.bf16.mxu0 %vm21198_vm0, %v25548_v47 }
0x1288   :  { %19447 = vmatprep.subr.bf16.mxu0 %v25548_v47 }
0x128b   :  { %19448 = vmatpush3.bf16.msra.mxu0 %v21160_v20 }
0x128c   :  { %19453 = vmatprep.subr.bf16.mxu0 %v25548_v47 }
0x128e   :  { %19450 = vmatmul.mubr.msk.bf16.vlgmr.msra.gmra.mrb[204].mxu0 %vm10452_vm2, %v15448_v44 }
0x128f   :  { %19454 = vmatpush3.bf16.msra.mxu0 %v21161_v45  ;;  %19457 = vmatprep.mubr.msk.bf16.mxu0 %vm21198_vm0, %v25548_v47 }
0x1290   :  { %19455 = vmatprep.subr.bf16.mxu0 %v25548_v47 }
0x1293   :  { %19456 = vmatpush3.bf16.msra.mxu0 %v21162_v11 }
0x1294   :  { %19461 = vmatprep.subr.bf16.mxu0 %v25548_v47 }
0x1296   :  { %19458 = vmatmul.mubr.msk.bf16.vlgmr.msra.gmra.mrb[208].mxu0 %vm10452_vm2, %v15521_v6 }
0x1297   :  { %19462 = vmatpush3.bf16.msra.mxu0 %v21163_v16  ;;  %19465 = vmatprep.mubr.msk.bf16.mxu0 %vm21198_vm0, %v25548_v47 }
0x1298   :  { %19463 = vmatprep.subr.bf16.mxu0 %v25548_v47 }
0x129b   :  { %19464 = vmatpush3.bf16.msra.mxu0 %v21164_v0 }
0x129c   :  { %19477 = vmatprep.subr.bf16.mxu0 %v25548_v47 }
0x129e   :  { %19466 = vmatmul.mubr.msk.bf16.vlgmr.msra.gmra.mrb[212].mxu0 %vm10452_vm2, %v15515_v52 }
0x129f   :  { %19478 = vmatpush3.bf16.msra.mxu0 %v21165_v1  ;;  %19481 = vmatprep.mubr.msk.bf16.mxu0 %vm21198_vm0, %v25548_v47 }
0x12a0   :  { %19479 = vmatprep.subr.bf16.mxu0 %v25548_v47 }
0x12a3   :  { %19480 = vmatpush3.bf16.msra.mxu0 %v21166_v28 }
0x12a6   :  { %19482 = vmatmul.mubr.msk.bf16.vlgmr.msra.gmra.mrb[216].mxu0 %vm10452_vm2, %v15699_v39 }
0x1348   :  { %v15691_v8 = vpop.f32.mrb[36].mxu1 }
0x1349   :  { %v19475_v22 = vpop.f32.mrb[37].mxu1  ;;  %v15323_v63 = vpop.f32.mrb[192].mxu0 }
0x134a   :  { %v15694_v30 = vpop.f32.mrb[38].mxu1  ;;  %v19427_v51 = vpop.f32.mrb[193].mxu0 }
0x134b   :  { %v19476_v26 = vpop.f32.mrb[39].mxu1  ;;  %v15326_v53 = vpop.f32.mrb[194].mxu0 }
0x134c   :  { %v19428_v49 = vpop.f32.mrb[195].mxu0 }
0x1351   :  { %v15378_v37 = vpop.f32.mrb[196].mxu0 }
0x1352   :  { %v15379_v12 = vadd.f32 %v15378_v37, %v15323_v63  ;;  %v19435_v61 = vpop.f32.mrb[197].mxu0 }
0x1353   :  { %v15381_v24 = vpop.f32.mrb[198].mxu0 }
0x1354   :  { %v19436_v18 = vpop.f32.mrb[199].mxu0 }
0x1359   :  { %v15440_v4 = vpop.f32.mrb[200].mxu0 }
0x135a   :  { %v15446_v47 = vadd.f32 %v15440_v4, %v15379_v12  ;;  %v19443_v62 = vpop.f32.mrb[201].mxu0 }
0x135b   :  { %v15443_v14 = vpop.f32.mrb[202].mxu0 }
0x135c   :  { %v19444_v40 = vpop.f32.mrb[203].mxu0 }
0x1361   :  { %v15503_v17 = vpop.f32.mrb[204].mxu0 }
0x1362   :  { %v15509_v54 = vadd.f32 %v15503_v17, %v15446_v47  ;;  %v19451_v2 = vpop.f32.mrb[205].mxu0 }
0x1363   :  { %v15506_v43 = vpop.f32.mrb[206].mxu0 }
0x1364   :  { %v15511_v50 = vadd.f32 %v15510_v15, %v15509_v54  ;;  %v19452_v23 = vpop.f32.mrb[207].mxu0 }
0x1366   :  { %15513 = vst.msk [vmem:[#allocation5] sm:$0x1] %vm15512_vm4, %v15511_v50 }
0x1369   :  { %v15575_v25 = vpop.f32.mrb[208].mxu0 }
0x136a   :  { %v19459_v13 = vpop.f32.mrb[209].mxu0 }
0x136b   :  { %v15578_v32 = vpop.f32.mrb[210].mxu0 }
0x136c   :  { %v19460_v57 = vpop.f32.mrb[211].mxu0 }
0x1371   :  { %v15630_v31 = vpop.f32.mrb[212].mxu0 }
0x1372   :  { %v15631_v60 = vadd.f32 %v15630_v31, %v15575_v25  ;;  %v19467_v42 = vpop.f32.mrb[213].mxu0 }
0x1373   :  { %v15633_v59 = vpop.f32.mrb[214].mxu0 }
0x1374   :  { %v19468_v3 = vpop.f32.mrb[215].mxu0  ;;  %v15697_v19 = vadd.f32 %v15691_v8, %v15631_v60 }
0x1379   :  { %v15753_v34 = vpop.f32.mrb[216].mxu0 }
0x137a   :  { %v15759_v36 = vadd.f32 %v15753_v34, %v15697_v19  ;;  %v19483_v48 = vpop.f32.mrb[217].mxu0 }
0x137b   :  { %v15756_v29 = vpop.f32.mrb[218].mxu0 }
0x137c   :  { %v15761_v9 = vadd.f32 %v15760_v41, %v15759_v36  ;;  %v19484_v10 = vpop.f32.mrb[219].mxu0 }
0x137e   :  { %15762 = vst.msk [vmem:[#allocation5 + $0x1] sm:$0x1] %vm15512_vm4, %v15761_v9 }
0x137f   :  { %21184 = shalt.err (!%p21181_p4)
}
0x1380   :  { %s21185_s5 = scalar_lea.hbm %s25177_s12, 32 }
0x1381   :  { %p21186_p5 = scmp.ne.s32.totalorder %s25177_s12, %s21185_s5  ;;  %p21189_p6 = scmp.lt.u32.totalorder %s21185_s5, %s25177_s12 }
0x1383   :  { %p21191_p7 = pnand %p21189_p6, %p21186_p5 }
0x1385   :  { %21194 = shalt.err (!%p21191_p7)
}
0x1386   :  { %15772 = dma.vmem_to_hbm [thread:$0]  %s15770_s8, 32, %s25177_s12, [#allocation6]  }
0x1387   :  { %21195 = dma.done.wait [#allocation6], 32  }
0x1388   :  { %21196 = vsyncadd [#allocation6], 4294967264 }
0x1389   :  { %15776 = vsyncpa [#allocation6], 1 }

</bundles_post_ra>
